<compile_context>
chip_gen: v5e
topology: v5e:2x2
jax: 0.10.0
libtpu: 0.0.40
codegen_flags: <defaults>
</compile_context>

<pallas_src>
import functools

import numpy as np
import jax
import jax.numpy as jnp
from jax.experimental import pallas as pl
from jax.experimental.pallas import tpu as pltpu

BN_EPS = 1e-5
MXU_DT = jnp.bfloat16          # MXU operand dtype; all accumulation is f32.


# ----------------------------------------------------------------------------
# In-kernel helpers
# ----------------------------------------------------------------------------
def _bn_relu(z, gamma, beta, eps):
    """Training-mode BatchNorm (batch stats over rows, biased var) + ReLU.

    Affine is folded to a single scale/shift; rsqrt goes to the EUP.
    Centered two-pass variance (no E[z^2]-mu^2 cancellation).
    """
    inv_n = 1.0 / float(z.shape[0])
    mu = jnp.sum(z, axis=0, keepdims=True) * inv_n
    zc = z - mu
    var = jnp.sum(zc * zc, axis=0, keepdims=True) * inv_n
    scale = gamma * jax.lax.rsqrt(var + eps)
    shift = beta - mu * scale
    return jnp.maximum(z * scale + shift, 0.0)


def cnn_fused_kernel(
    cols1_ref, w1_ref, b1_ref, g1_ref, be1_ref,      # layer 1
    sel2_ref, w2_ref, b2_ref, g2_ref, be2_ref,       # layer 2
    sel3_ref, w3_ref, b3_ref, g3_ref, be3_ref,       # layer 3
    wf_ref, bf_ref,                                  # fc1
    out_ref,                                         # output (B, 128)
    a1_ref, a2_ref, a3_ref,                          # VMEM-resident activations
    *, batch, eps,
):
    f32 = jnp.float32

    # ---- layer 1: conv1 as im2col matmul + BN + ReLU -> a1 (B*196, 32) ------
    z1 = jnp.dot(cols1_ref[...], w1_ref[...], preferred_element_type=f32)
    z1 = z1 + b1_ref[...]
    a1_ref[...] = _bn_relu(z1, g1_ref[...], be1_ref[...], eps).astype(a1_ref.dtype)

    # ---- layer 2: conv2 = sum over 9 taps of (gather @ a1) @ W_t ------------
    a1 = a1_ref[...]
    z2 = jnp.zeros((a2_ref.shape[0], w2_ref.shape[2]), f32)
    for t in range(9):
        # sel2[t] is a 0/1 matrix: exact row gather (incl. zero padding) on MXU.
        tap = jnp.dot(sel2_ref[t], a1, preferred_element_type=f32)
        z2 = z2 + jnp.dot(tap.astype(MXU_DT), w2_ref[t], preferred_element_type=f32)
    z2 = z2 + b2_ref[...]
    a2_ref[...] = _bn_relu(z2, g2_ref[...], be2_ref[...], eps).astype(a2_ref.dtype)

    # ---- layer 3 ------------------------------------------------------------
    a2 = a2_ref[...]
    z3 = jnp.zeros((a3_ref.shape[0], w3_ref.shape[2]), f32)
    for t in range(9):
        tap = jnp.dot(sel3_ref[t], a2, preferred_element_type=f32)
        z3 = z3 + jnp.dot(tap.astype(MXU_DT), w3_ref[t], preferred_element_type=f32)
    z3 = z3 + b3_ref[...]
    # a3 rows are ordered (hw, b) -- chosen via sel3 so fc1 needs no transpose.
    a3_ref[...] = _bn_relu(z3, g3_ref[...], be3_ref[...], eps).astype(a3_ref.dtype)

    # ---- fc1: out[b, :] = sum_hw a3[(hw, b), :] @ wf[hw] + bias -------------
    out = jnp.zeros((batch, wf_ref.shape[2]), f32)
    for hw in range(9):
        blk = a3_ref[pl.ds(hw * batch, batch), :]            # (B, 64)
        out = out + jnp.dot(blk, wf_ref[hw], preferred_element_type=f32)
    out_ref[...] = (out + bf_ref[...]).astype(out_ref.dtype)


# ----------------------------------------------------------------------------
# Static (trace-time) constants: per-tap selection matrices and weight folds
# ----------------------------------------------------------------------------
@functools.lru_cache(maxsize=None)
def _selectors(batch):
    """0/1 row-selection matrices implementing the strided, zero-padded 3x3
    patch gathers.

    sel2[t]: (B*49, B*196)  conv2 (14->7, s=2, p=1); output rows ordered (b, ho, wo)
    sel3[t]: (9*B,  B*49)   conv3 ( 7->3, s=3, p=1); output rows ordered (hw, b)
    tap index t = kh*3 + kw; out-of-bounds (padding) inputs -> all-zero row.
    """
    H1 = W1 = 14
    H2 = W2 = 7
    H3 = W3 = 3
    sel2 = np.zeros((9, batch * H2 * W2, batch * H1 * W1), np.float32)
    sel3 = np.zeros((9, H3 * W3 * batch, batch * H2 * W2), np.float32)
    for kh in range(3):
        for kw in range(3):
            t = kh * 3 + kw
            for b in range(batch):
                for ho in range(H2):
                    for wo in range(W2):
                        hi = 2 * ho + kh - 1
                        wi = 2 * wo + kw - 1
                        if 0 <= hi < H1 and 0 <= wi < W1:
                            sel2[t, b * H2 * W2 + ho * W2 + wo,
                                 b * H1 * W1 + hi * W1 + wi] = 1.0
                for ho in range(H3):
                    for wo in range(W3):
                        hi = 3 * ho + kh - 1
                        wi = 3 * wo + kw - 1
                        if 0 <= hi < H2 and 0 <= wi < W2:
                            sel3[t, (ho * W3 + wo) * batch + b,
                                 b * H2 * W2 + hi * W2 + wi] = 1.0
    return sel2, sel3


def _im2col(x_nhwc, k, stride, pad):
    """Layer-1 only (raw input, Cin=1): (B,H,W,C) -> (B*Ho*Wo, k*k*C), cols (kh,kw,C)."""
    B, H, W, C = x_nhwc.shape
    xp = jnp.pad(x_nhwc, ((0, 0), (pad, pad), (pad, pad), (0, 0)))
    Ho = (H + 2 * pad - k) // stride + 1
    Wo = (W + 2 * pad - k) // stride + 1
    patches = [
        xp[:, i : i + stride * Ho : stride, j : j + stride * Wo : stride, :]
        for i in range(k) for j in range(k)
    ]
    cols = jnp.stack(patches, axis=3)              # (B, Ho, Wo, k*k, C)
    return cols.reshape(B * Ho * Wo, k * k * C)


def _full_spec(shape):
    return pl.BlockSpec(shape, lambda: (0,) * len(shape))


# ----------------------------------------------------------------------------
# Forward pass: one fused pallas_call
# ----------------------------------------------------------------------------
def cnn_forward(x_nchw, p):
    B = x_nchw.shape[0]
    f32 = jnp.float32

    # Input layout NCHW -> NHWC (tiny op on the raw input; Cin = 1).
    x = jnp.transpose(x_nchw, (0, 2, 3, 1)).astype(f32)

    # Layer-1 im2col in the wrapper: (B*196, 9), ~14 KB.
    cols1 = _im2col(x, k=3, stride=2, pad=1)

    # Static, weight-side rearrangements (no per-call activation transposes).
    w1 = jnp.transpose(p["c1_w"], (2, 3, 1, 0)).reshape(9, 32)        # (kh*kw*Cin, 32)
    w2 = jnp.transpose(p["c2_w"], (2, 3, 1, 0)).reshape(9, 32, 64)    # per-tap (Cin, Cout)
    w3 = jnp.transpose(p["c3_w"], (2, 3, 1, 0)).reshape(9, 64, 64)
    # fc1 consumes NCHW-flattened features (index c*9 + hw); fold that ordering
    # into per-spatial-position slabs wf[hw, c, o] = fc1_w[o, c*9 + hw].
    wf = jnp.transpose(p["fc1_w"].reshape(128, 64, 9), (2, 1, 0))     # (9, 64, 128)

    sel2_np, sel3_np = _selectors(B)

    args = (
        cols1.astype(MXU_DT),
        w1.astype(MXU_DT),
        p["c1_b"].reshape(1, 32).astype(f32),
        p["n1_g"].reshape(1, 32).astype(f32),
        p["n1_b"].reshape(1, 32).astype(f32),
        jnp.asarray(sel2_np, MXU_DT),
        w2.astype(MXU_DT),
        p["c2_b"].reshape(1, 64).astype(f32),
        p["n2_g"].reshape(1, 64).astype(f32),
        p["n2_b"].reshape(1, 64).astype(f32),
        jnp.asarray(sel3_np, MXU_DT),
        w3.astype(MXU_DT),
        p["c3_b"].reshape(1, 64).astype(f32),
        p["n3_g"].reshape(1, 64).astype(f32),
        p["n3_b"].reshape(1, 64).astype(f32),
        wf.astype(MXU_DT),
        p["fc1_b"].reshape(1, 128).astype(f32),
    )

    kernel = functools.partial(cnn_fused_kernel, batch=B, eps=BN_EPS)
    return pl.pallas_call(
        kernel,
        out_shape=jax.ShapeDtypeStruct((B, 128), f32),
        grid=(),
        in_specs=[_full_spec(a.shape) for a in args],
        out_specs=_full_spec((B, 128)),
        scratch_shapes=[
            pltpu.VMEM((B * 196, 32), MXU_DT),   # a1 (14x14x32)
            pltpu.VMEM((B * 49, 64), MXU_DT),    # a2 (7x7x64)
            pltpu.VMEM((9 * B, 64), MXU_DT),     # a3 (3x3x64), rows ordered (hw, b)
        ],
    )(*args)


# ----------------------------------------------------------------------------
# Deterministic parameter initialization (same shapes as the PyTorch module)
# ----------------------------------------------------------------------------
def init_params(key):
    ks = jax.random.split(key, 8)

    def conv_p(k, cout, cin, ksz):
        kw, kb = jax.random.split(k)
        fan_in = cin * ksz * ksz
        w = jax.random.normal(kw, (cout, cin, ksz, ksz), jnp.float32) * (fan_in ** -0.5)
        b = jax.random.normal(kb, (cout,), jnp.float32) * 0.01
        return w, b

    c1_w, c1_b = conv_p(ks[0], 32, 1, 3)
    c2_w, c2_b = conv_p(ks[1], 64, 32, 3)
    c3_w, c3_b = conv_p(ks[2], 64, 64, 3)
    fc1_w = jax.random.normal(ks[3], (128, 576), jnp.float32) * (576 ** -0.5)
    fc1_b = jax.random.normal(ks[4], (128,), jnp.float32) * 0.01
    return {
        "c1_w": c1_w, "c1_b": c1_b,
        "n1_g": jnp.ones((32,), jnp.float32), "n1_b": jnp.zeros((32,), jnp.float32),
        "c2_w": c2_w, "c2_b": c2_b,
        "n2_g": jnp.ones((64,), jnp.float32), "n2_b": jnp.zeros((64,), jnp.float32),
        "c3_w": c3_w, "c3_b": c3_b,
        "n3_g": jnp.ones((64,), jnp.float32), "n3_b": jnp.zeros((64,), jnp.float32),
        "fc1_w": fc1_w, "fc1_b": fc1_b,
    }


if __name__ == "__main__":
    key = jax.random.PRNGKey(0)
    kx, kp = jax.random.split(key)

    # MNIST-shaped input (spatial 28x28 is fixed by the 576 = 64*3*3 flatten dim).
    x = jax.random.normal(kx, (2, 1, 28, 28), jnp.float32)
    params = init_params(kp)

    out = jax.jit(cnn_forward)(x, params)
    out = jax.block_until_ready(out)
    assert out.shape == (2, 128), out.shape
    assert out.dtype == jnp.float32
    assert bool(jnp.all(jnp.isfinite(out)))
    print("KERNEL_OK")
</pallas_src>

<mosaic_0001>
module attributes {stable_mosaic.version = 11 : i64} {
  func.func @cnn_fused_kernel(%arg0: memref<392x9xbf16, #tpu.memory_space<vmem>>, %arg1: memref<9x32xbf16, #tpu.memory_space<vmem>>, %arg2: memref<1x32xf32, #tpu.memory_space<vmem>>, %arg3: memref<1x32xf32, #tpu.memory_space<vmem>>, %arg4: memref<1x32xf32, #tpu.memory_space<vmem>>, %arg5: memref<9x98x392xbf16, #tpu.memory_space<vmem>>, %arg6: memref<9x32x64xbf16, #tpu.memory_space<vmem>>, %arg7: memref<1x64xf32, #tpu.memory_space<vmem>>, %arg8: memref<1x64xf32, #tpu.memory_space<vmem>>, %arg9: memref<1x64xf32, #tpu.memory_space<vmem>>, %arg10: memref<9x18x98xbf16, #tpu.memory_space<vmem>>, %arg11: memref<9x64x64xbf16, #tpu.memory_space<vmem>>, %arg12: memref<1x64xf32, #tpu.memory_space<vmem>>, %arg13: memref<1x64xf32, #tpu.memory_space<vmem>>, %arg14: memref<1x64xf32, #tpu.memory_space<vmem>>, %arg15: memref<9x64x128xbf16, #tpu.memory_space<vmem>>, %arg16: memref<1x128xf32, #tpu.memory_space<vmem>>, %arg17: memref<2x128xf32, #tpu.memory_space<vmem>>, %arg18: memref<392x32xbf16, #tpu.memory_space<vmem>>, %arg19: memref<98x64xbf16, #tpu.memory_space<vmem>>, %arg20: memref<18x64xbf16, #tpu.memory_space<vmem>>) attributes {dimension_semantics = [], scalar_prefetch = 0 : i64, scratch_operands = 3 : i64, tpu.core_type = #tpu.core_type<tc>} {
    %c0 = arith.constant 0 : index
    %c0_0 = arith.constant 0 : index
    %0 = vector.load %arg0[%c0, %c0_0] : memref<392x9xbf16, #tpu.memory_space<vmem>>, vector<392x9xbf16>
    %c0_1 = arith.constant 0 : index
    %c0_2 = arith.constant 0 : index
    %1 = vector.load %arg1[%c0_1, %c0_2] : memref<9x32xbf16, #tpu.memory_space<vmem>>, vector<9x32xbf16>
    %cst = arith.constant dense<0.000000e+00> : vector<392x32xf32>
    %2 = tpu.matmul %0, %1, %cst {dimension_numbers = #tpu.dot_dimension_numbers<[1], [0], [0], [1], [0, 0, 1, 1], [], []>} : vector<392x9xbf16>, vector<9x32xbf16>, vector<392x32xf32> -> vector<392x32xf32>
    %c0_3 = arith.constant 0 : index
    %c0_4 = arith.constant 0 : index
    %3 = vector.load %arg2[%c0_3, %c0_4] : memref<1x32xf32, #tpu.memory_space<vmem>>, vector<1x32xf32>
    %4 = vector.broadcast %3 : vector<1x32xf32> to vector<392x32xf32>
    %5 = arith.addf %2, %4 : vector<392x32xf32>
    %c0_5 = arith.constant 0 : index
    %c0_6 = arith.constant 0 : index
    %6 = vector.load %arg3[%c0_5, %c0_6] : memref<1x32xf32, #tpu.memory_space<vmem>>, vector<1x32xf32>
    %c0_7 = arith.constant 0 : index
    %c0_8 = arith.constant 0 : index
    %7 = vector.load %arg4[%c0_7, %c0_8] : memref<1x32xf32, #tpu.memory_space<vmem>>, vector<1x32xf32>
    %cst_9 = arith.constant dense<0.000000e+00> : vector<32xf32>
    %8 = vector.multi_reduction <add>, %5, %cst_9 [0] : vector<392x32xf32> to vector<32xf32>
    %9 = vector.shape_cast %8 : vector<32xf32> to vector<1x32xf32>
    %cst_10 = arith.constant 0.00255102036 : f32
    %10 = vector.broadcast %cst_10 : f32 to vector<1x32xf32>
    %11 = arith.mulf %9, %10 : vector<1x32xf32>
    %12 = vector.broadcast %11 : vector<1x32xf32> to vector<392x32xf32>
    %13 = arith.subf %5, %12 : vector<392x32xf32>
    %14 = arith.mulf %13, %13 : vector<392x32xf32>
    %cst_11 = arith.constant dense<0.000000e+00> : vector<32xf32>
    %15 = vector.multi_reduction <add>, %14, %cst_11 [0] : vector<392x32xf32> to vector<32xf32>
    %16 = vector.shape_cast %15 : vector<32xf32> to vector<1x32xf32>
    %cst_12 = arith.constant 0.00255102036 : f32
    %17 = vector.broadcast %cst_12 : f32 to vector<1x32xf32>
    %18 = arith.mulf %16, %17 : vector<1x32xf32>
    %cst_13 = arith.constant 9.99999974E-6 : f32
    %19 = vector.broadcast %cst_13 : f32 to vector<1x32xf32>
    %20 = arith.addf %18, %19 : vector<1x32xf32>
    %21 = math.rsqrt %20 : vector<1x32xf32>
    %22 = arith.mulf %6, %21 : vector<1x32xf32>
    %23 = arith.mulf %11, %22 : vector<1x32xf32>
    %24 = arith.subf %7, %23 : vector<1x32xf32>
    %25 = vector.broadcast %22 : vector<1x32xf32> to vector<392x32xf32>
    %26 = arith.mulf %5, %25 : vector<392x32xf32>
    %27 = vector.broadcast %24 : vector<1x32xf32> to vector<392x32xf32>
    %28 = arith.addf %26, %27 : vector<392x32xf32>
    %cst_14 = arith.constant 0.000000e+00 : f32
    %29 = vector.broadcast %cst_14 : f32 to vector<392x32xf32>
    %30 = arith.maximumf %28, %29 : vector<392x32xf32>
    %31 = arith.truncf %30 : vector<392x32xf32> to vector<392x32xbf16>
    %c0_15 = arith.constant 0 : index
    %c0_16 = arith.constant 0 : index
    %32 = vector.load %arg18[%c0_15, %c0_16] : memref<392x32xbf16, #tpu.memory_space<vmem>>, vector<392x32xbf16>
    tpu.vector_store %arg18[%c0_15, %c0_16], %31 {strides = array<i32>} : memref<392x32xbf16, #tpu.memory_space<vmem>>, vector<392x32xbf16>,
    %c0_17 = arith.constant 0 : index
    %c0_18 = arith.constant 0 : index
    %33 = vector.load %arg18[%c0_17, %c0_18] : memref<392x32xbf16, #tpu.memory_space<vmem>>, vector<392x32xbf16>
    %cst_19 = arith.constant 0.000000e+00 : f32
    %34 = vector.broadcast %cst_19 : f32 to vector<98x64xf32>
    %c0_20 = arith.constant 0 : index
    %c0_21 = arith.constant 0 : index
    %c0_22 = arith.constant 0 : index
    %35 = vector.load %arg5[%c0_20, %c0_21, %c0_22] : memref<9x98x392xbf16, #tpu.memory_space<vmem>>, vector<1x98x392xbf16>
    %36 = vector.shape_cast %35 : vector<1x98x392xbf16> to vector<98x392xbf16>
    %cst_23 = arith.constant dense<0.000000e+00> : vector<98x32xf32>
    %37 = tpu.matmul %36, %33, %cst_23 {dimension_numbers = #tpu.dot_dimension_numbers<[1], [0], [0], [1], [0, 0, 1, 1], [], []>} : vector<98x392xbf16>, vector<392x32xbf16>, vector<98x32xf32> -> vector<98x32xf32>
    %38 = arith.truncf %37 : vector<98x32xf32> to vector<98x32xbf16>
    %c0_24 = arith.constant 0 : index
    %c0_25 = arith.constant 0 : index
    %c0_26 = arith.constant 0 : index
    %39 = vector.load %arg6[%c0_24, %c0_25, %c0_26] : memref<9x32x64xbf16, #tpu.memory_space<vmem>>, vector<1x32x64xbf16>
    %40 = vector.shape_cast %39 : vector<1x32x64xbf16> to vector<32x64xbf16>
    %cst_27 = arith.constant dense<0.000000e+00> : vector<98x64xf32>
    %41 = tpu.matmul %38, %40, %cst_27 {dimension_numbers = #tpu.dot_dimension_numbers<[1], [0], [0], [1], [0, 0, 1, 1], [], []>} : vector<98x32xbf16>, vector<32x64xbf16>, vector<98x64xf32> -> vector<98x64xf32>
    %42 = arith.addf %34, %41 : vector<98x64xf32>
    %c1 = arith.constant 1 : index
    %c0_28 = arith.constant 0 : index
    %c0_29 = arith.constant 0 : index
    %43 = vector.load %arg5[%c1, %c0_28, %c0_29] : memref<9x98x392xbf16, #tpu.memory_space<vmem>>, vector<1x98x392xbf16>
    %44 = vector.shape_cast %43 : vector<1x98x392xbf16> to vector<98x392xbf16>
    %cst_30 = arith.constant dense<0.000000e+00> : vector<98x32xf32>
    %45 = tpu.matmul %44, %33, %cst_30 {dimension_numbers = #tpu.dot_dimension_numbers<[1], [0], [0], [1], [0, 0, 1, 1], [], []>} : vector<98x392xbf16>, vector<392x32xbf16>, vector<98x32xf32> -> vector<98x32xf32>
    %46 = arith.truncf %45 : vector<98x32xf32> to vector<98x32xbf16>
    %c1_31 = arith.constant 1 : index
    %c0_32 = arith.constant 0 : index
    %c0_33 = arith.constant 0 : index
    %47 = vector.load %arg6[%c1_31, %c0_32, %c0_33] : memref<9x32x64xbf16, #tpu.memory_space<vmem>>, vector<1x32x64xbf16>
    %48 = vector.shape_cast %47 : vector<1x32x64xbf16> to vector<32x64xbf16>
    %cst_34 = arith.constant dense<0.000000e+00> : vector<98x64xf32>
    %49 = tpu.matmul %46, %48, %cst_34 {dimension_numbers = #tpu.dot_dimension_numbers<[1], [0], [0], [1], [0, 0, 1, 1], [], []>} : vector<98x32xbf16>, vector<32x64xbf16>, vector<98x64xf32> -> vector<98x64xf32>
    %50 = arith.addf %42, %49 : vector<98x64xf32>
    %c2 = arith.constant 2 : index
    %c0_35 = arith.constant 0 : index
    %c0_36 = arith.constant 0 : index
    %51 = vector.load %arg5[%c2, %c0_35, %c0_36] : memref<9x98x392xbf16, #tpu.memory_space<vmem>>, vector<1x98x392xbf16>
    %52 = vector.shape_cast %51 : vector<1x98x392xbf16> to vector<98x392xbf16>
    %cst_37 = arith.constant dense<0.000000e+00> : vector<98x32xf32>
    %53 = tpu.matmul %52, %33, %cst_37 {dimension_numbers = #tpu.dot_dimension_numbers<[1], [0], [0], [1], [0, 0, 1, 1], [], []>} : vector<98x392xbf16>, vector<392x32xbf16>, vector<98x32xf32> -> vector<98x32xf32>
    %54 = arith.truncf %53 : vector<98x32xf32> to vector<98x32xbf16>
    %c2_38 = arith.constant 2 : index
    %c0_39 = arith.constant 0 : index
    %c0_40 = arith.constant 0 : index
    %55 = vector.load %arg6[%c2_38, %c0_39, %c0_40] : memref<9x32x64xbf16, #tpu.memory_space<vmem>>, vector<1x32x64xbf16>
    %56 = vector.shape_cast %55 : vector<1x32x64xbf16> to vector<32x64xbf16>
    %cst_41 = arith.constant dense<0.000000e+00> : vector<98x64xf32>
    %57 = tpu.matmul %54, %56, %cst_41 {dimension_numbers = #tpu.dot_dimension_numbers<[1], [0], [0], [1], [0, 0, 1, 1], [], []>} : vector<98x32xbf16>, vector<32x64xbf16>, vector<98x64xf32> -> vector<98x64xf32>
    %58 = arith.addf %50, %57 : vector<98x64xf32>
    %c3 = arith.constant 3 : index
    %c0_42 = arith.constant 0 : index
    %c0_43 = arith.constant 0 : index
    %59 = vector.load %arg5[%c3, %c0_42, %c0_43] : memref<9x98x392xbf16, #tpu.memory_space<vmem>>, vector<1x98x392xbf16>
    %60 = vector.shape_cast %59 : vector<1x98x392xbf16> to vector<98x392xbf16>
    %cst_44 = arith.constant dense<0.000000e+00> : vector<98x32xf32>
    %61 = tpu.matmul %60, %33, %cst_44 {dimension_numbers = #tpu.dot_dimension_numbers<[1], [0], [0], [1], [0, 0, 1, 1], [], []>} : vector<98x392xbf16>, vector<392x32xbf16>, vector<98x32xf32> -> vector<98x32xf32>
    %62 = arith.truncf %61 : vector<98x32xf32> to vector<98x32xbf16>
    %c3_45 = arith.constant 3 : index
    %c0_46 = arith.constant 0 : index
    %c0_47 = arith.constant 0 : index
    %63 = vector.load %arg6[%c3_45, %c0_46, %c0_47] : memref<9x32x64xbf16, #tpu.memory_space<vmem>>, vector<1x32x64xbf16>
    %64 = vector.shape_cast %63 : vector<1x32x64xbf16> to vector<32x64xbf16>
    %cst_48 = arith.constant dense<0.000000e+00> : vector<98x64xf32>
    %65 = tpu.matmul %62, %64, %cst_48 {dimension_numbers = #tpu.dot_dimension_numbers<[1], [0], [0], [1], [0, 0, 1, 1], [], []>} : vector<98x32xbf16>, vector<32x64xbf16>, vector<98x64xf32> -> vector<98x64xf32>
    %66 = arith.addf %58, %65 : vector<98x64xf32>
    %c4 = arith.constant 4 : index
    %c0_49 = arith.constant 0 : index
    %c0_50 = arith.constant 0 : index
    %67 = vector.load %arg5[%c4, %c0_49, %c0_50] : memref<9x98x392xbf16, #tpu.memory_space<vmem>>, vector<1x98x392xbf16>
    %68 = vector.shape_cast %67 : vector<1x98x392xbf16> to vector<98x392xbf16>
    %cst_51 = arith.constant dense<0.000000e+00> : vector<98x32xf32>
    %69 = tpu.matmul %68, %33, %cst_51 {dimension_numbers = #tpu.dot_dimension_numbers<[1], [0], [0], [1], [0, 0, 1, 1], [], []>} : vector<98x392xbf16>, vector<392x32xbf16>, vector<98x32xf32> -> vector<98x32xf32>
    %70 = arith.truncf %69 : vector<98x32xf32> to vector<98x32xbf16>
    %c4_52 = arith.constant 4 : index
    %c0_53 = arith.constant 0 : index
    %c0_54 = arith.constant 0 : index
    %71 = vector.load %arg6[%c4_52, %c0_53, %c0_54] : memref<9x32x64xbf16, #tpu.memory_space<vmem>>, vector<1x32x64xbf16>
    %72 = vector.shape_cast %71 : vector<1x32x64xbf16> to vector<32x64xbf16>
    %cst_55 = arith.constant dense<0.000000e+00> : vector<98x64xf32>
    %73 = tpu.matmul %70, %72, %cst_55 {dimension_numbers = #tpu.dot_dimension_numbers<[1], [0], [0], [1], [0, 0, 1, 1], [], []>} : vector<98x32xbf16>, vector<32x64xbf16>, vector<98x64xf32> -> vector<98x64xf32>
    %74 = arith.addf %66, %73 : vector<98x64xf32>
    %c5 = arith.constant 5 : index
    %c0_56 = arith.constant 0 : index
    %c0_57 = arith.constant 0 : index
    %75 = vector.load %arg5[%c5, %c0_56, %c0_57] : memref<9x98x392xbf16, #tpu.memory_space<vmem>>, vector<1x98x392xbf16>
    %76 = vector.shape_cast %75 : vector<1x98x392xbf16> to vector<98x392xbf16>
    %cst_58 = arith.constant dense<0.000000e+00> : vector<98x32xf32>
    %77 = tpu.matmul %76, %33, %cst_58 {dimension_numbers = #tpu.dot_dimension_numbers<[1], [0], [0], [1], [0, 0, 1, 1], [], []>} : vector<98x392xbf16>, vector<392x32xbf16>, vector<98x32xf32> -> vector<98x32xf32>
    %78 = arith.truncf %77 : vector<98x32xf32> to vector<98x32xbf16>
    %c5_59 = arith.constant 5 : index
    %c0_60 = arith.constant 0 : index
    %c0_61 = arith.constant 0 : index
    %79 = vector.load %arg6[%c5_59, %c0_60, %c0_61] : memref<9x32x64xbf16, #tpu.memory_space<vmem>>, vector<1x32x64xbf16>
    %80 = vector.shape_cast %79 : vector<1x32x64xbf16> to vector<32x64xbf16>
    %cst_62 = arith.constant dense<0.000000e+00> : vector<98x64xf32>
    %81 = tpu.matmul %78, %80, %cst_62 {dimension_numbers = #tpu.dot_dimension_numbers<[1], [0], [0], [1], [0, 0, 1, 1], [], []>} : vector<98x32xbf16>, vector<32x64xbf16>, vector<98x64xf32> -> vector<98x64xf32>
    %82 = arith.addf %74, %81 : vector<98x64xf32>
    %c6 = arith.constant 6 : index
    %c0_63 = arith.constant 0 : index
    %c0_64 = arith.constant 0 : index
    %83 = vector.load %arg5[%c6, %c0_63, %c0_64] : memref<9x98x392xbf16, #tpu.memory_space<vmem>>, vector<1x98x392xbf16>
    %84 = vector.shape_cast %83 : vector<1x98x392xbf16> to vector<98x392xbf16>
    %cst_65 = arith.constant dense<0.000000e+00> : vector<98x32xf32>
    %85 = tpu.matmul %84, %33, %cst_65 {dimension_numbers = #tpu.dot_dimension_numbers<[1], [0], [0], [1], [0, 0, 1, 1], [], []>} : vector<98x392xbf16>, vector<392x32xbf16>, vector<98x32xf32> -> vector<98x32xf32>
    %86 = arith.truncf %85 : vector<98x32xf32> to vector<98x32xbf16>
    %c6_66 = arith.constant 6 : index
    %c0_67 = arith.constant 0 : index
    %c0_68 = arith.constant 0 : index
    %87 = vector.load %arg6[%c6_66, %c0_67, %c0_68] : memref<9x32x64xbf16, #tpu.memory_space<vmem>>, vector<1x32x64xbf16>
    %88 = vector.shape_cast %87 : vector<1x32x64xbf16> to vector<32x64xbf16>
    %cst_69 = arith.constant dense<0.000000e+00> : vector<98x64xf32>
    %89 = tpu.matmul %86, %88, %cst_69 {dimension_numbers = #tpu.dot_dimension_numbers<[1], [0], [0], [1], [0, 0, 1, 1], [], []>} : vector<98x32xbf16>, vector<32x64xbf16>, vector<98x64xf32> -> vector<98x64xf32>
    %90 = arith.addf %82, %89 : vector<98x64xf32>
    %c7 = arith.constant 7 : index
    %c0_70 = arith.constant 0 : index
    %c0_71 = arith.constant 0 : index
    %91 = vector.load %arg5[%c7, %c0_70, %c0_71] : memref<9x98x392xbf16, #tpu.memory_space<vmem>>, vector<1x98x392xbf16>
    %92 = vector.shape_cast %91 : vector<1x98x392xbf16> to vector<98x392xbf16>
    %cst_72 = arith.constant dense<0.000000e+00> : vector<98x32xf32>
    %93 = tpu.matmul %92, %33, %cst_72 {dimension_numbers = #tpu.dot_dimension_numbers<[1], [0], [0], [1], [0, 0, 1, 1], [], []>} : vector<98x392xbf16>, vector<392x32xbf16>, vector<98x32xf32> -> vector<98x32xf32>
    %94 = arith.truncf %93 : vector<98x32xf32> to vector<98x32xbf16>
    %c7_73 = arith.constant 7 : index
    %c0_74 = arith.constant 0 : index
    %c0_75 = arith.constant 0 : index
    %95 = vector.load %arg6[%c7_73, %c0_74, %c0_75] : memref<9x32x64xbf16, #tpu.memory_space<vmem>>, vector<1x32x64xbf16>
    %96 = vector.shape_cast %95 : vector<1x32x64xbf16> to vector<32x64xbf16>
    %cst_76 = arith.constant dense<0.000000e+00> : vector<98x64xf32>
    %97 = tpu.matmul %94, %96, %cst_76 {dimension_numbers = #tpu.dot_dimension_numbers<[1], [0], [0], [1], [0, 0, 1, 1], [], []>} : vector<98x32xbf16>, vector<32x64xbf16>, vector<98x64xf32> -> vector<98x64xf32>
    %98 = arith.addf %90, %97 : vector<98x64xf32>
    %c8 = arith.constant 8 : index
    %c0_77 = arith.constant 0 : index
    %c0_78 = arith.constant 0 : index
    %99 = vector.load %arg5[%c8, %c0_77, %c0_78] : memref<9x98x392xbf16, #tpu.memory_space<vmem>>, vector<1x98x392xbf16>
    %100 = vector.shape_cast %99 : vector<1x98x392xbf16> to vector<98x392xbf16>
    %cst_79 = arith.constant dense<0.000000e+00> : vector<98x32xf32>
    %101 = tpu.matmul %100, %33, %cst_79 {dimension_numbers = #tpu.dot_dimension_numbers<[1], [0], [0], [1], [0, 0, 1, 1], [], []>} : vector<98x392xbf16>, vector<392x32xbf16>, vector<98x32xf32> -> vector<98x32xf32>
    %102 = arith.truncf %101 : vector<98x32xf32> to vector<98x32xbf16>
    %c8_80 = arith.constant 8 : index
    %c0_81 = arith.constant 0 : index
    %c0_82 = arith.constant 0 : index
    %103 = vector.load %arg6[%c8_80, %c0_81, %c0_82] : memref<9x32x64xbf16, #tpu.memory_space<vmem>>, vector<1x32x64xbf16>
    %104 = vector.shape_cast %103 : vector<1x32x64xbf16> to vector<32x64xbf16>
    %cst_83 = arith.constant dense<0.000000e+00> : vector<98x64xf32>
    %105 = tpu.matmul %102, %104, %cst_83 {dimension_numbers = #tpu.dot_dimension_numbers<[1], [0], [0], [1], [0, 0, 1, 1], [], []>} : vector<98x32xbf16>, vector<32x64xbf16>, vector<98x64xf32> -> vector<98x64xf32>
    %106 = arith.addf %98, %105 : vector<98x64xf32>
    %c0_84 = arith.constant 0 : index
    %c0_85 = arith.constant 0 : index
    %107 = vector.load %arg7[%c0_84, %c0_85] : memref<1x64xf32, #tpu.memory_space<vmem>>, vector<1x64xf32>
    %108 = vector.broadcast %107 : vector<1x64xf32> to vector<98x64xf32>
    %109 = arith.addf %106, %108 : vector<98x64xf32>
    %c0_86 = arith.constant 0 : index
    %c0_87 = arith.constant 0 : index
    %110 = vector.load %arg8[%c0_86, %c0_87] : memref<1x64xf32, #tpu.memory_space<vmem>>, vector<1x64xf32>
    %c0_88 = arith.constant 0 : index
    %c0_89 = arith.constant 0 : index
    %111 = vector.load %arg9[%c0_88, %c0_89] : memref<1x64xf32, #tpu.memory_space<vmem>>, vector<1x64xf32>
    %cst_90 = arith.constant dense<0.000000e+00> : vector<64xf32>
    %112 = vector.multi_reduction <add>, %109, %cst_90 [0] : vector<98x64xf32> to vector<64xf32>
    %113 = vector.shape_cast %112 : vector<64xf32> to vector<1x64xf32>
    %cst_91 = arith.constant 0.0102040814 : f32
    %114 = vector.broadcast %cst_91 : f32 to vector<1x64xf32>
    %115 = arith.mulf %113, %114 : vector<1x64xf32>
    %116 = vector.broadcast %115 : vector<1x64xf32> to vector<98x64xf32>
    %117 = arith.subf %109, %116 : vector<98x64xf32>
    %118 = arith.mulf %117, %117 : vector<98x64xf32>
    %cst_92 = arith.constant dense<0.000000e+00> : vector<64xf32>
    %119 = vector.multi_reduction <add>, %118, %cst_92 [0] : vector<98x64xf32> to vector<64xf32>
    %120 = vector.shape_cast %119 : vector<64xf32> to vector<1x64xf32>
    %cst_93 = arith.constant 0.0102040814 : f32
    %121 = vector.broadcast %cst_93 : f32 to vector<1x64xf32>
    %122 = arith.mulf %120, %121 : vector<1x64xf32>
    %cst_94 = arith.constant 9.99999974E-6 : f32
    %123 = vector.broadcast %cst_94 : f32 to vector<1x64xf32>
    %124 = arith.addf %122, %123 : vector<1x64xf32>
    %125 = math.rsqrt %124 : vector<1x64xf32>
    %126 = arith.mulf %110, %125 : vector<1x64xf32>
    %127 = arith.mulf %115, %126 : vector<1x64xf32>
    %128 = arith.subf %111, %127 : vector<1x64xf32>
    %129 = vector.broadcast %126 : vector<1x64xf32> to vector<98x64xf32>
    %130 = arith.mulf %109, %129 : vector<98x64xf32>
    %131 = vector.broadcast %128 : vector<1x64xf32> to vector<98x64xf32>
    %132 = arith.addf %130, %131 : vector<98x64xf32>
    %cst_95 = arith.constant 0.000000e+00 : f32
    %133 = vector.broadcast %cst_95 : f32 to vector<98x64xf32>
    %134 = arith.maximumf %132, %133 : vector<98x64xf32>
    %135 = arith.truncf %134 : vector<98x64xf32> to vector<98x64xbf16>
    %c0_96 = arith.constant 0 : index
    %c0_97 = arith.constant 0 : index
    %136 = vector.load %arg19[%c0_96, %c0_97] : memref<98x64xbf16, #tpu.memory_space<vmem>>, vector<98x64xbf16>
    tpu.vector_store %arg19[%c0_96, %c0_97], %135 {strides = array<i32>} : memref<98x64xbf16, #tpu.memory_space<vmem>>, vector<98x64xbf16>,
    %c0_98 = arith.constant 0 : index
    %c0_99 = arith.constant 0 : index
    %137 = vector.load %arg19[%c0_98, %c0_99] : memref<98x64xbf16, #tpu.memory_space<vmem>>, vector<98x64xbf16>
    %cst_100 = arith.constant 0.000000e+00 : f32
    %138 = vector.broadcast %cst_100 : f32 to vector<18x64xf32>
    %c0_101 = arith.constant 0 : index
    %c0_102 = arith.constant 0 : index
    %c0_103 = arith.constant 0 : index
    %139 = vector.load %arg10[%c0_101, %c0_102, %c0_103] : memref<9x18x98xbf16, #tpu.memory_space<vmem>>, vector<1x18x98xbf16>
    %140 = vector.shape_cast %139 : vector<1x18x98xbf16> to vector<18x98xbf16>
    %cst_104 = arith.constant dense<0.000000e+00> : vector<18x64xf32>
    %141 = tpu.matmul %140, %137, %cst_104 {dimension_numbers = #tpu.dot_dimension_numbers<[1], [0], [0], [1], [0, 0, 1, 1], [], []>} : vector<18x98xbf16>, vector<98x64xbf16>, vector<18x64xf32> -> vector<18x64xf32>
    %142 = arith.truncf %141 : vector<18x64xf32> to vector<18x64xbf16>
    %c0_105 = arith.constant 0 : index
    %c0_106 = arith.constant 0 : index
    %c0_107 = arith.constant 0 : index
    %143 = vector.load %arg11[%c0_105, %c0_106, %c0_107] : memref<9x64x64xbf16, #tpu.memory_space<vmem>>, vector<1x64x64xbf16>
    %144 = vector.shape_cast %143 : vector<1x64x64xbf16> to vector<64x64xbf16>
    %cst_108 = arith.constant dense<0.000000e+00> : vector<18x64xf32>
    %145 = tpu.matmul %142, %144, %cst_108 {dimension_numbers = #tpu.dot_dimension_numbers<[1], [0], [0], [1], [0, 0, 1, 1], [], []>} : vector<18x64xbf16>, vector<64x64xbf16>, vector<18x64xf32> -> vector<18x64xf32>
    %146 = arith.addf %138, %145 : vector<18x64xf32>
    %c1_109 = arith.constant 1 : index
    %c0_110 = arith.constant 0 : index
    %c0_111 = arith.constant 0 : index
    %147 = vector.load %arg10[%c1_109, %c0_110, %c0_111] : memref<9x18x98xbf16, #tpu.memory_space<vmem>>, vector<1x18x98xbf16>
    %148 = vector.shape_cast %147 : vector<1x18x98xbf16> to vector<18x98xbf16>
    %cst_112 = arith.constant dense<0.000000e+00> : vector<18x64xf32>
    %149 = tpu.matmul %148, %137, %cst_112 {dimension_numbers = #tpu.dot_dimension_numbers<[1], [0], [0], [1], [0, 0, 1, 1], [], []>} : vector<18x98xbf16>, vector<98x64xbf16>, vector<18x64xf32> -> vector<18x64xf32>
    %150 = arith.truncf %149 : vector<18x64xf32> to vector<18x64xbf16>
    %c1_113 = arith.constant 1 : index
    %c0_114 = arith.constant 0 : index
    %c0_115 = arith.constant 0 : index
    %151 = vector.load %arg11[%c1_113, %c0_114, %c0_115] : memref<9x64x64xbf16, #tpu.memory_space<vmem>>, vector<1x64x64xbf16>
    %152 = vector.shape_cast %151 : vector<1x64x64xbf16> to vector<64x64xbf16>
    %cst_116 = arith.constant dense<0.000000e+00> : vector<18x64xf32>
    %153 = tpu.matmul %150, %152, %cst_116 {dimension_numbers = #tpu.dot_dimension_numbers<[1], [0], [0], [1], [0, 0, 1, 1], [], []>} : vector<18x64xbf16>, vector<64x64xbf16>, vector<18x64xf32> -> vector<18x64xf32>
    %154 = arith.addf %146, %153 : vector<18x64xf32>
    %c2_117 = arith.constant 2 : index
    %c0_118 = arith.constant 0 : index
    %c0_119 = arith.constant 0 : index
    %155 = vector.load %arg10[%c2_117, %c0_118, %c0_119] : memref<9x18x98xbf16, #tpu.memory_space<vmem>>, vector<1x18x98xbf16>
    %156 = vector.shape_cast %155 : vector<1x18x98xbf16> to vector<18x98xbf16>
    %cst_120 = arith.constant dense<0.000000e+00> : vector<18x64xf32>
    %157 = tpu.matmul %156, %137, %cst_120 {dimension_numbers = #tpu.dot_dimension_numbers<[1], [0], [0], [1], [0, 0, 1, 1], [], []>} : vector<18x98xbf16>, vector<98x64xbf16>, vector<18x64xf32> -> vector<18x64xf32>
    %158 = arith.truncf %157 : vector<18x64xf32> to vector<18x64xbf16>
    %c2_121 = arith.constant 2 : index
    %c0_122 = arith.constant 0 : index
    %c0_123 = arith.constant 0 : index
    %159 = vector.load %arg11[%c2_121, %c0_122, %c0_123] : memref<9x64x64xbf16, #tpu.memory_space<vmem>>, vector<1x64x64xbf16>
    %160 = vector.shape_cast %159 : vector<1x64x64xbf16> to vector<64x64xbf16>
    %cst_124 = arith.constant dense<0.000000e+00> : vector<18x64xf32>
    %161 = tpu.matmul %158, %160, %cst_124 {dimension_numbers = #tpu.dot_dimension_numbers<[1], [0], [0], [1], [0, 0, 1, 1], [], []>} : vector<18x64xbf16>, vector<64x64xbf16>, vector<18x64xf32> -> vector<18x64xf32>
    %162 = arith.addf %154, %161 : vector<18x64xf32>
    %c3_125 = arith.constant 3 : index
    %c0_126 = arith.constant 0 : index
    %c0_127 = arith.constant 0 : index
    %163 = vector.load %arg10[%c3_125, %c0_126, %c0_127] : memref<9x18x98xbf16, #tpu.memory_space<vmem>>, vector<1x18x98xbf16>
    %164 = vector.shape_cast %163 : vector<1x18x98xbf16> to vector<18x98xbf16>
    %cst_128 = arith.constant dense<0.000000e+00> : vector<18x64xf32>
    %165 = tpu.matmul %164, %137, %cst_128 {dimension_numbers = #tpu.dot_dimension_numbers<[1], [0], [0], [1], [0, 0, 1, 1], [], []>} : vector<18x98xbf16>, vector<98x64xbf16>, vector<18x64xf32> -> vector<18x64xf32>
    %166 = arith.truncf %165 : vector<18x64xf32> to vector<18x64xbf16>
    %c3_129 = arith.constant 3 : index
    %c0_130 = arith.constant 0 : index
    %c0_131 = arith.constant 0 : index
    %167 = vector.load %arg11[%c3_129, %c0_130, %c0_131] : memref<9x64x64xbf16, #tpu.memory_space<vmem>>, vector<1x64x64xbf16>
    %168 = vector.shape_cast %167 : vector<1x64x64xbf16> to vector<64x64xbf16>
    %cst_132 = arith.constant dense<0.000000e+00> : vector<18x64xf32>
    %169 = tpu.matmul %166, %168, %cst_132 {dimension_numbers = #tpu.dot_dimension_numbers<[1], [0], [0], [1], [0, 0, 1, 1], [], []>} : vector<18x64xbf16>, vector<64x64xbf16>, vector<18x64xf32> -> vector<18x64xf32>
    %170 = arith.addf %162, %169 : vector<18x64xf32>
    %c4_133 = arith.constant 4 : index
    %c0_134 = arith.constant 0 : index
    %c0_135 = arith.constant 0 : index
    %171 = vector.load %arg10[%c4_133, %c0_134, %c0_135] : memref<9x18x98xbf16, #tpu.memory_space<vmem>>, vector<1x18x98xbf16>
    %172 = vector.shape_cast %171 : vector<1x18x98xbf16> to vector<18x98xbf16>
    %cst_136 = arith.constant dense<0.000000e+00> : vector<18x64xf32>
    %173 = tpu.matmul %172, %137, %cst_136 {dimension_numbers = #tpu.dot_dimension_numbers<[1], [0], [0], [1], [0, 0, 1, 1], [], []>} : vector<18x98xbf16>, vector<98x64xbf16>, vector<18x64xf32> -> vector<18x64xf32>
    %174 = arith.truncf %173 : vector<18x64xf32> to vector<18x64xbf16>
    %c4_137 = arith.constant 4 : index
    %c0_138 = arith.constant 0 : index
    %c0_139 = arith.constant 0 : index
    %175 = vector.load %arg11[%c4_137, %c0_138, %c0_139] : memref<9x64x64xbf16, #tpu.memory_space<vmem>>, vector<1x64x64xbf16>
    %176 = vector.shape_cast %175 : vector<1x64x64xbf16> to vector<64x64xbf16>
    %cst_140 = arith.constant dense<0.000000e+00> : vector<18x64xf32>
    %177 = tpu.matmul %174, %176, %cst_140 {dimension_numbers = #tpu.dot_dimension_numbers<[1], [0], [0], [1], [0, 0, 1, 1], [], []>} : vector<18x64xbf16>, vector<64x64xbf16>, vector<18x64xf32> -> vector<18x64xf32>
    %178 = arith.addf %170, %177 : vector<18x64xf32>
    %c5_141 = arith.constant 5 : index
    %c0_142 = arith.constant 0 : index
    %c0_143 = arith.constant 0 : index
    %179 = vector.load %arg10[%c5_141, %c0_142, %c0_143] : memref<9x18x98xbf16, #tpu.memory_space<vmem>>, vector<1x18x98xbf16>
    %180 = vector.shape_cast %179 : vector<1x18x98xbf16> to vector<18x98xbf16>
    %cst_144 = arith.constant dense<0.000000e+00> : vector<18x64xf32>
    %181 = tpu.matmul %180, %137, %cst_144 {dimension_numbers = #tpu.dot_dimension_numbers<[1], [0], [0], [1], [0, 0, 1, 1], [], []>} : vector<18x98xbf16>, vector<98x64xbf16>, vector<18x64xf32> -> vector<18x64xf32>
    %182 = arith.truncf %181 : vector<18x64xf32> to vector<18x64xbf16>
    %c5_145 = arith.constant 5 : index
    %c0_146 = arith.constant 0 : index
    %c0_147 = arith.constant 0 : index
    %183 = vector.load %arg11[%c5_145, %c0_146, %c0_147] : memref<9x64x64xbf16, #tpu.memory_space<vmem>>, vector<1x64x64xbf16>
    %184 = vector.shape_cast %183 : vector<1x64x64xbf16> to vector<64x64xbf16>
    %cst_148 = arith.constant dense<0.000000e+00> : vector<18x64xf32>
    %185 = tpu.matmul %182, %184, %cst_148 {dimension_numbers = #tpu.dot_dimension_numbers<[1], [0], [0], [1], [0, 0, 1, 1], [], []>} : vector<18x64xbf16>, vector<64x64xbf16>, vector<18x64xf32> -> vector<18x64xf32>
    %186 = arith.addf %178, %185 : vector<18x64xf32>
    %c6_149 = arith.constant 6 : index
    %c0_150 = arith.constant 0 : index
    %c0_151 = arith.constant 0 : index
    %187 = vector.load %arg10[%c6_149, %c0_150, %c0_151] : memref<9x18x98xbf16, #tpu.memory_space<vmem>>, vector<1x18x98xbf16>
    %188 = vector.shape_cast %187 : vector<1x18x98xbf16> to vector<18x98xbf16>
    %cst_152 = arith.constant dense<0.000000e+00> : vector<18x64xf32>
    %189 = tpu.matmul %188, %137, %cst_152 {dimension_numbers = #tpu.dot_dimension_numbers<[1], [0], [0], [1], [0, 0, 1, 1], [], []>} : vector<18x98xbf16>, vector<98x64xbf16>, vector<18x64xf32> -> vector<18x64xf32>
    %190 = arith.truncf %189 : vector<18x64xf32> to vector<18x64xbf16>
    %c6_153 = arith.constant 6 : index
    %c0_154 = arith.constant 0 : index
    %c0_155 = arith.constant 0 : index
    %191 = vector.load %arg11[%c6_153, %c0_154, %c0_155] : memref<9x64x64xbf16, #tpu.memory_space<vmem>>, vector<1x64x64xbf16>
    %192 = vector.shape_cast %191 : vector<1x64x64xbf16> to vector<64x64xbf16>
    %cst_156 = arith.constant dense<0.000000e+00> : vector<18x64xf32>
    %193 = tpu.matmul %190, %192, %cst_156 {dimension_numbers = #tpu.dot_dimension_numbers<[1], [0], [0], [1], [0, 0, 1, 1], [], []>} : vector<18x64xbf16>, vector<64x64xbf16>, vector<18x64xf32> -> vector<18x64xf32>
    %194 = arith.addf %186, %193 : vector<18x64xf32>
    %c7_157 = arith.constant 7 : index
    %c0_158 = arith.constant 0 : index
    %c0_159 = arith.constant 0 : index
    %195 = vector.load %arg10[%c7_157, %c0_158, %c0_159] : memref<9x18x98xbf16, #tpu.memory_space<vmem>>, vector<1x18x98xbf16>
    %196 = vector.shape_cast %195 : vector<1x18x98xbf16> to vector<18x98xbf16>
    %cst_160 = arith.constant dense<0.000000e+00> : vector<18x64xf32>
    %197 = tpu.matmul %196, %137, %cst_160 {dimension_numbers = #tpu.dot_dimension_numbers<[1], [0], [0], [1], [0, 0, 1, 1], [], []>} : vector<18x98xbf16>, vector<98x64xbf16>, vector<18x64xf32> -> vector<18x64xf32>
    %198 = arith.truncf %197 : vector<18x64xf32> to vector<18x64xbf16>
    %c7_161 = arith.constant 7 : index
    %c0_162 = arith.constant 0 : index
    %c0_163 = arith.constant 0 : index
    %199 = vector.load %arg11[%c7_161, %c0_162, %c0_163] : memref<9x64x64xbf16, #tpu.memory_space<vmem>>, vector<1x64x64xbf16>
    %200 = vector.shape_cast %199 : vector<1x64x64xbf16> to vector<64x64xbf16>
    %cst_164 = arith.constant dense<0.000000e+00> : vector<18x64xf32>
    %201 = tpu.matmul %198, %200, %cst_164 {dimension_numbers = #tpu.dot_dimension_numbers<[1], [0], [0], [1], [0, 0, 1, 1], [], []>} : vector<18x64xbf16>, vector<64x64xbf16>, vector<18x64xf32> -> vector<18x64xf32>
    %202 = arith.addf %194, %201 : vector<18x64xf32>
    %c8_165 = arith.constant 8 : index
    %c0_166 = arith.constant 0 : index
    %c0_167 = arith.constant 0 : index
    %203 = vector.load %arg10[%c8_165, %c0_166, %c0_167] : memref<9x18x98xbf16, #tpu.memory_space<vmem>>, vector<1x18x98xbf16>
    %204 = vector.shape_cast %203 : vector<1x18x98xbf16> to vector<18x98xbf16>
    %cst_168 = arith.constant dense<0.000000e+00> : vector<18x64xf32>
    %205 = tpu.matmul %204, %137, %cst_168 {dimension_numbers = #tpu.dot_dimension_numbers<[1], [0], [0], [1], [0, 0, 1, 1], [], []>} : vector<18x98xbf16>, vector<98x64xbf16>, vector<18x64xf32> -> vector<18x64xf32>
    %206 = arith.truncf %205 : vector<18x64xf32> to vector<18x64xbf16>
    %c8_169 = arith.constant 8 : index
    %c0_170 = arith.constant 0 : index
    %c0_171 = arith.constant 0 : index
    %207 = vector.load %arg11[%c8_169, %c0_170, %c0_171] : memref<9x64x64xbf16, #tpu.memory_space<vmem>>, vector<1x64x64xbf16>
    %208 = vector.shape_cast %207 : vector<1x64x64xbf16> to vector<64x64xbf16>
    %cst_172 = arith.constant dense<0.000000e+00> : vector<18x64xf32>
    %209 = tpu.matmul %206, %208, %cst_172 {dimension_numbers = #tpu.dot_dimension_numbers<[1], [0], [0], [1], [0, 0, 1, 1], [], []>} : vector<18x64xbf16>, vector<64x64xbf16>, vector<18x64xf32> -> vector<18x64xf32>
    %210 = arith.addf %202, %209 : vector<18x64xf32>
    %c0_173 = arith.constant 0 : index
    %c0_174 = arith.constant 0 : index
    %211 = vector.load %arg12[%c0_173, %c0_174] : memref<1x64xf32, #tpu.memory_space<vmem>>, vector<1x64xf32>
    %212 = vector.broadcast %211 : vector<1x64xf32> to vector<18x64xf32>
    %213 = arith.addf %210, %212 : vector<18x64xf32>
    %c0_175 = arith.constant 0 : index
    %c0_176 = arith.constant 0 : index
    %214 = vector.load %arg13[%c0_175, %c0_176] : memref<1x64xf32, #tpu.memory_space<vmem>>, vector<1x64xf32>
    %c0_177 = arith.constant 0 : index
    %c0_178 = arith.constant 0 : index
    %215 = vector.load %arg14[%c0_177, %c0_178] : memref<1x64xf32, #tpu.memory_space<vmem>>, vector<1x64xf32>
    %cst_179 = arith.constant dense<0.000000e+00> : vector<64xf32>
    %216 = vector.multi_reduction <add>, %213, %cst_179 [0] : vector<18x64xf32> to vector<64xf32>
    %217 = vector.shape_cast %216 : vector<64xf32> to vector<1x64xf32>
    %cst_180 = arith.constant 0.055555556 : f32
    %218 = vector.broadcast %cst_180 : f32 to vector<1x64xf32>
    %219 = arith.mulf %217, %218 : vector<1x64xf32>
    %220 = vector.broadcast %219 : vector<1x64xf32> to vector<18x64xf32>
    %221 = arith.subf %213, %220 : vector<18x64xf32>
    %222 = arith.mulf %221, %221 : vector<18x64xf32>
    %cst_181 = arith.constant dense<0.000000e+00> : vector<64xf32>
    %223 = vector.multi_reduction <add>, %222, %cst_181 [0] : vector<18x64xf32> to vector<64xf32>
    %224 = vector.shape_cast %223 : vector<64xf32> to vector<1x64xf32>
    %cst_182 = arith.constant 0.055555556 : f32
    %225 = vector.broadcast %cst_182 : f32 to vector<1x64xf32>
    %226 = arith.mulf %224, %225 : vector<1x64xf32>
    %cst_183 = arith.constant 9.99999974E-6 : f32
    %227 = vector.broadcast %cst_183 : f32 to vector<1x64xf32>
    %228 = arith.addf %226, %227 : vector<1x64xf32>
    %229 = math.rsqrt %228 : vector<1x64xf32>
    %230 = arith.mulf %214, %229 : vector<1x64xf32>
    %231 = arith.mulf %219, %230 : vector<1x64xf32>
    %232 = arith.subf %215, %231 : vector<1x64xf32>
    %233 = vector.broadcast %230 : vector<1x64xf32> to vector<18x64xf32>
    %234 = arith.mulf %213, %233 : vector<18x64xf32>
    %235 = vector.broadcast %232 : vector<1x64xf32> to vector<18x64xf32>
    %236 = arith.addf %234, %235 : vector<18x64xf32>
    %cst_184 = arith.constant 0.000000e+00 : f32
    %237 = vector.broadcast %cst_184 : f32 to vector<18x64xf32>
    %238 = arith.maximumf %236, %237 : vector<18x64xf32>
    %239 = arith.truncf %238 : vector<18x64xf32> to vector<18x64xbf16>
    %c0_185 = arith.constant 0 : index
    %c0_186 = arith.constant 0 : index
    %240 = vector.load %arg20[%c0_185, %c0_186] : memref<18x64xbf16, #tpu.memory_space<vmem>>, vector<18x64xbf16>
    tpu.vector_store %arg20[%c0_185, %c0_186], %239 {strides = array<i32>} : memref<18x64xbf16, #tpu.memory_space<vmem>>, vector<18x64xbf16>,
    %cst_187 = arith.constant 0.000000e+00 : f32
    %241 = vector.broadcast %cst_187 : f32 to vector<2x128xf32>
    %c0_188 = arith.constant 0 : index
    %c0_189 = arith.constant 0 : index
    %242 = vector.load %arg20[%c0_188, %c0_189] : memref<18x64xbf16, #tpu.memory_space<vmem>>, vector<2x64xbf16>
    %c0_190 = arith.constant 0 : index
    %c0_191 = arith.constant 0 : index
    %c0_192 = arith.constant 0 : index
    %243 = vector.load %arg15[%c0_190, %c0_191, %c0_192] : memref<9x64x128xbf16, #tpu.memory_space<vmem>>, vector<1x64x128xbf16>
    %244 = vector.shape_cast %243 : vector<1x64x128xbf16> to vector<64x128xbf16>
    %cst_193 = arith.constant dense<0.000000e+00> : vector<2x128xf32>
    %245 = tpu.matmul %242, %244, %cst_193 {dimension_numbers = #tpu.dot_dimension_numbers<[1], [0], [0], [1], [0, 0, 1, 1], [], []>} : vector<2x64xbf16>, vector<64x128xbf16>, vector<2x128xf32> -> vector<2x128xf32>
    %246 = arith.addf %241, %245 : vector<2x128xf32>
    %c2_194 = arith.constant 2 : index
    %c0_195 = arith.constant 0 : index
    %247 = vector.load %arg20[%c2_194, %c0_195] : memref<18x64xbf16, #tpu.memory_space<vmem>>, vector<2x64xbf16>
    %c1_196 = arith.constant 1 : index
    %c0_197 = arith.constant 0 : index
    %c0_198 = arith.constant 0 : index
    %248 = vector.load %arg15[%c1_196, %c0_197, %c0_198] : memref<9x64x128xbf16, #tpu.memory_space<vmem>>, vector<1x64x128xbf16>
    %249 = vector.shape_cast %248 : vector<1x64x128xbf16> to vector<64x128xbf16>
    %cst_199 = arith.constant dense<0.000000e+00> : vector<2x128xf32>
    %250 = tpu.matmul %247, %249, %cst_199 {dimension_numbers = #tpu.dot_dimension_numbers<[1], [0], [0], [1], [0, 0, 1, 1], [], []>} : vector<2x64xbf16>, vector<64x128xbf16>, vector<2x128xf32> -> vector<2x128xf32>
    %251 = arith.addf %246, %250 : vector<2x128xf32>
    %c4_200 = arith.constant 4 : index
    %c0_201 = arith.constant 0 : index
    %252 = vector.load %arg20[%c4_200, %c0_201] : memref<18x64xbf16, #tpu.memory_space<vmem>>, vector<2x64xbf16>
    %c2_202 = arith.constant 2 : index
    %c0_203 = arith.constant 0 : index
    %c0_204 = arith.constant 0 : index
    %253 = vector.load %arg15[%c2_202, %c0_203, %c0_204] : memref<9x64x128xbf16, #tpu.memory_space<vmem>>, vector<1x64x128xbf16>
    %254 = vector.shape_cast %253 : vector<1x64x128xbf16> to vector<64x128xbf16>
    %cst_205 = arith.constant dense<0.000000e+00> : vector<2x128xf32>
    %255 = tpu.matmul %252, %254, %cst_205 {dimension_numbers = #tpu.dot_dimension_numbers<[1], [0], [0], [1], [0, 0, 1, 1], [], []>} : vector<2x64xbf16>, vector<64x128xbf16>, vector<2x128xf32> -> vector<2x128xf32>
    %256 = arith.addf %251, %255 : vector<2x128xf32>
    %c6_206 = arith.constant 6 : index
    %c0_207 = arith.constant 0 : index
    %257 = vector.load %arg20[%c6_206, %c0_207] : memref<18x64xbf16, #tpu.memory_space<vmem>>, vector<2x64xbf16>
    %c3_208 = arith.constant 3 : index
    %c0_209 = arith.constant 0 : index
    %c0_210 = arith.constant 0 : index
    %258 = vector.load %arg15[%c3_208, %c0_209, %c0_210] : memref<9x64x128xbf16, #tpu.memory_space<vmem>>, vector<1x64x128xbf16>
    %259 = vector.shape_cast %258 : vector<1x64x128xbf16> to vector<64x128xbf16>
    %cst_211 = arith.constant dense<0.000000e+00> : vector<2x128xf32>
    %260 = tpu.matmul %257, %259, %cst_211 {dimension_numbers = #tpu.dot_dimension_numbers<[1], [0], [0], [1], [0, 0, 1, 1], [], []>} : vector<2x64xbf16>, vector<64x128xbf16>, vector<2x128xf32> -> vector<2x128xf32>
    %261 = arith.addf %256, %260 : vector<2x128xf32>
    %c8_212 = arith.constant 8 : index
    %c0_213 = arith.constant 0 : index
    %262 = vector.load %arg20[%c8_212, %c0_213] : memref<18x64xbf16, #tpu.memory_space<vmem>>, vector<2x64xbf16>
    %c4_214 = arith.constant 4 : index
    %c0_215 = arith.constant 0 : index
    %c0_216 = arith.constant 0 : index
    %263 = vector.load %arg15[%c4_214, %c0_215, %c0_216] : memref<9x64x128xbf16, #tpu.memory_space<vmem>>, vector<1x64x128xbf16>
    %264 = vector.shape_cast %263 : vector<1x64x128xbf16> to vector<64x128xbf16>
    %cst_217 = arith.constant dense<0.000000e+00> : vector<2x128xf32>
    %265 = tpu.matmul %262, %264, %cst_217 {dimension_numbers = #tpu.dot_dimension_numbers<[1], [0], [0], [1], [0, 0, 1, 1], [], []>} : vector<2x64xbf16>, vector<64x128xbf16>, vector<2x128xf32> -> vector<2x128xf32>
    %266 = arith.addf %261, %265 : vector<2x128xf32>
    %c10 = arith.constant 10 : index
    %c0_218 = arith.constant 0 : index
    %267 = vector.load %arg20[%c10, %c0_218] : memref<18x64xbf16, #tpu.memory_space<vmem>>, vector<2x64xbf16>
    %c5_219 = arith.constant 5 : index
    %c0_220 = arith.constant 0 : index
    %c0_221 = arith.constant 0 : index
    %268 = vector.load %arg15[%c5_219, %c0_220, %c0_221] : memref<9x64x128xbf16, #tpu.memory_space<vmem>>, vector<1x64x128xbf16>
    %269 = vector.shape_cast %268 : vector<1x64x128xbf16> to vector<64x128xbf16>
    %cst_222 = arith.constant dense<0.000000e+00> : vector<2x128xf32>
    %270 = tpu.matmul %267, %269, %cst_222 {dimension_numbers = #tpu.dot_dimension_numbers<[1], [0], [0], [1], [0, 0, 1, 1], [], []>} : vector<2x64xbf16>, vector<64x128xbf16>, vector<2x128xf32> -> vector<2x128xf32>
    %271 = arith.addf %266, %270 : vector<2x128xf32>
    %c12 = arith.constant 12 : index
    %c0_223 = arith.constant 0 : index
    %272 = vector.load %arg20[%c12, %c0_223] : memref<18x64xbf16, #tpu.memory_space<vmem>>, vector<2x64xbf16>
    %c6_224 = arith.constant 6 : index
    %c0_225 = arith.constant 0 : index
    %c0_226 = arith.constant 0 : index
    %273 = vector.load %arg15[%c6_224, %c0_225, %c0_226] : memref<9x64x128xbf16, #tpu.memory_space<vmem>>, vector<1x64x128xbf16>
    %274 = vector.shape_cast %273 : vector<1x64x128xbf16> to vector<64x128xbf16>
    %cst_227 = arith.constant dense<0.000000e+00> : vector<2x128xf32>
    %275 = tpu.matmul %272, %274, %cst_227 {dimension_numbers = #tpu.dot_dimension_numbers<[1], [0], [0], [1], [0, 0, 1, 1], [], []>} : vector<2x64xbf16>, vector<64x128xbf16>, vector<2x128xf32> -> vector<2x128xf32>
    %276 = arith.addf %271, %275 : vector<2x128xf32>
    %c14 = arith.constant 14 : index
    %c0_228 = arith.constant 0 : index
    %277 = vector.load %arg20[%c14, %c0_228] : memref<18x64xbf16, #tpu.memory_space<vmem>>, vector<2x64xbf16>
    %c7_229 = arith.constant 7 : index
    %c0_230 = arith.constant 0 : index
    %c0_231 = arith.constant 0 : index
    %278 = vector.load %arg15[%c7_229, %c0_230, %c0_231] : memref<9x64x128xbf16, #tpu.memory_space<vmem>>, vector<1x64x128xbf16>
    %279 = vector.shape_cast %278 : vector<1x64x128xbf16> to vector<64x128xbf16>
    %cst_232 = arith.constant dense<0.000000e+00> : vector<2x128xf32>
    %280 = tpu.matmul %277, %279, %cst_232 {dimension_numbers = #tpu.dot_dimension_numbers<[1], [0], [0], [1], [0, 0, 1, 1], [], []>} : vector<2x64xbf16>, vector<64x128xbf16>, vector<2x128xf32> -> vector<2x128xf32>
    %281 = arith.addf %276, %280 : vector<2x128xf32>
    %c16 = arith.constant 16 : index
    %c0_233 = arith.constant 0 : index
    %282 = vector.load %arg20[%c16, %c0_233] : memref<18x64xbf16, #tpu.memory_space<vmem>>, vector<2x64xbf16>
    %c8_234 = arith.constant 8 : index
    %c0_235 = arith.constant 0 : index
    %c0_236 = arith.constant 0 : index
    %283 = vector.load %arg15[%c8_234, %c0_235, %c0_236] : memref<9x64x128xbf16, #tpu.memory_space<vmem>>, vector<1x64x128xbf16>
    %284 = vector.shape_cast %283 : vector<1x64x128xbf16> to vector<64x128xbf16>
    %cst_237 = arith.constant dense<0.000000e+00> : vector<2x128xf32>
    %285 = tpu.matmul %282, %284, %cst_237 {dimension_numbers = #tpu.dot_dimension_numbers<[1], [0], [0], [1], [0, 0, 1, 1], [], []>} : vector<2x64xbf16>, vector<64x128xbf16>, vector<2x128xf32> -> vector<2x128xf32>
    %286 = arith.addf %281, %285 : vector<2x128xf32>
    %c0_238 = arith.constant 0 : index
    %c0_239 = arith.constant 0 : index
    %287 = vector.load %arg16[%c0_238, %c0_239] : memref<1x128xf32, #tpu.memory_space<vmem>>, vector<1x128xf32>
    %288 = vector.broadcast %287 : vector<1x128xf32> to vector<2x128xf32>
    %289 = arith.addf %286, %288 : vector<2x128xf32>
    %c0_240 = arith.constant 0 : index
    %c0_241 = arith.constant 0 : index
    %290 = vector.load %arg17[%c0_240, %c0_241] : memref<2x128xf32, #tpu.memory_space<vmem>>, vector<2x128xf32>
    tpu.vector_store %arg17[%c0_240, %c0_241], %289 {strides = array<i32>} : memref<2x128xf32, #tpu.memory_space<vmem>>, vector<2x128xf32>,
    return
  }
}

</mosaic_0001>

<bundles_post_ra>
// kernel: cnn_forward.1
= control target key start
LH: loop header
LB: loop body
LE: loop exit
PB: predicated region body
PF: predicated region fallthrough
CT: control target
= control target key end

     0   :  { %s13520_s0 = inlined_call_operand.vmem [shape: bf16[392,9], index: 0, kind: input, shape index: {}]   ;;  %s13521_s1 = inlined_call_operand.vmem [shape: bf16[9,32], index: 1, kind: input, shape index: {}]   ;;  %s13522_s2 = inlined_call_operand.vmem [shape: f32[1,32], index: 2, kind: input, shape index: {}]   ;;  %s13523_s3 = inlined_call_operand.vmem [shape: f32[1,32], index: 3, kind: input, shape index: {}]   ;;  %s13524_s4 = inlined_call_operand.vmem [shape: f32[1,32], index: 4, kind: input, shape index: {}]   ;;  %s13525_s5 = inlined_call_operand.vmem [shape: bf16[9,98,392], index: 5, kind: input, shape index: {}]   ;;  %s13526_s6 = inlined_call_operand.vmem [shape: bf16[9,32,64], index: 6, kind: input, shape index: {}]   ;;  %s13527_s7 = inlined_call_operand.vmem [shape: f32[1,64], index: 7, kind: input, shape index: {}]   ;;  %s13528_s8 = inlined_call_operand.vmem [shape: f32[1,64], index: 8, kind: input, shape index: {}]   ;;  %s13529_s9 = inlined_call_operand.vmem [shape: f32[1,64], index: 9, kind: input, shape index: {}]   ;;  %s13530_s10 = inlined_call_operand.vmem [shape: bf16[9,18,98], index: 10, kind: input, shape index: {}]   ;;  %s13531_s11 = inlined_call_operand.vmem [shape: bf16[9,64,64], index: 11, kind: input, shape index: {}]   ;;  %s13532_s12 = inlined_call_operand.vmem [shape: f32[1,64], index: 12, kind: input, shape index: {}]   ;;  %s13533_s13 = inlined_call_operand.vmem [shape: f32[1,64], index: 13, kind: input, shape index: {}]   ;;  %s13534_s14 = inlined_call_operand.vmem [shape: f32[1,64], index: 14, kind: input, shape index: {}]   ;;  %s13535_s15 = inlined_call_operand.vmem [shape: bf16[9,64,128], index: 15, kind: input, shape index: {}]   ;;  %s13536_s16 = inlined_call_operand.vmem [shape: f32[1,128], index: 16, kind: input, shape index: {}]   ;;  %s13537_s17 = inlined_call_operand.hbm [shape: f32[2,128], index: 17, kind: output, shape index: {}]  }
   0x1   :  { %13566 = sst [smem:[#allocation18_spill]] %s13520_s0 }
   0x2   :  { %13567 = sst [smem:[#allocation19_spill]] %s13521_s1 }
   0x3   :  { %s13568_s26 = sld [smem:[#allocation19_spill]]  ;;  %vm317_vm0 = vcmask 1043456   ;;  %vm318_vm1 = vcmask 1044480   ;;  %v9476_v3 = vmov 65535  }
   0x4   :  { %v319_v4 = vsel %vm317_vm0, 4294967295, %v9476_v3 }
   0x5   :  { %v320_v5 = vsel %vm318_vm1, %v319_v4, 0 }
   0x9   :  { %v7039_v0 = vld [vmem:[%s13568_s26] sm:$0xf]  ;;  %v9033_v1 = vld [vmem:[%s13568_s26] sm:$0x10] }
   0xa   :  { %v7040_v2 = vor.u32 %v9033_v1, %v7039_v0 }
   0xb   :  { %22 = vsyncpa [#allocation6], 0  ;;  %s13569_s30 = sld [smem:[#allocation18_spill]]  ;;  %vm241_vm2 = vcmask 72704   ;;  %vm459_vm3 = vcmask 261120   ;;  %vm982_vm7 = vcmask 257024  }
   0xc   :  { %v322_v6 = vand.u32 %v7040_v2, %v320_v5  ;;  %vm1381_vm8 = vcmask 64512   ;;  %vm5255_vm9 = vcmask 523264   ;;  %vm5279_vm10 = vcmask 517120   ;;  %s9477_s26 = smov [#allocation5]  }
   0xd   :  { %vm5432_vm14 = vcmask 516096   ;;  %vm5419_vm15 = vcmask 519168   ;;  %vm5497_vm1 = vcmask 801792  }
   0xe   :  { %331 = vmatpush.bf16.msra.mxu0 %v322_v6  ;;  %v9750_v6 = vld [vmem:[%s13522_s2] ss:$0 sm:$0xff] }
  0x11   :  { %v9009_v7 = vld [vmem:[%s13569_s30] sm:$0xff]  ;;  %v9010_v8 = vld [vmem:[%s13569_s30 + $0x8] sm:$0xff]  ;;  %v9011_v9 = vld [vmem:[%s13569_s30 + $0x10] sm:$0xff] }
  0x12   :  { %7041 = vmatmul.msk.bf16.vlgmr.msra.gmra.mxu0 %vm241_vm2, %v9009_v7  ;;  %v9012_v10 = vld [vmem:[%s13569_s30 + $0x18] sm:$0xff]  ;;  %v9013_v11 = vld [vmem:[%s13569_s30 + $0x20] sm:$0xff]  ;;  %v9014_v12 = vld [vmem:[%s13569_s30 + $0x28] sm:$0xff] }
  0x13   :  { %v9015_v13 = vld [vmem:[%s13569_s30 + $0x30] sm:$0xff]  ;;  %v9016_v14 = vld [vmem:[%s13569_s30 + $0x38] sm:$0xff]  ;;  %v9017_v15 = vld [vmem:[%s13569_s30 + $0x40] sm:$0xff] }
  0x14   :  { %v9018_v18 = vld [vmem:[%s13569_s30 + $0x48] sm:$0xff]  ;;  %v9019_v21 = vld [vmem:[%s13569_s30 + $0x50] sm:$0xff]  ;;  %v9020_v24 = vld [vmem:[%s13569_s30 + $0x58] sm:$0xff] }
  0x15   :  { %v9021_v27 = vld [vmem:[%s13569_s30 + $0x60] sm:$0xff]  ;;  %v9022_v30 = vld [vmem:[%s13569_s30 + $0x68] sm:$0xff]  ;;  %v9023_v33 = vld [vmem:[%s13569_s30 + $0x70] sm:$0xff] }
  0x16   :  { %v9024_v36 = vld [vmem:[%s13569_s30 + $0x78] sm:$0xff]  ;;  %v9025_v39 = vld [vmem:[%s13569_s30 + $0x80] sm:$0xff]  ;;  %v9026_v42 = vld [vmem:[%s13569_s30 + $0x88] sm:$0xff] }
  0x17   :  { %v9027_v45 = vld [vmem:[%s13569_s30 + $0x90] sm:$0xff]  ;;  %v9028_v48 = vld [vmem:[%s13569_s30 + $0x98] sm:$0xff]  ;;  %v9029_v51 = vld [vmem:[%s13569_s30 + $0xa0] sm:$0xff] }
  0x18   :  { %v9030_v54 = vld [vmem:[%s13569_s30 + $0xa8] sm:$0xff]  ;;  %v9031_v57 = vld [vmem:[%s13569_s30 + $0xb0] sm:$0xff]  ;;  %v9032_v60 = vld [vmem:[%s13569_s30 + $0xb8] sm:$0xff] }
  0x19   :  { %v106_v63 = vld [vmem:[%s13569_s30 + $0xc0] sm:$0xf] }
  0x1a   :  { %v210_v0 = vunpack.c.l.b16 %v106_v63 }
  0x1c   :  { %v235_v1 = vpack.c.b16 %v210_v0, %v210_v0 }
  0x22   :  { %7042 = vmatmul.msk.bf16.gmra.mxu0 %vm241_vm2, %v9010_v8 }
  0x32   :  { %7043 = vmatmul.msk.bf16.gmra.mxu0 %vm241_vm2, %v9011_v9 }
  0x42   :  { %7044 = vmatmul.msk.bf16.gmra.mxu0 %vm241_vm2, %v9012_v10 }
  0x52   :  { %7045 = vmatmul.msk.bf16.gmra.mxu0 %vm241_vm2, %v9013_v11 }
  0x62   :  { %7046 = vmatmul.msk.bf16.gmra.mxu0 %vm241_vm2, %v9014_v12 }
  0x72   :  { %7047 = vmatmul.msk.bf16.gmra.mxu0 %vm241_vm2, %v9015_v13 }
  0x82   :  { %7048 = vmatmul.msk.bf16.gmra.mxu0 %vm241_vm2, %v9016_v14 }
  0x8f   :  { %v9610_v16 = vpop.f32.mrf.mxu0 }
  0x90   :  { %v9760_v9 = vadd.f32 %v9750_v6, %v9610_v16 }
  0x92   :  { %7049 = vmatmul.msk.bf16.gmra.mxu0 %vm241_vm2, %v9017_v15  ;;  %v460_v13 = vsel %vm459_vm3, %v9760_v9, 0.0 }
  0x97   :  { %v9613_v17 = vpop.f32.mrf.mxu0 }
  0x98   :  { %v9754_v7 = vadd.f32 %v9750_v6, %v9613_v17 }
  0x9a   :  { %v461_v11 = vsel %vm459_vm3, %v9754_v7, 0.0 }
  0x9b   :  { %v462_v16 = vadd.f32 %v461_v11, %v460_v13 }
  0x9f   :  { %v9618_v19 = vpop.f32.mrf.mxu0 }
  0xa0   :  { %v9764_v10 = vadd.f32 %v9750_v6, %v9618_v19 }
  0xa2   :  { %7050 = vmatmul.msk.bf16.gmra.mxu0 %vm241_vm2, %v9018_v18  ;;  %v463_v14 = vsel %vm459_vm3, %v9764_v10, 0.0 }
  0xa3   :  { %v464_v19 = vadd.f32 %v463_v14, %v462_v16 }
  0xa7   :  { %v9621_v20 = vpop.f32.mrf.mxu0 }
  0xa8   :  { %v9770_v12 = vadd.f32 %v9750_v6, %v9621_v20 }
  0xaa   :  { %v465_v17 = vsel %vm459_vm3, %v9770_v12, 0.0 }
  0xaf   :  { %v9626_v22 = vpop.f32.mrf.mxu0 }
  0xb0   :  { %v9778_v15 = vadd.f32 %v9750_v6, %v9626_v22  ;;  %v466_v22 = vadd.f32 %v465_v17, %v464_v19 }
  0xb2   :  { %7051 = vmatmul.msk.bf16.gmra.mxu0 %vm241_vm2, %v9019_v21  ;;  %13570 = vst [vmem:[#allocation8_spill] sm:$0xff] %v9778_v15  ;;  %v467_v21 = vsel %vm459_vm3, %v9778_v15, 0.0 }
  0xb7   :  { %v9629_v23 = vpop.f32.mrf.mxu0 }
  0xb8   :  { %v9784_v18 = vadd.f32 %v9750_v6, %v9629_v23  ;;  %v468_v23 = vadd.f32 %v467_v21, %v466_v22 }
  0xba   :  { %13571 = vst [vmem:[#allocation9_spill] sm:$0xff] %v9784_v18 }
  0xbf   :  { %v9634_v25 = vpop.f32.mrf.mxu0 }
  0xc2   :  { %7052 = vmatmul.msk.bf16.gmra.mxu0 %vm241_vm2, %v9020_v24  ;;  %v9792_v24 = vadd.f32 %v9750_v6, %v9634_v25 }
  0xc7   :  { %v9637_v26 = vpop.f32.mrf.mxu0 }
  0xcf   :  { %v9642_v28 = vpop.f32.mrf.mxu0 }
  0xd2   :  { %7053 = vmatmul.msk.bf16.gmra.mxu0 %vm241_vm2, %v9021_v27  ;;  %v469_v27 = vsel %vm459_vm3, %v9784_v18, 0.0 }
  0xd7   :  { %v9645_v29 = vpop.f32.mrf.mxu0 }
  0xdf   :  { %v9650_v31 = vpop.f32.mrf.mxu0 }
  0xe2   :  { %7054 = vmatmul.msk.bf16.gmra.mxu0 %vm241_vm2, %v9022_v30  ;;  %v9798_v30 = vadd.f32 %v9750_v6, %v9637_v26 }
  0xe4   :  { %v473_v25 = vsel %vm459_vm3, %v9798_v30, 0.0 }
  0xe7   :  { %v9653_v32 = vpop.f32.mrf.mxu0 }
  0xef   :  { %v9658_v34 = vpop.f32.mrf.mxu0 }
  0xf0   :  { %v9830_v63 = vadd.f32 %v9750_v6, %v9658_v34 }
  0xf2   :  { %7055 = vmatmul.msk.bf16.gmra.mxu0 %vm241_vm2, %v9023_v33  ;;  %v471_v33 = vsel %vm459_vm3, %v9792_v24, 0.0 }
  0xf7   :  { %v9661_v35 = vpop.f32.mrf.mxu0 }
  0xff   :  { %v9666_v37 = vpop.f32.mrf.mxu0 }
 0x100   :  { %v9844_v14 = vadd.f32 %v9750_v6, %v9666_v37 }
 0x102   :  { %7056 = vmatmul.msk.bf16.gmra.mxu0 %vm241_vm2, %v9024_v36  ;;  %v9804_v36 = vadd.f32 %v9750_v6, %v9642_v28  ;;  %v487_v19 = vsel %vm459_vm3, %v9844_v14, 0.0 }
 0x104   :  { %v475_v26 = vsel %vm459_vm3, %v9804_v36, 0.0 }
 0x107   :  { %v9669_v38 = vpop.f32.mrf.mxu0 }
 0x108   :  { %v9850_v17 = vadd.f32 %v9750_v6, %v9669_v38 }
 0x10a   :  { %v489_v37 = vsel %vm459_vm3, %v9850_v17, 0.0 }
 0x10f   :  { %v9674_v40 = vpop.f32.mrf.mxu0 }
 0x110   :  { %v9856_v21 = vadd.f32 %v9750_v6, %v9674_v40 }
 0x112   :  { %7057 = vmatmul.msk.bf16.gmra.mxu0 %vm241_vm2, %v9025_v39  ;;  %v470_v39 = vadd.f32 %v469_v27, %v468_v23  ;;  %v491_v38 = vsel %vm459_vm3, %v9856_v21, 0.0 }
 0x117   :  { %v9677_v41 = vpop.f32.mrf.mxu0 }
 0x118   :  { %v9862_v27 = vadd.f32 %v9750_v6, %v9677_v41 }
 0x11f   :  { %v9682_v43 = vpop.f32.mrf.mxu0 }
 0x122   :  { %7058 = vmatmul.msk.bf16.gmra.mxu0 %vm241_vm2, %v9026_v42  ;;  %v9810_v42 = vadd.f32 %v9750_v6, %v9645_v29 }
 0x127   :  { %v9685_v44 = vpop.f32.mrf.mxu0 }
 0x12f   :  { %v9690_v46 = vpop.f32.mrf.mxu0 }
 0x132   :  { %7059 = vmatmul.msk.bf16.gmra.mxu0 %vm241_vm2, %v9027_v45  ;;  %v472_v45 = vadd.f32 %v471_v33, %v470_v39  ;;  %v9870_v39 = vadd.f32 %v9750_v6, %v9682_v43 }
 0x134   :  { %v474_v28 = vadd.f32 %v473_v25, %v472_v45  ;;  %v493_v25 = vsel %vm459_vm3, %v9862_v27, 0.0  ;;  %v9876_v45 = vadd.f32 %v9750_v6, %v9685_v44 }
 0x136   :  { %v476_v29 = vadd.f32 %v475_v26, %v474_v28  ;;  %v495_v26 = vsel %vm459_vm3, %v9870_v39, 0.0  ;;  %v9882_v28 = vadd.f32 %v9750_v6, %v9690_v46  ;;  %v497_v43 = vsel %vm459_vm3, %v9876_v45, 0.0 }
 0x137   :  { %v9693_v47 = vpop.f32.mrf.mxu0 }
 0x138   :  { %v499_v44 = vsel %vm459_vm3, %v9882_v28, 0.0 }
 0x13f   :  { %v9698_v49 = vpop.f32.mrf.mxu0 }
 0x142   :  { %7060 = vmatmul.msk.bf16.gmra.mxu0 %vm241_vm2, %v9028_v48 }
 0x147   :  { %v9701_v50 = vpop.f32.mrf.mxu0 }
 0x14f   :  { %v9706_v52 = vpop.f32.mrf.mxu0 }
 0x152   :  { %7061 = vmatmul.msk.bf16.gmra.mxu0 %vm241_vm2, %v9029_v51  ;;  %v9818_v51 = vadd.f32 %v9750_v6, %v9650_v31 }
 0x157   :  { %v9709_v53 = vpop.f32.mrf.mxu0 }
 0x15f   :  { %v9714_v55 = vpop.f32.mrf.mxu0 }
 0x162   :  { %7062 = vmatmul.msk.bf16.gmra.mxu0 %vm241_vm2, %v9030_v54  ;;  %v477_v54 = vsel %vm459_vm3, %v9810_v42, 0.0 }
 0x163   :  { %v478_v0 = vadd.f32 %v477_v54, %v476_v29  ;;  %v9888_v29 = vadd.f32 %v9750_v6, %v9693_v47 }
 0x167   :  { %v9717_v56 = vpop.f32.mrf.mxu0 }
 0x16f   :  { %v9722_v58 = vpop.f32.mrf.mxu0 }
 0x172   :  { %7063 = vmatmul.msk.bf16.gmra.mxu0 %vm241_vm2, %v9031_v57  ;;  %v9824_v57 = vadd.f32 %v9750_v6, %v9653_v32  ;;  %v483_v32 = vsel %vm459_vm3, %v9830_v63, 0.0 }
 0x174   :  { %v481_v31 = vsel %vm459_vm3, %v9824_v57, 0.0 }
 0x177   :  { %v9725_v59 = vpop.f32.mrf.mxu0 }
 0x17f   :  { %v9730_v61 = vpop.f32.mrf.mxu0 }
 0x182   :  { %7064 = vmatmul.msk.bf16.gmra.mxu0 %vm241_vm2, %v9032_v60  ;;  %v479_v60 = vsel %vm459_vm3, %v9818_v51, 0.0 }
 0x183   :  { %v480_v11 = vadd.f32 %v479_v60, %v478_v0 }
 0x185   :  { %v482_v34 = vadd.f32 %v481_v31, %v480_v11  ;;  %v9896_v31 = vadd.f32 %v9750_v6, %v9698_v49  ;;  %v501_v11 = vsel %vm459_vm3, %v9888_v29, 0.0 }
 0x187   :  { %v9733_v62 = vpop.f32.mrf.mxu0 }
 0x18f   :  { %v9738_v2 = vpop.f32.mrf.mxu0 }
 0x192   :  { %7065 = vmatmul.msk.bf16.gmra.mxu0 %vm241_vm2, %v235_v1  ;;  %v9836_v1 = vadd.f32 %v9750_v6, %v9661_v35  ;;  %v484_v35 = vadd.f32 %v483_v32, %v482_v34  ;;  %v9902_v32 = vadd.f32 %v9750_v6, %v9701_v50  ;;  %v503_v34 = vsel %vm459_vm3, %v9896_v31, 0.0 }
 0x194   :  { %v485_v16 = vsel %vm459_vm3, %v9836_v1, 0.0  ;;  %v505_v49 = vsel %vm459_vm3, %v9902_v32, 0.0 }
 0x195   :  { %v486_v22 = vadd.f32 %v485_v16, %v484_v35  ;;  %v9908_v16 = vadd.f32 %v9750_v6, %v9706_v52 }
 0x197   :  { %v9741_v3 = vpop.f32.mrf.mxu0  ;;  %v488_v23 = vadd.f32 %v487_v19, %v486_v22  ;;  %v9914_v19 = vadd.f32 %v9750_v6, %v9709_v53  ;;  %v507_v50 = vsel %vm459_vm3, %v9908_v16, 0.0 }
 0x199   :  { %v490_v40 = vadd.f32 %v489_v37, %v488_v23  ;;  %v9920_v23 = vadd.f32 %v9750_v6, %v9714_v55  ;;  %v509_v52 = vsel %vm459_vm3, %v9914_v19, 0.0 }
 0x19b   :  { %v492_v41 = vadd.f32 %v491_v38, %v490_v40  ;;  %v9926_v40 = vadd.f32 %v9750_v6, %v9717_v56  ;;  %v511_v53 = vsel %vm459_vm3, %v9920_v23, 0.0 }
 0x19d   :  { %v494_v54 = vadd.f32 %v493_v25, %v492_v41  ;;  %v9932_v41 = vadd.f32 %v9750_v6, %v9722_v58  ;;  %v513_v55 = vsel %vm459_vm3, %v9926_v40, 0.0 }
 0x19f   :  { %v9743_v4 = vpop.f32.mrf.mxu0  ;;  %v496_v60 = vadd.f32 %v495_v26, %v494_v54  ;;  %13572 = vst [vmem:[#allocation10_spill] sm:$0xff] %v9932_v41  ;;  %v9938_v54 = vadd.f32 %v9750_v6, %v9725_v59  ;;  %v515_v56 = vsel %vm459_vm3, %v9932_v41, 0.0 }
 0x1a1   :  { %v498_v46 = vadd.f32 %v497_v43, %v496_v60  ;;  %13573 = vst [vmem:[#allocation11_spill] sm:$0xff] %v9938_v54  ;;  %v517_v58 = vsel %vm459_vm3, %v9938_v54, 0.0 }
 0x1a3   :  { %v500_v47 = vadd.f32 %v499_v44, %v498_v46  ;;  %v9944_v44 = vadd.f32 %v9750_v6, %v9730_v61 }
 0x1a5   :  { %v502_v35 = vadd.f32 %v501_v11, %v500_v47  ;;  %13574 = vst [vmem:[#allocation12_spill] sm:$0xff] %v9944_v44  ;;  %v9950_v11 = vadd.f32 %v9750_v6, %v9733_v62  ;;  %v519_v59 = vsel %vm459_vm3, %v9944_v44, 0.0 }
 0x1a7   :  { %v9745_v5 = vpop.f32.mrf.mxu0  ;;  %v504_v22 = vadd.f32 %v503_v34, %v502_v35  ;;  %13575 = vst [vmem:[#allocation13_spill] sm:$0xff] %v9950_v11  ;;  %v9956_v34 = vadd.f32 %v9750_v6, %v9738_v2  ;;  %v521_v61 = vsel %vm459_vm3, %v9950_v11, 0.0 }
 0x1a9   :  { %v506_v38 = vadd.f32 %v505_v49, %v504_v22  ;;  %13576 = vst [vmem:[#allocation14_spill] sm:$0xff] %v9956_v34  ;;  %v9962_v49 = vadd.f32 %v9750_v6, %v9741_v3  ;;  %v523_v62 = vsel %vm459_vm3, %v9956_v34, 0.0 }
 0x1ab   :  { %v508_v25 = vadd.f32 %v507_v50, %v506_v38  ;;  %13577 = vst [vmem:[#allocation15_spill] sm:$0xff] %v9962_v49  ;;  %v9968_v38 = vadd.f32 %v9750_v6, %v9743_v4  ;;  %v525_v2 = vsel %vm459_vm3, %v9962_v49, 0.0 }
 0x1ad   :  { %v510_v26 = vadd.f32 %v509_v52, %v508_v25  ;;  %v9974_v25 = vadd.f32 %v9750_v6, %v9745_v5  ;;  %v527_v3 = vsel %vm459_vm3, %v9968_v38, 0.0 }
 0x1af   :  { %v9756_v8 = vpop.f32.mrf.mxu0  ;;  %v512_v43 = vadd.f32 %v511_v53, %v510_v26  ;;  %v529_v4 = vsel %vm459_vm3, %v9974_v25, 0.0 }
 0x1b0   :  { %v9980_v26 = vadd.f32 %v9750_v6, %v9756_v8 }
 0x1b1   :  { %v514_v46 = vadd.f32 %v513_v55, %v512_v43 }
 0x1b2   :  { %v531_v5 = vsel %vm459_vm3, %v9980_v26, 0.0 }
 0x1b3   :  { %v516_v47 = vadd.f32 %v515_v56, %v514_v46 }
 0x1b5   :  { %v518_v35 = vadd.f32 %v517_v58, %v516_v47 }
 0x1b7   :  { %v9786_v20 = vpop.f32.mrf.mxu0  ;;  %v520_v22 = vadd.f32 %v519_v59, %v518_v35 }
 0x1b8   :  { %v9986_v43 = vadd.f32 %v9750_v6, %v9786_v20 }
 0x1b9   :  { %v522_v52 = vadd.f32 %v521_v61, %v520_v22 }
 0x1ba   :  { %v533_v8 = vsel %vm459_vm3, %v9986_v43, 0.0 }
 0x1bb   :  { %v524_v53 = vadd.f32 %v523_v62, %v522_v52 }
 0x1bd   :  { %v526_v55 = vadd.f32 %v525_v2, %v524_v53 }
 0x1bf   :  { %v9812_v48 = vpop.f32.mrf.mxu0  ;;  %v528_v56 = vadd.f32 %v527_v3, %v526_v55 }
 0x1c0   :  { %v9992_v58 = vadd.f32 %v9750_v6, %v9812_v48 }
 0x1c1   :  { %v530_v47 = vadd.f32 %v529_v4, %v528_v56 }
 0x1c2   :  { %v535_v20 = vsel %vm459_vm3, %v9992_v58, 0.0 }
 0x1c3   :  { %v532_v35 = vadd.f32 %v531_v5, %v530_v47 }
 0x1c5   :  { %v534_v22 = vadd.f32 %v533_v8, %v532_v35 }
 0x1c7   :  { %v9838_v13 = vpop.f32.mrf.mxu0  ;;  %v536_v52 = vadd.f32 %v535_v20, %v534_v22 }
 0x1c8   :  { %v9998_v59 = vadd.f32 %v9750_v6, %v9838_v13 }
 0x1ca   :  { %v537_v48 = vsel %vm459_vm3, %v9998_v59, 0.0 }
 0x1cb   :  { %v538_v3 = vadd.f32 %v537_v48, %v536_v52 }
 0x1cf   :  { %v9864_v33 = vpop.f32.mrf.mxu0 }
 0x1d0   :  { %v10004_v61 = vadd.f32 %v9750_v6, %v9864_v33 }
 0x1d2   :  { %v539_v13 = vsel %vm459_vm3, %v10004_v61, 0.0 }
 0x1d3   :  { %v540_v4 = vadd.f32 %v539_v13, %v538_v3 }
 0x1d7   :  { %v9890_v0 = vpop.f32.mrf.mxu0 }
 0x1d8   :  { %v10010_v62 = vadd.f32 %v9750_v6, %v9890_v0 }
 0x1da   :  { %v541_v33 = vsel %vm459_vm3, %v10010_v62, 0.0 }
 0x1db   :  { %v542_v5 = vadd.f32 %v541_v33, %v540_v4 }
 0x1df   :  { %v438_v37 = vpop.f32.mrf.mxu0 }
 0x1e0   :  { %v10015_v53 = vadd.f32 %v9750_v6, %v438_v37 }
 0x1e2   :  { %v543_v0 = vsel %vm459_vm3, %v10015_v53, 0.0 }
 0x1e3   :  { %v544_v8 = vadd.f32 %v543_v0, %v542_v5 }
 0x1e7   :  { %v440_v60 = vpop.f32.mrf.mxu0 }
 0x1e8   :  { %v10020_v55 = vadd.f32 %v9750_v6, %v440_v60 }
 0x1ea   :  { %v545_v47 = vsel %vm459_vm3, %v10020_v55, 0.0 }
 0x1eb   :  { %v546_v22 = vadd.f32 %v545_v47, %v544_v8 }
 0x1ef   :  { %v443_v50 = vpop.f32.mrf.mxu0 }
 0x1f0   :  { %v10025_v56 = vadd.f32 %v9750_v6, %v443_v50 }
 0x1f2   :  { %v547_v60 = vsel %vm459_vm3, %v10025_v56, 0.0 }
 0x1f3   :  { %v548_v52 = vadd.f32 %v547_v60, %v546_v22 }
 0x1f7   :  { %v445_v46 = vpop.f32.mrf.mxu0 }
 0x1f8   :  { %v10030_v37 = vadd.f32 %v9750_v6, %v445_v46 }
 0x1fa   :  { %13578 = vst [vmem:[#allocation16_spill] sm:$0xff] %v10030_v37  ;;  %v549_v50 = vsel %vm459_vm3, %v10030_v37, 0.0 }
 0x1fb   :  { %v550_v13 = vadd.f32 %v549_v50, %v548_v52 }
 0x1ff   :  { %v448_v2 = vpop.f32.mrf.mxu0 }
 0x200   :  { %v10035_v20 = vadd.f32 %v9750_v6, %v448_v2 }
 0x202   :  { %13579 = vst [vmem:[#allocation17_spill] sm:$0xff] %v10035_v20  ;;  %v551_v46 = vsel %vm459_vm3, %v10035_v20, 0.0 }
 0x203   :  { %v552_v33 = vadd.f32 %v551_v46, %v550_v13 }
 0x207   :  { %v450_v35 = vpop.f32.mrf.mxu0 }
 0x208   :  { %v10040_v48 = vadd.f32 %v9750_v6, %v450_v35 }
 0x20a   :  { %v553_v3 = vsel %vm459_vm3, %v10040_v48, 0.0 }
 0x20b   :  { %v554_v0 = vadd.f32 %v553_v3, %v552_v33 }
 0x20f   :  { %v453_v4 = vpop.f32.mrf.mxu0 }
 0x210   :  { %v10047_v2 = vadd.f32 %v9750_v6, %v453_v4 }
 0x212   :  { %v555_v5 = vsel %vm459_vm3, %v10047_v2, 0.0 }
 0x213   :  { %v556_v47 = vadd.f32 %v555_v5, %v554_v0 }
 0x215   :  { %v557_v8 = vrot.slane %v556_v47, 4 }
 0x217   :  { %v455_v35 = vpop.f32.mrf.mxu0  ;;  %v558_v60 = vadd.f32 %v557_v8, %v556_v47 }
 0x219   :  { %v559_v22 = vrot.slane %v558_v60, 2 }
 0x21b   :  { %v560_v37 = vadd.f32 %v559_v22, %v558_v60 }
 0x21d   :  { %v561_v20 = vrot.slane %v560_v37, 1 }
 0x21f   :  { %v562_v50 = vadd.f32 %v561_v20, %v560_v37 }
 0x221   :  { %v10051_v52 = vmul.f32 0.0025510204, %v562_v50 }
 0x223   :  { %v564_v46 = vsub.f32 %v9760_v9, %v10051_v52  ;;  %v565_v6 = vsub.f32 %v9754_v7, %v10051_v52  ;;  %v566_v13 = vsub.f32 %v9764_v10, %v10051_v52  ;;  %v567_v3 = vsub.f32 %v9770_v12, %v10051_v52 }
 0x224   :  { %v568_v0 = vsub.f32 %v9778_v15, %v10051_v52  ;;  %v569_v20 = vsub.f32 %v9784_v18, %v10051_v52  ;;  %v570_v60 = vsub.f32 %v9792_v24, %v10051_v52 }
 0x225   :  { %v613_v33 = vmul.f32 %v564_v46, %v564_v46  ;;  %v614_v4 = vmul.f32 %v565_v6, %v565_v6  ;;  %v615_v37 = vmul.f32 %v566_v13, %v566_v13  ;;  %v616_v5 = vmul.f32 %v567_v3, %v567_v3 }
 0x226   :  { %v617_v22 = vmul.f32 %v568_v0, %v568_v0  ;;  %v571_v6 = vsub.f32 %v9798_v30, %v10051_v52  ;;  %v618_v13 = vmul.f32 %v569_v20, %v569_v20  ;;  %v572_v3 = vsub.f32 %v9804_v36, %v10051_v52 }
 0x227   :  { %v662_v47 = vsel %vm459_vm3, %v613_v33, 0.0  ;;  %v663_v8 = vsel %vm459_vm3, %v614_v4, 0.0  ;;  %v665_v50 = vsel %vm459_vm3, %v615_v37, 0.0  ;;  %v667_v15 = vsel %vm459_vm3, %v616_v5, 0.0 }
 0x228   :  { %v664_v35 = vadd.f32 %v663_v8, %v662_v47  ;;  %v619_v33 = vmul.f32 %v570_v60, %v570_v60  ;;  %v669_v4 = vsel %vm459_vm3, %v617_v22, 0.0  ;;  %v573_v0 = vsub.f32 %v9810_v42, %v10051_v52 }
 0x229   :  { %v620_v8 = vmul.f32 %v571_v6, %v571_v6  ;;  %v671_v37 = vsel %vm459_vm3, %v618_v13, 0.0  ;;  %v574_v20 = vsub.f32 %v9818_v51, %v10051_v52  ;;  %v575_v60 = vsub.f32 %v9824_v57, %v10051_v52 }
 0x22a   :  { %v666_v46 = vadd.f32 %v665_v50, %v664_v35  ;;  %v621_v50 = vmul.f32 %v572_v3, %v572_v3  ;;  %v576_v6 = vsub.f32 %v9830_v63, %v10051_v52  ;;  %v577_v3 = vsub.f32 %v9836_v1, %v10051_v52 }
 0x22c   :  { %v668_v18 = vadd.f32 %v667_v15, %v666_v46  ;;  %v673_v15 = vsel %vm459_vm3, %v619_v33, 0.0  ;;  %v622_v46 = vmul.f32 %v573_v0, %v573_v0  ;;  %v677_v13 = vsel %vm459_vm3, %v621_v50, 0.0 }
 0x22d   :  { %v578_v0 = vsub.f32 %v9844_v14, %v10051_v52 }
 0x22e   :  { %v670_v47 = vadd.f32 %v669_v4, %v668_v18  ;;  %v675_v18 = vsel %vm459_vm3, %v620_v8, 0.0  ;;  %v623_v4 = vmul.f32 %v574_v20, %v574_v20  ;;  %v679_v33 = vsel %vm459_vm3, %v622_v46, 0.0 }
 0x22f   :  { %v579_v20 = vsub.f32 %v9850_v17, %v10051_v52 }
 0x230   :  { %v672_v35 = vadd.f32 %v671_v37, %v670_v47  ;;  %v624_v37 = vmul.f32 %v575_v60, %v575_v60  ;;  %v681_v8 = vsel %vm459_vm3, %v623_v4, 0.0  ;;  %v580_v60 = vsub.f32 %v9856_v21, %v10051_v52 }
 0x232   :  { %v674_v5 = vadd.f32 %v673_v15, %v672_v35  ;;  %v625_v15 = vmul.f32 %v576_v6, %v576_v6  ;;  %v683_v50 = vsel %vm459_vm3, %v624_v37, 0.0  ;;  %v581_v6 = vsub.f32 %v9862_v27, %v10051_v52 }
 0x234   :  { %v676_v22 = vadd.f32 %v675_v18, %v674_v5  ;;  %v626_v18 = vmul.f32 %v577_v3, %v577_v3  ;;  %v685_v46 = vsel %vm459_vm3, %v625_v15, 0.0  ;;  %v582_v3 = vsub.f32 %v9870_v39, %v10051_v52 }
 0x236   :  { %v678_v47 = vadd.f32 %v677_v13, %v676_v22  ;;  %v627_v13 = vmul.f32 %v578_v0, %v578_v0  ;;  %v687_v4 = vsel %vm459_vm3, %v626_v18, 0.0  ;;  %v583_v0 = vsub.f32 %v9876_v45, %v10051_v52 }
 0x238   :  { %v680_v35 = vadd.f32 %v679_v33, %v678_v47  ;;  %v628_v33 = vmul.f32 %v579_v20, %v579_v20  ;;  %v689_v37 = vsel %vm459_vm3, %v627_v13, 0.0  ;;  %v584_v20 = vsub.f32 %v9882_v28, %v10051_v52 }
 0x23a   :  { %v682_v5 = vadd.f32 %v681_v8, %v680_v35  ;;  %v629_v8 = vmul.f32 %v580_v60, %v580_v60  ;;  %v691_v15 = vsel %vm459_vm3, %v628_v33, 0.0  ;;  %v585_v60 = vsub.f32 %v9888_v29, %v10051_v52 }
 0x23c   :  { %v684_v22 = vadd.f32 %v683_v50, %v682_v5  ;;  %v630_v50 = vmul.f32 %v581_v6, %v581_v6  ;;  %v693_v18 = vsel %vm459_vm3, %v629_v8, 0.0  ;;  %v586_v6 = vsub.f32 %v9896_v31, %v10051_v52 }
 0x23e   :  { %v686_v47 = vadd.f32 %v685_v46, %v684_v22  ;;  %v631_v46 = vmul.f32 %v582_v3, %v582_v3  ;;  %v695_v13 = vsel %vm459_vm3, %v630_v50, 0.0  ;;  %v587_v3 = vsub.f32 %v9902_v32, %v10051_v52 }
 0x240   :  { %v688_v35 = vadd.f32 %v687_v4, %v686_v47  ;;  %v632_v4 = vmul.f32 %v583_v0, %v583_v0  ;;  %v697_v33 = vsel %vm459_vm3, %v631_v46, 0.0  ;;  %v588_v0 = vsub.f32 %v9908_v16, %v10051_v52 }
 0x242   :  { %v690_v5 = vadd.f32 %v689_v37, %v688_v35  ;;  %v633_v37 = vmul.f32 %v584_v20, %v584_v20  ;;  %v699_v8 = vsel %vm459_vm3, %v632_v4, 0.0  ;;  %v589_v20 = vsub.f32 %v9914_v19, %v10051_v52 }
 0x244   :  { %v692_v22 = vadd.f32 %v691_v15, %v690_v5  ;;  %v634_v15 = vmul.f32 %v585_v60, %v585_v60  ;;  %v701_v50 = vsel %vm459_vm3, %v633_v37, 0.0  ;;  %v590_v60 = vsub.f32 %v9920_v23, %v10051_v52 }
 0x246   :  { %v694_v47 = vadd.f32 %v693_v18, %v692_v22  ;;  %v635_v18 = vmul.f32 %v586_v6, %v586_v6  ;;  %v703_v46 = vsel %vm459_vm3, %v634_v15, 0.0  ;;  %v591_v6 = vsub.f32 %v9926_v40, %v10051_v52 }
 0x248   :  { %v696_v35 = vadd.f32 %v695_v13, %v694_v47  ;;  %v636_v13 = vmul.f32 %v587_v3, %v587_v3  ;;  %v705_v4 = vsel %vm459_vm3, %v635_v18, 0.0  ;;  %v592_v3 = vsub.f32 %v9932_v41, %v10051_v52 }
 0x24a   :  { %v698_v5 = vadd.f32 %v697_v33, %v696_v35  ;;  %v637_v33 = vmul.f32 %v588_v0, %v588_v0  ;;  %v707_v37 = vsel %vm459_vm3, %v636_v13, 0.0  ;;  %v593_v0 = vsub.f32 %v9938_v54, %v10051_v52 }
 0x24c   :  { %v700_v22 = vadd.f32 %v699_v8, %v698_v5  ;;  %v638_v8 = vmul.f32 %v589_v20, %v589_v20  ;;  %v709_v15 = vsel %vm459_vm3, %v637_v33, 0.0  ;;  %v594_v20 = vsub.f32 %v9944_v44, %v10051_v52 }
 0x24e   :  { %v702_v47 = vadd.f32 %v701_v50, %v700_v22  ;;  %v639_v50 = vmul.f32 %v590_v60, %v590_v60  ;;  %v711_v18 = vsel %vm459_vm3, %v638_v8, 0.0  ;;  %v595_v60 = vsub.f32 %v9950_v11, %v10051_v52 }
 0x250   :  { %v704_v35 = vadd.f32 %v703_v46, %v702_v47  ;;  %v640_v46 = vmul.f32 %v591_v6, %v591_v6  ;;  %v713_v13 = vsel %vm459_vm3, %v639_v50, 0.0  ;;  %v596_v6 = vsub.f32 %v9956_v34, %v10051_v52 }
 0x252   :  { %v706_v5 = vadd.f32 %v705_v4, %v704_v35  ;;  %v641_v4 = vmul.f32 %v592_v3, %v592_v3  ;;  %v715_v33 = vsel %vm459_vm3, %v640_v46, 0.0  ;;  %v597_v3 = vsub.f32 %v9962_v49, %v10051_v52 }
 0x254   :  { %v708_v22 = vadd.f32 %v707_v37, %v706_v5  ;;  %v642_v37 = vmul.f32 %v593_v0, %v593_v0  ;;  %v717_v8 = vsel %vm459_vm3, %v641_v4, 0.0  ;;  %v598_v0 = vsub.f32 %v9968_v38, %v10051_v52 }
 0x256   :  { %v710_v47 = vadd.f32 %v709_v15, %v708_v22  ;;  %v643_v15 = vmul.f32 %v594_v20, %v594_v20  ;;  %v719_v50 = vsel %vm459_vm3, %v642_v37, 0.0  ;;  %v599_v20 = vsub.f32 %v9974_v25, %v10051_v52 }
 0x258   :  { %v712_v35 = vadd.f32 %v711_v18, %v710_v47  ;;  %v644_v18 = vmul.f32 %v595_v60, %v595_v60  ;;  %v721_v46 = vsel %vm459_vm3, %v643_v15, 0.0  ;;  %v600_v60 = vsub.f32 %v9980_v26, %v10051_v52 }
 0x25a   :  { %v714_v5 = vadd.f32 %v713_v13, %v712_v35  ;;  %v645_v13 = vmul.f32 %v596_v6, %v596_v6  ;;  %v723_v4 = vsel %vm459_vm3, %v644_v18, 0.0  ;;  %v601_v6 = vsub.f32 %v9986_v43, %v10051_v52 }
 0x25c   :  { %v716_v22 = vadd.f32 %v715_v33, %v714_v5  ;;  %v646_v33 = vmul.f32 %v597_v3, %v597_v3  ;;  %v725_v37 = vsel %vm459_vm3, %v645_v13, 0.0  ;;  %v602_v3 = vsub.f32 %v9992_v58, %v10051_v52 }
 0x25e   :  { %v718_v47 = vadd.f32 %v717_v8, %v716_v22  ;;  %v647_v8 = vmul.f32 %v598_v0, %v598_v0  ;;  %v727_v15 = vsel %vm459_vm3, %v646_v33, 0.0  ;;  %v603_v0 = vsub.f32 %v9998_v59, %v10051_v52 }
 0x260   :  { %v720_v35 = vadd.f32 %v719_v50, %v718_v47  ;;  %v648_v50 = vmul.f32 %v599_v20, %v599_v20  ;;  %v729_v18 = vsel %vm459_vm3, %v647_v8, 0.0  ;;  %v604_v20 = vsub.f32 %v10004_v61, %v10051_v52 }
 0x262   :  { %v722_v5 = vadd.f32 %v721_v46, %v720_v35  ;;  %v649_v46 = vmul.f32 %v600_v60, %v600_v60  ;;  %v731_v13 = vsel %vm459_vm3, %v648_v50, 0.0  ;;  %v605_v60 = vsub.f32 %v10010_v62, %v10051_v52 }
 0x264   :  { %v724_v22 = vadd.f32 %v723_v4, %v722_v5  ;;  %v650_v4 = vmul.f32 %v601_v6, %v601_v6  ;;  %v733_v33 = vsel %vm459_vm3, %v649_v46, 0.0  ;;  %v606_v6 = vsub.f32 %v10015_v53, %v10051_v52 }
 0x266   :  { %v726_v47 = vadd.f32 %v725_v37, %v724_v22  ;;  %v651_v37 = vmul.f32 %v602_v3, %v602_v3  ;;  %v735_v8 = vsel %vm459_vm3, %v650_v4, 0.0  ;;  %v607_v3 = vsub.f32 %v10020_v55, %v10051_v52 }
 0x268   :  { %v728_v35 = vadd.f32 %v727_v15, %v726_v47  ;;  %v652_v15 = vmul.f32 %v603_v0, %v603_v0  ;;  %v737_v50 = vsel %vm459_vm3, %v651_v37, 0.0  ;;  %v608_v0 = vsub.f32 %v10025_v56, %v10051_v52 }
 0x269   :  { %v656_v49 = vmul.f32 %v607_v3, %v607_v3  ;;  %v612_v3 = vsub.f32 %v10047_v2, %v10051_v52 }
 0x26a   :  { %v730_v5 = vadd.f32 %v729_v18, %v728_v35  ;;  %v653_v18 = vmul.f32 %v604_v20, %v604_v20  ;;  %v739_v46 = vsel %vm459_vm3, %v652_v15, 0.0  ;;  %v657_v34 = vmul.f32 %v608_v0, %v608_v0 }
 0x26c   :  { %v732_v22 = vadd.f32 %v731_v13, %v730_v5  ;;  %v654_v13 = vmul.f32 %v605_v60, %v605_v60  ;;  %v741_v4 = vsel %vm459_vm3, %v653_v18, 0.0  ;;  %v747_v18 = vsel %vm459_vm3, %v656_v49, 0.0 }
 0x26e   :  { %v734_v47 = vadd.f32 %v733_v33, %v732_v22  ;;  %v655_v33 = vmul.f32 %v606_v6, %v606_v6  ;;  %v743_v37 = vsel %vm459_vm3, %v654_v13, 0.0  ;;  %v611_v6 = vsub.f32 %v10040_v48, %v10051_v52 }
 0x26f   :  { %v749_v13 = vsel %vm459_vm3, %v657_v34, 0.0 }
 0x270   :  { %v736_v35 = vadd.f32 %v735_v8, %v734_v47  ;;  %v13580_v8 = vld [vmem:[#allocation16_spill] sm:$0xff]  ;;  %v745_v15 = vsel %vm459_vm3, %v655_v33, 0.0  ;;  %v661_v33 = vmul.f32 %v612_v3, %v612_v3 }
 0x271   :  { %v609_v20 = vsub.f32 %v13580_v8, %v10051_v52 }
 0x272   :  { %v738_v5 = vadd.f32 %v737_v50, %v736_v35  ;;  %v13581_v50 = vld [vmem:[#allocation17_spill] sm:$0xff]  ;;  %v757_v49 = vsel %vm459_vm3, %v661_v33, 0.0 }
 0x273   :  { %v610_v60 = vsub.f32 %v13581_v50, %v10051_v52 }
 0x274   :  { %v740_v22 = vadd.f32 %v739_v46, %v738_v5  ;;  %v658_v46 = vmul.f32 %v609_v20, %v609_v20 }
 0x276   :  { %v742_v47 = vadd.f32 %v741_v4, %v740_v22  ;;  %v659_v4 = vmul.f32 %v610_v60, %v610_v60  ;;  %v751_v0 = vsel %vm459_vm3, %v658_v46, 0.0 }
 0x278   :  { %v744_v35 = vadd.f32 %v743_v37, %v742_v47  ;;  %v660_v37 = vmul.f32 %v611_v6, %v611_v6 }
 0x27a   :  { %v746_v5 = vadd.f32 %v745_v15, %v744_v35  ;;  %v753_v35 = vsel %vm459_vm3, %v659_v4, 0.0  ;;  %v755_v20 = vsel %vm459_vm3, %v660_v37, 0.0  ;;  %v457_v37 = vld [vmem:[%s13523_s3] sm:$0x1]  ;;  %s6930_s3 = sshll.u32 %s9477_s26, 4  ;;  %s6931_s3 = int_to_ptr.vmem [resolvable:$true] %s6930_s3 }
 0x27c   :  { %v748_v22 = vadd.f32 %v747_v18, %v746_v5 }
 0x27e   :  { %v750_v47 = vadd.f32 %v749_v13, %v748_v22 }
 0x280   :  { %v752_v11 = vadd.f32 %v751_v0, %v750_v47 }
 0x282   :  { %v754_v15 = vadd.f32 %v753_v35, %v752_v11 }
 0x284   :  { %v756_v44 = vadd.f32 %v755_v20, %v754_v15 }
 0x286   :  { %v758_v5 = vadd.f32 %v757_v49, %v756_v44 }
 0x288   :  { %v759_v18 = vrot.slane %v758_v5, 4 }
 0x28a   :  { %v760_v54 = vadd.f32 %v759_v18, %v758_v5 }
 0x28c   :  { %v761_v60 = vrot.slane %v760_v54, 2 }
 0x28e   :  { %v762_v41 = vadd.f32 %v761_v60, %v760_v54 }
 0x290   :  { %v763_v34 = vrot.slane %v762_v41, 1 }
 0x292   :  { %v764_v22 = vadd.f32 %v763_v34, %v762_v41  ;;  %v458_v41 = vld [vmem:[%s13524_s4] sm:$0x1] }
 0x294   :  { %v765_v6 = vmul.f32 0.0025510204, %v764_v22 }
 0x296   :  { %v766_v13 = vadd.f32 1e-05, %v765_v6 }
 0x298   :  { %9385 = vrsqrt.f32 %v766_v13  ;;  %vm773_vm5 = vweird.f32 %v766_v13 }
 0x29e   :  { %v9386_v46 = vpop.eup %9385 }
 0x29f   :  { %v768_v3 = vmul.f32 %v9386_v46, %v766_v13  ;;  %vm774_vm4 = vweird.f32 %v9386_v46 }
 0x2a0   :  { %vm775_vm6 = vmor %vm773_vm5, %vm774_vm4 }
 0x2a1   :  { %v769_v47 = vmul.f32 %v9386_v46, %v768_v3 }
 0x2a3   :  { %v770_v4 = vmul.f32 0.5, %v769_v47 }
 0x2a5   :  { %v771_v11 = vsub.f32 1.5, %v770_v4 }
 0x2a7   :  { %v772_v44 = vmul.f32 %v9386_v46, %v771_v11 }
 0x2a9   :  { %v776_v0 = vsel %vm775_vm6, %v9386_v46, %v772_v44 }
 0x2aa   :  { %v777_v54 = vmul.f32 %v776_v0, %v457_v37 }
 0x2ac   :  { %v778_v33 = vmul.f32 %v777_v54, %v10051_v52  ;;  %v10207_v35 = vperm.slane %v777_v54, 0 }
 0x2ae   :  { %v779_v15 = vsub.f32 %v458_v41, %v778_v33  ;;  %v831_v20 = vmul.f32 %v10207_v35, %v10047_v2  ;;  %v817_v34 = vmul.f32 %v10207_v35, %v9968_v38  ;;  %v818_v52 = vmul.f32 %v10207_v35, %v9974_v25 }
 0x2af   :  { %v819_v22 = vmul.f32 %v10207_v35, %v9980_v26  ;;  %v820_v2 = vmul.f32 %v10207_v35, %v9986_v43  ;;  %v821_v6 = vmul.f32 %v10207_v35, %v9992_v58  ;;  %v822_v13 = vmul.f32 %v10207_v35, %v9998_v59 }
 0x2b0   :  { %v10211_v49 = vperm.slane %v779_v15, 0  ;;  %v823_v46 = vmul.f32 %v10207_v35, %v10004_v61  ;;  %v824_v38 = vmul.f32 %v10207_v35, %v10010_v62  ;;  %v825_v25 = vmul.f32 %v10207_v35, %v10015_v53 }
 0x2b1   :  { %v826_v26 = vmul.f32 %v10207_v35, %v10020_v55  ;;  %v827_v43 = vmul.f32 %v10207_v35, %v10025_v56  ;;  %v828_v58 = vmul.f32 %v10207_v35, %v13580_v8  ;;  %v829_v59 = vmul.f32 %v10207_v35, %v13581_v50 }
 0x2b2   :  { %v883_v5 = vadd.f32 %v10211_v49, %v831_v20  ;;  %v830_v61 = vmul.f32 %v10207_v35, %v10040_v48  ;;  %v10244_v62 = vadd.f32 %v10211_v49, %v817_v34  ;;  %v10247_v53 = vadd.f32 %v10211_v49, %v818_v52  ;;  %v13582_v20 = vld [vmem:[#allocation8_spill] sm:$0xff]  ;;  %v13583_v34 = vld [vmem:[#allocation9_spill] sm:$0xff] }
 0x2b3   :  { %v10250_v55 = vadd.f32 %v10211_v49, %v819_v22  ;;  %v10253_v56 = vadd.f32 %v10211_v49, %v820_v2  ;;  %v10256_v8 = vadd.f32 %v10211_v49, %v821_v6  ;;  %v10259_v50 = vadd.f32 %v10211_v49, %v822_v13 }
 0x2b4   :  { %v932_v18 = vmax.f32 %v883_v5, 0.0  ;;  %v10262_v48 = vadd.f32 %v10211_v49, %v823_v46  ;;  %v10265_v3 = vadd.f32 %v10211_v49, %v824_v38  ;;  %v10268_v47 = vadd.f32 %v10211_v49, %v825_v25 }
 0x2b5   :  { %v10271_v4 = vadd.f32 %v10211_v49, %v826_v26  ;;  %v10274_v11 = vadd.f32 %v10211_v49, %v827_v43  ;;  %v10277_v37 = vadd.f32 %v10211_v49, %v828_v58  ;;  %v10280_v44 = vadd.f32 %v10211_v49, %v829_v59 }
 0x2b6   :  { %v981_v60 = vpack.c.bf16 %v932_v18, %v932_v18  ;;  %v10283_v0 = vadd.f32 %v10211_v49, %v830_v61  ;;  %v783_v54 = vmul.f32 %v10207_v35, %v9760_v9  ;;  %v784_v41 = vmul.f32 %v10207_v35, %v9754_v7 }
 0x2b7   :  { %v785_v33 = vmul.f32 %v10207_v35, %v9764_v10  ;;  %v786_v15 = vmul.f32 %v10207_v35, %v9770_v12  ;;  %v787_v5 = vmul.f32 %v10207_v35, %v13582_v20  ;;  %v788_v52 = vmul.f32 %v10207_v35, %v13583_v34 }
 0x2b8   :  { %1031 = vst.msk [vmem:[#allocation2 + $0xc0] sm:$0xf] %vm982_vm7, %v981_v60  ;;  %v835_v18 = vadd.f32 %v10211_v49, %v783_v54  ;;  %v836_v60 = vadd.f32 %v10211_v49, %v784_v41  ;;  %v789_v10 = vmul.f32 %v10207_v35, %v9792_v24  ;;  %v790_v12 = vmul.f32 %v10207_v35, %v9798_v30 }
 0x2b9   :  { %v837_v9 = vadd.f32 %v10211_v49, %v785_v33  ;;  %v838_v7 = vadd.f32 %v10211_v49, %v786_v15  ;;  %v839_v22 = vadd.f32 %v10211_v49, %v787_v5  ;;  %v840_v2 = vadd.f32 %v10211_v49, %v788_v52 }
 0x2ba   :  { %v791_v6 = vmul.f32 %v10207_v35, %v9804_v36  ;;  %v841_v13 = vadd.f32 %v10211_v49, %v789_v10  ;;  %v884_v46 = vmax.f32 %v835_v18, 0.0  ;;  %v885_v38 = vmax.f32 %v836_v60, 0.0 }
 0x2bb   :  { %v792_v25 = vmul.f32 %v10207_v35, %v9810_v42  ;;  %v842_v26 = vadd.f32 %v10211_v49, %v790_v12  ;;  %v886_v24 = vmax.f32 %v837_v9, 0.0  ;;  %v887_v43 = vmax.f32 %v838_v7, 0.0 }
 0x2bc   :  { %v793_v58 = vmul.f32 %v10207_v35, %v9818_v51  ;;  %v794_v30 = vmul.f32 %v10207_v35, %v9824_v57  ;;  %v843_v59 = vadd.f32 %v10211_v49, %v791_v6  ;;  %v888_v36 = vmax.f32 %v839_v22, 0.0 }
 0x2bd   :  { %v795_v61 = vmul.f32 %v10207_v35, %v9830_v63  ;;  %v796_v54 = vmul.f32 %v10207_v35, %v9836_v1  ;;  %v844_v42 = vadd.f32 %v10211_v49, %v792_v25  ;;  %v889_v41 = vmax.f32 %v840_v2, 0.0 }
 0x2be   :  { %v845_v33 = vadd.f32 %v10211_v49, %v793_v58  ;;  %v890_v15 = vmax.f32 %v841_v13, 0.0  ;;  %v933_v20 = vpack.c.bf16 %v884_v46, %v884_v46  ;;  %v934_v51 = vpack.c.bf16 %v885_v38, %v885_v38 }
 0x2bf   :  { %v846_v5 = vadd.f32 %v10211_v49, %v794_v30  ;;  %v891_v57 = vmax.f32 %v842_v26, 0.0  ;;  %v935_v18 = vpack.c.bf16 %v886_v24, %v886_v24  ;;  %v936_v60 = vpack.c.bf16 %v887_v43, %v887_v43 }
 0x2c0   :  { %v797_v34 = vmul.f32 %v10207_v35, %v9844_v14  ;;  %v847_v63 = vadd.f32 %v10211_v49, %v795_v61  ;;  %v892_v52 = vmax.f32 %v843_v59, 0.0  ;;  %v937_v1 = vpack.c.bf16 %v888_v36, %v888_v36  ;;  %983 = vst.msk [vmem:[#allocation2] sm:$0xf] %vm982_vm7, %v933_v20 }
 0x2c1   :  { %v798_v9 = vmul.f32 %v10207_v35, %v9850_v17  ;;  %v848_v7 = vadd.f32 %v10211_v49, %v796_v54  ;;  %v893_v10 = vmax.f32 %v844_v42, 0.0  ;;  %v938_v22 = vpack.c.bf16 %v889_v41, %v889_v41  ;;  %984 = vst.msk [vmem:[#allocation2 + $0x4] sm:$0xf] %vm982_vm7, %v934_v51 }
 0x2c2   :  { %v799_v12 = vmul.f32 %v10207_v35, %v9856_v21  ;;  %v849_v14 = vadd.f32 %v10211_v49, %v797_v34  ;;  %v894_v2 = vmax.f32 %v845_v33, 0.0  ;;  %v939_v6 = vpack.c.bf16 %v890_v15, %v890_v15  ;;  %985 = vst.msk [vmem:[#allocation2 + $0x8] sm:$0xf] %vm982_vm7, %v935_v18 }
 0x2c3   :  { %v800_v13 = vmul.f32 %v10207_v35, %v9862_v27  ;;  %v850_v17 = vadd.f32 %v10211_v49, %v798_v9  ;;  %v895_v46 = vmax.f32 %v846_v5, 0.0  ;;  %v940_v38 = vpack.c.bf16 %v891_v57, %v891_v57  ;;  %986 = vst.msk [vmem:[#allocation2 + $0xc] sm:$0xf] %vm982_vm7, %v936_v60 }
 0x2c4   :  { %v801_v25 = vmul.f32 %v10207_v35, %v9870_v39  ;;  %v851_v21 = vadd.f32 %v10211_v49, %v799_v12  ;;  %v896_v26 = vmax.f32 %v847_v63, 0.0  ;;  %v941_v24 = vpack.c.bf16 %v892_v52, %v892_v52  ;;  %987 = vst.msk [vmem:[#allocation2 + $0x10] sm:$0xf] %vm982_vm7, %v937_v1 }
 0x2c5   :  { %v802_v43 = vmul.f32 %v10207_v35, %v9876_v45  ;;  %v852_v27 = vadd.f32 %v10211_v49, %v800_v13  ;;  %v897_v58 = vmax.f32 %v848_v7, 0.0  ;;  %v942_v30 = vpack.c.bf16 %v893_v10, %v893_v10  ;;  %988 = vst.msk [vmem:[#allocation2 + $0x14] sm:$0xf] %vm982_vm7, %v938_v22 }
 0x2c6   :  { %v803_v59 = vmul.f32 %v10207_v35, %v9882_v28  ;;  %v853_v39 = vadd.f32 %v10211_v49, %v801_v25  ;;  %v898_v36 = vmax.f32 %v849_v14, 0.0  ;;  %v943_v61 = vpack.c.bf16 %v894_v2, %v894_v2  ;;  %989 = vst.msk [vmem:[#allocation2 + $0x18] sm:$0xf] %vm982_vm7, %v939_v6  ;;  %v13584_v2 = vld [vmem:[#allocation10_spill] sm:$0xff] }
 0x2c7   :  { %v804_v54 = vmul.f32 %v10207_v35, %v9888_v29  ;;  %v854_v45 = vadd.f32 %v10211_v49, %v802_v43  ;;  %v899_v42 = vmax.f32 %v850_v17, 0.0  ;;  %v944_v41 = vpack.c.bf16 %v895_v46, %v895_v46  ;;  %990 = vst.msk [vmem:[#allocation2 + $0x1c] sm:$0xf] %vm982_vm7, %v940_v38  ;;  %v13585_v46 = vld [vmem:[#allocation11_spill] sm:$0xff] }
 0x2c8   :  { %v805_v33 = vmul.f32 %v10207_v35, %v9896_v31  ;;  %v855_v28 = vadd.f32 %v10211_v49, %v803_v59  ;;  %v900_v15 = vmax.f32 %v851_v21, 0.0  ;;  %v945_v20 = vpack.c.bf16 %v896_v26, %v896_v26  ;;  %991 = vst.msk [vmem:[#allocation2 + $0x20] sm:$0xf] %vm982_vm7, %v941_v24  ;;  %v13586_v26 = vld [vmem:[#allocation12_spill] sm:$0xff] }
 0x2c9   :  { %v806_v51 = vmul.f32 %v10207_v35, %v9902_v32  ;;  %v856_v29 = vadd.f32 %v10211_v49, %v804_v54  ;;  %v901_v5 = vmax.f32 %v852_v27, 0.0  ;;  %v946_v57 = vpack.c.bf16 %v897_v58, %v897_v58  ;;  %992 = vst.msk [vmem:[#allocation2 + $0x24] sm:$0xf] %vm982_vm7, %v942_v30  ;;  %v13587_v30 = vld [vmem:[#allocation13_spill] sm:$0xff]  ;;  %v13588_v54 = vld [vmem:[#allocation14_spill] sm:$0xff] }
 0x2ca   :  { %v807_v18 = vmul.f32 %v10207_v35, %v9908_v16  ;;  %v857_v31 = vadd.f32 %v10211_v49, %v805_v33  ;;  %v902_v60 = vmax.f32 %v853_v39, 0.0  ;;  %v947_v34 = vpack.c.bf16 %v898_v36, %v898_v36  ;;  %993 = vst.msk [vmem:[#allocation2 + $0x28] sm:$0xf] %vm982_vm7, %v943_v61 }
 0x2cb   :  { %v808_v63 = vmul.f32 %v10207_v35, %v9914_v19  ;;  %v858_v32 = vadd.f32 %v10211_v49, %v806_v51  ;;  %v903_v52 = vmax.f32 %v854_v45, 0.0  ;;  %v948_v1 = vpack.c.bf16 %v899_v42, %v899_v42  ;;  %994 = vst.msk [vmem:[#allocation2 + $0x2c] sm:$0xf] %vm982_vm7, %v944_v41 }
 0x2cc   :  { %v809_v9 = vmul.f32 %v10207_v35, %v9920_v23  ;;  %v859_v16 = vadd.f32 %v10211_v49, %v807_v18  ;;  %v904_v7 = vmax.f32 %v855_v28, 0.0  ;;  %v949_v10 = vpack.c.bf16 %v900_v15, %v900_v15  ;;  %995 = vst.msk [vmem:[#allocation2 + $0x30] sm:$0xf] %vm982_vm7, %v945_v20  ;;  %v13589_v28 = vld [vmem:[#allocation15_spill] sm:$0xff] }
 0x2cd   :  { %v810_v22 = vmul.f32 %v10207_v35, %v9926_v40  ;;  %v860_v19 = vadd.f32 %v10211_v49, %v808_v63  ;;  %v905_v12 = vmax.f32 %v856_v29, 0.0  ;;  %v950_v14 = vpack.c.bf16 %v901_v5, %v901_v5  ;;  %996 = vst.msk [vmem:[#allocation2 + $0x34] sm:$0xf] %vm982_vm7, %v946_v57 }
 0x2ce   :  { %v811_v6 = vmul.f32 %v10207_v35, %v13584_v2  ;;  %v861_v23 = vadd.f32 %v10211_v49, %v809_v9  ;;  %v906_v13 = vmax.f32 %v857_v31, 0.0  ;;  %v951_v17 = vpack.c.bf16 %v902_v60, %v902_v60  ;;  %997 = vst.msk [vmem:[#allocation2 + $0x38] sm:$0xf] %vm982_vm7, %v947_v34 }
 0x2cf   :  { %v812_v38 = vmul.f32 %v10207_v35, %v13585_v46  ;;  %v862_v40 = vadd.f32 %v10211_v49, %v810_v22  ;;  %v907_v25 = vmax.f32 %v858_v32, 0.0  ;;  %v952_v21 = vpack.c.bf16 %v903_v52, %v903_v52  ;;  %998 = vst.msk [vmem:[#allocation2 + $0x3c] sm:$0xf] %vm982_vm7, %v948_v1 }
 0x2d0   :  { %v813_v24 = vmul.f32 %v10207_v35, %v13586_v26  ;;  %v863_v43 = vadd.f32 %v10211_v49, %v811_v6  ;;  %v908_v27 = vmax.f32 %v859_v16, 0.0  ;;  %v953_v58 = vpack.c.bf16 %v904_v7, %v904_v7  ;;  %999 = vst.msk [vmem:[#allocation2 + $0x40] sm:$0xf] %vm982_vm7, %v949_v10 }
 0x2d1   :  { %v814_v59 = vmul.f32 %v10207_v35, %v13587_v30  ;;  %v864_v39 = vadd.f32 %v10211_v49, %v812_v38  ;;  %v909_v36 = vmax.f32 %v860_v19, 0.0  ;;  %v954_v61 = vpack.c.bf16 %v905_v12, %v905_v12  ;;  %1000 = vst.msk [vmem:[#allocation2 + $0x44] sm:$0xf] %vm982_vm7, %v950_v14  ;;  %v10453_v30 = vld [vmem:[#allocation2 + $0x18] sm:$0xff] }
 0x2d2   :  { %v815_v45 = vmul.f32 %v10207_v35, %v13588_v54  ;;  %v865_v42 = vadd.f32 %v10211_v49, %v813_v24  ;;  %v910_v41 = vmax.f32 %v861_v23, 0.0  ;;  %v955_v33 = vpack.c.bf16 %v906_v13, %v906_v13  ;;  %1001 = vst.msk [vmem:[#allocation2 + $0x48] sm:$0xf] %vm982_vm7, %v951_v17 }
 0x2d3   :  { %v816_v15 = vmul.f32 %v10207_v35, %v13589_v28  ;;  %v866_v20 = vadd.f32 %v10211_v49, %v814_v59  ;;  %v911_v51 = vmax.f32 %v862_v40, 0.0  ;;  %v956_v29 = vpack.c.bf16 %v907_v25, %v907_v25  ;;  %1002 = vst.msk [vmem:[#allocation2 + $0x4c] sm:$0xf] %vm982_vm7, %v952_v21 }
 0x2d4   :  { %v867_v5 = vadd.f32 %v10211_v49, %v815_v45  ;;  %v912_v57 = vmax.f32 %v863_v43, 0.0  ;;  %v957_v18 = vpack.c.bf16 %v908_v27, %v908_v27  ;;  %1003 = vst.msk [vmem:[#allocation2 + $0x50] sm:$0xf] %vm982_vm7, %v953_v58  ;;  %v913_v60 = vmax.f32 %v864_v39, 0.0  ;;  %v10418_v19 = vld [vmem:[#allocation2 + $0x30] sm:$0xff] }
 0x2d5   :  { %v868_v31 = vadd.f32 %v10211_v49, %v816_v15  ;;  %v958_v34 = vpack.c.bf16 %v909_v36, %v909_v36  ;;  %1004 = vst.msk [vmem:[#allocation2 + $0x54] sm:$0xf] %vm982_vm7, %v954_v61  ;;  %v914_v63 = vmax.f32 %v865_v42, 0.0  ;;  %v959_v35 = vpack.c.bf16 %v910_v41, %v910_v41  ;;  %v10474_v41 = vld [vmem:[#allocation2 + $0x8] sm:$0xff]  ;;  %v10481_v15 = vld [vmem:[#allocation2] sm:$0xff] }
 0x2d6   :  { %1005 = vst.msk [vmem:[#allocation2 + $0x58] sm:$0xf] %vm982_vm7, %v955_v33  ;;  %v10410_v32 = vld [vmem:[#allocation2 + $0x38] sm:$0xff]  ;;  %v915_v52 = vmax.f32 %v866_v20, 0.0  ;;  %v960_v1 = vpack.c.bf16 %v911_v51, %v911_v51  ;;  %v916_v9 = vmax.f32 %v867_v5, 0.0  ;;  %v961_v16 = vpack.c.bf16 %v912_v57, %v912_v57 }
 0x2d7   :  { %1006 = vst.msk [vmem:[#allocation2 + $0x5c] sm:$0xf] %vm982_vm7, %v956_v29  ;;  %1406 = vmatpush.bf16.msra.mxu1 %v10410_v32  ;;  %v917_v49 = vmax.f32 %v868_v31, 0.0  ;;  %v962_v7 = vpack.c.bf16 %v913_v60, %v913_v60  ;;  %v918_v10 = vmax.f32 %v10244_v62, 0.0  ;;  %v963_v22 = vpack.c.bf16 %v914_v63, %v914_v63  ;;  %v7068_v51 = vld [vmem:[%s13525_s5] sm:$0xf] }
 0x2d8   :  { %1007 = vst.msk [vmem:[#allocation2 + $0x60] sm:$0xf] %vm982_vm7, %v957_v18  ;;  %v919_v12 = vmax.f32 %v10247_v53, 0.0  ;;  %v964_v14 = vpack.c.bf16 %v915_v52, %v915_v52  ;;  %v920_v2 = vmax.f32 %v10250_v55, 0.0  ;;  %v965_v6 = vpack.c.bf16 %v916_v9, %v916_v9  ;;  %v10429_v53 = vld [vmem:[#allocation2 + $0x28] sm:$0xff]  ;;  %v10522_v9 = vld [vmem:[#allocation2 + $0x40] sm:$0xff] }
 0x2d9   :  { %1008 = vst.msk [vmem:[#allocation2 + $0x64] sm:$0xf] %vm982_vm7, %v958_v34  ;;  %v921_v23 = vmax.f32 %v10253_v56, 0.0  ;;  %v966_v62 = vpack.c.bf16 %v917_v49, %v917_v49  ;;  %v922_v13 = vmax.f32 %v10256_v8, 0.0  ;;  %v967_v17 = vpack.c.bf16 %v918_v10, %v918_v10  ;;  %v9060_v29 = vld [vmem:[%s13525_s5 + $0xc] sm:$0xf0] }
 0x2da   :  { %1009 = vst.msk [vmem:[#allocation2 + $0x68] sm:$0xf] %vm982_vm7, %v959_v35  ;;  %v923_v46 = vmax.f32 %v10259_v50, 0.0  ;;  %v968_v55 = vpack.c.bf16 %v919_v12, %v919_v12  ;;  %v924_v38 = vmax.f32 %v10262_v48, 0.0  ;;  %v969_v40 = vpack.c.bf16 %v920_v2, %v920_v2  ;;  %v10440_v50 = vld [vmem:[#allocation2 + $0x20] sm:$0xff]  ;;  %v10508_v63 = vld [vmem:[#allocation2 + $0x48] sm:$0xff] }
 0x2db   :  { %1010 = vst.msk [vmem:[#allocation2 + $0x6c] sm:$0xf] %vm982_vm7, %v960_v1  ;;  %1407 = vmatpush.bf16.msra.mxu1 %v10418_v19  ;;  %v925_v56 = vmax.f32 %v10265_v3, 0.0  ;;  %v970_v8 = vpack.c.bf16 %v921_v23, %v921_v23  ;;  %v926_v25 = vmax.f32 %v10268_v47, 0.0  ;;  %v971_v21 = vpack.c.bf16 %v922_v13, %v922_v13  ;;  %v9058_v52 = vld [vmem:[%s13525_s5 + $0x4] sm:$0xf] }
 0x2dc   :  { %1011 = vst.msk [vmem:[#allocation2 + $0x70] sm:$0xf] %vm982_vm7, %v961_v16  ;;  %v927_v26 = vmax.f32 %v10271_v4, 0.0  ;;  %v972_v48 = vpack.c.bf16 %v923_v46, %v923_v46  ;;  %v928_v24 = vmax.f32 %v10274_v11, 0.0  ;;  %v973_v43 = vpack.c.bf16 %v924_v38, %v924_v38  ;;  %v10500_v60 = vld [vmem:[#allocation2 + $0x50] sm:$0xff] }
 0x2dd   :  { %1012 = vst.msk [vmem:[#allocation2 + $0x74] sm:$0xf] %vm982_vm7, %v962_v7  ;;  %v929_v3 = vmax.f32 %v10277_v37, 0.0  ;;  %v974_v47 = vpack.c.bf16 %v925_v56, %v925_v56  ;;  %v930_v27 = vmax.f32 %v10280_v44, 0.0  ;;  %v975_v58 = vpack.c.bf16 %v926_v25, %v926_v25  ;;  %v1080_v44 = vld [vmem:[#allocation2 + $0xc0] sm:$0xf] }
 0x2de   :  { %1013 = vst.msk [vmem:[#allocation2 + $0x78] sm:$0xf] %vm982_vm7, %v963_v22  ;;  %v931_v11 = vmax.f32 %v10283_v0, 0.0  ;;  %v976_v59 = vpack.c.bf16 %v927_v26, %v927_v26  ;;  %v977_v39 = vpack.c.bf16 %v928_v24, %v928_v24  ;;  %v10464_v0 = vld [vmem:[#allocation2 + $0x10] sm:$0xff]  ;;  %v1331_v45 = vunpack.c.l.b16 %v1080_v44  ;;  %v10495_v18 = vld [vmem:[#allocation2 + $0x58] sm:$0xff] }
 0x2df   :  { %1014 = vst.msk [vmem:[#allocation2 + $0x7c] sm:$0xf] %vm982_vm7, %v964_v14  ;;  %1408 = vmatpush.bf16.msra.mxu1 %v10429_v53  ;;  %v978_v37 = vpack.c.bf16 %v929_v3, %v929_v3  ;;  %v979_v36 = vpack.c.bf16 %v930_v27, %v930_v27  ;;  %v7069_v5 = vor.u32 %v9060_v29, %v7068_v51  ;;  %v7070_v1 = vld [vmem:[%s13525_s5 + $0x10] sm:$0xf0]  ;;  %v7084_v16 = vld [vmem:[%s13525_s5 + $0x20] sm:$0xf] }
 0x2e0   :  { %1015 = vst.msk [vmem:[#allocation2 + $0x80] sm:$0xf] %vm982_vm7, %v965_v6  ;;  %v980_v54 = vpack.c.bf16 %v931_v11, %v931_v11  ;;  %v1356_v33 = vpack.c.b16 %v1331_v45, %v1331_v45  ;;  %v10479_v28 = vld [vmem:[#allocation2 + $0x60] sm:$0xff]  ;;  %v9064_v49 = vld [vmem:[%s13525_s5 + $0x2c] sm:$0xf0]  ;;  %v7073_v7 = vor.u32 %v9058_v52, %v7070_v1 }
 0x2e1   :  { %1016 = vst.msk [vmem:[#allocation2 + $0x84] sm:$0xf] %vm982_vm7, %v966_v62  ;;  %v7085_v10 = vor.u32 %v9064_v49, %v7084_v16  ;;  %v7076_v2 = vld [vmem:[%s13525_s5 + $0x8] sm:$0xf]  ;;  %v9061_v6 = vld [vmem:[%s13525_s5 + $0x14] sm:$0xf0] }
 0x2e2   :  { %1017 = vst.msk [vmem:[#allocation2 + $0x88] sm:$0xf] %vm982_vm7, %v967_v17  ;;  %v10472_v42 = vld [vmem:[#allocation2 + $0x68] sm:$0xff]  ;;  %v10486_v20 = vsel %vm317_vm0, %v1356_v33, 0  ;;  %v9113_v62 = vld [vmem:[%s13525_s5 + $0x1b4] sm:$0xf0]  ;;  %v7077_v17 = vor.u32 %v9061_v6, %v7076_v2 }
 0x2e3   :  { %1018 = vst.msk [vmem:[#allocation2 + $0x8c] sm:$0xf] %vm982_vm7, %v968_v55  ;;  %1409 = vmatpush.bf16.msra.mxu1 %v10440_v50  ;;  %v7464_v23 = vld [vmem:[%s13525_s5 + $0x1a8] sm:$0xf]  ;;  %v9062_v55 = vld [vmem:[%s13525_s5 + $0x24] sm:$0xf] }
 0x2e4   :  { %1019 = vst.msk [vmem:[#allocation2 + $0x90] sm:$0xf] %vm982_vm7, %v969_v40  ;;  %v10462_v61 = vld [vmem:[#allocation2 + $0x70] sm:$0xff]  ;;  %v7465_v46 = vor.u32 %v9113_v62, %v7464_v23  ;;  %v7100_v40 = vld [vmem:[%s13525_s5 + $0x40] sm:$0xf]  ;;  %vm5504_vm0 = vcmask 1040384  }
 0x2e5   :  { %1020 = vst.msk [vmem:[#allocation2 + $0x94] sm:$0xf] %vm982_vm7, %v970_v8  ;;  %v7086_v38 = vld [vmem:[%s13525_s5 + $0x30] sm:$0xf0]  ;;  %v9068_v56 = vld [vmem:[%s13525_s5 + $0x4c] sm:$0xf0] }
 0x2e6   :  { %1021 = vst.msk [vmem:[#allocation2 + $0x98] sm:$0xf] %vm982_vm7, %v971_v21  ;;  %v10451_v4 = vld [vmem:[#allocation2 + $0x78] sm:$0xff]  ;;  %v7101_v8 = vor.u32 %v9068_v56, %v7100_v40  ;;  %v7089_v25 = vor.u32 %v9062_v55, %v7086_v38  ;;  %v7092_v21 = vld [vmem:[%s13525_s5 + $0x28] sm:$0xf] }
 0x2e7   :  { %1022 = vst.msk [vmem:[#allocation2 + $0x9c] sm:$0xf] %vm982_vm7, %v972_v48  ;;  %1449 = vmatpush.bf16.msra.mxu2 %v10451_v4  ;;  %1410 = vmatpush.bf16.msra.mxu1 %v10453_v30  ;;  %v9065_v26 = vld [vmem:[%s13525_s5 + $0x34] sm:$0xf0]  ;;  %v7480_v48 = vld [vmem:[%s13525_s5 + $0x1c8] sm:$0xf] }
 0x2e8   :  { %1023 = vst.msk [vmem:[#allocation2 + $0xa0] sm:$0xf] %vm982_vm7, %v973_v43  ;;  %v10564_v13 = vld [vmem:[#allocation2 + $0x80] sm:$0xff]  ;;  %v9117_v24 = vld [vmem:[%s13525_s5 + $0x1d4] sm:$0xf0]  ;;  %v7093_v43 = vor.u32 %v9065_v26, %v7092_v21 }
 0x2e9   :  { %1024 = vst.msk [vmem:[#allocation2 + $0xa4] sm:$0xf] %vm982_vm7, %v974_v47  ;;  %v7481_v3 = vor.u32 %v9117_v24, %v7480_v48  ;;  %v9066_v47 = vld [vmem:[%s13525_s5 + $0x44] sm:$0xf]  ;;  %v7102_v27 = vld [vmem:[%s13525_s5 + $0x50] sm:$0xf0] }
 0x2ea   :  { %1025 = vst.msk [vmem:[#allocation2 + $0xa8] sm:$0xf] %vm982_vm7, %v975_v58  ;;  %v10546_v14 = vld [vmem:[#allocation2 + $0x88] sm:$0xff]  ;;  %v7116_v58 = vld [vmem:[%s13525_s5 + $0x60] sm:$0xf] }
 0x2eb   :  { %1026 = vst.msk [vmem:[#allocation2 + $0xac] sm:$0xf] %vm982_vm7, %v976_v59  ;;  %1450 = vmatpush.bf16.msra.mxu2 %v10462_v61  ;;  %1411 = vmatpush.bf16.msra.mxu1 %v10464_v0  ;;  %v9072_v11 = vld [vmem:[%s13525_s5 + $0x6c] sm:$0xf0]  ;;  %v9069_v44 = vld [vmem:[%s13525_s5 + $0x54] sm:$0xf0] }
 0x2ec   :  { %1027 = vst.msk [vmem:[#allocation2 + $0xb0] sm:$0xf] %vm982_vm7, %v977_v39  ;;  %v10540_v12 = vld [vmem:[#allocation2 + $0x90] sm:$0xff]  ;;  %v7117_v59 = vor.u32 %v9072_v11, %v7116_v58  ;;  %v7105_v39 = vor.u32 %v9066_v47, %v7102_v27  ;;  %v7132_v45 = vld [vmem:[%s13525_s5 + $0x80] sm:$0xf]  ;;  %v9109_v58 = vld [vmem:[%s13526_s6 + $0x18] sm:$0xff] }
 0x2ed   :  { %1028 = vst.msk [vmem:[#allocation2 + $0xb4] sm:$0xf] %vm982_vm7, %v978_v37  ;;  %v7108_v37 = vld [vmem:[%s13525_s5 + $0x48] sm:$0xf]  ;;  %v9076_v33 = vld [vmem:[%s13525_s5 + $0x8c] sm:$0xf0] }
 0x2ee   :  { %1029 = vst.msk [vmem:[#allocation2 + $0xb8] sm:$0xf] %vm982_vm7, %v979_v36  ;;  %v10534_v22 = vld [vmem:[#allocation2 + $0x98] sm:$0xff]  ;;  %v7496_v36 = vld [vmem:[%s13525_s5 + $0x1e8] sm:$0xf]  ;;  %v7109_v51 = vor.u32 %v9069_v44, %v7108_v37  ;;  %v7133_v52 = vor.u32 %v9076_v33, %v7132_v45  ;;  %v9108_v11 = vld [vmem:[%s13526_s6 + $0x10] sm:$0xff] }
 0x2ef   :  { %1030 = vst.msk [vmem:[#allocation2 + $0xbc] sm:$0xf] %vm982_vm7, %v980_v54  ;;  %1451 = vmatpush.bf16.msra.mxu2 %v10472_v42  ;;  %1412 = vmatpush.bf16.msra.mxu1 %v10474_v41  ;;  %v9121_v54 = vld [vmem:[%s13525_s5 + $0x1f4] sm:$0xf0]  ;;  %v7124_v16 = vld [vmem:[%s13525_s5 + $0x68] sm:$0xf] }
 0x2f0   :  { %v10514_v35 = vld [vmem:[#allocation2 + $0xa0] sm:$0xff]  ;;  %v7497_v29 = vor.u32 %v9121_v54, %v7496_v36  ;;  %v9073_v49 = vld [vmem:[%s13525_s5 + $0x74] sm:$0xf0]  ;;  %v9080_v6 = vld [vmem:[%s13525_s5 + $0xac] sm:$0xf0] }
 0x2f1   :  { %v7148_v2 = vld [vmem:[%s13525_s5 + $0xa0] sm:$0xf]  ;;  %v7125_v23 = vor.u32 %v9073_v49, %v7124_v16  ;;  %v7140_v56 = vld [vmem:[%s13525_s5 + $0x88] sm:$0xf]  ;;  %v9129_v21 = vld [vmem:[%s13525_s5 + $0x234] sm:$0xf0] }
 0x2f2   :  { %v10506_v34 = vld [vmem:[#allocation2 + $0xa8] sm:$0xff]  ;;  %v7149_v55 = vor.u32 %v9080_v6, %v7148_v2  ;;  %v1105_v40 = vld [vmem:[%s13525_s5 + $0xc0] sm:$0x11]  ;;  %v9133_v44 = vld [vmem:[%s13525_s5 + $0x254] sm:$0xf0] }
 0x2f3   :  { %1452 = vmatpush.bf16.msra.mxu2 %v10479_v28  ;;  %1413 = vmatpush.bf16.msra.mxu1 %v10481_v15  ;;  %v1181_v26 = vunpack.c.l.b16 %v1105_v40  ;;  %v7544_v37 = vld [vmem:[%s13525_s5 + $0x248] sm:$0xf]  ;;  %v9059_v36 = vld [vmem:[%s13525_s5 + $0xc] sm:$0xf]  ;;  %v7078_v54 = vld [vmem:[%s13525_s5 + $0x18] sm:$0xf0]  ;;  %v1182_v45 = vunpack.c.h.b16 %v1105_v40 }
 0x2f4   :  { %v10498_v31 = vld [vmem:[#allocation2 + $0xb0] sm:$0xff]  ;;  %v9086_v2 = vld [vmem:[%s13525_s5 + $0xdc] sm:$0xf0]  ;;  %v7295_v40 = vld [vmem:[%s13525_s5 + $0xe0] sm:$0xf0] }
 0x2f5   :  { %v1209_v47 = vpack.c.b16 %v1181_v26, %v1181_v26 }
 0x2f6   :  { %v9057_v57 = vld [vmem:[#allocation2 + $0xb8] sm:$0xff]  ;;  %1414 = vmatmul.bf16.vlgmr.msra.gmra.mxu1 %v7069_v5  ;;  %v9070_v5 = vld [vmem:[%s13525_s5 + $0x64] sm:$0xf] }
 0x2f7   :  { %1542 = vmatpush.bf16.msrb.mxu1 %v10486_v20  ;;  %1492 = vmatpush.bf16.msra.mxu3 %v9057_v57 }
 0x2f8   :  { %2361 = vmatpush.bf16.msrb.mxu0 %v9057_v57  ;;  %1453 = vmatpush.bf16.msra.mxu2 %v10495_v18 }
 0x2fb   :  { %1850 = vmatpush.bf16.msra.mxu1 %v9057_v57  ;;  %1493 = vmatpush.bf16.msra.mxu3 %v10498_v31  ;;  %v7118_v57 = vld [vmem:[%s13525_s5 + $0x70] sm:$0xf0] }
 0x2fc   :  { %2362 = vmatpush.bf16.msrb.mxu0 %v10498_v31  ;;  %1454 = vmatpush.bf16.msra.mxu2 %v10500_v60  ;;  %v7121_v1 = vor.u32 %v9070_v5, %v7118_v57  ;;  %v1210_v5 = vpack.c.b16 %v1182_v45, %v1182_v45  ;;  %v10732_v57 = vld [vmem:[%s13525_s5 + $0xc8] sm:$0x11] }
 0x2ff   :  { %1851 = vmatpush.bf16.msra.mxu1 %v10498_v31  ;;  %1494 = vmatpush.bf16.msra.mxu3 %v10506_v34 }
 0x300   :  { %2363 = vmatpush.bf16.msrb.mxu0 %v10506_v34  ;;  %1455 = vmatpush.bf16.msra.mxu2 %v10508_v63 }
 0x303   :  { %1852 = vmatpush.bf16.msra.mxu1 %v10506_v34  ;;  %1495 = vmatpush.bf16.msra.mxu3 %v10514_v35 }
 0x304   :  { %2364 = vmatpush.bf16.msrb.mxu0 %v10514_v35  ;;  %1456 = vmatpush.bf16.msra.mxu2 %v10522_v9 }
 0x306   :  { %1419 = vmatmul.bf16.gmra.mxu1 %v7085_v10  ;;  %v9125_v10 = vld [vmem:[%s13525_s5 + $0x214] sm:$0xf0] }
 0x307   :  { %1853 = vmatpush.bf16.msra.mxu1 %v10514_v35  ;;  %1496 = vmatpush.bf16.msra.mxu3 %v10534_v22 }
 0x308   :  { %1764 = vmatpush.bf16.msrb.mxu2 %v10410_v32  ;;  %2365 = vmatpush.bf16.msrb.mxu0 %v10534_v22 }
 0x309   :  { %1457 = vmatmul.bf16.vlgmr.msra.gmra.mxu2 %v7073_v7  ;;  %v7512_v7 = vld [vmem:[%s13525_s5 + $0x208] sm:$0xf] }
 0x30a   :  { %v7513_v62 = vor.u32 %v9125_v10, %v7512_v7  ;;  %v7293_v10 = vld [vmem:[%s13525_s5 + $0xd0] sm:$0xf] }
 0x30b   :  { %1854 = vmatpush.bf16.msra.mxu1 %v10534_v22  ;;  %1497 = vmatpush.bf16.msra.mxu3 %v10540_v12 }
 0x30c   :  { %1765 = vmatpush.bf16.msrb.mxu2 %v10418_v19  ;;  %2366 = vmatpush.bf16.msrb.mxu0 %v10540_v12 }
 0x30f   :  { %1855 = vmatpush.bf16.msra.mxu1 %v10540_v12  ;;  %1498 = vmatpush.bf16.msra.mxu3 %v10546_v14 }
 0x310   :  { %1766 = vmatpush.bf16.msrb.mxu2 %v10429_v53  ;;  %2367 = vmatpush.bf16.msrb.mxu0 %v10546_v14 }
 0x313   :  { %1856 = vmatpush.bf16.msra.mxu1 %v10546_v14  ;;  %1499 = vmatpush.bf16.msra.mxu3 %v10564_v13 }
 0x314   :  { %1767 = vmatpush.bf16.msrb.mxu2 %v10440_v50  ;;  %2368 = vmatpush.bf16.msrb.mxu0 %v10564_v13 }
 0x316   :  { %1500 = vmatmul.bf16.vlgmr.msra.gmra.mxu3 %v7077_v17  ;;  %1424 = vmatmul.bf16.gmra.mxu1 %v7101_v8  ;;  %v9074_v17 = vld [vmem:[%s13525_s5 + $0x84] sm:$0xf]  ;;  %v9077_v8 = vld [vmem:[%s13525_s5 + $0x94] sm:$0xf0] }
 0x317   :  { %1807 = vmatpush.bf16.msrb.mxu3 %v10451_v4  ;;  %1857 = vmatpush.bf16.msra.mxu1 %v10564_v13  ;;  %v7141_v48 = vor.u32 %v9077_v8, %v7140_v56  ;;  %v9136_v56 = vld [vmem:[%s13525_s5 + $0x274] sm:$0xf]  ;;  %v7606_v8 = vld [vmem:[%s13525_s5 + $0x280] sm:$0xf0] }
 0x318   :  { %2766 = vmatpush.bf16.msra.mxu0 %v10451_v4  ;;  %1768 = vmatpush.bf16.msrb.mxu2 %v10453_v30 }
 0x319   :  { %2369 = vmatmul.bf16.vlgmr.msrb.gmra.mxu0 %v7465_v46  ;;  %1462 = vmatmul.bf16.gmra.mxu2 %v7089_v25  ;;  %v7134_v46 = vld [vmem:[%s13525_s5 + $0x90] sm:$0xf0]  ;;  %v7528_v25 = vld [vmem:[%s13525_s5 + $0x228] sm:$0xf] }
 0x31a   :  { %v7137_v38 = vor.u32 %v9074_v17, %v7134_v46  ;;  %v7529_v24 = vor.u32 %v9129_v21, %v7528_v25  ;;  %v7294_v46 = vor.u32 %v9086_v2, %v7293_v10  ;;  %v7609_v25 = vor.u32 %v9136_v56, %v7606_v8  ;;  %v9090_v21 = vld [vmem:[%s13525_s5 + $0xfc] sm:$0xf0]  ;;  %v9075_v10 = vld [vmem:[%s13525_s5 + $0x8c] sm:$0xf]  ;;  %v7142_v2 = vld [vmem:[%s13525_s5 + $0x98] sm:$0xf0] }
 0x31b   :  { %1808 = vmatpush.bf16.msrb.mxu3 %v10462_v61 }
 0x31c   :  { %2767 = vmatpush.bf16.msra.mxu0 %v10462_v61  ;;  %1769 = vmatpush.bf16.msrb.mxu2 %v10464_v0 }
 0x31f   :  { %1809 = vmatpush.bf16.msrb.mxu3 %v10472_v42 }
 0x320   :  { %2768 = vmatpush.bf16.msra.mxu0 %v10472_v42  ;;  %1770 = vmatpush.bf16.msrb.mxu2 %v10474_v41 }
 0x323   :  { %1810 = vmatpush.bf16.msrb.mxu3 %v10479_v28 }
 0x324   :  { %2769 = vmatpush.bf16.msra.mxu0 %v10479_v28  ;;  %1771 = vmatpush.bf16.msrb.mxu2 %v10481_v15 }
 0x326   :  { %1505 = vmatmul.bf16.gmra.mxu3 %v7093_v43  ;;  %1429 = vmatmul.bf16.gmra.mxu1 %v7117_v59  ;;  %v9078_v43 = vld [vmem:[%s13525_s5 + $0xa4] sm:$0xf]  ;;  %v7156_v59 = vld [vmem:[%s13525_s5 + $0xa8] sm:$0xf] }
 0x327   :  { %1811 = vmatpush.bf16.msrb.mxu3 %v10495_v18 }
 0x328   :  { %1900 = vmatpush.bf16.msra.mxu2 %v10486_v20  ;;  %2770 = vmatpush.bf16.msra.mxu0 %v10495_v18 }
 0x329   :  { %2374 = vmatmul.bf16.gmra.mxu0 %v7481_v3  ;;  %1467 = vmatmul.bf16.gmra.mxu2 %v7105_v39  ;;  %v7150_v3 = vld [vmem:[%s13525_s5 + $0xb0] sm:$0xf0]  ;;  %v9081_v39 = vld [vmem:[%s13525_s5 + $0xb4] sm:$0xf0] }
 0x32a   :  { %v7153_v27 = vor.u32 %v9078_v43, %v7150_v3  ;;  %v7157_v33 = vor.u32 %v9081_v39, %v7156_v59  ;;  %v9094_v59 = vld [vmem:[%s13525_s5 + $0x11c] sm:$0xf0]  ;;  %v9071_v39 = vld [vmem:[%s13525_s5 + $0x6c] sm:$0xf] }
 0x32b   :  { %1812 = vmatpush.bf16.msrb.mxu3 %v10500_v60 }
 0x32c   :  { %2771 = vmatpush.bf16.msra.mxu0 %v10500_v60 }
 0x32f   :  { %1813 = vmatpush.bf16.msrb.mxu3 %v10508_v63 }
 0x330   :  { %2772 = vmatpush.bf16.msra.mxu0 %v10508_v63 }
 0x333   :  { %1814 = vmatpush.bf16.msrb.mxu3 %v10522_v9 }
 0x334   :  { %2773 = vmatpush.bf16.msra.mxu0 %v10522_v9 }
 0x336   :  { %1510 = vmatmul.bf16.gmra.mxu3 %v7109_v51  ;;  %1434 = vmatmul.bf16.gmra.mxu1 %v7133_v52  ;;  %v7545_v51 = vor.u32 %v9133_v44, %v7544_v37  ;;  %v7453_v52 = vld [vmem:[%s13525_s5 + $0x268] sm:$0x11]  ;;  %v7126_v37 = vld [vmem:[%s13525_s5 + $0x78] sm:$0xf0] }
 0x337   :  { %1987 = vmatpush.bf16.msra.mxu3 %v9109_v58  ;;  %v2203_v16 = vunpack.c.l.b16 %v7453_v52  ;;  %v9088_v58 = vld [vmem:[%s13525_s5 + $0xf4] sm:$0xf] }
 0x338   :  { %3171 = vmatpush.bf16.msrb.mxu0 %v10410_v32 }
 0x339   :  { %2379 = vmatmul.bf16.gmra.mxu0 %v7497_v29  ;;  %1472 = vmatmul.bf16.gmra.mxu2 %v7121_v1  ;;  %v7081_v29 = vor.u32 %v9059_v36, %v7078_v54  ;;  %v1183_v1 = vunpack.c.l.b16 %v10732_v57  ;;  %v2231_v7 = vpack.c.b16 %v2203_v16, %v2203_v16  ;;  %v7129_v54 = vor.u32 %v9071_v39, %v7126_v37  ;;  %v9100_v37 = vld [vmem:[%s13525_s5 + $0x154] sm:$0xf] }
 0x33b   :  { %1988 = vmatpush.bf16.msra.mxu3 %v9108_v11  ;;  %v1211_v49 = vpack.c.b16 %v1183_v1, %v1183_v1  ;;  %v7341_v1 = vld [vmem:[%s13525_s5 + $0x130] sm:$0xf] }
 0x33c   :  { %3172 = vmatpush.bf16.msrb.mxu0 %v10418_v19 }
 0x340   :  { %3173 = vmatpush.bf16.msrb.mxu0 %v10429_v53 }
 0x344   :  { %3174 = vmatpush.bf16.msrb.mxu0 %v10440_v50 }
 0x346   :  { %1515 = vmatmul.bf16.gmra.mxu3 %v7125_v23  ;;  %1439 = vmatmul.bf16.gmra.mxu1 %v7149_v55  ;;  %v9063_v23 = vld [vmem:[%s13525_s5 + $0x2c] sm:$0xf] }
 0x348   :  { %3175 = vmatpush.bf16.msrb.mxu0 %v10453_v30 }
 0x349   :  { %2384 = vmatmul.bf16.gmra.mxu0 %v7513_v62  ;;  %1477 = vmatmul.bf16.gmra.mxu2 %v7137_v38  ;;  %v7094_v62 = vld [vmem:[%s13525_s5 + $0x38] sm:$0xf0]  ;;  %v9084_v38 = vld [vmem:[%s13525_s5 + $0xd4] sm:$0xf] }
 0x34a   :  { %v7097_v17 = vor.u32 %v9063_v23, %v7094_v62  ;;  %v7145_v62 = vor.u32 %v9075_v10, %v7142_v2 }
 0x34c   :  { %3176 = vmatpush.bf16.msrb.mxu0 %v10464_v0 }
 0x350   :  { %3177 = vmatpush.bf16.msrb.mxu0 %v10474_v41 }
 0x354   :  { %3178 = vmatpush.bf16.msrb.mxu0 %v10481_v15 }
 0x356   :  { %1520 = vmatmul.bf16.gmra.mxu3 %v7141_v48  ;;  %1444 = vmatmul.bf16.gmra.mxu1 %v1209_v47  ;;  %v9067_v48 = vld [vmem:[%s13525_s5 + $0x4c] sm:$0xf] }
 0x359   :  { %2389 = vmatmul.bf16.gmra.mxu0 %v7529_v24  ;;  %1482 = vmatmul.bf16.gmra.mxu2 %v7153_v27  ;;  %v7110_v24 = vld [vmem:[%s13525_s5 + $0x58] sm:$0xf0] }
 0x35a   :  { %v7113_v43 = vor.u32 %v9067_v48, %v7110_v24 }
 0x366   :  { %1525 = vmatmul.bf16.gmra.mxu3 %v7157_v33  ;;  %7258 = vmatmul.msk.bf16.vlgmr.msrb.gmra.mxu1 %vm1381_vm8, %v7081_v29 }
 0x369   :  { %2394 = vmatmul.bf16.gmra.mxu0 %v7545_v51  ;;  %1487 = vmatmul.bf16.gmra.mxu2 %v1210_v5  ;;  %v9092_v5 = vld [vmem:[%s13525_s5 + $0x114] sm:$0xf] }
 0x373   :  { %v1415_v6 = vpop.f32.mrf.mxu1 }
 0x376   :  { %1530 = vmatmul.bf16.gmra.mxu3 %v1211_v49  ;;  %7259 = vmatmul.msk.bf16.gmra.mxu1 %vm1381_vm8, %v7097_v17 }
 0x379   :  { %2399 = vmatmul.bf16.gmra.mxu0 %v2231_v7  ;;  %1772 = vmatmul.bf16.vlgmr.msrb.gmra.mxu2 %v7294_v46  ;;  %v9098_v7 = vld [vmem:[%s13525_s5 + $0x13c] sm:$0xf0] }
 0x37a   :  { %2275 = vmatpush.bf16.msrb.mxu2 %v10410_v32  ;;  %v7298_v32 = vor.u32 %v9084_v38, %v7295_v40  ;;  %v7342_v46 = vor.u32 %v9098_v7, %v7341_v1 }
 0x37b   :  { %v1417_v55 = vpop.f32.mrf.mxu1 }
 0x37e   :  { %2276 = vmatpush.bf16.msrb.mxu2 %v10418_v19  ;;  %v7309_v19 = vld [vmem:[%s13525_s5 + $0xf0] sm:$0xf] }
 0x37f   :  { %v7310_v3 = vor.u32 %v9090_v21, %v7309_v19  ;;  %v7654_v19 = vld [vmem:[%s13525_s5 + $0x2e0] sm:$0xf0] }
 0x382   :  { %2277 = vmatpush.bf16.msrb.mxu2 %v10429_v53 }
 0x383   :  { %v1420_v26 = vpop.f32.mrf.mxu1 }
 0x386   :  { %1815 = vmatmul.bf16.vlgmr.msrb.gmra.mxu3 %v7298_v32  ;;  %2278 = vmatpush.bf16.msrb.mxu2 %v10440_v50  ;;  %v7311_v50 = vld [vmem:[%s13525_s5 + $0x100] sm:$0xf0] }
 0x387   :  { %2318 = vmatpush.bf16.msrb.mxu3 %v10451_v4  ;;  %7260 = vmatmul.msk.bf16.gmra.mxu1 %vm1381_vm8, %v7113_v43  ;;  %v9140_v4 = vld [vmem:[%s13525_s5 + $0x294] sm:$0xf]  ;;  %v7314_v11 = vor.u32 %v9088_v58, %v7311_v50  ;;  %v7343_v32 = vld [vmem:[%s13525_s5 + $0x140] sm:$0xf0] }
 0x389   :  { %2774 = vmatmul.bf16.vlgmr.msra.gmra.mxu0 %v7609_v25  ;;  %1777 = vmatmul.bf16.gmra.mxu2 %v7310_v3  ;;  %v9148_v25 = vld [vmem:[%s13525_s5 + $0x2d4] sm:$0xf]  ;;  %v9102_v3 = vld [vmem:[%s13525_s5 + $0x15c] sm:$0xf0] }
 0x38a   :  { %2279 = vmatpush.bf16.msrb.mxu2 %v10453_v30  ;;  %v7622_v30 = vld [vmem:[%s13525_s5 + $0x2a0] sm:$0xf0]  ;;  %v7657_v43 = vor.u32 %v9148_v25, %v7654_v19  ;;  %v7301_v25 = vld [vmem:[%s13525_s5 + $0xd8] sm:$0xf] }
 0x38b   :  { %2319 = vmatpush.bf16.msrb.mxu3 %v10462_v61  ;;  %v1422_v47 = vpop.f32.mrf.mxu1  ;;  %v7325_v61 = vld [vmem:[%s13525_s5 + $0x110] sm:$0xf]  ;;  %v9082_v19 = vld [vmem:[%s13526_s6] sm:$0xff] }
 0x38c   :  { %v1458_v53 = vpop.f32.mrf.mxu2  ;;  %v7326_v45 = vor.u32 %v9094_v59, %v7325_v61 }
 0x38d   :  { %v1459_v27 = vadd.f32 %v1458_v53, %v1415_v6  ;;  %v9079_v53 = vld [vmem:[%s13525_s5 + $0xac] sm:$0xf] }
 0x38e   :  { %2280 = vmatpush.bf16.msrb.mxu2 %v10464_v0 }
 0x38f   :  { %2320 = vmatpush.bf16.msrb.mxu3 %v10472_v42  ;;  %v7625_v42 = vor.u32 %v9140_v4, %v7622_v30 }
 0x392   :  { %2281 = vmatpush.bf16.msrb.mxu2 %v10474_v41 }
 0x393   :  { %2321 = vmatpush.bf16.msrb.mxu3 %v10479_v28  ;;  %v1425_v36 = vpop.f32.mrf.mxu1 }
 0x394   :  { %v1460_v0 = vpop.f32.mrf.mxu2 }
 0x395   :  { %v1461_v44 = vadd.f32 %v1460_v0, %v1417_v55  ;;  %v7359_v0 = vld [vmem:[%s13525_s5 + $0x160] sm:$0xf0] }
 0x396   :  { %1820 = vmatmul.bf16.gmra.mxu3 %v7314_v11  ;;  %2282 = vmatpush.bf16.msrb.mxu2 %v10481_v15  ;;  %v7327_v15 = vld [vmem:[%s13525_s5 + $0x120] sm:$0xf0] }
 0x397   :  { %2322 = vmatpush.bf16.msrb.mxu3 %v10495_v18  ;;  %7261 = vmatmul.msk.bf16.gmra.mxu1 %vm1381_vm8, %v7129_v54  ;;  %v9144_v18 = vld [vmem:[%s13525_s5 + $0x2b4] sm:$0xf]  ;;  %v1184_v54 = vunpack.c.h.b16 %v10732_v57 }
 0x399   :  { %2779 = vmatmul.bf16.gmra.mxu0 %v7625_v42  ;;  %v1501_v33 = vpop.f32.mrf.mxu3  ;;  %1782 = vmatmul.bf16.gmra.mxu2 %v7326_v45 }
 0x39a   :  { %v10814_v51 = vadd.f32 %v1501_v33, %v1459_v27  ;;  %v10894_v33 = vpop.f32.mrf.mxu0 }
 0x39b   :  { %2323 = vmatpush.bf16.msrb.mxu3 %v10500_v60  ;;  %v1427_v28 = vpop.f32.mrf.mxu1  ;;  %v7638_v60 = vld [vmem:[%s13525_s5 + $0x2c0] sm:$0xf0] }
 0x39c   :  { %v1463_v41 = vpop.f32.mrf.mxu2  ;;  %v7641_v49 = vor.u32 %v9144_v18, %v7638_v60 }
 0x39d   :  { %v1464_v29 = vadd.f32 %v1463_v41, %v1420_v26  ;;  %v7357_v26 = vld [vmem:[%s13525_s5 + $0x150] sm:$0xf]  ;;  %v7362_v41 = vor.u32 %v9100_v37, %v7359_v0 }
 0x39e   :  { %v7358_v30 = vor.u32 %v9102_v3, %v7357_v26  ;;  %v9087_v26 = vld [vmem:[%s13525_s5 + $0xe4] sm:$0xf0] }
 0x39f   :  { %2324 = vmatpush.bf16.msrb.mxu3 %v10508_v63  ;;  %v7330_v63 = vor.u32 %v9092_v5, %v7327_v15  ;;  %v9106_v5 = vld [vmem:[%s13525_s5 + $0x17c] sm:$0xf0]  ;;  %v1212_v15 = vpack.c.b16 %v1184_v54, %v1184_v54  ;;  %v7302_v3 = vor.u32 %v9087_v26, %v7301_v25  ;;  %v9091_v54 = vld [vmem:[%s13525_s5 + $0x104] sm:$0xf0]  ;;  %v7333_v25 = vld [vmem:[%s13525_s5 + $0x118] sm:$0xf] }
 0x3a1   :  { %v1503_v52 = vpop.f32.mrf.mxu3 }
 0x3a2   :  { %v10833_v16 = vadd.f32 %v1503_v52, %v1461_v44  ;;  %v9152_v44 = vld [vmem:[%s13525_s5 + $0x2f4] sm:$0xf] }
 0x3a3   :  { %2325 = vmatpush.bf16.msrb.mxu3 %v10522_v9  ;;  %v1430_v23 = vpop.f32.mrf.mxu1  ;;  %v9096_v9 = vld [vmem:[%s13525_s5 + $0x134] sm:$0xf] }
 0x3a4   :  { %v1465_v6 = vpop.f32.mrf.mxu2  ;;  %v7346_v24 = vor.u32 %v9096_v9, %v7343_v32 }
 0x3a5   :  { %v1466_v17 = vadd.f32 %v1465_v6, %v1422_v47  ;;  %v7158_v47 = vld [vmem:[%s13525_s5 + $0xb8] sm:$0xf0]  ;;  %v9104_v6 = vld [vmem:[%s13525_s5 + $0x174] sm:$0xf] }
 0x3a6   :  { %1825 = vmatmul.bf16.gmra.mxu3 %v7330_v63  ;;  %v7161_v50 = vor.u32 %v9079_v53, %v7158_v47 }
 0x3a7   :  { %7262 = vmatmul.msk.bf16.gmra.mxu1 %vm1381_vm8, %v7145_v62  ;;  %v7375_v62 = vld [vmem:[%s13525_s5 + $0x180] sm:$0xf0] }
 0x3a8   :  { %v7378_v9 = vor.u32 %v9104_v6, %v7375_v62 }
 0x3a9   :  { %2784 = vmatmul.bf16.gmra.mxu0 %v7641_v49  ;;  %v1506_v55 = vpop.f32.mrf.mxu3  ;;  %1787 = vmatmul.bf16.gmra.mxu2 %v7342_v46  ;;  %v10907_v49 = vpop.f32.mrf.mxu0  ;;  %v7686_v46 = vld [vmem:[%s13525_s5 + $0x320] sm:$0xf0] }
 0x3aa   :  { %v10846_v38 = vadd.f32 %v1506_v55, %v1464_v29  ;;  %v7373_v29 = vld [vmem:[%s13525_s5 + $0x170] sm:$0xf]  ;;  %v9083_v55 = vld [vmem:[%s13526_s6 + $0x8] sm:$0xff] }
 0x3ab   :  { %v1432_v56 = vpop.f32.mrf.mxu1  ;;  %v7374_v57 = vor.u32 %v9106_v5, %v7373_v29  ;;  %2063 = vmatpush.bf16.msrb.mxu1 %v9083_v55  ;;  %v9085_v29 = vld [vmem:[%s13525_s5 + $0xdc] sm:$0xf]  ;;  %v7303_v5 = vld [vmem:[%s13525_s5 + $0xe8] sm:$0xf0]  ;;  %v9164_v55 = vld [vmem:[%s13525_s5 + $0x34c] sm:$0xf0] }
 0x3ac   :  { %v1468_v40 = vpop.f32.mrf.mxu2 }
 0x3ad   :  { %v1469_v8 = vadd.f32 %v1468_v40, %v1425_v36  ;;  %v7670_v36 = vld [vmem:[%s13525_s5 + $0x300] sm:$0xf0]  ;;  %v9187_v40 = vld [vmem:[%s13526_s6 + $0x48] sm:$0xff] }
 0x3ae   :  { %3394 = vmatpush.bf16.msra.mxu0 %v9187_v40 }
 0x3af   :  { %2064 = vmatpush.bf16.msrb.mxu1 %v9082_v19  ;;  %v9095_v19 = vld [vmem:[%s13525_s5 + $0x124] sm:$0xf0] }
 0x3b1   :  { %v1508_v21 = vpop.f32.mrf.mxu3  ;;  %v10944_v53 = vpop.f32.mrf.mxu0 }
 0x3b2   :  { %v10863_v48 = vadd.f32 %v1508_v21, %v1466_v17  ;;  %v9156_v17 = vld [vmem:[%s13525_s5 + $0x314] sm:$0xf]  ;;  %v9186_v21 = vld [vmem:[%s13526_s6 + $0x40] sm:$0xff] }
 0x3b3   :  { %v1435_v58 = vpop.f32.mrf.mxu1  ;;  %v7689_v32 = vor.u32 %v9156_v17, %v7686_v46  ;;  %3395 = vmatpush.bf16.msra.mxu0 %v9186_v21 }
 0x3b4   :  { %v1470_v27 = vpop.f32.mrf.mxu2 }
 0x3b5   :  { %v10874_v4 = vadd.f32 %v1470_v27, %v1427_v28  ;;  %v7673_v28 = vor.u32 %v9152_v44, %v7670_v36  ;;  %v7317_v36 = vld [vmem:[%s13525_s5 + $0xf8] sm:$0xf] }
 0x3b6   :  { %1830 = vmatmul.bf16.gmra.mxu3 %v7346_v24 }
 0x3b7   :  { %7263 = vmatmul.msk.bf16.gmra.mxu1 %vm1381_vm8, %v7161_v50 }
 0x3b9   :  { %2789 = vmatmul.bf16.gmra.mxu0 %v7657_v43  ;;  %v1511_v61 = vpop.f32.mrf.mxu3  ;;  %1792 = vmatmul.bf16.gmra.mxu2 %v7358_v30  ;;  %v7600_v30 = vld [vmem:[%s13525_s5 + $0x330] sm:$0x11]  ;;  %v10954_v0 = vpop.f32.mrf.mxu0 }
 0x3ba   :  { %v10877_v11 = vadd.f32 %v1511_v61, %v1469_v8  ;;  %v2650_v37 = vunpack.c.h.b16 %v7600_v30 }
 0x3bb   :  { %v1437_v59 = vpop.f32.mrf.mxu1 }
 0x3bc   :  { %v1473_v42 = vpop.f32.mrf.mxu2 }
 0x3bd   :  { %v1474_v39 = vadd.f32 %v1473_v42, %v1430_v23  ;;  %v7289_v23 = vld [vmem:[%s13525_s5 + $0x190] sm:$0x11] }
 0x3be   :  { %v1690_v8 = vunpack.c.l.b16 %v7289_v23 }
 0x3c0   :  { %v1718_v27 = vpack.c.b16 %v1690_v8, %v1690_v8 }
 0x3c1   :  { %v10892_v45 = vpop.f32.mrf.mxu3  ;;  %v10975_v6 = vpop.f32.mrf.mxu0 }
 0x3c3   :  { %v1440_v60 = vpop.f32.mrf.mxu1 }
 0x3c4   :  { %v1475_v18 = vpop.f32.mrf.mxu2 }
 0x3c5   :  { %v10902_v52 = vadd.f32 %v1475_v18, %v1432_v56 }
 0x3c6   :  { %1835 = vmatmul.bf16.gmra.mxu3 %v7362_v41 }
 0x3c7   :  { %7264 = vmatmul.msk.bf16.gmra.mxu1 %vm1381_vm8, %v1212_v15 }
 0x3c9   :  { %2794 = vmatmul.bf16.gmra.mxu0 %v7673_v28  ;;  %v1516_v1 = vpop.f32.mrf.mxu3  ;;  %1797 = vmatmul.bf16.gmra.mxu2 %v7374_v57  ;;  %v2678_v28 = vpack.c.b16 %v2650_v37, %v2650_v37  ;;  %v11005_v21 = vpop.f32.mrf.mxu0 }
 0x3ca   :  { %v10905_v63 = vadd.f32 %v1516_v1, %v1474_v39  ;;  %v1691_v39 = vunpack.c.h.b16 %v7289_v23  ;;  %v7306_v1 = vor.u32 %v9085_v29, %v7303_v5 }
 0x3cb   :  { %v1442_v10 = vpop.f32.mrf.mxu1 }
 0x3cc   :  { %v1478_v7 = vpop.f32.mrf.mxu2  ;;  %v1719_v41 = vpack.c.b16 %v1691_v39, %v1691_v39 }
 0x3cd   :  { %v1479_v2 = vadd.f32 %v1478_v7, %v1435_v58 }
 0x3d1   :  { %v10930_v56 = vpop.f32.mrf.mxu3 }
 0x3d3   :  { %v1445_v43 = vpop.f32.mrf.mxu1 }
 0x3d4   :  { %v1480_v24 = vpop.f32.mrf.mxu2 }
 0x3d5   :  { %v10946_v47 = vadd.f32 %v1480_v24, %v1437_v59 }
 0x3d6   :  { %1840 = vmatmul.bf16.gmra.mxu3 %v7378_v9  ;;  %v9089_v9 = vld [vmem:[%s13525_s5 + $0xfc] sm:$0xf] }
 0x3d7   :  { %1858 = vmatmul.bf16.vlgmr.msra.gmra.mxu1 %v7302_v3 }
 0x3d8   :  { %2411 = vmatpush.bf16.msra.mxu1 %v10486_v20 }
 0x3d9   :  { %2799 = vmatmul.bf16.gmra.mxu0 %v7689_v32  ;;  %v1521_v58 = vpop.f32.mrf.mxu3  ;;  %1802 = vmatmul.bf16.gmra.mxu2 %v1718_v27 }
 0x3da   :  { %v10949_v50 = vadd.f32 %v1521_v58, %v1479_v2 }
 0x3db   :  { %v1447_v42 = vpop.f32.mrf.mxu1 }
 0x3dc   :  { %v1483_v61 = vpop.f32.mrf.mxu2 }
 0x3dd   :  { %v1484_v59 = vadd.f32 %v1483_v61, %v1440_v60  ;;  %v7318_v60 = vor.u32 %v9091_v54, %v7317_v36  ;;  %v7335_v36 = vld [vmem:[%s13525_s5 + $0x128] sm:$0xf0]  ;;  %v7349_v54 = vld [vmem:[%s13525_s5 + $0x138] sm:$0xf] }
 0x3e1   :  { %v10956_v44 = vpop.f32.mrf.mxu3 }
 0x3e3   :  { %v1544_v18 = vpop.f32.mrf.mxu1 }
 0x3e4   :  { %v1485_v15 = vpop.f32.mrf.mxu2  ;;  %v10973_v7 = vadd.f32 %v1544_v18, %v10814_v51  ;;  %v7752_v51 = vld [vmem:[%s13525_s5 + $0x340] sm:$0xf] }
 0x3e5   :  { %v10970_v57 = vadd.f32 %v1485_v15, %v1442_v10  ;;  %v7753_v32 = vor.u32 %v9164_v55, %v7752_v51  ;;  %v7351_v55 = vld [vmem:[%s13525_s5 + $0x148] sm:$0xf0] }
 0x3e6   :  { %1845 = vmatmul.bf16.gmra.mxu3 %v1719_v41 }
 0x3e7   :  { %1863 = vmatmul.bf16.gmra.mxu1 %v7318_v60 }
 0x3e9   :  { %2804 = vmatmul.bf16.gmra.mxu0 %v2678_v28  ;;  %v1526_v2 = vpop.f32.mrf.mxu3  ;;  %7387 = vmatmul.msk.bf16.vlgmr.msra.gmra.mxu2 %vm1381_vm8, %v7306_v1  ;;  %v1514_v1 = vadd.f32 %v10892_v45, %v10874_v4  ;;  %v7365_v4 = vld [vmem:[%s13525_s5 + $0x158] sm:$0xf]  ;;  %v9103_v45 = vld [vmem:[%s13525_s5 + $0x164] sm:$0xf0] }
 0x3ea   :  { %v10978_v23 = vadd.f32 %v1526_v2, %v1484_v59 }
 0x3eb   :  { %v1546_v17 = vpop.f32.mrf.mxu1 }
 0x3ec   :  { %v1488_v62 = vpop.f32.mrf.mxu2  ;;  %v10981_v10 = vadd.f32 %v1546_v17, %v10833_v16  ;;  %v7319_v16 = vld [vmem:[%s13525_s5 + $0x108] sm:$0xf0] }
 0x3ed   :  { %v1489_v46 = vadd.f32 %v1488_v62, %v1445_v43  ;;  %v7334_v43 = vor.u32 %v9095_v19, %v7333_v25  ;;  %v7322_v3 = vor.u32 %v9089_v9, %v7319_v16 }
 0x3ee   :  { %v1578_v40 = vpack.c.bf16 %v10981_v10, %v10973_v7  ;;  %v7456_v7 = vld [vmem:[%s13525_s5 + $0x1a0] sm:$0xf]  ;;  %v9112_v10 = vld [vmem:[%s13525_s5 + $0x1ac] sm:$0xf0] }
 0x3f1   :  { %v10991_v8 = vpop.f32.mrf.mxu3 }
 0x3f3   :  { %v1549_v24 = vpop.f32.mrf.mxu1 }
 0x3f4   :  { %v1490_v26 = vpop.f32.mrf.mxu2  ;;  %v11008_v27 = vadd.f32 %v1549_v24, %v10846_v38  ;;  %v9093_v38 = vld [vmem:[%s13525_s5 + $0x11c] sm:$0xf] }
 0x3f5   :  { %v7338_v29 = vor.u32 %v9093_v38, %v7335_v36  ;;  %v7367_v38 = vld [vmem:[%s13525_s5 + $0x168] sm:$0xf0] }
 0x3f7   :  { %1868 = vmatmul.bf16.gmra.mxu1 %v7334_v43  ;;  %v1519_v43 = vadd.f32 %v10930_v56, %v10902_v52  ;;  %v7381_v52 = vld [vmem:[%s13525_s5 + $0x178] sm:$0xf]  ;;  %v9107_v56 = vld [vmem:[%s13525_s5 + $0x184] sm:$0xf0] }
 0x3f9   :  { %3179 = vmatmul.bf16.vlgmr.msrb.gmra.mxu0 %v7753_v32  ;;  %v1531_v58 = vpop.f32.mrf.mxu3  ;;  %7388 = vmatmul.msk.bf16.gmra.mxu2 %vm1381_vm8, %v7322_v3  ;;  %v7366_v32 = vor.u32 %v9103_v45, %v7365_v4  ;;  %v7383_v45 = vld [vmem:[%s13525_s5 + $0x188] sm:$0xf0] }
 0x3fa   :  { %3755 = vmatpush.bf16.msrb.mxu0 %v10486_v20  ;;  %v11012_v30 = vadd.f32 %v1531_v58, %v1489_v46 }
 0x3fb   :  { %v1551_v42 = vpop.f32.mrf.mxu1 }
 0x3fc   :  { %v1773_v61 = vpop.f32.mrf.mxu2  ;;  %v11015_v59 = vadd.f32 %v1551_v42, %v10863_v48  ;;  %v9099_v48 = vld [vmem:[%s13525_s5 + $0x144] sm:$0xf0] }
 0x3fd   :  { %v7350_v28 = vor.u32 %v9099_v48, %v7349_v54  ;;  %v7382_v54 = vor.u32 %v9107_v56, %v7381_v52 }
 0x3fe   :  { %v1579_v39 = vpack.c.bf16 %v11015_v59, %v11008_v27 }
 0x401   :  { %v1533_v37 = vpop.f32.mrf.mxu3 }
 0x404   :  { %v11031_v41 = vpop.f32.mrf.mxu2  ;;  %v1554_v5 = vpop.f32.mrf.mxu1 }
 0x405   :  { %v11034_v15 = vadd.f32 %v1554_v5, %v10877_v11  ;;  %v9097_v11 = vld [vmem:[%s13525_s5 + $0x13c] sm:$0xf] }
 0x406   :  { %v7354_v16 = vor.u32 %v9097_v11, %v7351_v55 }
 0x407   :  { %1873 = vmatmul.bf16.gmra.mxu1 %v7350_v28 }
 0x409   :  { %v1816_v18 = vpop.f32.mrf.mxu3  ;;  %7389 = vmatmul.msk.bf16.gmra.mxu2 %vm1381_vm8, %v7338_v29 }
 0x40a   :  { %v11037_v60 = vadd.f32 %v1816_v18, %v1773_v61 }
 0x40c   :  { %v1778_v2 = vpop.f32.mrf.mxu2  ;;  %v1556_v62 = vpop.f32.mrf.mxu1 }
 0x40d   :  { %v11041_v17 = vadd.f32 %v1556_v62, %v1514_v1  ;;  %v1524_v1 = vadd.f32 %v10956_v44, %v10946_v47  ;;  %v7290_v47 = vld [vmem:[%s13525_s5 + $0x198] sm:$0x11] }
 0x40e   :  { %v1692_v44 = vunpack.c.l.b16 %v7290_v47 }
 0x40f   :  { %v1580_v46 = vpack.c.bf16 %v11041_v17, %v11034_v15  ;;  %v11189_v15 = vld [vmem:[#allocation2 + $0x38] sm:$0xff] }
 0x411   :  { %v11045_v51 = vpop.f32.mrf.mxu3 }
 0x414   :  { %v11059_v9 = vpop.f32.mrf.mxu2  ;;  %v1559_v25 = vpop.f32.mrf.mxu1 }
 0x415   :  { %v11062_v19 = vadd.f32 %v1559_v25, %v10905_v63  ;;  %v9101_v63 = vld [vmem:[%s13525_s5 + $0x15c] sm:$0xf] }
 0x416   :  { %v7370_v48 = vor.u32 %v9101_v63, %v7367_v38  ;;  %v1529_v63 = vadd.f32 %v10991_v8, %v10970_v57 }
 0x417   :  { %1878 = vmatmul.bf16.gmra.mxu1 %v7366_v32 }
 0x419   :  { %v1821_v26 = vpop.f32.mrf.mxu3  ;;  %7390 = vmatmul.msk.bf16.gmra.mxu2 %vm1381_vm8, %v7354_v16 }
 0x41a   :  { %v11065_v24 = vadd.f32 %v1821_v26, %v1778_v2  ;;  %v1720_v26 = vpack.c.b16 %v1692_v44, %v1692_v44 }
 0x41c   :  { %v1783_v3 = vpop.f32.mrf.mxu2  ;;  %v1561_v58 = vpop.f32.mrf.mxu1 }
 0x41d   :  { %v11069_v61 = vadd.f32 %v1561_v58, %v1519_v43 }
 0x41f   :  { %v1581_v42 = vpack.c.bf16 %v11069_v61, %v11062_v19 }
 0x421   :  { %v11073_v37 = vpop.f32.mrf.mxu3 }
 0x424   :  { %v11087_v36 = vpop.f32.mrf.mxu2  ;;  %v1564_v28 = vpop.f32.mrf.mxu1 }
 0x425   :  { %v11090_v29 = vadd.f32 %v1564_v28, %v10949_v50  ;;  %v9105_v50 = vld [vmem:[%s13525_s5 + $0x17c] sm:$0xf]  ;;  %v1693_v28 = vunpack.c.h.b16 %v7290_v47 }
 0x426   :  { %v7386_v16 = vor.u32 %v9105_v50, %v7383_v45  ;;  %v11144_v50 = vld [vmem:[#allocation2 + $0xb8] sm:$0xff] }
 0x427   :  { %1883 = vmatmul.bf16.gmra.mxu1 %v7382_v54  ;;  %v1721_v8 = vpack.c.b16 %v1693_v28, %v1693_v28 }
 0x429   :  { %v1826_v5 = vpop.f32.mrf.mxu3  ;;  %7391 = vmatmul.msk.bf16.gmra.mxu2 %vm1381_vm8, %v7370_v48 }
 0x42a   :  { %v11093_v18 = vadd.f32 %v1826_v5, %v1783_v3  ;;  %v9134_v5 = vld [vmem:[%s13526_s6 + $0x20] sm:$0xff] }
 0x42c   :  { %v1788_v2 = vpop.f32.mrf.mxu2  ;;  %v1566_v62 = vpop.f32.mrf.mxu1 }
 0x42d   :  { %v11097_v11 = vadd.f32 %v1566_v62, %v1524_v1 }
 0x42f   :  { %v1582_v55 = vpack.c.bf16 %v11097_v11, %v11090_v29 }
 0x431   :  { %v11101_v4 = vpop.f32.mrf.mxu3 }
 0x434   :  { %v11112_v32 = vpop.f32.mrf.mxu2  ;;  %v1569_v25 = vpop.f32.mrf.mxu1 }
 0x435   :  { %v11115_v43 = vadd.f32 %v1569_v25, %v10978_v23  ;;  %v9135_v23 = vld [vmem:[%s13526_s6 + $0x28] sm:$0xff] }
 0x436   :  { %2498 = vmatpush.bf16.msra.mxu2 %v9135_v23 }
 0x437   :  { %1888 = vmatmul.bf16.gmra.mxu1 %v1720_v26 }
 0x439   :  { %v1831_v3 = vpop.f32.mrf.mxu3  ;;  %7392 = vmatmul.msk.bf16.gmra.mxu2 %vm1381_vm8, %v7386_v16  ;;  %v7457_v16 = vor.u32 %v9112_v10, %v7456_v7  ;;  %v11201_v7 = vld [vmem:[#allocation2 + $0x20] sm:$0xff] }
 0x43a   :  { %v11118_v58 = vadd.f32 %v1831_v3, %v1788_v2  ;;  %2499 = vmatpush.bf16.msra.mxu2 %v9134_v5 }
 0x43c   :  { %v1793_v38 = vpop.f32.mrf.mxu2  ;;  %v1571_v52 = vpop.f32.mrf.mxu1 }
 0x43d   :  { %v11122_v56 = vadd.f32 %v1571_v52, %v1529_v63 }
 0x43f   :  { %v1583_v54 = vpack.c.bf16 %v11122_v56, %v11115_v43 }
 0x441   :  { %v11129_v48 = vpop.f32.mrf.mxu3 }
 0x444   :  { %v11134_v57 = vpop.f32.mrf.mxu2  ;;  %v1574_v1 = vpop.f32.mrf.mxu1 }
 0x445   :  { %v11137_v2 = vadd.f32 %v1574_v1, %v11012_v30 }
 0x447   :  { %7421 = vmatmul.msk.bf16.vlgmr.msrb.gmra.mxu1 %vm459_vm3, %v1578_v40 }
 0x448   :  { %2809 = vmatpush.bf16.msrb.mxu1 %v11144_v50 }
 0x449   :  { %v1836_v62 = vpop.f32.mrf.mxu3  ;;  %7393 = vmatmul.msk.bf16.gmra.mxu2 %vm1381_vm8, %v1721_v8 }
 0x44a   :  { %v11147_v45 = vadd.f32 %v1836_v62, %v1793_v38 }
 0x44c   :  { %v1798_v47 = vpop.f32.mrf.mxu2  ;;  %2810 = vmatpush.bf16.msrb.mxu1 %v10498_v31  ;;  %v1576_v30 = vpop.f32.mrf.mxu1 }
 0x450   :  { %2811 = vmatpush.bf16.msrb.mxu1 %v10506_v34 }
 0x451   :  { %v11150_v44 = vpop.f32.mrf.mxu3 }
 0x454   :  { %v11159_v40 = vpop.f32.mrf.mxu2  ;;  %2812 = vmatpush.bf16.msrb.mxu1 %v10514_v35  ;;  %v1859_v25 = vpop.f32.mrf.mxu1 }
 0x457   :  { %7422 = vmatmul.msk.bf16.gmra.mxu1 %vm459_vm3, %v1579_v39 }
 0x458   :  { %2813 = vmatpush.bf16.msrb.mxu1 %v10534_v22 }
 0x459   :  { %v1841_v31 = vpop.f32.mrf.mxu3  ;;  %2283 = vmatmul.bf16.vlgmr.msrb.gmra.mxu2 %v7457_v16  ;;  %v11212_v16 = vld [vmem:[#allocation2 + $0x10] sm:$0xff] }
 0x45a   :  { %v11167_v34 = vadd.f32 %v1841_v31, %v1798_v47  ;;  %2859 = vmatpush.bf16.msrb.mxu2 %v10486_v20  ;;  %13590 = vst [vmem:[#allocation16_spill] sm:$0xff] %v11212_v16  ;;  %v11217_v31 = vld [vmem:[#allocation2 + $0x8] sm:$0xff] }
 0x45b   :  { %13591 = vst [vmem:[#allocation17_spill] sm:$0xff] %v11217_v31 }
 0x45c   :  { %v1803_v26 = vpop.f32.mrf.mxu2  ;;  %2814 = vmatpush.bf16.msrb.mxu1 %v10540_v12  ;;  %v1861_v3 = vpop.f32.mrf.mxu1  ;;  %v1819_v12 = vadd.f32 %v11045_v51, %v11031_v41  ;;  %v11197_v51 = vld [vmem:[#allocation2 + $0x28] sm:$0xff] }
 0x45e   :  { %v1862_v23 = vadd.f32 %v1861_v3, %v1819_v12 }
 0x460   :  { %2815 = vmatpush.bf16.msrb.mxu1 %v10546_v14  ;;  %v1860_v14 = vadd.f32 %v1859_v25, %v11037_v60  ;;  %v11192_v60 = vld [vmem:[#allocation2 + $0x30] sm:$0xff]  ;;  %v1829_v25 = vadd.f32 %v11101_v4, %v11087_v36 }
 0x461   :  { %v11171_v63 = vpop.f32.mrf.mxu3 }
 0x464   :  { %v1805_v35 = vpop.f32.mrf.mxu2  ;;  %2816 = vmatpush.bf16.msrb.mxu1 %v10564_v13  ;;  %v1864_v27 = vpop.f32.mrf.mxu1 }
 0x465   :  { %v1865_v19 = vadd.f32 %v1864_v27, %v11065_v24  ;;  %v11221_v27 = vld [vmem:[#allocation2] sm:$0xff] }
 0x466   :  { %13592 = vst [vmem:[#allocation8_spill] sm:$0xff] %v11221_v27 }
 0x467   :  { %7423 = vmatmul.msk.bf16.gmra.mxu1 %vm459_vm3, %v1580_v46  ;;  %v1824_v46 = vadd.f32 %v11073_v37, %v11059_v9  ;;  %v11209_v9 = vld [vmem:[#allocation2 + $0x18] sm:$0xff] }
 0x469   :  { %v1846_v22 = vpop.f32.mrf.mxu3 }
 0x46a   :  { %v11179_v59 = vadd.f32 %v1846_v22, %v1803_v26 }
 0x46c   :  { %v1902_v39 = vpop.f32.mrf.mxu2  ;;  %v1866_v38 = vpop.f32.mrf.mxu1 }
 0x46d   :  { %v1903_v13 = vadd.f32 %v1902_v39, %v1860_v14  ;;  %v1867_v61 = vadd.f32 %v1866_v38, %v1824_v46 }
 0x471   :  { %v1848_v52 = vpop.f32.mrf.mxu3 }
 0x474   :  { %v1904_v28 = vpop.f32.mrf.mxu2  ;;  %v1869_v8 = vpop.f32.mrf.mxu1 }
 0x475   :  { %v1905_v5 = vadd.f32 %v1904_v28, %v1862_v23  ;;  %v1870_v29 = vadd.f32 %v1869_v8, %v11093_v18  ;;  %v1834_v18 = vadd.f32 %v11129_v48, %v11112_v32  ;;  %v1584_v28 = vpack.c.bf16 %v11137_v2, %v11137_v2  ;;  %v7466_v48 = vld [vmem:[%s13525_s5 + $0x1b8] sm:$0xf0] }
 0x476   :  { %v1839_v32 = vadd.f32 %v11150_v44, %v11134_v57  ;;  %v11247_v57 = vld [vmem:[#allocation2 + $0x78] sm:$0xff] }
 0x477   :  { %v1936_v1 = vpack.c.bf16 %v1905_v5, %v1903_v13  ;;  %7424 = vmatmul.msk.bf16.gmra.mxu1 %vm459_vm3, %v1581_v42 }
 0x479   :  { %7406 = vmatmul.msk.bf16.vlgmr.msra.gmra.mxu3 %vm459_vm3, %v1936_v1 }
 0x47a   :  { %2723 = vmatpush.bf16.msra.mxu3 %v11189_v15 }
 0x47c   :  { %v1907_v41 = vpop.f32.mrf.mxu2  ;;  %v1871_v17 = vpop.f32.mrf.mxu1 }
 0x47d   :  { %v1908_v62 = vadd.f32 %v1907_v41, %v1865_v19  ;;  %v1872_v11 = vadd.f32 %v1871_v17, %v1829_v25  ;;  %v11250_v19 = vld [vmem:[#allocation2 + $0x70] sm:$0xff] }
 0x47e   :  { %2724 = vmatpush.bf16.msra.mxu3 %v11192_v60 }
 0x482   :  { %2725 = vmatpush.bf16.msra.mxu3 %v11197_v51 }
 0x484   :  { %v1909_v42 = vpop.f32.mrf.mxu2  ;;  %v1874_v30 = vpop.f32.mrf.mxu1 }
 0x485   :  { %v1910_v47 = vadd.f32 %v1909_v42, %v1867_v61  ;;  %v1875_v39 = vadd.f32 %v1874_v30, %v11118_v58  ;;  %v9111_v58 = vld [vmem:[%s13525_s5 + $0x1ac] sm:$0xf]  ;;  %v1844_v61 = vadd.f32 %v11171_v63, %v11159_v40  ;;  %v11265_v40 = vld [vmem:[#allocation2 + $0x60] sm:$0xff] }
 0x486   :  { %2726 = vmatpush.bf16.msra.mxu3 %v11201_v7  ;;  %v7469_v8 = vor.u32 %v9111_v58, %v7466_v48  ;;  %v11255_v42 = vld [vmem:[#allocation2 + $0x68] sm:$0xff]  ;;  %v7514_v48 = vld [vmem:[%s13525_s5 + $0x218] sm:$0xf0] }
 0x487   :  { %v1937_v10 = vpack.c.bf16 %v1910_v47, %v1908_v62  ;;  %7425 = vmatmul.msk.bf16.gmra.mxu1 %vm459_vm3, %v1582_v55  ;;  %v9115_v62 = vld [vmem:[%s13525_s5 + $0x1cc] sm:$0xf]  ;;  %v7482_v47 = vld [vmem:[%s13525_s5 + $0x1d8] sm:$0xf0] }
 0x488   :  { %v9123_v58 = vld [vmem:[%s13525_s5 + $0x20c] sm:$0xf] }
 0x489   :  { %7407 = vmatmul.msk.bf16.gmra.mxu3 %vm459_vm3, %v1937_v10 }
 0x48a   :  { %2727 = vmatpush.bf16.msra.mxu3 %v11209_v9 }
 0x48c   :  { %v1912_v24 = vpop.f32.mrf.mxu2  ;;  %v1876_v37 = vpop.f32.mrf.mxu1 }
 0x48d   :  { %v1913_v26 = vadd.f32 %v1912_v24, %v1870_v29  ;;  %v1877_v38 = vadd.f32 %v1876_v37, %v1834_v18  ;;  %v7485_v37 = vor.u32 %v9115_v62, %v7482_v47  ;;  %v11283_v18 = vld [vmem:[#allocation2 + $0x48] sm:$0xff]  ;;  %v9114_v62 = vld [vmem:[%s13525_s5 + $0x1c4] sm:$0xf]  ;;  %v7474_v47 = vld [vmem:[%s13525_s5 + $0x1d0] sm:$0xf0] }
 0x48e   :  { %2728 = vmatpush.bf16.msra.mxu3 %v11212_v16 }
 0x492   :  { %2729 = vmatpush.bf16.msra.mxu3 %v11217_v31 }
 0x494   :  { %v1914_v55 = vpop.f32.mrf.mxu2  ;;  %v1879_v35 = vpop.f32.mrf.mxu1 }
 0x495   :  { %v1915_v3 = vadd.f32 %v1914_v55, %v1872_v11  ;;  %v1880_v2 = vadd.f32 %v1879_v35, %v11147_v45  ;;  %v11270_v55 = vld [vmem:[#allocation2 + $0x58] sm:$0xff] }
 0x496   :  { %2730 = vmatpush.bf16.msra.mxu3 %v11221_v27 }
 0x497   :  { %v1938_v22 = vpack.c.bf16 %v1915_v3, %v1913_v26  ;;  %7426 = vmatmul.msk.bf16.gmra.mxu1 %vm459_vm3, %v1583_v54  ;;  %v9116_v26 = vld [vmem:[%s13525_s5 + $0x1cc] sm:$0xf0] }
 0x499   :  { %7408 = vmatmul.msk.bf16.gmra.mxu3 %vm459_vm3, %v1938_v22  ;;  %v11279_v22 = vld [vmem:[#allocation2 + $0x50] sm:$0xff] }
 0x49c   :  { %v1917_v36 = vpop.f32.mrf.mxu2  ;;  %v1881_v4 = vpop.f32.mrf.mxu1 }
 0x49d   :  { %v1918_v52 = vadd.f32 %v1917_v36, %v1875_v39  ;;  %v1882_v13 = vadd.f32 %v1881_v4, %v1839_v32  ;;  %v9119_v39 = vld [vmem:[%s13525_s5 + $0x1ec] sm:$0xf] }
 0x4a4   :  { %v1919_v12 = vpop.f32.mrf.mxu2  ;;  %v1884_v23 = vpop.f32.mrf.mxu1 }
 0x4a5   :  { %v1920_v14 = vadd.f32 %v1919_v12, %v1877_v38  ;;  %v1885_v30 = vadd.f32 %v1884_v23, %v11167_v34  ;;  %v7472_v34 = vld [vmem:[%s13525_s5 + $0x1c0] sm:$0xf]  ;;  %v7498_v38 = vld [vmem:[%s13525_s5 + $0x1f8] sm:$0xf0] }
 0x4a6   :  { %v7473_v3 = vor.u32 %v9116_v26, %v7472_v34  ;;  %v11292_v23 = vld [vmem:[#allocation2 + $0x40] sm:$0xff]  ;;  %v9128_v34 = vld [vmem:[%s13525_s5 + $0x22c] sm:$0xf0] }
 0x4a7   :  { %v1939_v43 = vpack.c.bf16 %v1920_v14, %v1918_v52  ;;  %7427 = vmatmul.msk.bf16.gmra.mxu1 %vm459_vm3, %v1584_v28  ;;  %v7501_v14 = vor.u32 %v9119_v39, %v7498_v38 }
 0x4a8   :  { %2288 = vmatmul.bf16.gmra.mxu2 %v7473_v3  ;;  %v9131_v3 = vld [vmem:[%s13525_s5 + $0x24c] sm:$0xf] }
 0x4a9   :  { %7409 = vmatmul.msk.bf16.gmra.mxu3 %vm459_vm3, %v1939_v43 }
 0x4ac   :  { %v1922_v56 = vpop.f32.mrf.mxu2  ;;  %v1886_v54 = vpop.f32.mrf.mxu1 }
 0x4ad   :  { %v1923_v1 = vadd.f32 %v1922_v56, %v1880_v2  ;;  %v1887_v10 = vadd.f32 %v1886_v54, %v1844_v61  ;;  %v7488_v56 = vld [vmem:[%s13525_s5 + $0x1e0] sm:$0xf]  ;;  %v9120_v54 = vld [vmem:[%s13525_s5 + $0x1ec] sm:$0xf0]  ;;  %v9110_v2 = vld [vmem:[%s13525_s5 + $0x1a4] sm:$0xf] }
 0x4ae   :  { %v7489_v32 = vor.u32 %v9120_v54, %v7488_v56  ;;  %v7530_v61 = vld [vmem:[%s13525_s5 + $0x238] sm:$0xf0] }
 0x4b4   :  { %v1924_v5 = vpop.f32.mrf.mxu2  ;;  %v1889_v17 = vpop.f32.mrf.mxu1 }
 0x4b5   :  { %v1925_v41 = vadd.f32 %v1924_v5, %v1882_v13  ;;  %v1890_v4 = vadd.f32 %v1889_v17, %v11179_v59  ;;  %v7458_v13 = vld [vmem:[%s13525_s5 + $0x1b0] sm:$0xf0]  ;;  %v7517_v5 = vor.u32 %v9123_v58, %v7514_v48  ;;  %v7504_v17 = vld [vmem:[%s13525_s5 + $0x200] sm:$0xf]  ;;  %v9132_v58 = vld [vmem:[%s13525_s5 + $0x24c] sm:$0xf0] }
 0x4b6   :  { %v9408_v48 = vld [vmem:[%s13525_s5 + $0x268] sm:$0x11] }
 0x4b7   :  { %v1940_v46 = vpack.c.bf16 %v1925_v41, %v1923_v1  ;;  %7550 = vmatmul.msk.bf16.vlgmr.msra.gmra.mxu1 %vm1381_vm8, %v7469_v8  ;;  %v7461_v8 = vor.u32 %v9110_v2, %v7458_v13  ;;  %v2204_v2 = vunpack.c.h.b16 %v9408_v48  ;;  %v7506_v13 = vld [vmem:[%s13525_s5 + $0x210] sm:$0xf0]  ;;  %v9161_v48 = vld [vmem:[%s13526_s6 + $0x38] sm:$0xff] }
 0x4b8   :  { %3214 = vmatpush.bf16.msra.mxu1 %v11247_v57  ;;  %2293 = vmatmul.bf16.gmra.mxu2 %v7489_v32  ;;  %v7536_v32 = vld [vmem:[%s13525_s5 + $0x240] sm:$0xf] }
 0x4b9   :  { %7410 = vmatmul.msk.bf16.gmra.mxu3 %vm459_vm3, %v1940_v46  ;;  %v9124_v46 = vld [vmem:[%s13525_s5 + $0x20c] sm:$0xf0] }
 0x4bc   :  { %v1927_v44 = vpop.f32.mrf.mxu2  ;;  %3215 = vmatpush.bf16.msra.mxu1 %v11250_v19  ;;  %v1891_v45 = vpop.f32.mrf.mxu1 }
 0x4bd   :  { %v1928_v25 = vadd.f32 %v1927_v44, %v1885_v30  ;;  %v7505_v44 = vor.u32 %v9124_v46, %v7504_v17  ;;  %v9127_v45 = vld [vmem:[%s13525_s5 + $0x22c] sm:$0xf] }
 0x4be   :  { %v7533_v30 = vor.u32 %v9127_v45, %v7530_v61 }
 0x4c0   :  { %3216 = vmatpush.bf16.msra.mxu1 %v11255_v42 }
 0x4c4   :  { %v1929_v24 = vpop.f32.mrf.mxu2  ;;  %3217 = vmatpush.bf16.msra.mxu1 %v11265_v40  ;;  %v2066_v63 = vpop.f32.mrf.mxu1 }
 0x4c5   :  { %v1930_v29 = vadd.f32 %v1929_v24, %v1887_v10  ;;  %v7477_v10 = vor.u32 %v9114_v62, %v7474_v47  ;;  %v7612_v47 = vld [vmem:[%s13525_s5 + $0x278] sm:$0xf] }
 0x4c7   :  { %v1941_v11 = vpack.c.bf16 %v1930_v29, %v1928_v25  ;;  %7551 = vmatmul.msk.bf16.gmra.mxu1 %vm1381_vm8, %v7485_v37 }
 0x4c8   :  { %3218 = vmatpush.bf16.msra.mxu1 %v11270_v55  ;;  %2298 = vmatmul.bf16.gmra.mxu2 %v7505_v44 }
 0x4c9   :  { %7411 = vmatmul.msk.bf16.gmra.mxu3 %vm459_vm3, %v1941_v11  ;;  %v7520_v11 = vld [vmem:[%s13525_s5 + $0x220] sm:$0xf] }
 0x4ca   :  { %v7521_v26 = vor.u32 %v9128_v34, %v7520_v11 }
 0x4cc   :  { %v1932_v35 = vpop.f32.mrf.mxu2  ;;  %3219 = vmatpush.bf16.msra.mxu1 %v11279_v22  ;;  %v2068_v36 = vpop.f32.mrf.mxu1 }
 0x4cd   :  { %v1933_v12 = vadd.f32 %v1932_v35, %v1890_v4  ;;  %v9118_v35 = vld [vmem:[%s13525_s5 + $0x1e4] sm:$0xf]  ;;  %v7490_v4 = vld [vmem:[%s13525_s5 + $0x1f0] sm:$0xf0] }
 0x4cf   :  { %v1942_v28 = vpack.c.bf16 %v1933_v12, %v1933_v12 }
 0x4d0   :  { %3220 = vmatpush.bf16.msra.mxu1 %v11283_v18 }
 0x4d4   :  { %v1934_v52 = vpop.f32.mrf.mxu2  ;;  %3221 = vmatpush.bf16.msra.mxu1 %v11292_v23  ;;  %v2071_v59 = vpop.f32.mrf.mxu1 }
 0x4d5   :  { %v7493_v52 = vor.u32 %v9118_v35, %v7490_v4 }
 0x4d7   :  { %7552 = vmatmul.msk.bf16.gmra.mxu1 %vm1381_vm8, %v7501_v14 }
 0x4d8   :  { %2303 = vmatmul.bf16.gmra.mxu2 %v7521_v26 }
 0x4d9   :  { %7412 = vmatmul.msk.bf16.gmra.mxu3 %vm459_vm3, %v1942_v28 }
 0x4dc   :  { %v2073_v43 = vpop.f32.mrf.mxu1 }
 0x4e4   :  { %v2076_v1 = vpop.f32.mrf.mxu1 }
 0x4e7   :  { %7553 = vmatmul.msk.bf16.gmra.mxu1 %vm1381_vm8, %v7517_v5  ;;  %v2232_v5 = vpack.c.b16 %v2204_v2, %v2204_v2  ;;  %v9160_v2 = vld [vmem:[%s13526_s6 + $0x30] sm:$0xff] }
 0x4e9   :  { %2326 = vmatmul.bf16.vlgmr.msrb.gmra.mxu3 %v7461_v8 }
 0x4ea   :  { %2946 = vmatpush.bf16.msrb.mxu3 %v9161_v48  ;;  %v7676_v48 = vld [vmem:[%s13525_s5 + $0x2f8] sm:$0xf] }
 0x4ec   :  { %v2078_v41 = vpop.f32.mrf.mxu1 }
 0x4ee   :  { %2947 = vmatpush.bf16.msrb.mxu3 %v9160_v2  ;;  %v9155_v2 = vld [vmem:[%s13525_s5 + $0x304] sm:$0xf0] }
 0x4f4   :  { %v2081_v24 = vpop.f32.mrf.mxu1 }
 0x4f7   :  { %7554 = vmatmul.msk.bf16.gmra.mxu1 %vm1381_vm8, %v7533_v30  ;;  %v9139_v30 = vld [vmem:[%s13525_s5 + $0x284] sm:$0xf0] }
 0x4f9   :  { %2331 = vmatmul.bf16.gmra.mxu3 %v7477_v10  ;;  %v7522_v10 = vld [vmem:[%s13525_s5 + $0x230] sm:$0xf0] }
 0x4fc   :  { %v1990_v37 = vpop.f32.mrf.mxu3  ;;  %v11337_v29 = vpop.f32.mrf.mxu1 }
 0x4fd   :  { %v11335_v25 = vadd.f32 %v2066_v63, %v1990_v37  ;;  %v7546_v63 = vld [vmem:[%s13525_s5 + $0x258] sm:$0xf0]  ;;  %v7613_v37 = vor.u32 %v9139_v30, %v7612_v47  ;;  %v2284_v30 = vpop.f32.mrf.mxu2 }
 0x4fe   :  { %v7549_v38 = vor.u32 %v9131_v3, %v7546_v63  ;;  %v7452_v3 = vld [vmem:[%s13525_s5 + $0x260] sm:$0x11] }
 0x4ff   :  { %v2201_v63 = vunpack.c.l.b16 %v7452_v3 }
 0x501   :  { %v2229_v35 = vpack.c.b16 %v2201_v63, %v2201_v63 }
 0x504   :  { %v1992_v39 = vpop.f32.mrf.mxu3  ;;  %v2086_v14 = vpop.f32.mrf.mxu1 }
 0x505   :  { %v11357_v12 = vadd.f32 %v2068_v36, %v1992_v39  ;;  %v7537_v36 = vor.u32 %v9132_v58, %v7536_v32 }
 0x507   :  { %7555 = vmatmul.msk.bf16.gmra.mxu1 %vm1381_vm8, %v7549_v38  ;;  %2308 = vmatmul.bf16.gmra.mxu2 %v7537_v36  ;;  %v7628_v38 = vld [vmem:[%s13525_s5 + $0x298] sm:$0xf] }
 0x509   :  { %2336 = vmatmul.bf16.gmra.mxu3 %v7493_v52  ;;  %v9143_v52 = vld [vmem:[%s13525_s5 + $0x2a4] sm:$0xf0] }
 0x50a   :  { %v7629_v58 = vor.u32 %v9143_v52, %v7628_v38 }
 0x50c   :  { %v1995_v28 = vpop.f32.mrf.mxu3  ;;  %v11362_v54 = vpop.f32.mrf.mxu1 }
 0x50d   :  { %v11360_v56 = vadd.f32 %v2071_v59, %v1995_v28  ;;  %v9122_v59 = vld [vmem:[%s13525_s5 + $0x204] sm:$0xf] }
 0x50e   :  { %v7509_v46 = vor.u32 %v9122_v59, %v7506_v13  ;;  %v9130_v28 = vld [vmem:[%s13525_s5 + $0x244] sm:$0xf] }
 0x514   :  { %v1997_v8 = vpop.f32.mrf.mxu3  ;;  %v2091_v44 = vpop.f32.mrf.mxu1 }
 0x515   :  { %v11379_v17 = vadd.f32 %v2073_v43, %v1997_v8  ;;  %v9126_v43 = vld [vmem:[%s13525_s5 + $0x224] sm:$0xf]  ;;  %v7644_v8 = vld [vmem:[%s13525_s5 + $0x2b8] sm:$0xf] }
 0x516   :  { %v7525_v34 = vor.u32 %v9126_v43, %v7522_v10 }
 0x517   :  { %7556 = vmatmul.msk.bf16.gmra.mxu1 %vm1381_vm8, %v2232_v5  ;;  %2313 = vmatmul.bf16.gmra.mxu2 %v2229_v35  ;;  %v2202_v5 = vunpack.c.h.b16 %v7452_v3  ;;  %v9151_v3 = vld [vmem:[%s13525_s5 + $0x2e4] sm:$0xf0]  ;;  %v7604_v35 = vld [vmem:[%s13525_s5 + $0x270] sm:$0xf] }
 0x519   :  { %2341 = vmatmul.bf16.gmra.mxu3 %v7509_v46  ;;  %v9147_v46 = vld [vmem:[%s13525_s5 + $0x2c4] sm:$0xf0]  ;;  %v2230_v43 = vpack.c.b16 %v2202_v5, %v2202_v5 }
 0x51a   :  { %v7645_v47 = vor.u32 %v9147_v46, %v7644_v8  ;;  %v7677_v8 = vor.u32 %v9155_v2, %v7676_v48 }
 0x51c   :  { %v2000_v45 = vpop.f32.mrf.mxu3  ;;  %v11384_v62 = vpop.f32.mrf.mxu1 }
 0x51d   :  { %v11382_v61 = vadd.f32 %v2076_v1, %v2000_v45 }
 0x524   :  { %v2002_v1 = vpop.f32.mrf.mxu3  ;;  %v2096_v26 = vpop.f32.mrf.mxu1 }
 0x525   :  { %v11398_v11 = vadd.f32 %v2078_v41, %v2002_v1  ;;  %v2286_v1 = vpop.f32.mrf.mxu2 }
 0x527   :  { %2817 = vmatmul.bf16.vlgmr.msrb.gmra.mxu1 %v7613_v37 }
 0x528   :  { %3619 = vmatpush.bf16.msrb.mxu1 %v11189_v15 }
 0x529   :  { %2346 = vmatmul.bf16.gmra.mxu3 %v7525_v34  ;;  %v7660_v34 = vld [vmem:[%s13525_s5 + $0x2d8] sm:$0xf] }
 0x52c   :  { %v2005_v4 = vpop.f32.mrf.mxu3  ;;  %3620 = vmatpush.bf16.msrb.mxu1 %v11192_v60  ;;  %v2098_v41 = vpop.f32.mrf.mxu1 }
 0x52d   :  { %v11404_v39 = vadd.f32 %v2081_v24, %v2005_v4  ;;  %v7538_v24 = vld [vmem:[%s13525_s5 + $0x250] sm:$0xf0]  ;;  %v9138_v4 = vld [vmem:[%s13525_s5 + $0x27c] sm:$0xf0]  ;;  %v2289_v38 = vpop.f32.mrf.mxu2 }
 0x52e   :  { %v7541_v36 = vor.u32 %v9130_v28, %v7538_v24  ;;  %v7605_v52 = vor.u32 %v9138_v4, %v7604_v35 }
 0x530   :  { %3621 = vmatpush.bf16.msrb.mxu1 %v11197_v51 }
 0x534   :  { %v11420_v32 = vpop.f32.mrf.mxu3  ;;  %3622 = vmatpush.bf16.msrb.mxu1 %v11201_v7 }
 0x537   :  { %2822 = vmatmul.bf16.gmra.mxu1 %v7629_v58  ;;  %v2291_v58 = vpop.f32.mrf.mxu2 }
 0x538   :  { %3623 = vmatpush.bf16.msrb.mxu1 %v11209_v9 }
 0x539   :  { %2351 = vmatmul.bf16.gmra.mxu3 %v7541_v36 }
 0x53c   :  { %v2010_v59 = vpop.f32.mrf.mxu3  ;;  %3624 = vmatpush.bf16.msrb.mxu1 %v11212_v16 }
 0x53d   :  { %v11430_v13 = vadd.f32 %v2086_v14, %v2010_v59  ;;  %v2413_v14 = vpop.f32.mrf.mxu1 }
 0x53f   :  { %v2294_v46 = vpop.f32.mrf.mxu2 }
 0x540   :  { %3625 = vmatpush.bf16.msrb.mxu1 %v11217_v31 }
 0x544   :  { %v11440_v45 = vpop.f32.mrf.mxu3  ;;  %3626 = vmatpush.bf16.msrb.mxu1 %v11221_v27 }
 0x545   :  { %v2415_v63 = vpop.f32.mrf.mxu1 }
 0x547   :  { %2827 = vmatmul.bf16.gmra.mxu1 %v7645_v47 }
 0x549   :  { %2356 = vmatmul.bf16.gmra.mxu3 %v2230_v43 }
 0x54c   :  { %v2015_v10 = vpop.f32.mrf.mxu3 }
 0x54d   :  { %v11443_v37 = vadd.f32 %v2091_v44, %v2015_v10  ;;  %v7661_v44 = vor.u32 %v9151_v3, %v7660_v34  ;;  %v2418_v28 = vpop.f32.mrf.mxu1  ;;  %v2296_v10 = vpop.f32.mrf.mxu2  ;;  %v9159_v3 = vld [vmem:[%s13525_s5 + $0x324] sm:$0xf0] }
 0x554   :  { %v11457_v41 = vpop.f32.mrf.mxu3 }
 0x555   :  { %v2420_v59 = vpop.f32.mrf.mxu1 }
 0x557   :  { %2832 = vmatmul.bf16.gmra.mxu1 %v7661_v44 }
 0x559   :  { %2731 = vmatmul.bf16.vlgmr.msra.gmra.mxu3 %v7605_v52  ;;  %v11476_v52 = vpop.f32.mrf.mxu2 }
 0x55a   :  { %3307 = vmatpush.bf16.msra.mxu3 %v10486_v20 }
 0x55c   :  { %v2020_v24 = vpop.f32.mrf.mxu3 }
 0x55d   :  { %v11460_v36 = vadd.f32 %v2096_v26, %v2020_v24  ;;  %v11468_v47 = vpop.f32.mrf.mxu1  ;;  %v7692_v26 = vld [vmem:[%s13525_s5 + $0x318] sm:$0xf] }
 0x55e   :  { %v7693_v44 = vor.u32 %v9159_v3, %v7692_v26  ;;  %v11488_v26 = vld [vmem:[%s13525_s5 + $0x338] sm:$0x11] }
 0x564   :  { %v2022_v5 = vpop.f32.mrf.mxu3 }
 0x565   :  { %v2425_v35 = vpop.f32.mrf.mxu1 }
 0x567   :  { %2837 = vmatmul.bf16.gmra.mxu1 %v7677_v8  ;;  %v11480_v8 = vpop.f32.mrf.mxu0 }
 0x56c   :  { %v2327_v43 = vpop.f32.mrf.mxu3 }
 0x56d   :  { %v2328_v34 = vadd.f32 %v2327_v43, %v2284_v30  ;;  %v11482_v27 = vpop.f32.mrf.mxu1 }
 0x56f   :  { %v2371_v24 = vadd.f32 %v10894_v33, %v2328_v34  ;;  %v2301_v33 = vpop.f32.mrf.mxu2 }
 0x571   :  { %v2414_v30 = vadd.f32 %v2413_v14, %v2371_v24 }
 0x574   :  { %v2329_v4 = vpop.f32.mrf.mxu3 }
 0x575   :  { %v2330_v48 = vadd.f32 %v2329_v4, %v2286_v1  ;;  %v2387_v1 = vpop.f32.mrf.mxu0  ;;  %v2430_v34 = vpop.f32.mrf.mxu1 }
 0x577   :  { %v2373_v2 = vadd.f32 %v10907_v49, %v2330_v48  ;;  %2842 = vmatmul.bf16.gmra.mxu1 %v7693_v44  ;;  %v2651_v49 = vunpack.c.l.b16 %v11488_v26  ;;  %v11496_v48 = vld [vmem:[#allocation2 + $0xa8] sm:$0xff] }
 0x578   :  { %13594 = vst [vmem:[#allocation10_spill] sm:$0xff] %v11496_v48 }
 0x579   :  { %v2416_v5 = vadd.f32 %v2415_v63, %v2373_v2  ;;  %v11492_v63 = vld [vmem:[#allocation2 + $0xb0] sm:$0xff]  ;;  %v2679_v4 = vpack.c.b16 %v2651_v49, %v2651_v49  ;;  %v2304_v2 = vpop.f32.mrf.mxu2 }
 0x57a   :  { %13593 = vst [vmem:[#allocation9_spill] sm:$0xff] %v11492_v63 }
 0x57b   :  { %v2447_v43 = vpack.c.bf16 %v2416_v5, %v2414_v30  ;;  %v11500_v5 = vld [vmem:[#allocation2 + $0xa0] sm:$0xff] }
 0x57c   :  { %v2332_v31 = vpop.f32.mrf.mxu3  ;;  %13595 = vst [vmem:[#allocation11_spill] sm:$0xff] %v11500_v5 }
 0x57d   :  { %7569 = vmatmul.msk.bf16.vlgmr.msra.gmra.mxu2 %vm459_vm3, %v2447_v43  ;;  %v2333_v14 = vadd.f32 %v2332_v31, %v2289_v38  ;;  %v2390_v30 = vpop.f32.mrf.mxu0  ;;  %v11503_v49 = vpop.f32.mrf.mxu1 }
 0x57e   :  { %3257 = vmatpush.bf16.msra.mxu2 %v11144_v50 }
 0x57f   :  { %v2376_v44 = vadd.f32 %v10944_v53, %v2333_v14 }
 0x581   :  { %v2419_v31 = vadd.f32 %v2418_v28, %v2376_v44  ;;  %v9162_v28 = vld [vmem:[%s13525_s5 + $0x344] sm:$0xf]  ;;  %v2306_v14 = vpop.f32.mrf.mxu2 }
 0x582   :  { %3258 = vmatpush.bf16.msra.mxu2 %v11492_v63 }
 0x584   :  { %v2334_v3 = vpop.f32.mrf.mxu3 }
 0x585   :  { %v2335_v24 = vadd.f32 %v2334_v3, %v2291_v58  ;;  %v11506_v58 = vld [vmem:[#allocation2 + $0x98] sm:$0xff]  ;;  %v2392_v3 = vpop.f32.mrf.mxu0  ;;  %v2435_v44 = vpop.f32.mrf.mxu1 }
 0x586   :  { %3259 = vmatpush.bf16.msra.mxu2 %v11496_v48  ;;  %13596 = vst [vmem:[#allocation12_spill] sm:$0xff] %v11506_v58 }
 0x587   :  { %v2378_v50 = vadd.f32 %v10954_v0, %v2335_v24  ;;  %2847 = vmatmul.bf16.gmra.mxu1 %v2679_v4  ;;  %v11515_v4 = vld [vmem:[#allocation2 + $0x90] sm:$0xff] }
 0x588   :  { %13597 = vst [vmem:[#allocation13_spill] sm:$0xff] %v11515_v4 }
 0x589   :  { %v2421_v38 = vadd.f32 %v2420_v59, %v2378_v50  ;;  %v7754_v59 = vld [vmem:[%s13525_s5 + $0x350] sm:$0xf0] }
 0x58a   :  { %3260 = vmatpush.bf16.msra.mxu2 %v11500_v5  ;;  %v7757_v50 = vor.u32 %v9162_v28, %v7754_v59  ;;  %v11524_v5 = vld [vmem:[#allocation2 + $0x80] sm:$0xff]  ;;  %v2309_v48 = vpop.f32.mrf.mxu2 }
 0x58b   :  { %v2448_v43 = vpack.c.bf16 %v2421_v38, %v2419_v31  ;;  %v11519_v38 = vld [vmem:[#allocation2 + $0x88] sm:$0xff]  ;;  %13599 = vst [vmem:[#allocation15_spill] sm:$0xff] %v11524_v5 }
 0x58c   :  { %v2337_v53 = vpop.f32.mrf.mxu3  ;;  %13598 = vst [vmem:[#allocation14_spill] sm:$0xff] %v11519_v38 }
 0x58d   :  { %7570 = vmatmul.msk.bf16.gmra.mxu2 %vm459_vm3, %v2448_v43  ;;  %v2338_v0 = vadd.f32 %v2337_v53, %v2294_v46  ;;  %v2395_v28 = vpop.f32.mrf.mxu0 }
 0x58e   :  { %3261 = vmatpush.bf16.msra.mxu2 %v11506_v58 }
 0x58f   :  { %v2381_v31 = vadd.f32 %v10975_v6, %v2338_v0  ;;  %v2438_v6 = vpop.f32.mrf.mxu1 }
 0x591   :  { %v2424_v53 = vadd.f32 %v11468_v47, %v2381_v31  ;;  %v7770_v47 = vld [vmem:[%s13525_s5 + $0x370] sm:$0xf0] }
 0x592   :  { %3262 = vmatpush.bf16.msra.mxu2 %v11515_v4 }
 0x594   :  { %v2339_v24 = vpop.f32.mrf.mxu3 }
 0x595   :  { %v2340_v46 = vadd.f32 %v2339_v24, %v2296_v10  ;;  %v2397_v31 = vpop.f32.mrf.mxu0 }
 0x596   :  { %3263 = vmatpush.bf16.msra.mxu2 %v11519_v38 }
 0x597   :  { %v2383_v43 = vadd.f32 %v11005_v21, %v2340_v46  ;;  %3222 = vmatmul.bf16.vlgmr.msra.gmra.mxu1 %v7757_v50  ;;  %v9166_v21 = vld [vmem:[%s13525_s5 + $0x364] sm:$0xf]  ;;  %v2311_v50 = vpop.f32.mrf.mxu2 }
 0x598   :  { %v7773_v0 = vor.u32 %v9166_v21, %v7770_v47 }
 0x599   :  { %v2426_v58 = vadd.f32 %v2425_v35, %v2383_v43 }
 0x59a   :  { %3264 = vmatpush.bf16.msra.mxu2 %v11524_v5 }
 0x59b   :  { %v2449_v4 = vpack.c.bf16 %v2426_v58, %v2424_v53 }
 0x59c   :  { %v2342_v59 = vpop.f32.mrf.mxu3 }
 0x59d   :  { %7571 = vmatmul.msk.bf16.gmra.mxu2 %vm459_vm3, %v2449_v4  ;;  %v2343_v10 = vadd.f32 %v2342_v59, %v11476_v52  ;;  %v2440_v4 = vpop.f32.mrf.mxu1  ;;  %v2400_v38 = vpop.f32.mrf.mxu0 }
 0x59f   :  { %v2386_v58 = vadd.f32 %v11480_v8, %v2343_v10  ;;  %v2314_v5 = vpop.f32.mrf.mxu2  ;;  %v9170_v8 = vld [vmem:[%s13525_s5 + $0x384] sm:$0xf] }
 0x5a1   :  { %v2429_v52 = vadd.f32 %v11482_v27, %v2386_v58 }
 0x5a4   :  { %v2344_v35 = vpop.f32.mrf.mxu3 }
 0x5a5   :  { %v2345_v24 = vadd.f32 %v2344_v35, %v2301_v33  ;;  %v2443_v63 = vpop.f32.mrf.mxu1  ;;  %v7786_v33 = vld [vmem:[%s13525_s5 + $0x390] sm:$0xf0]  ;;  %v2402_v47 = vpop.f32.mrf.mxu0 }
 0x5a6   :  { %v7789_v10 = vor.u32 %v9170_v8, %v7786_v33 }
 0x5a7   :  { %v2388_v46 = vadd.f32 %v2387_v1, %v2345_v24  ;;  %3227 = vmatmul.bf16.gmra.mxu1 %v7773_v0  ;;  %v2316_v21 = vpop.f32.mrf.mxu2 }
 0x5a9   :  { %v2431_v43 = vadd.f32 %v2430_v34, %v2388_v46 }
 0x5ab   :  { %v2450_v53 = vpack.c.bf16 %v2431_v43, %v2429_v52  ;;  %v9174_v43 = vld [vmem:[%s13525_s5 + $0x3a4] sm:$0xf] }
 0x5ac   :  { %v2347_v59 = vpop.f32.mrf.mxu3 }
 0x5ad   :  { %7572 = vmatmul.msk.bf16.gmra.mxu2 %vm459_vm3, %v2450_v53  ;;  %v2348_v16 = vadd.f32 %v2347_v59, %v2304_v2  ;;  %v2445_v0 = vpop.f32.mrf.mxu1 }
 0x5ae   :  { %v7636_v0 = vld [vmem:[%s13525_s5 + $0x2b0] sm:$0xf] }
 0x5af   :  { %v2391_v27 = vadd.f32 %v2390_v30, %v2348_v16  ;;  %v7802_v16 = vld [vmem:[%s13525_s5 + $0x3b0] sm:$0xf0] }
 0x5b1   :  { %v2434_v58 = vadd.f32 %v11503_v49, %v2391_v27 }
 0x5b4   :  { %v2349_v1 = vpop.f32.mrf.mxu3 }
 0x5b5   :  { %v2350_v34 = vadd.f32 %v2349_v1, %v2306_v14  ;;  %v7805_v14 = vor.u32 %v9174_v43, %v7802_v16  ;;  %v11594_v16 = vld [vmem:[%s13525_s5 + $0x400] sm:$0x11] }
 0x5b7   :  { %v2393_v35 = vadd.f32 %v2392_v3, %v2350_v34  ;;  %3232 = vmatmul.bf16.gmra.mxu1 %v7789_v10  ;;  %v9142_v10 = vld [vmem:[%s13525_s5 + $0x29c] sm:$0xf0] }
 0x5b9   :  { %v2436_v2 = vadd.f32 %v2435_v44, %v2393_v35  ;;  %v7834_v35 = vld [vmem:[%s13525_s5 + $0x3f0] sm:$0xf0] }
 0x5bb   :  { %v2451_v24 = vpack.c.bf16 %v2436_v2, %v2434_v58 }
 0x5bc   :  { %v2352_v46 = vpop.f32.mrf.mxu3 }
 0x5bd   :  { %7573 = vmatmul.msk.bf16.gmra.mxu2 %vm459_vm3, %v2451_v24  ;;  %v2353_v52 = vadd.f32 %v2352_v46, %v2309_v48  ;;  %v7620_v48 = vld [vmem:[%s13525_s5 + $0x290] sm:$0xf]  ;;  %v9137_v24 = vld [vmem:[%s13525_s5 + $0x27c] sm:$0xf]  ;;  %v7614_v46 = vld [vmem:[%s13525_s5 + $0x288] sm:$0xf0] }
 0x5be   :  { %v7621_v27 = vor.u32 %v9142_v10, %v7620_v48  ;;  %v7617_v43 = vor.u32 %v9137_v24, %v7614_v46  ;;  %v7900_v48 = vld [vmem:[%s13525_s5 + $0x410] sm:$0xf]  ;;  %v9153_v46 = vld [vmem:[%s13525_s5 + $0x2fc] sm:$0xf] }
 0x5bf   :  { %v2396_v3 = vadd.f32 %v2395_v28, %v2353_v52 }
 0x5c0   :  { %2736 = vmatmul.bf16.gmra.mxu3 %v7621_v27  ;;  %v9190_v27 = vld [vmem:[%s13525_s5 + $0x41c] sm:$0xf0] }
 0x5c1   :  { %v2439_v49 = vadd.f32 %v2438_v6, %v2396_v3  ;;  %v9178_v6 = vld [vmem:[%s13525_s5 + $0x3c4] sm:$0xf]  ;;  %v9150_v3 = vld [vmem:[%s13525_s5 + $0x2dc] sm:$0xf0] }
 0x5c4   :  { %v2354_v30 = vpop.f32.mrf.mxu3 }
 0x5c5   :  { %v2355_v53 = vadd.f32 %v2354_v30, %v2311_v50  ;;  %v3098_v30 = vunpack.c.h.b16 %v11594_v16 }
 0x5c7   :  { %v2398_v59 = vadd.f32 %v2397_v31, %v2355_v53  ;;  %3237 = vmatmul.bf16.gmra.mxu1 %v7805_v14  ;;  %v7652_v14 = vld [vmem:[%s13525_s5 + $0x2d0] sm:$0xf]  ;;  %v9213_v53 = vld [vmem:[%s13526_s6 + $0x58] sm:$0xff] }
 0x5c8   :  { %3842 = vmatpush.bf16.msra.mxu1 %v9213_v53 }
 0x5c9   :  { %v2441_v44 = vadd.f32 %v2440_v4, %v2398_v59  ;;  %v11565_v4 = vpop.f32.mrf.mxu1 }
 0x5cb   :  { %v2452_v8 = vpack.c.bf16 %v2441_v44, %v2439_v49  ;;  %v7653_v49 = vor.u32 %v9150_v3, %v7652_v14  ;;  %v9141_v44 = vld [vmem:[%s13525_s5 + $0x29c] sm:$0xf]  ;;  %v9416_v3 = vld [vmem:[%s13525_s5 + $0x330] sm:$0x11] }
 0x5cc   :  { %v2357_v33 = vpop.f32.mrf.mxu3  ;;  %v2649_v53 = vunpack.c.l.b16 %v9416_v3 }
 0x5cd   :  { %v2358_v1 = vadd.f32 %v2357_v33, %v2314_v5  ;;  %7574 = vmatmul.msk.bf16.gmra.mxu2 %vm459_vm3, %v2452_v8  ;;  %v7818_v5 = vld [vmem:[%s13525_s5 + $0x3d0] sm:$0xf0]  ;;  %v7630_v8 = vld [vmem:[%s13525_s5 + $0x2a8] sm:$0xf0] }
 0x5ce   :  { %v7821_v31 = vor.u32 %v9178_v6, %v7818_v5  ;;  %v7633_v33 = vor.u32 %v9141_v44, %v7630_v8  ;;  %v7901_v6 = vor.u32 %v9190_v27, %v7900_v48  ;;  %v7646_v5 = vld [vmem:[%s13525_s5 + $0x2c8] sm:$0xf0]  ;;  %v9157_v44 = vld [vmem:[%s13525_s5 + $0x31c] sm:$0xf]  ;;  %v2084_v8 = vadd.f32 %v11337_v29, %v11420_v32 }
 0x5cf   :  { %v2401_v28 = vadd.f32 %v2400_v38, %v2358_v1  ;;  %v9182_v38 = vld [vmem:[%s13525_s5 + $0x3e4] sm:$0xf] }
 0x5d0   :  { %v7837_v2 = vor.u32 %v9182_v38, %v7834_v35  ;;  %v7684_v38 = vld [vmem:[%s13525_s5 + $0x310] sm:$0xf] }
 0x5d1   :  { %v2444_v34 = vadd.f32 %v2443_v63, %v2401_v28  ;;  %v11568_v47 = vpop.f32.mrf.mxu1  ;;  %v9146_v63 = vld [vmem:[%s13525_s5 + $0x2bc] sm:$0xf0] }
 0x5d2   :  { %v7637_v58 = vor.u32 %v9146_v63, %v7636_v0  ;;  %v7662_v0 = vld [vmem:[%s13525_s5 + $0x2e8] sm:$0xf0] }
 0x5d3   :  { %v2453_v21 = vpack.c.bf16 %v2444_v34, %v2444_v34 }
 0x5d4   :  { %v2359_v50 = vpop.f32.mrf.mxu3  ;;  %2741 = vmatmul.bf16.gmra.mxu3 %v7637_v58 }
 0x5d7   :  { %3242 = vmatmul.bf16.gmra.mxu1 %v7821_v31 }
 0x5d9   :  { %v11588_v52 = vpop.f32.mrf.mxu1 }
 0x5dc   :  { %v2732_v27 = vpop.f32.mrf.mxu3 }
 0x5dd   :  { %7575 = vmatmul.msk.bf16.gmra.mxu2 %vm459_vm3, %v2453_v21 }
 0x5e1   :  { %v11608_v59 = vpop.f32.mrf.mxu1 }
 0x5e4   :  { %2746 = vmatmul.bf16.gmra.mxu3 %v7653_v49  ;;  %v2734_v32 = vpop.f32.mrf.mxu3 }
 0x5e7   :  { %3247 = vmatmul.bf16.gmra.mxu1 %v7837_v2 }
 0x5e9   :  { %v11621_v1 = vpop.f32.mrf.mxu1 }
 0x5ed   :  { %7698 = vmatmul.msk.bf16.vlgmr.msrb.gmra.mxu2 %vm1381_vm8, %v7617_v43  ;;  %v7678_v43 = vld [vmem:[%s13525_s5 + $0x308] sm:$0xf0] }
 0x5ee   :  { %3662 = vmatpush.bf16.msrb.mxu2 %v11247_v57  ;;  %v3126_v57 = vpack.c.b16 %v3098_v30, %v3098_v30 }
 0x5f1   :  { %v11648_v50 = vpop.f32.mrf.mxu1 }
 0x5f2   :  { %3663 = vmatpush.bf16.msrb.mxu2 %v11250_v19  ;;  %v9212_v19 = vld [vmem:[%s13526_s6 + $0x50] sm:$0xff] }
 0x5f3   :  { %3843 = vmatpush.bf16.msra.mxu1 %v9212_v19 }
 0x5f6   :  { %3664 = vmatpush.bf16.msrb.mxu2 %v11255_v42 }
 0x5f7   :  { %3252 = vmatmul.bf16.gmra.mxu1 %v3126_v57 }
 0x5fa   :  { %3665 = vmatpush.bf16.msrb.mxu2 %v11265_v40  ;;  %v7668_v40 = vld [vmem:[%s13525_s5 + $0x2f0] sm:$0xf] }
 0x5fd   :  { %7699 = vmatmul.msk.bf16.gmra.mxu2 %vm1381_vm8, %v7633_v33 }
 0x5fe   :  { %3666 = vmatpush.bf16.msrb.mxu2 %v11270_v55  ;;  %v9154_v55 = vld [vmem:[%s13525_s5 + $0x2fc] sm:$0xf0] }
 0x5ff   :  { %v7669_v28 = vor.u32 %v9154_v55, %v7668_v40  ;;  %v2775_v40 = vpop.f32.mrf.mxu0  ;;  %v2652_v55 = vunpack.c.h.b16 %v11488_v26  ;;  %v7760_v26 = vld [vmem:[%s13525_s5 + $0x348] sm:$0xf] }
 0x600   :  { %v2501_v42 = vpop.f32.mrf.mxu2 }
 0x601   :  { %v11629_v10 = vadd.f32 %v2501_v42, %v11335_v25  ;;  %2751 = vmatmul.bf16.gmra.mxu3 %v7669_v28  ;;  %v9145_v25 = vld [vmem:[%s13525_s5 + $0x2bc] sm:$0xf]  ;;  %v2089_v28 = vadd.f32 %v11362_v54, %v11440_v45  ;;  %v9165_v54 = vld [vmem:[%s13525_s5 + $0x354] sm:$0xf0]  ;;  %v2094_v45 = vadd.f32 %v11384_v62, %v11457_v41  ;;  %v7776_v62 = vld [vmem:[%s13525_s5 + $0x368] sm:$0xf] }
 0x602   :  { %3667 = vmatpush.bf16.msrb.mxu2 %v11279_v22  ;;  %v7649_v22 = vor.u32 %v9145_v25, %v7646_v5  ;;  %v2680_v25 = vpack.c.b16 %v2652_v55, %v2652_v55  ;;  %v9169_v41 = vld [vmem:[%s13525_s5 + $0x374] sm:$0xf0] }
 0x603   :  { %v11757_v55 = vld [vmem:[#allocation2 + $0xb8] sm:$0xff] }
 0x606   :  { %3668 = vmatpush.bf16.msrb.mxu2 %v11283_v18 }
 0x607   :  { %3627 = vmatmul.bf16.vlgmr.msrb.gmra.mxu1 %v7901_v6  ;;  %v2777_v5 = vpop.f32.mrf.mxu0 }
 0x608   :  { %v2503_v31 = vpop.f32.mrf.mxu2  ;;  %4203 = vmatpush.bf16.msrb.mxu1 %v10486_v20 }
 0x609   :  { %v11651_v34 = vadd.f32 %v2503_v31, %v11357_v12  ;;  %v9158_v12 = vld [vmem:[%s13525_s5 + $0x31c] sm:$0xf0] }
 0x60a   :  { %3669 = vmatpush.bf16.msrb.mxu2 %v11292_v23  ;;  %v7685_v35 = vor.u32 %v9158_v12, %v7684_v38  ;;  %v9149_v23 = vld [vmem:[%s13525_s5 + $0x2dc] sm:$0xf] }
 0x60b   :  { %v7665_v58 = vor.u32 %v9149_v23, %v7662_v0 }
 0x60d   :  { %7700 = vmatmul.msk.bf16.gmra.mxu2 %vm1381_vm8, %v7649_v22 }
 0x610   :  { %v2506_v18 = vpop.f32.mrf.mxu2 }
 0x611   :  { %v11657_v21 = vadd.f32 %v2506_v18, %v11360_v56  ;;  %2756 = vmatmul.bf16.gmra.mxu3 %v7685_v35  ;;  %v7761_v35 = vor.u32 %v9165_v54, %v7760_v26  ;;  %v13604_v54 = vld [vmem:[#allocation10_spill] sm:$0xff] }
 0x618   :  { %v2508_v56 = vpop.f32.mrf.mxu2 }
 0x619   :  { %v11672_v63 = vadd.f32 %v2508_v56, %v11379_v17  ;;  %v7681_v17 = vor.u32 %v9153_v46, %v7678_v43 }
 0x61d   :  { %7701 = vmatmul.msk.bf16.gmra.mxu2 %vm1381_vm8, %v7665_v58 }
 0x620   :  { %v2511_v2 = vpop.f32.mrf.mxu2 }
 0x621   :  { %v11676_v24 = vadd.f32 %v2511_v2, %v11382_v61  ;;  %v2677_v61 = vpack.c.b16 %v2649_v53, %v2649_v53 }
 0x623   :  { %2761 = vmatmul.bf16.gmra.mxu3 %v2677_v61  ;;  %v13601_v61 = vld [vmem:[#allocation17_spill] sm:$0xff] }
 0x628   :  { %v2513_v30 = vpop.f32.mrf.mxu2 }
 0x629   :  { %v11685_v14 = vadd.f32 %v2513_v30, %v11398_v11  ;;  %v7694_v11 = vld [vmem:[%s13525_s5 + $0x328] sm:$0xf0] }
 0x62a   :  { %v7697_v42 = vor.u32 %v9157_v44, %v7694_v11  ;;  %v13600_v30 = vld [vmem:[#allocation16_spill] sm:$0xff] }
 0x62d   :  { %7702 = vmatmul.msk.bf16.gmra.mxu2 %vm1381_vm8, %v7681_v17  ;;  %v2778_v17 = vadd.f32 %v2777_v5, %v2734_v32  ;;  %v13603_v32 = vld [vmem:[#allocation9_spill] sm:$0xff] }
 0x62f   :  { %v2821_v44 = vadd.f32 %v11568_v47, %v2778_v17  ;;  %v13607_v17 = vld [vmem:[#allocation13_spill] sm:$0xff] }
 0x630   :  { %v2516_v49 = vpop.f32.mrf.mxu2 }
 0x631   :  { %v11692_v57 = vadd.f32 %v2516_v49, %v11404_v39  ;;  %v11752_v49 = vpop.f32.mrf.mxu1 }
 0x638   :  { %v2518_v33 = vpop.f32.mrf.mxu2 }
 0x639   :  { %v11702_v19 = vadd.f32 %v2518_v33, %v2084_v8 }
 0x63d   :  { %7703 = vmatmul.msk.bf16.gmra.mxu2 %vm1381_vm8, %v7697_v42 }
 0x640   :  { %v2521_v48 = vpop.f32.mrf.mxu2 }
 0x641   :  { %v11706_v39 = vadd.f32 %v2521_v48, %v11430_v13  ;;  %v2780_v13 = vpop.f32.mrf.mxu0 }
 0x643   :  { %v2737_v18 = vpop.f32.mrf.mxu3 }
 0x644   :  { %v2781_v47 = vadd.f32 %v2780_v13, %v2737_v18 }
 0x648   :  { %v2523_v6 = vpop.f32.mrf.mxu2 }
 0x649   :  { %v11711_v29 = vadd.f32 %v2523_v6, %v2089_v28  ;;  %v2782_v23 = vpop.f32.mrf.mxu0  ;;  %v2835_v28 = vpop.f32.mrf.mxu1 }
 0x64d   :  { %7704 = vmatmul.msk.bf16.gmra.mxu2 %vm1381_vm8, %v2680_v25 }
 0x650   :  { %v2526_v31 = vpop.f32.mrf.mxu2 }
 0x651   :  { %v11715_v22 = vadd.f32 %v2526_v31, %v11443_v37  ;;  %v2739_v37 = vpop.f32.mrf.mxu3  ;;  %v2785_v58 = vpop.f32.mrf.mxu0  ;;  %v2824_v31 = vadd.f32 %v11588_v52, %v2781_v47 }
 0x652   :  { %v2783_v5 = vadd.f32 %v2782_v23, %v2739_v37  ;;  %v13605_v37 = vld [vmem:[#allocation11_spill] sm:$0xff] }
 0x658   :  { %v2528_v38 = vpop.f32.mrf.mxu2 }
 0x659   :  { %v11725_v12 = vadd.f32 %v2528_v38, %v2094_v45  ;;  %v2742_v2 = vpop.f32.mrf.mxu3  ;;  %v7808_v45 = vld [vmem:[%s13525_s5 + $0x3a8] sm:$0xf]  ;;  %v9177_v38 = vld [vmem:[%s13525_s5 + $0x3b4] sm:$0xf0] }
 0x65a   :  { %v7809_v23 = vor.u32 %v9177_v38, %v7808_v45 }
 0x65d   :  { %3265 = vmatmul.bf16.vlgmr.msra.gmra.mxu2 %v7761_v35  ;;  %v2826_v35 = vadd.f32 %v11608_v59, %v2783_v5 }
 0x65e   :  { %4067 = vmatpush.bf16.msra.mxu2 %v11189_v15  ;;  %v7777_v15 = vor.u32 %v9169_v41, %v7776_v62 }
 0x660   :  { %v2531_v0 = vpop.f32.mrf.mxu2 }
 0x661   :  { %v11729_v56 = vadd.f32 %v2531_v0, %v11460_v36  ;;  %v2787_v36 = vpop.f32.mrf.mxu0  ;;  %v2838_v0 = vpop.f32.mrf.mxu1 }
 0x662   :  { %4068 = vmatpush.bf16.msra.mxu2 %v11192_v60  ;;  %v2744_v60 = vpop.f32.mrf.mxu3 }
 0x663   :  { %v2788_v59 = vadd.f32 %v2787_v36, %v2744_v60  ;;  %v13609_v60 = vld [vmem:[#allocation15_spill] sm:$0xff] }
 0x666   :  { %4069 = vmatpush.bf16.msra.mxu2 %v11197_v51  ;;  %v2776_v51 = vadd.f32 %v2775_v40, %v2732_v27 }
 0x668   :  { %v2533_v46 = vpop.f32.mrf.mxu2  ;;  %v2819_v53 = vadd.f32 %v11565_v4, %v2776_v51  ;;  %v13602_v4 = vld [vmem:[#allocation8_spill] sm:$0xff]  ;;  %v2786_v51 = vadd.f32 %v2785_v58, %v2742_v2 }
 0x669   :  { %v11742_v3 = vpop.f32.mrf.mxu0  ;;  %v13606_v46 = vld [vmem:[#allocation12_spill] sm:$0xff] }
 0x66a   :  { %4070 = vmatpush.bf16.msra.mxu2 %v11201_v7  ;;  %v7792_v7 = vld [vmem:[%s13525_s5 + $0x388] sm:$0xf]  ;;  %v2747_v11 = vpop.f32.mrf.mxu3 }
 0x66d   :  { %3270 = vmatmul.bf16.gmra.mxu2 %v7777_v15 }
 0x66e   :  { %4071 = vmatpush.bf16.msra.mxu2 %v11209_v9  ;;  %v9173_v9 = vld [vmem:[%s13525_s5 + $0x394] sm:$0xf0] }
 0x66f   :  { %v7793_v48 = vor.u32 %v9173_v9, %v7792_v7  ;;  %v13608_v7 = vld [vmem:[#allocation14_spill] sm:$0xff]  ;;  %v7824_v9 = vld [vmem:[%s13525_s5 + $0x3c8] sm:$0xf] }
 0x670   :  { %v2861_v43 = vpop.f32.mrf.mxu2 }
 0x671   :  { %v2862_v33 = vadd.f32 %v2861_v43, %v2819_v53  ;;  %v2792_v40 = vpop.f32.mrf.mxu0 }
 0x672   :  { %4072 = vmatpush.bf16.msra.mxu2 %v13600_v30  ;;  %v2749_v25 = vpop.f32.mrf.mxu3  ;;  %v2840_v30 = vpop.f32.mrf.mxu1 }
 0x673   :  { %v2793_v47 = vadd.f32 %v2792_v40, %v2749_v25 }
 0x675   :  { %v2836_v45 = vadd.f32 %v2835_v28, %v2793_v47  ;;  %v7918_v47 = vld [vmem:[%s13525_s5 + $0x440] sm:$0xf0] }
 0x676   :  { %4073 = vmatpush.bf16.msra.mxu2 %v13601_v61  ;;  %v2829_v61 = vadd.f32 %v11621_v1, %v2786_v51 }
 0x678   :  { %v2863_v8 = vpop.f32.mrf.mxu2 }
 0x679   :  { %v2864_v42 = vadd.f32 %v2863_v8, %v2821_v44  ;;  %v2795_v26 = vpop.f32.mrf.mxu0  ;;  %v9181_v44 = vld [vmem:[%s13525_s5 + $0x3d4] sm:$0xf0]  ;;  %v2831_v8 = vadd.f32 %v11648_v50, %v2788_v59 }
 0x67a   :  { %4074 = vmatpush.bf16.msra.mxu2 %v13602_v4 }
 0x67b   :  { %v2895_v27 = vpack.c.bf16 %v2864_v42, %v2862_v33  ;;  %v7825_v42 = vor.u32 %v9181_v44, %v7824_v9 }
 0x67d   :  { %7717 = vmatmul.msk.bf16.vlgmr.msrb.gmra.mxu3 %vm459_vm3, %v2895_v27  ;;  %3275 = vmatmul.bf16.gmra.mxu2 %v7793_v48  ;;  %v2843_v48 = vpop.f32.mrf.mxu1 }
 0x67e   :  { %3705 = vmatpush.bf16.msrb.mxu3 %v11757_v55 }
 0x680   :  { %v2866_v6 = vpop.f32.mrf.mxu2 }
 0x681   :  { %v2867_v18 = vadd.f32 %v2866_v6, %v2824_v31  ;;  %v2797_v15 = vpop.f32.mrf.mxu0  ;;  %v2791_v6 = vadd.f32 %v11742_v3, %v2747_v11  ;;  %v7840_v31 = vld [vmem:[%s13525_s5 + $0x3e8] sm:$0xf] }
 0x682   :  { %3706 = vmatpush.bf16.msrb.mxu3 %v13603_v32 }
 0x683   :  { %v2834_v50 = vadd.f32 %v11752_v49, %v2791_v6  ;;  %v9192_v6 = vld [vmem:[%s13525_s5 + $0x434] sm:$0xf] }
 0x684   :  { %v2752_v52 = vpop.f32.mrf.mxu3 }
 0x685   :  { %v2845_v5 = vpop.f32.mrf.mxu1 }
 0x686   :  { %3707 = vmatpush.bf16.msrb.mxu3 %v13604_v54  ;;  %v9185_v54 = vld [vmem:[%s13525_s5 + $0x3f4] sm:$0xf0] }
 0x688   :  { %v2868_v13 = vpop.f32.mrf.mxu2 }
 0x689   :  { %v2869_v62 = vadd.f32 %v2868_v13, %v2826_v35  ;;  %v2800_v36 = vpop.f32.mrf.mxu0 }
 0x68a   :  { %3708 = vmatpush.bf16.msrb.mxu3 %v13605_v37  ;;  %v11797_v37 = vld [vmem:[%s13525_s5 + $0x408] sm:$0x11] }
 0x68b   :  { %v2896_v41 = vpack.c.bf16 %v2869_v62, %v2867_v18  ;;  %v7841_v62 = vor.u32 %v9185_v54, %v7840_v31 }
 0x68c   :  { %v2754_v53 = vpop.f32.mrf.mxu3 }
 0x68d   :  { %7718 = vmatmul.msk.bf16.gmra.mxu3 %vm459_vm3, %v2896_v41  ;;  %3280 = vmatmul.bf16.gmra.mxu2 %v7809_v23  ;;  %v2848_v49 = vpop.f32.mrf.mxu1  ;;  %v2796_v23 = vadd.f32 %v2795_v26, %v2752_v52  ;;  %v2798_v28 = vadd.f32 %v2797_v15, %v2754_v53  ;;  %v7902_v15 = vld [vmem:[%s13525_s5 + $0x420] sm:$0xf0] }
 0x68e   :  { %3709 = vmatpush.bf16.msrb.mxu3 %v13606_v46 }
 0x68f   :  { %v2839_v46 = vadd.f32 %v2838_v0, %v2796_v23  ;;  %v9188_v0 = vld [vmem:[%s13525_s5 + $0x414] sm:$0xf] }
 0x690   :  { %v2871_v43 = vpop.f32.mrf.mxu2  ;;  %v11843_v23 = vld [vmem:[#allocation2 + $0x70] sm:$0xff] }
 0x691   :  { %v2872_v2 = vadd.f32 %v2871_v43, %v2829_v61  ;;  %v2802_v32 = vpop.f32.mrf.mxu0  ;;  %v3099_v43 = vunpack.c.l.b16 %v11797_v37 }
 0x692   :  { %3710 = vmatpush.bf16.msrb.mxu3 %v13607_v17  ;;  %v2841_v17 = vadd.f32 %v2840_v30, %v2798_v28  ;;  %v7800_v28 = vld [vmem:[%s13525_s5 + $0x3a0] sm:$0xf] }
 0x693   :  { %v3127_v44 = vpack.c.b16 %v3099_v43, %v3099_v43 }
 0x694   :  { %v2757_v4 = vpop.f32.mrf.mxu3 }
 0x695   :  { %v2850_v51 = vpop.f32.mrf.mxu1  ;;  %v2801_v52 = vadd.f32 %v2800_v36, %v2757_v4 }
 0x696   :  { %3711 = vmatpush.bf16.msrb.mxu3 %v13608_v7  ;;  %v11855_v51 = vld [vmem:[#allocation2 + $0x68] sm:$0xff] }
 0x698   :  { %v2873_v58 = vpop.f32.mrf.mxu2 }
 0x699   :  { %v2874_v33 = vadd.f32 %v2873_v58, %v2831_v8  ;;  %v2805_v11 = vpop.f32.mrf.mxu0 }
 0x69a   :  { %3712 = vmatpush.bf16.msrb.mxu3 %v13609_v60  ;;  %v7905_v60 = vor.u32 %v9188_v0, %v7902_v15  ;;  %v9180_v0 = vld [vmem:[%s13525_s5 + $0x3cc] sm:$0xf0]  ;;  %v9171_v15 = vld [vmem:[%s13525_s5 + $0x38c] sm:$0xf] }
 0x69b   :  { %v2897_v1 = vpack.c.bf16 %v2874_v33, %v2872_v2  ;;  %v2844_v2 = vadd.f32 %v2843_v48, %v2801_v52 }
 0x69c   :  { %v2759_v35 = vpop.f32.mrf.mxu3 }
 0x69d   :  { %7719 = vmatmul.msk.bf16.gmra.mxu3 %vm459_vm3, %v2897_v1  ;;  %3285 = vmatmul.bf16.gmra.mxu2 %v7825_v42  ;;  %v2803_v58 = vadd.f32 %v2802_v32, %v2759_v35  ;;  %v7768_v32 = vld [vmem:[%s13525_s5 + $0x360] sm:$0xf]  ;;  %v7762_v35 = vld [vmem:[%s13525_s5 + $0x358] sm:$0xf0] }
 0x69f   :  { %v2846_v30 = vadd.f32 %v2845_v5, %v2803_v58  ;;  %v11877_v58 = vld [vmem:[#allocation2 + $0x50] sm:$0xff] }
 0x6a0   :  { %v2876_v27 = vpop.f32.mrf.mxu2 }
 0x6a1   :  { %v2877_v13 = vadd.f32 %v2876_v27, %v2834_v50  ;;  %v2807_v41 = vpop.f32.mrf.mxu0  ;;  %v9168_v50 = vld [vmem:[%s13525_s5 + $0x36c] sm:$0xf0] }
 0x6a2   :  { %v7769_v5 = vor.u32 %v9168_v50, %v7768_v32  ;;  %v9176_v41 = vld [vmem:[%s13525_s5 + $0x3ac] sm:$0xf0] }
 0x6a3   :  { %v7801_v43 = vor.u32 %v9176_v41, %v7800_v28  ;;  %v9184_v32 = vld [vmem:[%s13525_s5 + $0x3ec] sm:$0xf0]  ;;  %v9179_v41 = vld [vmem:[%s13525_s5 + $0x3cc] sm:$0xf] }
 0x6a4   :  { %3184 = vmatmul.bf16.gmra.mxu0 %v7769_v5  ;;  %v9175_v5 = vld [vmem:[%s13525_s5 + $0x3ac] sm:$0xf] }
 0x6a6   :  { %v2762_v25 = vpop.f32.mrf.mxu3 }
 0x6a7   :  { %v2806_v27 = vadd.f32 %v2805_v11, %v2762_v25  ;;  %v11840_v25 = vld [vmem:[#allocation2 + $0x78] sm:$0xff] }
 0x6a8   :  { %v2878_v38 = vpop.f32.mrf.mxu2 }
 0x6a9   :  { %v2879_v18 = vadd.f32 %v2878_v38, %v2836_v45  ;;  %v2849_v48 = vadd.f32 %v2848_v49, %v2806_v27  ;;  %v7921_v45 = vor.u32 %v9192_v6, %v7918_v47  ;;  %v9163_v38 = vld [vmem:[%s13525_s5 + $0x34c] sm:$0xf] }
 0x6aa   :  { %v7765_v49 = vor.u32 %v9163_v38, %v7762_v35 }
 0x6ab   :  { %v2898_v3 = vpack.c.bf16 %v2879_v18, %v2877_v13  ;;  %v9196_v13 = vld [vmem:[%s13525_s5 + $0x454] sm:$0xf]  ;;  %v7934_v18 = vld [vmem:[%s13525_s5 + $0x460] sm:$0xf0] }
 0x6ad   :  { %7720 = vmatmul.msk.bf16.gmra.mxu3 %vm459_vm3, %v2898_v3  ;;  %3290 = vmatmul.bf16.gmra.mxu2 %v7841_v62  ;;  %v7784_v62 = vld [vmem:[%s13525_s5 + $0x380] sm:$0xf]  ;;  %v9172_v3 = vld [vmem:[%s13525_s5 + $0x38c] sm:$0xf0] }
 0x6ae   :  { %v2764_v61 = vpop.f32.mrf.mxu3  ;;  %v7785_v11 = vor.u32 %v9172_v3, %v7784_v62  ;;  %v9239_v62 = vld [vmem:[%s13526_s6 + $0x68] sm:$0xff]  ;;  %v9238_v3 = vld [vmem:[%s13526_s6 + $0x60] sm:$0xff] }
 0x6af   :  { %v7950_v61 = vld [vmem:[%s13525_s5 + $0x480] sm:$0xf0] }
 0x6b0   :  { %v2881_v40 = vpop.f32.mrf.mxu2 }
 0x6b1   :  { %v2882_v7 = vadd.f32 %v2881_v40, %v2839_v46  ;;  %v7937_v40 = vor.u32 %v9196_v13, %v7934_v18  ;;  %v9167_v46 = vld [vmem:[%s13525_s5 + $0x36c] sm:$0xf] }
 0x6b4   :  { %3189 = vmatmul.bf16.gmra.mxu0 %v7785_v11 }
 0x6b8   :  { %v2883_v59 = vpop.f32.mrf.mxu2 }
 0x6b9   :  { %v2884_v9 = vadd.f32 %v2883_v59, %v2841_v17  ;;  %v7778_v17 = vld [vmem:[%s13525_s5 + $0x378] sm:$0xf0]  ;;  %v9200_v59 = vld [vmem:[%s13525_s5 + $0x474] sm:$0xf] }
 0x6bb   :  { %v2899_v8 = vpack.c.bf16 %v2884_v9, %v2882_v7  ;;  %v7781_v7 = vor.u32 %v9167_v46, %v7778_v17  ;;  %v7953_v9 = vor.u32 %v9200_v59, %v7950_v61  ;;  %v7826_v46 = vld [vmem:[%s13525_s5 + $0x3d8] sm:$0xf0] }
 0x6bc   :  { %v7829_v59 = vor.u32 %v9179_v41, %v7826_v46 }
 0x6bd   :  { %7721 = vmatmul.msk.bf16.gmra.mxu3 %vm459_vm3, %v2899_v8  ;;  %3295 = vmatmul.bf16.gmra.mxu2 %v3127_v44  ;;  %v11867_v44 = vld [vmem:[#allocation2 + $0x60] sm:$0xff]  ;;  %v11871_v8 = vld [vmem:[#allocation2 + $0x58] sm:$0xff] }
 0x6c0   :  { %v2886_v26 = vpop.f32.mrf.mxu2 }
 0x6c1   :  { %v2887_v33 = vadd.f32 %v2886_v26, %v2844_v2  ;;  %v7816_v2 = vld [vmem:[%s13525_s5 + $0x3c0] sm:$0xf] }
 0x6c4   :  { %3194 = vmatmul.bf16.gmra.mxu0 %v7801_v43 }
 0x6c8   :  { %v2888_v53 = vpop.f32.mrf.mxu2 }
 0x6c9   :  { %v2889_v42 = vadd.f32 %v2888_v53, %v2846_v30  ;;  %v7817_v30 = vor.u32 %v9180_v0, %v7816_v2  ;;  %v11889_v53 = vld [vmem:[#allocation2 + $0x48] sm:$0xff] }
 0x6cb   :  { %v2900_v1 = vpack.c.bf16 %v2889_v42, %v2887_v33  ;;  %v9204_v33 = vld [vmem:[%s13525_s5 + $0x494] sm:$0xf]  ;;  %v7966_v42 = vld [vmem:[%s13525_s5 + $0x4a0] sm:$0xf0] }
 0x6cd   :  { %7722 = vmatmul.msk.bf16.gmra.mxu3 %vm459_vm3, %v2900_v1  ;;  %3670 = vmatmul.bf16.vlgmr.msrb.gmra.mxu2 %v7905_v60 }
 0x6ce   :  { %4290 = vmatpush.bf16.msrb.mxu2 %v9239_v62 }
 0x6d0   :  { %v2891_v36 = vpop.f32.mrf.mxu2 }
 0x6d1   :  { %v2892_v4 = vadd.f32 %v2891_v36, %v2849_v48  ;;  %v7969_v36 = vor.u32 %v9204_v33, %v7966_v42 }
 0x6d2   :  { %4291 = vmatpush.bf16.msrb.mxu2 %v9238_v3 }
 0x6d3   :  { %v2901_v54 = vpack.c.bf16 %v2892_v4, %v2892_v4  ;;  %v11906_v4 = vld [vmem:[#allocation2 + $0x40] sm:$0xff] }
 0x6d4   :  { %3199 = vmatmul.bf16.gmra.mxu0 %v7817_v30 }
 0x6d8   :  { %v2893_v31 = vpop.f32.mrf.mxu2 }
 0x6dd   :  { %7723 = vmatmul.msk.bf16.gmra.mxu3 %vm459_vm3, %v2901_v54  ;;  %3675 = vmatmul.bf16.gmra.mxu2 %v7921_v45  ;;  %v9208_v54 = vld [vmem:[%s13525_s5 + $0x4b4] sm:$0xf]  ;;  %v7982_v45 = vld [vmem:[%s13525_s5 + $0x4c0] sm:$0xf0] }
 0x6de   :  { %v7985_v18 = vor.u32 %v9208_v54, %v7982_v45 }
 0x6e0   :  { %v11904_v48 = vpop.f32.mrf.mxu2 }
 0x6e8   :  { %v11919_v50 = vpop.f32.mrf.mxu2 }
 0x6ed   :  { %7846 = vmatmul.msk.bf16.vlgmr.msra.gmra.mxu3 %vm1381_vm8, %v7765_v49  ;;  %3680 = vmatmul.bf16.gmra.mxu2 %v7937_v40  ;;  %v11951_v40 = vld [vmem:[%s13525_s5 + $0x4d0] sm:$0x11] }
 0x6ee   :  { %4110 = vmatpush.bf16.msra.mxu3 %v11840_v25  ;;  %v3546_v28 = vunpack.c.h.b16 %v11951_v40 }
 0x6f0   :  { %v11943_v11 = vpop.f32.mrf.mxu2  ;;  %v3574_v61 = vpack.c.b16 %v3546_v28, %v3546_v28  ;;  %v12011_v28 = vld [vmem:[#allocation2 + $0x38] sm:$0xff] }
 0x6f2   :  { %4111 = vmatpush.bf16.msra.mxu3 %v11843_v23 }
 0x6f6   :  { %4112 = vmatpush.bf16.msra.mxu3 %v11855_v51 }
 0x6f8   :  { %v11960_v43 = vpop.f32.mrf.mxu2 }
 0x6fa   :  { %4113 = vmatpush.bf16.msra.mxu3 %v11867_v44 }
 0x6fd   :  { %7847 = vmatmul.msk.bf16.gmra.mxu3 %vm1381_vm8, %v7781_v7  ;;  %3685 = vmatmul.bf16.gmra.mxu2 %v7953_v9  ;;  %v3097_v7 = vunpack.c.l.b16 %v11594_v16  ;;  %v8048_v16 = vld [vmem:[%s13525_s5 + $0x4e0] sm:$0xf] }
 0x6fe   :  { %4114 = vmatpush.bf16.msra.mxu3 %v11871_v8 }
 0x6ff   :  { %v3125_v9 = vpack.c.b16 %v3097_v7, %v3097_v7  ;;  %v9195_v7 = vld [vmem:[%s13525_s5 + $0x444] sm:$0xf0] }
 0x700   :  { %v2949_v26 = vpop.f32.mrf.mxu3  ;;  %v11970_v0 = vpop.f32.mrf.mxu2 }
 0x701   :  { %v11875_v52 = vadd.f32 %v2949_v26, %v11629_v10  ;;  %v7794_v10 = vld [vmem:[%s13525_s5 + $0x398] sm:$0xf0] }
 0x702   :  { %4115 = vmatpush.bf16.msra.mxu3 %v11877_v58  ;;  %v7797_v27 = vor.u32 %v9171_v15, %v7794_v10  ;;  %v7842_v15 = vld [vmem:[%s13525_s5 + $0x3f8] sm:$0xf0] }
 0x706   :  { %4116 = vmatpush.bf16.msra.mxu3 %v11889_v53 }
 0x708   :  { %v2951_v60 = vpop.f32.mrf.mxu3 }
 0x709   :  { %v11902_v1 = vadd.f32 %v2951_v60, %v11651_v34  ;;  %v7832_v34 = vld [vmem:[%s13525_s5 + $0x3e0] sm:$0xf]  ;;  %v11987_v60 = vpop.f32.mrf.mxu2 }
 0x70a   :  { %4117 = vmatpush.bf16.msra.mxu3 %v11906_v4  ;;  %v7833_v31 = vor.u32 %v9184_v32, %v7832_v34  ;;  %v3223_v34 = vpop.f32.mrf.mxu1  ;;  %v3100_v32 = vunpack.c.h.b16 %v11797_v37  ;;  %v9191_v37 = vld [vmem:[%s13525_s5 + $0x424] sm:$0xf0] }
 0x70c   :  { %3204 = vmatmul.bf16.gmra.mxu0 %v7833_v31 }
 0x70d   :  { %7848 = vmatmul.msk.bf16.gmra.mxu3 %vm1381_vm8, %v7797_v27  ;;  %3690 = vmatmul.bf16.gmra.mxu2 %v7969_v36 }
 0x710   :  { %v2954_v6 = vpop.f32.mrf.mxu3 }
 0x711   :  { %v11911_v47 = vadd.f32 %v2954_v6, %v11657_v21  ;;  %v7810_v21 = vld [vmem:[%s13525_s5 + $0x3b8] sm:$0xf0]  ;;  %v3180_v6 = vpop.f32.mrf.mxu0 }
 0x712   :  { %v7813_v13 = vor.u32 %v9175_v5, %v7810_v21  ;;  %v3225_v21 = vpop.f32.mrf.mxu1 }
 0x718   :  { %v2956_v38 = vpop.f32.mrf.mxu3 }
 0x719   :  { %v11934_v35 = vadd.f32 %v2956_v38, %v11672_v63  ;;  %v3182_v54 = vpop.f32.mrf.mxu0 }
 0x71c   :  { %3209 = vmatmul.bf16.gmra.mxu0 %v3125_v9 }
 0x71d   :  { %7849 = vmatmul.msk.bf16.gmra.mxu3 %vm1381_vm8, %v7813_v13  ;;  %3695 = vmatmul.bf16.gmra.mxu2 %v7985_v18  ;;  %v3228_v13 = vpop.f32.mrf.mxu1 }
 0x720   :  { %v2959_v63 = vpop.f32.mrf.mxu3 }
 0x721   :  { %v11946_v49 = vadd.f32 %v2959_v63, %v11676_v24  ;;  %v3185_v18 = vpop.f32.mrf.mxu0 }
 0x725   :  { %v3230_v63 = vpop.f32.mrf.mxu1 }
 0x728   :  { %v2961_v17 = vpop.f32.mrf.mxu3 }
 0x729   :  { %v11963_v24 = vadd.f32 %v2961_v17, %v11685_v14  ;;  %v9183_v14 = vld [vmem:[%s13525_s5 + $0x3ec] sm:$0xf]  ;;  %v12017_v17 = vld [vmem:[#allocation2 + $0x30] sm:$0xff] }
 0x72a   :  { %v7845_v33 = vor.u32 %v9183_v14, %v7842_v15  ;;  %v12033_v14 = vld [vmem:[#allocation2 + $0x20] sm:$0xff] }
 0x72d   :  { %7850 = vmatmul.msk.bf16.gmra.mxu3 %vm1381_vm8, %v7829_v59  ;;  %3700 = vmatmul.bf16.gmra.mxu2 %v3574_v61  ;;  %v12020_v59 = vpop.f32.mrf.mxu1  ;;  %v7924_v61 = vld [vmem:[%s13525_s5 + $0x438] sm:$0xf] }
 0x730   :  { %v2964_v26 = vpop.f32.mrf.mxu3 }
 0x731   :  { %v11968_v2 = vadd.f32 %v2964_v26, %v11692_v57  ;;  %v9216_v57 = vld [vmem:[%s13525_s5 + $0x4ec] sm:$0xf0]  ;;  %v7925_v26 = vor.u32 %v9195_v7, %v7924_v61 }
 0x732   :  { %v8049_v42 = vor.u32 %v9216_v57, %v8048_v16  ;;  %v12038_v16 = vld [vmem:[#allocation2 + $0x18] sm:$0xff] }
 0x735   :  { %v12036_v15 = vpop.f32.mrf.mxu1 }
 0x738   :  { %v2966_v30 = vpop.f32.mrf.mxu3 }
 0x739   :  { %v11985_v10 = vadd.f32 %v2966_v30, %v11702_v19  ;;  %v3128_v19 = vpack.c.b16 %v3100_v32, %v3100_v32 }
 0x73b   :  { %13610 = vst [vmem:[#allocation16_spill] sm:$0xff] %v11985_v10 }
 0x73d   :  { %7851 = vmatmul.msk.bf16.gmra.mxu3 %vm1381_vm8, %v7845_v33  ;;  %4075 = vmatmul.bf16.vlgmr.msra.gmra.mxu2 %v8049_v42  ;;  %v3224_v33 = vadd.f32 %v3223_v34, %v3180_v6  ;;  %v12041_v42 = vld [vmem:[#allocation2 + $0x10] sm:$0xff]  ;;  %v12044_v32 = vpop.f32.mrf.mxu1  ;;  %v9199_v6 = vld [vmem:[%s13525_s5 + $0x464] sm:$0xf0] }
 0x73e   :  { %4651 = vmatpush.bf16.msra.mxu2 %v10486_v20 }
 0x740   :  { %v2969_v27 = vpop.f32.mrf.mxu3 }
 0x741   :  { %v11992_v36 = vadd.f32 %v2969_v27, %v11706_v39  ;;  %v7908_v39 = vld [vmem:[%s13525_s5 + $0x418] sm:$0xf]  ;;  %v3226_v27 = vadd.f32 %v3225_v21, %v3182_v54 }
 0x742   :  { %v7909_v3 = vor.u32 %v9191_v37, %v7908_v39  ;;  %v12058_v39 = vpop.f32.mrf.mxu2 }
 0x743   :  { %v3269_v21 = vadd.f32 %v11919_v50, %v3226_v27  ;;  %v12066_v50 = vld [vmem:[#allocation2 + $0xb0] sm:$0xff] }
 0x745   :  { %v3240_v61 = vpop.f32.mrf.mxu1 }
 0x748   :  { %v2971_v5 = vpop.f32.mrf.mxu3 }
 0x749   :  { %v11996_v31 = vadd.f32 %v2971_v5, %v11711_v29  ;;  %v3267_v5 = vadd.f32 %v11904_v48, %v3224_v33  ;;  %v3229_v33 = vadd.f32 %v3228_v13, %v3185_v18  ;;  %v9203_v13 = vld [vmem:[%s13525_s5 + $0x484] sm:$0xf0] }
 0x74b   :  { %13611 = vst [vmem:[#allocation17_spill] sm:$0xff] %v11996_v31  ;;  %v3272_v27 = vadd.f32 %v11943_v11, %v3229_v33 }
 0x74d   :  { %7852 = vmatmul.msk.bf16.gmra.mxu3 %vm1381_vm8, %v3128_v19  ;;  %v12047_v19 = vld [vmem:[#allocation2 + $0x8] sm:$0xff] }
 0x750   :  { %v2974_v45 = vpop.f32.mrf.mxu3 }
 0x751   :  { %v12000_v38 = vadd.f32 %v2974_v45, %v11715_v22  ;;  %v3187_v22 = vpop.f32.mrf.mxu0  ;;  %v7940_v45 = vld [vmem:[%s13525_s5 + $0x458] sm:$0xf] }
 0x758   :  { %v2976_v29 = vpop.f32.mrf.mxu3 }
 0x759   :  { %v12009_v62 = vadd.f32 %v2976_v29, %v11725_v12  ;;  %v12022_v12 = vld [vmem:[#allocation2 + $0x28] sm:$0xff]  ;;  %v7941_v29 = vor.u32 %v9199_v6, %v7940_v45 }
 0x75a   :  { %v12072_v45 = vld [vmem:[#allocation2 + $0xa8] sm:$0xff] }
 0x75b   :  { %13612 = vst [vmem:[#allocation8_spill] sm:$0xff] %v12009_v62 }
 0x75d   :  { %3713 = vmatmul.bf16.vlgmr.msrb.gmra.mxu3 %v7909_v3  ;;  %v12061_v3 = vld [vmem:[#allocation2] sm:$0xff] }
 0x75e   :  { %4515 = vmatpush.bf16.msrb.mxu3 %v12011_v28 }
 0x760   :  { %v2979_v41 = vpop.f32.mrf.mxu3 }
 0x761   :  { %v12015_v46 = vadd.f32 %v2979_v41, %v11729_v56  ;;  %v12031_v56 = vpop.f32.mrf.mxu0 }
 0x762   :  { %4516 = vmatpush.bf16.msrb.mxu3 %v12017_v17  ;;  %v3234_v33 = vadd.f32 %v12020_v59, %v12031_v56  ;;  %v9207_v59 = vld [vmem:[%s13525_s5 + $0x4a4] sm:$0xf0] }
 0x766   :  { %4517 = vmatpush.bf16.msrb.mxu3 %v12022_v12 }
 0x768   :  { %v2981_v9 = vpop.f32.mrf.mxu3 }
 0x769   :  { %v3192_v57 = vpop.f32.mrf.mxu0  ;;  %v3283_v9 = vpop.f32.mrf.mxu2 }
 0x76a   :  { %4518 = vmatpush.bf16.msrb.mxu3 %v12033_v14 }
 0x76d   :  { %3718 = vmatmul.bf16.gmra.mxu3 %v7925_v26 }
 0x76e   :  { %4519 = vmatpush.bf16.msrb.mxu3 %v12038_v16 }
 0x770   :  { %v3309_v30 = vpop.f32.mrf.mxu3 }
 0x771   :  { %v12056_v34 = vpop.f32.mrf.mxu0  ;;  %v3310_v48 = vadd.f32 %v3309_v30, %v3267_v5  ;;  %v3231_v30 = vadd.f32 %v3230_v63, %v3187_v22  ;;  %v12070_v5 = vpop.f32.mrf.mxu1 }
 0x772   :  { %4520 = vmatpush.bf16.msrb.mxu3 %v12041_v42  ;;  %v12082_v6 = vpop.f32.mrf.mxu2  ;;  %v3239_v10 = vadd.f32 %v12044_v32, %v12056_v34 }
 0x773   :  { %v3274_v18 = vadd.f32 %v11960_v43, %v3231_v30  ;;  %v12093_v30 = vld [vmem:[#allocation2 + $0x90] sm:$0xff] }
 0x776   :  { %4521 = vmatpush.bf16.msrb.mxu3 %v12047_v19 }
 0x778   :  { %v3311_v54 = vpop.f32.mrf.mxu3 }
 0x779   :  { %v3312_v37 = vadd.f32 %v3311_v54, %v3269_v21  ;;  %v3197_v7 = vpop.f32.mrf.mxu0  ;;  %v3245_v43 = vpop.f32.mrf.mxu1 }
 0x77a   :  { %4522 = vmatpush.bf16.msrb.mxu3 %v12061_v3 }
 0x77b   :  { %v3343_v41 = vpack.c.bf16 %v3312_v37, %v3310_v48  ;;  %v12084_v48 = vld [vmem:[#allocation2 + $0xa0] sm:$0xff] }
 0x77d   :  { %7865 = vmatmul.msk.bf16.vlgmr.msra.gmra.mxu0 %vm459_vm3, %v3343_v41  ;;  %3723 = vmatmul.bf16.gmra.mxu3 %v7941_v29  ;;  %v12088_v29 = vld [vmem:[#allocation2 + $0x98] sm:$0xff] }
 0x77e   :  { %4153 = vmatpush.bf16.msra.mxu0 %v11757_v55  ;;  %v7956_v55 = vld [vmem:[%s13525_s5 + $0x478] sm:$0xf] }
 0x77f   :  { %v7957_v54 = vor.u32 %v9203_v13, %v7956_v55  ;;  %v3236_v55 = vadd.f32 %v12036_v15, %v3192_v57  ;;  %v3277_v13 = vadd.f32 %v11970_v0, %v3234_v33  ;;  %v12108_v0 = vld [vmem:[#allocation2 + $0x80] sm:$0xff] }
 0x780   :  { %v3314_v26 = vpop.f32.mrf.mxu3  ;;  %13614 = vst [vmem:[#allocation10_spill] sm:$0xff] %v12108_v0 }
 0x781   :  { %v3200_v11 = vpop.f32.mrf.mxu0  ;;  %v3315_v22 = vadd.f32 %v3314_v26, %v3272_v27  ;;  %v3288_v26 = vpop.f32.mrf.mxu2  ;;  %v3279_v56 = vadd.f32 %v11987_v60, %v3236_v55  ;;  %v3241_v60 = vadd.f32 %v3240_v61, %v3197_v7 }
 0x782   :  { %4154 = vmatpush.bf16.msra.mxu0 %v12066_v50  ;;  %v3248_v57 = vpop.f32.mrf.mxu1  ;;  %v3244_v7 = vadd.f32 %v12070_v5, %v3200_v11 }
 0x786   :  { %4155 = vmatpush.bf16.msra.mxu0 %v12072_v45 }
 0x788   :  { %v3316_v63 = vpop.f32.mrf.mxu3 }
 0x789   :  { %v3317_v21 = vadd.f32 %v3316_v63, %v3274_v18  ;;  %v3202_v27 = vpop.f32.mrf.mxu0  ;;  %v12098_v18 = vld [vmem:[#allocation2 + $0x88] sm:$0xff]  ;;  %v7972_v63 = vld [vmem:[%s13525_s5 + $0x498] sm:$0xf]  ;;  %v3291_v33 = vpop.f32.mrf.mxu2 }
 0x78a   :  { %4156 = vmatpush.bf16.msra.mxu0 %v12084_v48  ;;  %13613 = vst [vmem:[#allocation9_spill] sm:$0xff] %v12098_v18  ;;  %v7973_v15 = vor.u32 %v9207_v59, %v7972_v63  ;;  %v3250_v55 = vpop.f32.mrf.mxu1  ;;  %v7988_v63 = vld [vmem:[%s13525_s5 + $0x4b8] sm:$0xf]  ;;  %v9211_v59 = vld [vmem:[%s13525_s5 + $0x4c4] sm:$0xf0] }
 0x78b   :  { %v3344_v37 = vpack.c.bf16 %v3317_v21, %v3315_v22 }
 0x78d   :  { %7866 = vmatmul.msk.bf16.gmra.mxu0 %vm459_vm3, %v3344_v37  ;;  %3728 = vmatmul.bf16.gmra.mxu3 %v7957_v54 }
 0x78e   :  { %4157 = vmatpush.bf16.msra.mxu0 %v12088_v29 }
 0x790   :  { %v3319_v41 = vpop.f32.mrf.mxu3 }
 0x791   :  { %v3320_v21 = vadd.f32 %v3319_v41, %v3277_v13  ;;  %v3205_v62 = vpop.f32.mrf.mxu0  ;;  %v3282_v41 = vadd.f32 %v12058_v39, %v3239_v10  ;;  %v3293_v13 = vpop.f32.mrf.mxu2 }
 0x792   :  { %4158 = vmatpush.bf16.msra.mxu0 %v12093_v30  ;;  %v3253_v34 = vpop.f32.mrf.mxu1  ;;  %v3249_v11 = vadd.f32 %v3248_v57, %v3205_v62  ;;  %v7916_v62 = vld [vmem:[%s13525_s5 + $0x430] sm:$0xf]  ;;  %v9194_v57 = vld [vmem:[%s13525_s5 + $0x43c] sm:$0xf0] }
 0x796   :  { %4159 = vmatpush.bf16.msra.mxu0 %v12098_v18 }
 0x798   :  { %v3321_v22 = vpop.f32.mrf.mxu3 }
 0x799   :  { %v3322_v54 = vadd.f32 %v3321_v22, %v3279_v56  ;;  %v3207_v56 = vpop.f32.mrf.mxu0  ;;  %v3284_v22 = vadd.f32 %v3283_v9, %v3241_v60  ;;  %v3296_v10 = vpop.f32.mrf.mxu2  ;;  %v3246_v9 = vadd.f32 %v3245_v43, %v3202_v27  ;;  %v3292_v43 = vadd.f32 %v3291_v33, %v3249_v11 }
 0x79a   :  { %4160 = vmatpush.bf16.msra.mxu0 %v12108_v0  ;;  %v12126_v0 = vld [vmem:[%s13525_s5 + $0x4d8] sm:$0x11]  ;;  %v3255_v60 = vpop.f32.mrf.mxu1  ;;  %v3251_v18 = vadd.f32 %v3250_v55, %v3207_v56  ;;  %v7917_v33 = vor.u32 %v9194_v57, %v7916_v62  ;;  %v9218_v56 = vld [vmem:[%s13525_s5 + $0x504] sm:$0xf] }
 0x79b   :  { %v3345_v37 = vpack.c.bf16 %v3322_v54, %v3320_v21  ;;  %v9197_v57 = vld [vmem:[%s13525_s5 + $0x45c] sm:$0xf] }
 0x79c   :  { %v3294_v27 = vadd.f32 %v3293_v13, %v3251_v18  ;;  %3632 = vmatmul.bf16.gmra.mxu1 %v7917_v33  ;;  %v9230_v33 = vld [vmem:[%s13525_s5 + $0x564] sm:$0xf] }
 0x79d   :  { %7867 = vmatmul.msk.bf16.gmra.mxu0 %vm459_vm3, %v3345_v37  ;;  %3733 = vmatmul.bf16.gmra.mxu3 %v7973_v15  ;;  %v7989_v37 = vor.u32 %v9211_v59, %v7988_v63 }
 0x7a0   :  { %v3324_v31 = vpop.f32.mrf.mxu3 }
 0x7a1   :  { %v3325_v54 = vadd.f32 %v3324_v31, %v3282_v41  ;;  %v3210_v39 = vpop.f32.mrf.mxu0  ;;  %v3287_v31 = vadd.f32 %v12082_v6, %v3244_v7  ;;  %v3547_v41 = vunpack.c.l.b16 %v12126_v0  ;;  %v3298_v63 = vpop.f32.mrf.mxu2  ;;  %v9214_v6 = vld [vmem:[%s13525_s5 + $0x4e4] sm:$0xf] }
 0x7a8   :  { %v3326_v21 = vpop.f32.mrf.mxu3 }
 0x7a9   :  { %v3327_v15 = vadd.f32 %v3326_v21, %v3284_v22  ;;  %v3212_v59 = vpop.f32.mrf.mxu0  ;;  %v3289_v22 = vadd.f32 %v3288_v26, %v3246_v9  ;;  %v8050_v26 = vld [vmem:[%s13525_s5 + $0x4f0] sm:$0xf0] }
 0x7aa   :  { %v8053_v60 = vor.u32 %v9214_v6, %v8050_v26  ;;  %v9202_v6 = vld [vmem:[%s13525_s5 + $0x47c] sm:$0xf0] }
 0x7ab   :  { %v3346_v32 = vpack.c.bf16 %v3327_v15, %v3325_v54 }
 0x7ad   :  { %7868 = vmatmul.msk.bf16.gmra.mxu0 %vm459_vm3, %v3346_v32  ;;  %3738 = vmatmul.bf16.gmra.mxu3 %v7989_v37  ;;  %v3575_v37 = vpack.c.b16 %v3547_v41, %v3547_v41  ;;  %v3254_v41 = vadd.f32 %v3253_v34, %v3210_v39  ;;  %v8066_v34 = vld [vmem:[%s13525_s5 + $0x510] sm:$0xf0] }
 0x7ae   :  { %v8069_v59 = vor.u32 %v9218_v56, %v8066_v34  ;;  %v7980_v56 = vld [vmem:[%s13525_s5 + $0x4b0] sm:$0xf]  ;;  %v9210_v34 = vld [vmem:[%s13525_s5 + $0x4bc] sm:$0xf0] }
 0x7af   :  { %v3297_v18 = vadd.f32 %v3296_v10, %v3254_v41  ;;  %v7932_v10 = vld [vmem:[%s13525_s5 + $0x450] sm:$0xf]  ;;  %v9206_v41 = vld [vmem:[%s13525_s5 + $0x49c] sm:$0xf0] }
 0x7b0   :  { %v3329_v61 = vpop.f32.mrf.mxu3 }
 0x7b1   :  { %v3330_v54 = vadd.f32 %v3329_v61, %v3287_v31 }
 0x7b8   :  { %v3331_v21 = vpop.f32.mrf.mxu3 }
 0x7b9   :  { %v3332_v15 = vadd.f32 %v3331_v21, %v3289_v22  ;;  %v9198_v22 = vld [vmem:[%s13525_s5 + $0x45c] sm:$0xf0] }
 0x7ba   :  { %v7933_v21 = vor.u32 %v9198_v22, %v7932_v10  ;;  %v9201_v10 = vld [vmem:[%s13525_s5 + $0x47c] sm:$0xf]  ;;  %v7958_v22 = vld [vmem:[%s13525_s5 + $0x488] sm:$0xf0] }
 0x7bb   :  { %v3347_v32 = vpack.c.bf16 %v3332_v15, %v3330_v54  ;;  %v9189_v54 = vld [vmem:[%s13525_s5 + $0x41c] sm:$0xf]  ;;  %v7910_v15 = vld [vmem:[%s13525_s5 + $0x428] sm:$0xf0] }
 0x7bc   :  { %3637 = vmatmul.bf16.gmra.mxu1 %v7933_v21  ;;  %v8130_v21 = vld [vmem:[%s13525_s5 + $0x590] sm:$0xf0] }
 0x7bd   :  { %7869 = vmatmul.msk.bf16.gmra.mxu0 %vm459_vm3, %v3347_v32  ;;  %3743 = vmatmul.bf16.gmra.mxu3 %v3575_v37  ;;  %v9222_v37 = vld [vmem:[%s13525_s5 + $0x524] sm:$0xf]  ;;  %v8082_v32 = vld [vmem:[%s13525_s5 + $0x530] sm:$0xf0] }
 0x7be   :  { %v8085_v11 = vor.u32 %v9222_v37, %v8082_v32 }
 0x7c0   :  { %v3334_v5 = vpop.f32.mrf.mxu3 }
 0x7c1   :  { %v3335_v7 = vadd.f32 %v3334_v5, %v3292_v43  ;;  %v7913_v5 = vor.u32 %v9189_v54, %v7910_v15  ;;  %v7948_v43 = vld [vmem:[%s13525_s5 + $0x470] sm:$0xf]  ;;  %v7961_v54 = vor.u32 %v9201_v10, %v7958_v22 }
 0x7c2   :  { %v7949_v26 = vor.u32 %v9202_v6, %v7948_v43  ;;  %v12265_v6 = vld [vmem:[%s13525_s5 + $0x5a0] sm:$0x11] }
 0x7c8   :  { %v3336_v61 = vpop.f32.mrf.mxu3 }
 0x7c9   :  { %v3337_v9 = vadd.f32 %v3336_v61, %v3294_v27  ;;  %v9193_v27 = vld [vmem:[%s13525_s5 + $0x43c] sm:$0xf]  ;;  %v7926_v61 = vld [vmem:[%s13525_s5 + $0x448] sm:$0xf0] }
 0x7cb   :  { %v3348_v31 = vpack.c.bf16 %v3337_v9, %v3335_v7  ;;  %v8098_v7 = vld [vmem:[%s13525_s5 + $0x550] sm:$0xf0]  ;;  %v7929_v9 = vor.u32 %v9193_v27, %v7926_v61  ;;  %v3994_v27 = vunpack.c.h.b16 %v12265_v6 }
 0x7cc   :  { %3642 = vmatmul.bf16.gmra.mxu1 %v7949_v26 }
 0x7cd   :  { %7870 = vmatmul.msk.bf16.gmra.mxu0 %vm459_vm3, %v3348_v31  ;;  %4118 = vmatmul.bf16.vlgmr.msra.gmra.mxu3 %v8053_v60 }
 0x7d0   :  { %v3339_v55 = vpop.f32.mrf.mxu3 }
 0x7d1   :  { %v3340_v13 = vadd.f32 %v3339_v55, %v3297_v18 }
 0x7d3   :  { %v3349_v63 = vpack.c.bf16 %v3340_v13, %v3340_v13 }
 0x7d8   :  { %v3341_v39 = vpop.f32.mrf.mxu3 }
 0x7d9   :  { %v7981_v39 = vor.u32 %v9210_v34, %v7980_v56  ;;  %v3671_v56 = vpop.f32.mrf.mxu2 }
 0x7dd   :  { %7871 = vmatmul.msk.bf16.gmra.mxu0 %vm459_vm3, %v3349_v63  ;;  %4123 = vmatmul.bf16.gmra.mxu3 %v8069_v59 }
 0x7e0   :  { %v12220_v18 = vpop.f32.mrf.mxu3 }
 0x7e8   :  { %v12236_v59 = vpop.f32.mrf.mxu3 }
 0x7ed   :  { %7994 = vmatmul.msk.bf16.vlgmr.msrb.gmra.mxu0 %vm1381_vm8, %v7913_v5  ;;  %4128 = vmatmul.bf16.gmra.mxu3 %v8085_v11  ;;  %v9264_v5 = vld [vmem:[%s13526_s6 + $0x70] sm:$0xff] }
 0x7ee   :  { %4558 = vmatpush.bf16.msrb.mxu0 %v11840_v25  ;;  %v9226_v25 = vld [vmem:[%s13525_s5 + $0x544] sm:$0xf] }
 0x7f0   :  { %v12260_v11 = vpop.f32.mrf.mxu3 }
 0x7f2   :  { %4559 = vmatpush.bf16.msrb.mxu0 %v11843_v23  ;;  %v8101_v23 = vor.u32 %v9226_v25, %v8098_v7  ;;  %v9205_v25 = vld [vmem:[%s13525_s5 + $0x49c] sm:$0xf]  ;;  %v7974_v7 = vld [vmem:[%s13525_s5 + $0x4a8] sm:$0xf0] }
 0x7f6   :  { %4560 = vmatpush.bf16.msrb.mxu0 %v11855_v51  ;;  %v7964_v51 = vld [vmem:[%s13525_s5 + $0x490] sm:$0xf] }
 0x7f7   :  { %v7965_v62 = vor.u32 %v9206_v41, %v7964_v51 }
 0x7f9   :  { %3647 = vmatmul.bf16.gmra.mxu1 %v7965_v62  ;;  %v9209_v62 = vld [vmem:[%s13525_s5 + $0x4bc] sm:$0xf] }
 0x7fa   :  { %4561 = vmatpush.bf16.msrb.mxu0 %v11867_v44  ;;  %v3397_v60 = vpop.f32.mrf.mxu0 }
 0x7fb   :  { %v12193_v31 = vadd.f32 %v3397_v60, %v11875_v52  ;;  %v4022_v60 = vpack.c.b16 %v3994_v27, %v3994_v27 }
 0x7fd   :  { %7995 = vmatmul.msk.bf16.gmra.mxu0 %vm1381_vm8, %v7929_v9  ;;  %4133 = vmatmul.bf16.gmra.mxu3 %v8101_v23  ;;  %v12278_v9 = vpop.f32.mrf.mxu3  ;;  %v7977_v23 = vor.u32 %v9205_v25, %v7974_v7 }
 0x7fe   :  { %4562 = vmatpush.bf16.msrb.mxu0 %v11871_v8  ;;  %v7942_v8 = vld [vmem:[%s13525_s5 + $0x468] sm:$0xf0] }
 0x802   :  { %4563 = vmatpush.bf16.msrb.mxu0 %v11877_v58  ;;  %v3399_v44 = vpop.f32.mrf.mxu0  ;;  %v8114_v58 = vld [vmem:[%s13525_s5 + $0x570] sm:$0xf0] }
 0x803   :  { %v12205_v52 = vadd.f32 %v3399_v44, %v11902_v1  ;;  %v7945_v1 = vor.u32 %v9197_v57, %v7942_v8  ;;  %v8117_v55 = vor.u32 %v9230_v33, %v8114_v58  ;;  %v7990_v44 = vld [vmem:[%s13525_s5 + $0x4c8] sm:$0xf0]  ;;  %v9242_v57 = vld [vmem:[%s13525_s5 + $0x5bc] sm:$0xf0] }
 0x804   :  { %v7993_v8 = vor.u32 %v9209_v62, %v7990_v44 }
 0x806   :  { %4564 = vmatpush.bf16.msrb.mxu0 %v11889_v53 }
 0x809   :  { %3652 = vmatmul.bf16.gmra.mxu1 %v7981_v39  ;;  %v3548_v39 = vunpack.c.h.b16 %v12126_v0  ;;  %v9217_v0 = vld [vmem:[%s13525_s5 + $0x4f4] sm:$0xf0] }
 0x80a   :  { %4565 = vmatpush.bf16.msrb.mxu0 %v11906_v4  ;;  %v3402_v13 = vpop.f32.mrf.mxu0 }
 0x80b   :  { %v12224_v53 = vadd.f32 %v3402_v13, %v11911_v47  ;;  %v9265_v47 = vld [vmem:[%s13526_s6 + $0x78] sm:$0xff]  ;;  %v3628_v13 = vpop.f32.mrf.mxu1  ;;  %v3576_v10 = vpack.c.b16 %v3548_v39, %v3548_v39 }
 0x80c   :  { %4738 = vmatpush.bf16.msra.mxu3 %v9265_v47  ;;  %v3673_v47 = vpop.f32.mrf.mxu2 }
 0x80d   :  { %7996 = vmatmul.msk.bf16.gmra.mxu0 %vm1381_vm8, %v7945_v1  ;;  %4138 = vmatmul.bf16.gmra.mxu3 %v8117_v55 }
 0x810   :  { %4739 = vmatpush.bf16.msra.mxu3 %v9264_v5 }
 0x812   :  { %v3404_v63 = vpop.f32.mrf.mxu0 }
 0x813   :  { %v12234_v4 = vadd.f32 %v3404_v63, %v11934_v35  ;;  %v9234_v35 = vld [vmem:[%s13525_s5 + $0x584] sm:$0xf]  ;;  %v3630_v63 = vpop.f32.mrf.mxu1 }
 0x814   :  { %v8133_v15 = vor.u32 %v9234_v35, %v8130_v21  ;;  %v3676_v21 = vpop.f32.mrf.mxu2 }
 0x81a   :  { %v3407_v37 = vpop.f32.mrf.mxu0 }
 0x81b   :  { %v12254_v32 = vadd.f32 %v3407_v37, %v11946_v49  ;;  %v3545_v49 = vunpack.c.l.b16 %v11951_v40  ;;  %v12284_v40 = vpop.f32.mrf.mxu3  ;;  %v3633_v35 = vpop.f32.mrf.mxu1 }
 0x81c   :  { %v3678_v37 = vpop.f32.mrf.mxu2 }
 0x81d   :  { %7997 = vmatmul.msk.bf16.gmra.mxu0 %vm1381_vm8, %v7961_v54  ;;  %4143 = vmatmul.bf16.gmra.mxu3 %v8133_v15  ;;  %v3573_v61 = vpack.c.b16 %v3545_v49, %v3545_v49 }
 0x81f   :  { %3657 = vmatmul.bf16.gmra.mxu1 %v3573_v61 }
 0x822   :  { %v3409_v43 = vpop.f32.mrf.mxu0 }
 0x823   :  { %v12268_v26 = vadd.f32 %v3409_v43, %v11963_v24  ;;  %v12303_v55 = vpop.f32.mrf.mxu3  ;;  %v3635_v15 = vpop.f32.mrf.mxu1 }
 0x824   :  { %v3681_v27 = vpop.f32.mrf.mxu2 }
 0x82a   :  { %v3412_v24 = vpop.f32.mrf.mxu0 }
 0x82b   :  { %v12281_v51 = vadd.f32 %v3412_v24, %v11968_v2  ;;  %v8196_v2 = vld [vmem:[%s13525_s5 + $0x5b0] sm:$0xf]  ;;  %v3674_v24 = vadd.f32 %v3673_v47, %v3630_v63  ;;  %v3729_v44 = vpop.f32.mrf.mxu3 }
 0x82c   :  { %v8197_v33 = vor.u32 %v9242_v57, %v8196_v2  ;;  %v3683_v7 = vpop.f32.mrf.mxu2 }
 0x82d   :  { %7998 = vmatmul.msk.bf16.gmra.mxu0 %vm1381_vm8, %v7977_v23  ;;  %4148 = vmatmul.bf16.gmra.mxu3 %v4022_v60  ;;  %v3672_v60 = vadd.f32 %v3671_v56, %v3628_v13  ;;  %v3717_v2 = vadd.f32 %v12236_v59, %v3674_v24 }
 0x832   :  { %v12286_v41 = vpop.f32.mrf.mxu0 }
 0x834   :  { %v3686_v62 = vpop.f32.mrf.mxu2 }
 0x839   :  { %v3638_v49 = vpop.f32.mrf.mxu1 }
 0x83a   :  { %v3417_v58 = vpop.f32.mrf.mxu0 }
 0x83b   :  { %v12301_v1 = vadd.f32 %v3417_v58, %v11992_v36  ;;  %v3677_v58 = vadd.f32 %v3676_v21, %v3633_v35 }
 0x83d   :  { %7999 = vmatmul.msk.bf16.gmra.mxu0 %vm1381_vm8, %v7993_v8  ;;  %4523 = vmatmul.bf16.vlgmr.msrb.gmra.mxu3 %v8197_v33  ;;  %v3688_v33 = vpop.f32.mrf.mxu2  ;;  %v3720_v13 = vadd.f32 %v12260_v11, %v3677_v58 }
 0x83e   :  { %5099 = vmatpush.bf16.msrb.mxu3 %v10486_v20  ;;  %v8056_v20 = vld [vmem:[%s13525_s5 + $0x4e8] sm:$0xf] }
 0x83f   :  { %v8057_v5 = vor.u32 %v9217_v0, %v8056_v20  ;;  %v3682_v20 = vadd.f32 %v3681_v27, %v3638_v49 }
 0x841   :  { %v3640_v25 = vpop.f32.mrf.mxu1 }
 0x842   :  { %v12307_v34 = vpop.f32.mrf.mxu0 }
 0x84a   :  { %v3422_v22 = vpop.f32.mrf.mxu0 }
 0x84b   :  { %v12311_v36 = vadd.f32 %v3422_v22, %v12000_v38 }
 0x84d   :  { %8000 = vmatmul.msk.bf16.gmra.mxu0 %vm1381_vm8, %v3576_v10 }
 0x852   :  { %v12314_v54 = vpop.f32.mrf.mxu0 }
 0x85a   :  { %v3427_v43 = vpop.f32.mrf.mxu0 }
 0x85b   :  { %v12323_v38 = vadd.f32 %v3427_v43, %v12015_v46  ;;  %v3643_v46 = vpop.f32.mrf.mxu1 }
 0x85c   :  { %v3687_v27 = vadd.f32 %v3686_v62, %v3643_v46 }
 0x85d   :  { %4161 = vmatmul.bf16.vlgmr.msra.gmra.mxu0 %v8057_v5 }
 0x85e   :  { %4963 = vmatpush.bf16.msra.mxu0 %v12011_v28  ;;  %v3715_v28 = vadd.f32 %v12220_v18, %v3672_v60  ;;  %v3731_v18 = vpop.f32.mrf.mxu3 }
 0x862   :  { %4964 = vmatpush.bf16.msra.mxu0 %v12017_v17  ;;  %v3429_v61 = vpop.f32.mrf.mxu0 }
 0x866   :  { %4965 = vmatpush.bf16.msra.mxu0 %v12022_v12  ;;  %v3734_v63 = vpop.f32.mrf.mxu3 }
 0x86a   :  { %4966 = vmatpush.bf16.msra.mxu0 %v12033_v14  ;;  %v3757_v23 = vpop.f32.mrf.mxu0  ;;  %v3645_v14 = vpop.f32.mrf.mxu1 }
 0x86b   :  { %v3758_v12 = vadd.f32 %v3757_v23, %v3715_v28  ;;  %v13616_v28 = vld [vmem:[#allocation10_spill] sm:$0xff] }
 0x86e   :  { %4967 = vmatpush.bf16.msra.mxu0 %v12038_v16  ;;  %v12335_v16 = vld [vmem:[#allocation2 + $0xb8] sm:$0xff]  ;;  %v3736_v0 = vpop.f32.mrf.mxu3 }
 0x872   :  { %4968 = vmatpush.bf16.msra.mxu0 %v12041_v42  ;;  %v3759_v17 = vpop.f32.mrf.mxu0  ;;  %v3679_v42 = vadd.f32 %v3678_v37, %v3635_v15  ;;  %v3684_v15 = vadd.f32 %v3683_v7, %v3640_v25  ;;  %v13615_v37 = vld [vmem:[#allocation9_spill] sm:$0xff]  ;;  %v3689_v25 = vadd.f32 %v3688_v33, %v3645_v14 }
 0x873   :  { %v3760_v57 = vadd.f32 %v3759_v17, %v3717_v2 }
 0x874   :  { %v3722_v39 = vadd.f32 %v12278_v9, %v3679_v42  ;;  %v3725_v9 = vadd.f32 %v12284_v40, %v3682_v20  ;;  %v3727_v5 = vadd.f32 %v12303_v55, %v3684_v15 }
 0x875   :  { %v3791_v8 = vpack.c.bf16 %v3760_v57, %v3758_v12  ;;  %v3730_v12 = vadd.f32 %v3729_v44, %v3687_v27 }
 0x876   :  { %4969 = vmatpush.bf16.msra.mxu0 %v12047_v19  ;;  %v3648_v56 = vpop.f32.mrf.mxu1  ;;  %v3691_v19 = vpop.f32.mrf.mxu2 }
 0x877   :  { %8013 = vmatmul.msk.bf16.vlgmr.msra.gmra.mxu1 %vm459_vm3, %v3791_v8  ;;  %v3739_v17 = vpop.f32.mrf.mxu3  ;;  %v3732_v8 = vadd.f32 %v3731_v18, %v3689_v25 }
 0x878   :  { %4601 = vmatpush.bf16.msra.mxu1 %v12335_v16 }
 0x87a   :  { %4970 = vmatpush.bf16.msra.mxu0 %v12061_v3  ;;  %v3762_v59 = vpop.f32.mrf.mxu0 }
 0x87b   :  { %v3763_v10 = vadd.f32 %v3762_v59, %v3720_v13 }
 0x87c   :  { %4602 = vmatpush.bf16.msra.mxu1 %v12066_v50 }
 0x87e   :  { %v3650_v35 = vpop.f32.mrf.mxu1  ;;  %v3693_v21 = vpop.f32.mrf.mxu2 }
 0x87f   :  { %v3741_v57 = vpop.f32.mrf.mxu3 }
 0x880   :  { %4603 = vmatpush.bf16.msra.mxu1 %v12072_v45 }
 0x882   :  { %v3764_v47 = vpop.f32.mrf.mxu0 }
 0x883   :  { %v3765_v22 = vadd.f32 %v3764_v47, %v3722_v39 }
 0x884   :  { %4604 = vmatpush.bf16.msra.mxu1 %v12084_v48 }
 0x885   :  { %v3792_v3 = vpack.c.bf16 %v3765_v22, %v3763_v10  ;;  %v3692_v22 = vadd.f32 %v3691_v19, %v3648_v56  ;;  %v9220_v56 = vld [vmem:[%s13525_s5 + $0x50c] sm:$0xf0] }
 0x886   :  { %v3653_v60 = vpop.f32.mrf.mxu1  ;;  %v3696_v24 = vpop.f32.mrf.mxu2 }
 0x887   :  { %8014 = vmatmul.msk.bf16.gmra.mxu1 %vm459_vm3, %v3792_v3  ;;  %v3744_v47 = vpop.f32.mrf.mxu3  ;;  %v3694_v3 = vadd.f32 %v3693_v21, %v3650_v35  ;;  %v3735_v62 = vadd.f32 %v3734_v63, %v3692_v22  ;;  %v3697_v63 = vadd.f32 %v3696_v24, %v3653_v60  ;;  %v9221_v60 = vld [vmem:[%s13525_s5 + $0x514] sm:$0xf0]  ;;  %v9228_v22 = vld [vmem:[%s13525_s5 + $0x54c] sm:$0xf0] }
 0x888   :  { %4605 = vmatpush.bf16.msra.mxu1 %v12088_v29 }
 0x889   :  { %v3737_v33 = vadd.f32 %v3736_v0, %v3694_v3  ;;  %v3740_v0 = vadd.f32 %v3739_v17, %v3697_v63  ;;  %v9232_v63 = vld [vmem:[%s13525_s5 + $0x56c] sm:$0xf0] }
 0x88a   :  { %v3767_v11 = vpop.f32.mrf.mxu0 }
 0x88b   :  { %v3768_v61 = vadd.f32 %v3767_v11, %v3725_v9  ;;  %v8064_v9 = vld [vmem:[%s13525_s5 + $0x500] sm:$0xf] }
 0x88c   :  { %4606 = vmatpush.bf16.msra.mxu1 %v12093_v30  ;;  %v8065_v19 = vor.u32 %v9220_v56, %v8064_v9  ;;  %v9445_v9 = vld [vmem:[#allocation2 + $0x60] sm:$0xff] }
 0x88e   :  { %v3655_v7 = vpop.f32.mrf.mxu1  ;;  %v3698_v40 = vpop.f32.mrf.mxu2  ;;  %4080 = vmatmul.bf16.gmra.mxu2 %v8065_v19 }
 0x88f   :  { %v3746_v14 = vpop.f32.mrf.mxu3  ;;  %v3699_v21 = vadd.f32 %v3698_v40, %v3655_v7 }
 0x890   :  { %4607 = vmatpush.bf16.msra.mxu1 %v13615_v37  ;;  %v9229_v14 = vld [vmem:[%s13525_s5 + $0x554] sm:$0xf0] }
 0x892   :  { %v3769_v43 = vpop.f32.mrf.mxu0 }
 0x893   :  { %v3770_v23 = vadd.f32 %v3769_v43, %v3727_v5  ;;  %v3742_v5 = vadd.f32 %v3741_v57, %v3699_v21  ;;  %v8080_v57 = vld [vmem:[%s13525_s5 + $0x520] sm:$0xf] }
 0x894   :  { %4608 = vmatpush.bf16.msra.mxu1 %v13616_v28 }
 0x895   :  { %v3793_v2 = vpack.c.bf16 %v3770_v23, %v3768_v61 }
 0x896   :  { %v3701_v39 = vpop.f32.mrf.mxu2 }
 0x897   :  { %8015 = vmatmul.msk.bf16.gmra.mxu1 %vm459_vm3, %v3793_v2 }
 0x89a   :  { %v3772_v49 = vpop.f32.mrf.mxu0 }
 0x89b   :  { %v3773_v59 = vadd.f32 %v3772_v49, %v3730_v12  ;;  %v8072_v12 = vld [vmem:[%s13525_s5 + $0x508] sm:$0xf] }
 0x89c   :  { %v3658_v13 = vpop.f32.mrf.mxu1  ;;  %v8073_v24 = vor.u32 %v9221_v60, %v8072_v12  ;;  %v9449_v12 = vld [vmem:[#allocation2 + $0x40] sm:$0xff] }
 0x89d   :  { %v3702_v49 = vadd.f32 %v3701_v39, %v3658_v13  ;;  %v9215_v13 = vld [vmem:[%s13525_s5 + $0x4ec] sm:$0xf]  ;;  %v8058_v39 = vld [vmem:[%s13525_s5 + $0x4f8] sm:$0xf0] }
 0x89e   :  { %v3703_v46 = vpop.f32.mrf.mxu2  ;;  %4166 = vmatmul.bf16.gmra.mxu0 %v8073_v24 }
 0x89f   :  { %v3745_v25 = vadd.f32 %v3744_v47, %v3702_v49  ;;  %v8061_v47 = vor.u32 %v9215_v13, %v8058_v39  ;;  %v9443_v46 = vld [vmem:[#allocation2 + $0x70] sm:$0xff]  ;;  %v9448_v49 = vld [vmem:[#allocation2 + $0x48] sm:$0xff] }
 0x8a2   :  { %v3774_v55 = vpop.f32.mrf.mxu0 }
 0x8a3   :  { %v3775_v58 = vadd.f32 %v3774_v55, %v3732_v8  ;;  %v9224_v8 = vld [vmem:[%s13525_s5 + $0x52c] sm:$0xf0] }
 0x8a4   :  { %v3660_v11 = vpop.f32.mrf.mxu1  ;;  %v8081_v55 = vor.u32 %v9224_v8, %v8080_v57 }
 0x8a5   :  { %v3794_v42 = vpack.c.bf16 %v3775_v58, %v3773_v59  ;;  %v8088_v59 = vld [vmem:[%s13525_s5 + $0x528] sm:$0xf]  ;;  %v9225_v58 = vld [vmem:[%s13525_s5 + $0x534] sm:$0xf0] }
 0x8a6   :  { %4085 = vmatmul.bf16.gmra.mxu2 %v8081_v55  ;;  %v9442_v11 = vld [vmem:[#allocation2 + $0x78] sm:$0xff] }
 0x8a7   :  { %8016 = vmatmul.msk.bf16.gmra.mxu1 %vm459_vm3, %v3794_v42  ;;  %v8089_v42 = vor.u32 %v9225_v58, %v8088_v59  ;;  %v9237_v55 = vld [vmem:[%s13525_s5 + $0x594] sm:$0xf0]  ;;  %v9227_v58 = vld [vmem:[%s13525_s5 + $0x54c] sm:$0xf] }
 0x8aa   :  { %v3777_v10 = vpop.f32.mrf.mxu0 }
 0x8ab   :  { %v3778_v20 = vadd.f32 %v3777_v10, %v3735_v62  ;;  %v8096_v10 = vld [vmem:[%s13525_s5 + $0x540] sm:$0xf]  ;;  %v8104_v62 = vld [vmem:[%s13525_s5 + $0x548] sm:$0xf] }
 0x8ac   :  { %v8097_v3 = vor.u32 %v9228_v22, %v8096_v10  ;;  %v3993_v10 = vunpack.c.l.b16 %v12265_v6 }
 0x8ae   :  { %4171 = vmatmul.bf16.gmra.mxu0 %v8089_v42  ;;  %v8106_v42 = vld [vmem:[%s13525_s5 + $0x558] sm:$0xf0]  ;;  %v4021_v22 = vpack.c.b16 %v3993_v10, %v3993_v10 }
 0x8b2   :  { %v3779_v44 = vpop.f32.mrf.mxu0 }
 0x8b3   :  { %v3780_v18 = vadd.f32 %v3779_v44, %v3737_v33  ;;  %v8105_v33 = vor.u32 %v9229_v14, %v8104_v62  ;;  %v9444_v44 = vld [vmem:[#allocation2 + $0x68] sm:$0xff] }
 0x8b4   :  { %v8045_v14 = vld [vmem:[%s13525_s5 + $0x5a8] sm:$0x11] }
 0x8b5   :  { %v3795_v15 = vpack.c.bf16 %v3780_v18, %v3778_v20  ;;  %v9219_v20 = vld [vmem:[%s13525_s5 + $0x50c] sm:$0xf]  ;;  %v8074_v18 = vld [vmem:[%s13525_s5 + $0x518] sm:$0xf0]  ;;  %v3995_v6 = vunpack.c.l.b16 %v8045_v14 }
 0x8b6   :  { %4090 = vmatmul.bf16.gmra.mxu2 %v8097_v3  ;;  %v9231_v3 = vld [vmem:[%s13525_s5 + $0x56c] sm:$0xf] }
 0x8b7   :  { %8017 = vmatmul.msk.bf16.gmra.mxu1 %vm459_vm3, %v3795_v15  ;;  %v8077_v15 = vor.u32 %v9219_v20, %v8074_v18  ;;  %v9235_v20 = vld [vmem:[%s13525_s5 + $0x58c] sm:$0xf] }
 0x8ba   :  { %v3782_v35 = vpop.f32.mrf.mxu0 }
 0x8bb   :  { %v3783_v61 = vadd.f32 %v3782_v35, %v3740_v0  ;;  %v8112_v35 = vld [vmem:[%s13525_s5 + $0x560] sm:$0xf]  ;;  %v9446_v0 = vld [vmem:[#allocation2 + $0x58] sm:$0xff] }
 0x8bc   :  { %v8113_v21 = vor.u32 %v9232_v63, %v8112_v35  ;;  %v4119_v35 = vpop.f32.mrf.mxu3 }
 0x8be   :  { %4176 = vmatmul.bf16.gmra.mxu0 %v8105_v33  ;;  %v4023_v33 = vpack.c.b16 %v3995_v6, %v3995_v6 }
 0x8c2   :  { %v3784_v43 = vpop.f32.mrf.mxu0 }
 0x8c3   :  { %v3785_v23 = vadd.f32 %v3784_v43, %v3742_v5  ;;  %v9447_v5 = vld [vmem:[#allocation2 + $0x50] sm:$0xff] }
 0x8c5   :  { %v3796_v2 = vpack.c.bf16 %v3785_v23, %v3783_v61  ;;  %v8120_v61 = vld [vmem:[%s13525_s5 + $0x568] sm:$0xf]  ;;  %v9233_v23 = vld [vmem:[%s13525_s5 + $0x574] sm:$0xf0] }
 0x8c6   :  { %4095 = vmatmul.bf16.gmra.mxu2 %v8113_v21 }
 0x8c7   :  { %8018 = vmatmul.msk.bf16.gmra.mxu1 %vm459_vm3, %v3796_v2  ;;  %v8121_v2 = vor.u32 %v9233_v23, %v8120_v61 }
 0x8ca   :  { %v3787_v27 = vpop.f32.mrf.mxu0 }
 0x8cb   :  { %v3788_v17 = vadd.f32 %v3787_v27, %v3745_v25  ;;  %v9223_v27 = vld [vmem:[%s13525_s5 + $0x52c] sm:$0xf] }
 0x8cd   :  { %v3797_v40 = vpack.c.bf16 %v3788_v17, %v3788_v17  ;;  %v8128_v17 = vld [vmem:[%s13525_s5 + $0x580] sm:$0xf] }
 0x8ce   :  { %4181 = vmatmul.bf16.gmra.mxu0 %v8121_v2 }
 0x8d2   :  { %v3789_v7 = vpop.f32.mrf.mxu0 }
 0x8d3   :  { %v9236_v7 = vld [vmem:[%s13525_s5 + $0x58c] sm:$0xf0] }
 0x8d7   :  { %8019 = vmatmul.msk.bf16.gmra.mxu1 %vm459_vm3, %v3797_v40  ;;  %v8129_v40 = vor.u32 %v9236_v7, %v8128_v17 }
 0x8d9   :  { %4100 = vmatmul.bf16.gmra.mxu2 %v8129_v40 }
 0x8da   :  { %v4162_v63 = vpop.f32.mrf.mxu0 }
 0x8e2   :  { %v4164_v61 = vpop.f32.mrf.mxu0 }
 0x8e7   :  { %8142 = vmatmul.msk.bf16.vlgmr.msrb.gmra.mxu1 %vm1381_vm8, %v8061_v47 }
 0x8e8   :  { %5006 = vmatpush.bf16.msrb.mxu1 %v9442_v11  ;;  %v8122_v11 = vld [vmem:[%s13525_s5 + $0x578] sm:$0xf0] }
 0x8e9   :  { %4105 = vmatmul.bf16.gmra.mxu2 %v4021_v22 }
 0x8ec   :  { %5007 = vmatpush.bf16.msrb.mxu1 %v9443_v46  ;;  %v8125_v46 = vor.u32 %v9231_v3, %v8122_v11 }
 0x8f0   :  { %5008 = vmatpush.bf16.msrb.mxu1 %v9444_v44 }
 0x8f4   :  { %5009 = vmatpush.bf16.msrb.mxu1 %v9445_v9  ;;  %v3845_v56 = vpop.f32.mrf.mxu1 }
 0x8f5   :  { %v12406_v19 = vadd.f32 %v3845_v56, %v12193_v31  ;;  %v4076_v56 = vpop.f32.mrf.mxu2 }
 0x8f7   :  { %8143 = vmatmul.msk.bf16.gmra.mxu1 %vm1381_vm8, %v8077_v15 }
 0x8f8   :  { %5010 = vmatpush.bf16.msrb.mxu1 %v9446_v0 }
 0x8fc   :  { %5011 = vmatpush.bf16.msrb.mxu1 %v9447_v5  ;;  %v3847_v43 = vpop.f32.mrf.mxu1  ;;  %v4121_v5 = vpop.f32.mrf.mxu3 }
 0x8fd   :  { %v12416_v31 = vadd.f32 %v3847_v43, %v12205_v52  ;;  %v8090_v52 = vld [vmem:[%s13525_s5 + $0x538] sm:$0xf0]  ;;  %v4078_v0 = vpop.f32.mrf.mxu2  ;;  %v3996_v43 = vunpack.c.h.b16 %v8045_v14 }
 0x8fe   :  { %v8093_v25 = vor.u32 %v9223_v27, %v8090_v52  ;;  %v4122_v10 = vadd.f32 %v4121_v5, %v4078_v0 }
 0x8ff   :  { %v4024_v23 = vpack.c.b16 %v3996_v43, %v3996_v43 }
 0x900   :  { %5012 = vmatpush.bf16.msrb.mxu1 %v9448_v49  ;;  %v4165_v11 = vadd.f32 %v4164_v61, %v4122_v10 }
 0x904   :  { %5013 = vmatpush.bf16.msrb.mxu1 %v9449_v12  ;;  %v3850_v60 = vpop.f32.mrf.mxu1  ;;  %v4124_v27 = vpop.f32.mrf.mxu3 }
 0x905   :  { %v12431_v24 = vadd.f32 %v3850_v60, %v12224_v53  ;;  %v8136_v53 = vld [vmem:[%s13525_s5 + $0x588] sm:$0xf] }
 0x906   :  { %v8137_v59 = vor.u32 %v9237_v55, %v8136_v53 }
 0x907   :  { %8144 = vmatmul.msk.bf16.gmra.mxu1 %vm1381_vm8, %v8093_v25 }
 0x908   :  { %4186 = vmatmul.bf16.gmra.mxu0 %v8137_v59 }
 0x90c   :  { %v3852_v57 = vpop.f32.mrf.mxu1  ;;  %v4126_v12 = vpop.f32.mrf.mxu3 }
 0x90d   :  { %v12441_v8 = vadd.f32 %v3852_v57, %v12234_v4  ;;  %v8109_v4 = vor.u32 %v9227_v58, %v8106_v42 }
 0x914   :  { %v3855_v13 = vpop.f32.mrf.mxu1  ;;  %v4129_v57 = vpop.f32.mrf.mxu3 }
 0x915   :  { %v12456_v39 = vadd.f32 %v3855_v13, %v12254_v32 }
 0x917   :  { %8145 = vmatmul.msk.bf16.gmra.mxu1 %vm1381_vm8, %v8109_v4  ;;  %v4120_v4 = vadd.f32 %v4119_v35, %v4076_v56 }
 0x918   :  { %4191 = vmatmul.bf16.gmra.mxu0 %v4023_v33 }
 0x919   :  { %v4163_v3 = vadd.f32 %v4162_v63, %v4120_v4 }
 0x91b   :  { %v4167_v25 = vpop.f32.mrf.mxu0 }
 0x91c   :  { %v12459_v47 = vpop.f32.mrf.mxu1 }
 0x923   :  { %v4169_v7 = vpop.f32.mrf.mxu0 }
 0x924   :  { %v3860_v62 = vpop.f32.mrf.mxu1 }
 0x925   :  { %v12469_v32 = vadd.f32 %v3860_v62, %v12281_v51  ;;  %v8138_v51 = vld [vmem:[%s13525_s5 + $0x598] sm:$0xf0] }
 0x926   :  { %v8141_v18 = vor.u32 %v9235_v20, %v8138_v51 }
 0x927   :  { %8146 = vmatmul.msk.bf16.gmra.mxu1 %vm1381_vm8, %v8125_v46 }
 0x92b   :  { %v4172_v59 = vpop.f32.mrf.mxu0 }
 0x92c   :  { %v12475_v44 = vpop.f32.mrf.mxu1 }
 0x933   :  { %v4174_v13 = vpop.f32.mrf.mxu0 }
 0x934   :  { %v3865_v15 = vpop.f32.mrf.mxu1 }
 0x935   :  { %v12484_v9 = vadd.f32 %v3865_v15, %v12301_v1  ;;  %v4081_v1 = vpop.f32.mrf.mxu2 }
 0x936   :  { %v4125_v15 = vadd.f32 %v4124_v27, %v4081_v1 }
 0x937   :  { %8147 = vmatmul.msk.bf16.gmra.mxu1 %vm1381_vm8, %v8141_v18 }
 0x938   :  { %v4168_v63 = vadd.f32 %v4167_v25, %v4125_v15 }
 0x93b   :  { %v4177_v33 = vpop.f32.mrf.mxu0 }
 0x93c   :  { %v12487_v21 = vpop.f32.mrf.mxu1 }
 0x93d   :  { %v4083_v60 = vpop.f32.mrf.mxu2 }
 0x93e   :  { %v4127_v56 = vadd.f32 %v4126_v12, %v4083_v60 }
 0x940   :  { %v4170_v5 = vadd.f32 %v4169_v7, %v4127_v56 }
 0x943   :  { %v4179_v35 = vpop.f32.mrf.mxu0 }
 0x944   :  { %v3870_v2 = vpop.f32.mrf.mxu1 }
 0x945   :  { %v12490_v49 = vadd.f32 %v3870_v2, %v12311_v36  ;;  %v4086_v53 = vpop.f32.mrf.mxu2  ;;  %v4131_v36 = vpop.f32.mrf.mxu3 }
 0x946   :  { %v4130_v1 = vadd.f32 %v4129_v57, %v4086_v53 }
 0x947   :  { %8148 = vmatmul.msk.bf16.gmra.mxu1 %vm1381_vm8, %v4024_v23 }
 0x948   :  { %v4173_v12 = vadd.f32 %v4172_v59, %v4130_v1 }
 0x94c   :  { %v12493_v52 = vpop.f32.mrf.mxu1 }
 0x94d   :  { %v4088_v58 = vpop.f32.mrf.mxu2  ;;  %v4134_v22 = vpop.f32.mrf.mxu3 }
 0x94e   :  { %v4132_v25 = vadd.f32 %v4131_v36, %v4088_v58 }
 0x950   :  { %v4175_v60 = vadd.f32 %v4174_v13, %v4132_v25 }
 0x954   :  { %v3875_v17 = vpop.f32.mrf.mxu1 }
 0x955   :  { %v12496_v40 = vadd.f32 %v3875_v17, %v12323_v38  ;;  %v4091_v46 = vpop.f32.mrf.mxu2  ;;  %v4136_v20 = vpop.f32.mrf.mxu3 }
 0x956   :  { %v4135_v53 = vadd.f32 %v4134_v22, %v4091_v46 }
 0x958   :  { %v4178_v59 = vadd.f32 %v4177_v33, %v4135_v53  ;;  %v8214_v53 = vld [vmem:[%s13525_s5 + $0x5e0] sm:$0xf0] }
 0x95c   :  { %v3877_v55 = vpop.f32.mrf.mxu1 }
 0x95d   :  { %v4093_v18 = vpop.f32.mrf.mxu2  ;;  %v4139_v0 = vpop.f32.mrf.mxu3 }
 0x95e   :  { %v4137_v36 = vadd.f32 %v4136_v20, %v4093_v18 }
 0x964   :  { %v4205_v42 = vpop.f32.mrf.mxu1 }
 0x965   :  { %v4206_v14 = vadd.f32 %v4205_v42, %v4163_v3  ;;  %v4096_v2 = vpop.f32.mrf.mxu2  ;;  %v4180_v3 = vadd.f32 %v4179_v35, %v4137_v36  ;;  %v9247_v36 = vld [vmem:[%s13525_s5 + $0x5e4] sm:$0xf0] }
 0x966   :  { %v4140_v15 = vadd.f32 %v4139_v0, %v4096_v2  ;;  %v8198_v0 = vld [vmem:[%s13525_s5 + $0x5c0] sm:$0xf0]  ;;  %v8204_v2 = vld [vmem:[%s13525_s5 + $0x5b8] sm:$0xf] }
 0x96c   :  { %v4207_v62 = vpop.f32.mrf.mxu1 }
 0x96d   :  { %v4208_v6 = vadd.f32 %v4207_v62, %v4165_v11 }
 0x96f   :  { %v4239_v38 = vpack.c.bf16 %v4208_v6, %v4206_v14 }
 0x971   :  { %8161 = vmatmul.msk.bf16.vlgmr.msrb.gmra.mxu2 %vm459_vm3, %v4239_v38 }
 0x972   :  { %5049 = vmatpush.bf16.msrb.mxu2 %v12335_v16  ;;  %v4182_v16 = vpop.f32.mrf.mxu0 }
 0x973   :  { %v4183_v46 = vadd.f32 %v4182_v16, %v4140_v15  ;;  %v9243_v16 = vld [vmem:[%s13525_s5 + $0x5c4] sm:$0xf0] }
 0x974   :  { %v4210_v51 = vpop.f32.mrf.mxu1 }
 0x975   :  { %v4211_v61 = vadd.f32 %v4210_v51, %v4168_v63 }
 0x976   :  { %5050 = vmatpush.bf16.msrb.mxu2 %v12066_v50  ;;  %v4141_v50 = vpop.f32.mrf.mxu3 }
 0x97a   :  { %5051 = vmatpush.bf16.msrb.mxu2 %v12072_v45  ;;  %v4098_v45 = vpop.f32.mrf.mxu2  ;;  %v4184_v7 = vpop.f32.mrf.mxu0 }
 0x97b   :  { %v4142_v56 = vadd.f32 %v4141_v50, %v4098_v45  ;;  %v8205_v50 = vor.u32 %v9243_v16, %v8204_v2  ;;  %v8222_v2 = vld [vmem:[%s13525_s5 + $0x5e8] sm:$0xf0]  ;;  %v8252_v16 = vld [vmem:[%s13525_s5 + $0x618] sm:$0xf] }
 0x97c   :  { %v4212_v43 = vpop.f32.mrf.mxu1 }
 0x97d   :  { %v4213_v23 = vadd.f32 %v4212_v43, %v4170_v5  ;;  %v4185_v20 = vadd.f32 %v4184_v7, %v4142_v56  ;;  %4609 = vmatmul.bf16.vlgmr.msra.gmra.mxu1 %v8205_v50  ;;  %v9241_v56 = vld [vmem:[%s13525_s5 + $0x5bc] sm:$0xf]  ;;  %v9255_v50 = vld [vmem:[%s13525_s5 + $0x624] sm:$0xf0] }
 0x97e   :  { %5052 = vmatpush.bf16.msrb.mxu2 %v12084_v48  ;;  %v4144_v4 = vpop.f32.mrf.mxu3 }
 0x97f   :  { %v4240_v17 = vpack.c.bf16 %v4213_v23, %v4211_v61  ;;  %v9240_v23 = vld [vmem:[%s13525_s5 + $0x5b4] sm:$0xf] }
 0x981   :  { %8162 = vmatmul.msk.bf16.gmra.mxu2 %vm459_vm3, %v4240_v17  ;;  %v8201_v17 = vor.u32 %v9240_v23, %v8198_v0  ;;  %v9245_v0 = vld [vmem:[%s13525_s5 + $0x5dc] sm:$0xf] }
 0x982   :  { %5053 = vmatpush.bf16.msrb.mxu2 %v12088_v29  ;;  %v4101_v29 = vpop.f32.mrf.mxu2 }
 0x983   :  { %4566 = vmatmul.bf16.vlgmr.msrb.gmra.mxu0 %v8201_v17  ;;  %v4145_v1 = vadd.f32 %v4144_v4, %v4101_v29  ;;  %v9244_v4 = vld [vmem:[%s13525_s5 + $0x5d4] sm:$0xf]  ;;  %v8225_v17 = vor.u32 %v9245_v0, %v8222_v2 }
 0x984   :  { %v4215_v27 = vpop.f32.mrf.mxu1 }
 0x985   :  { %v4216_v55 = vadd.f32 %v4215_v27, %v4173_v12 }
 0x986   :  { %5054 = vmatpush.bf16.msrb.mxu2 %v12093_v30  ;;  %v4187_v30 = vpop.f32.mrf.mxu0  ;;  %v4146_v58 = vpop.f32.mrf.mxu3 }
 0x987   :  { %v4188_v45 = vadd.f32 %v4187_v30, %v4145_v1  ;;  %v8220_v30 = vld [vmem:[%s13525_s5 + $0x5d8] sm:$0xf] }
 0x98a   :  { %5055 = vmatpush.bf16.msrb.mxu2 %v13615_v37  ;;  %v4103_v13 = vpop.f32.mrf.mxu2 }
 0x98b   :  { %v4147_v25 = vadd.f32 %v4146_v58, %v4103_v13  ;;  %v8217_v58 = vor.u32 %v9244_v4, %v8214_v53  ;;  %v9259_v53 = vld [vmem:[%s13525_s5 + $0x644] sm:$0xf0] }
 0x98c   :  { %v4217_v48 = vpop.f32.mrf.mxu1 }
 0x98d   :  { %v4218_v42 = vadd.f32 %v4217_v48, %v4175_v60 }
 0x98e   :  { %5056 = vmatpush.bf16.msrb.mxu2 %v13616_v28  ;;  %v4189_v6 = vpop.f32.mrf.mxu0  ;;  %v4149_v38 = vpop.f32.mrf.mxu3 }
 0x98f   :  { %v4241_v10 = vpack.c.bf16 %v4218_v42, %v4216_v55  ;;  %v4190_v12 = vadd.f32 %v4189_v6, %v4147_v25  ;;  %v9250_v6 = vld [vmem:[%s13525_s5 + $0x5fc] sm:$0xf0] }
 0x991   :  { %8163 = vmatmul.msk.bf16.gmra.mxu2 %vm459_vm3, %v4241_v10  ;;  %v8212_v10 = vld [vmem:[%s13525_s5 + $0x5d0] sm:$0xf] }
 0x992   :  { %v4106_v51 = vpop.f32.mrf.mxu2 }
 0x993   :  { %v4150_v42 = vadd.f32 %v4149_v38, %v4106_v51  ;;  %4571 = vmatmul.bf16.gmra.mxu0 %v8217_v58  ;;  %v9248_v38 = vld [vmem:[%s13525_s5 + $0x5f4] sm:$0xf]  ;;  %v8230_v51 = vld [vmem:[%s13525_s5 + $0x600] sm:$0xf0] }
 0x994   :  { %v4220_v57 = vpop.f32.mrf.mxu1  ;;  %v8233_v15 = vor.u32 %v9248_v38, %v8230_v51  ;;  %v9263_v51 = vld [vmem:[%s13525_s5 + $0x664] sm:$0xf0] }
 0x995   :  { %v4221_v11 = vadd.f32 %v4220_v57, %v4178_v59  ;;  %v9246_v57 = vld [vmem:[%s13525_s5 + $0x5dc] sm:$0xf0]  ;;  %v8221_v59 = vor.u32 %v9247_v36, %v8220_v30 }
 0x996   :  { %v4192_v63 = vpop.f32.mrf.mxu0  ;;  %v4151_v22 = vpop.f32.mrf.mxu3  ;;  %v8213_v29 = vor.u32 %v9246_v57, %v8212_v10 }
 0x997   :  { %4614 = vmatmul.bf16.gmra.mxu1 %v8221_v59  ;;  %v9262_v59 = vld [vmem:[%s13525_s5 + $0x65c] sm:$0xf0] }
 0x998   :  { %4528 = vmatmul.bf16.gmra.mxu3 %v8213_v29  ;;  %v8268_v29 = vld [vmem:[%s13525_s5 + $0x638] sm:$0xf] }
 0x999   :  { %v8269_v30 = vor.u32 %v9259_v53, %v8268_v29 }
 0x99a   :  { %v4108_v33 = vpop.f32.mrf.mxu2 }
 0x99b   :  { %v8244_v33 = vld [vmem:[%s13525_s5 + $0x610] sm:$0xf] }
 0x99c   :  { %v4222_v37 = vpop.f32.mrf.mxu1 }
 0x99d   :  { %v4223_v62 = vadd.f32 %v4222_v37, %v4180_v3  ;;  %v4193_v37 = vadd.f32 %v4192_v63, %v4150_v42  ;;  %v8206_v63 = vld [vmem:[%s13525_s5 + $0x5c8] sm:$0xf0] }
 0x99e   :  { %v4194_v61 = vpop.f32.mrf.mxu0  ;;  %v8209_v22 = vor.u32 %v9241_v56, %v8206_v63  ;;  %v8238_v42 = vld [vmem:[%s13525_s5 + $0x608] sm:$0xf0] }
 0x99f   :  { %v4242_v14 = vpack.c.bf16 %v4223_v62, %v4221_v11  ;;  %v8246_v61 = vld [vmem:[%s13525_s5 + $0x620] sm:$0xf0] }
 0x9a1   :  { %8164 = vmatmul.msk.bf16.gmra.mxu2 %vm459_vm3, %v4242_v14  ;;  %v8228_v14 = vld [vmem:[%s13525_s5 + $0x5f0] sm:$0xf] }
 0x9a3   :  { %4576 = vmatmul.bf16.gmra.mxu0 %v8233_v15 }
 0x9a4   :  { %v4225_v28 = vpop.f32.mrf.mxu1 }
 0x9a5   :  { %v4226_v35 = vadd.f32 %v4225_v28, %v4183_v46  ;;  %v8229_v28 = vor.u32 %v9250_v6, %v8228_v14  ;;  %v8236_v46 = vld [vmem:[%s13525_s5 + $0x5f8] sm:$0xf] }
 0x9a8   :  { %4533 = vmatmul.bf16.gmra.mxu3 %v8229_v28  ;;  %v8284_v28 = vld [vmem:[%s13525_s5 + $0x658] sm:$0xf] }
 0x9a9   :  { %v8285_v15 = vor.u32 %v9263_v51, %v8284_v28 }
 0x9ac   :  { %v4227_v18 = vpop.f32.mrf.mxu1 }
 0x9ad   :  { %v4228_v5 = vadd.f32 %v4227_v18, %v4185_v20  ;;  %v9251_v20 = vld [vmem:[%s13525_s5 + $0x604] sm:$0xf0] }
 0x9ae   :  { %v8237_v18 = vor.u32 %v9251_v20, %v8236_v46 }
 0x9af   :  { %v4243_v43 = vpack.c.bf16 %v4228_v5, %v4226_v35  ;;  %v9254_v35 = vld [vmem:[%s13525_s5 + $0x61c] sm:$0xf0]  ;;  %v9252_v5 = vld [vmem:[%s13525_s5 + $0x614] sm:$0xf] }
 0x9b0   :  { %4619 = vmatmul.bf16.gmra.mxu1 %v8237_v18  ;;  %v8249_v23 = vor.u32 %v9252_v5, %v8246_v61  ;;  %v8192_v18 = vld [vmem:[%s13525_s5 + $0x670] sm:$0x11]  ;;  %v8193_v61 = vld [vmem:[%s13525_s5 + $0x678] sm:$0x11] }
 0x9b1   :  { %8165 = vmatmul.msk.bf16.gmra.mxu2 %vm459_vm3, %v4243_v43  ;;  %v8245_v43 = vor.u32 %v9254_v35, %v8244_v33  ;;  %v4441_v33 = vunpack.c.l.b16 %v8192_v18  ;;  %v4443_v0 = vunpack.c.l.b16 %v8193_v61 }
 0x9b3   :  { %4581 = vmatmul.bf16.gmra.mxu0 %v8249_v23  ;;  %v4469_v35 = vpack.c.b16 %v4441_v33, %v4441_v33  ;;  %v4471_v2 = vpack.c.b16 %v4443_v0, %v4443_v0 }
 0x9b4   :  { %v4230_v27 = vpop.f32.mrf.mxu1 }
 0x9b5   :  { %v4231_v7 = vadd.f32 %v4230_v27, %v4188_v45  ;;  %v8253_v27 = vor.u32 %v9255_v50, %v8252_v16  ;;  %v8260_v45 = vld [vmem:[%s13525_s5 + $0x630] sm:$0xf]  ;;  %v8286_v16 = vld [vmem:[%s13525_s5 + $0x668] sm:$0xf0] }
 0x9b8   :  { %4538 = vmatmul.bf16.gmra.mxu3 %v8245_v43 }
 0x9bc   :  { %v4232_v60 = vpop.f32.mrf.mxu1 }
 0x9bd   :  { %v4233_v48 = vadd.f32 %v4232_v60, %v4190_v12  ;;  %v9258_v12 = vld [vmem:[%s13525_s5 + $0x63c] sm:$0xf0]  ;;  %v9256_v60 = vld [vmem:[%s13525_s5 + $0x634] sm:$0xf] }
 0x9bf   :  { %v4244_v55 = vpack.c.bf16 %v4233_v48, %v4231_v7  ;;  %v8261_v7 = vor.u32 %v9258_v12, %v8260_v45  ;;  %v8262_v48 = vld [vmem:[%s13525_s5 + $0x640] sm:$0xf0]  ;;  %v4524_v45 = vpop.f32.mrf.mxu3 }
 0x9c0   :  { %4624 = vmatmul.bf16.gmra.mxu1 %v8253_v27 }
 0x9c1   :  { %8166 = vmatmul.msk.bf16.gmra.mxu2 %vm459_vm3, %v4244_v55  ;;  %v8265_v55 = vor.u32 %v9256_v60, %v8262_v48 }
 0x9c3   :  { %4586 = vmatmul.bf16.gmra.mxu0 %v8265_v55 }
 0x9c4   :  { %v4235_v3 = vpop.f32.mrf.mxu1 }
 0x9c5   :  { %v4236_v13 = vadd.f32 %v4235_v3, %v4193_v37  ;;  %v9260_v3 = vld [vmem:[%s13525_s5 + $0x654] sm:$0xf] }
 0x9c7   :  { %v4245_v62 = vpack.c.bf16 %v4236_v13, %v4236_v13  ;;  %v8278_v13 = vld [vmem:[%s13525_s5 + $0x660] sm:$0xf0] }
 0x9c8   :  { %4543 = vmatmul.bf16.gmra.mxu3 %v8261_v7  ;;  %v4444_v7 = vunpack.c.h.b16 %v8193_v61 }
 0x9ca   :  { %v4472_v55 = vpack.c.b16 %v4444_v7, %v4444_v7 }
 0x9cc   :  { %v4237_v11 = vpop.f32.mrf.mxu1 }
 0x9cd   :  { %v8281_v11 = vor.u32 %v9260_v3, %v8278_v13 }
 0x9d0   :  { %4629 = vmatmul.bf16.gmra.mxu1 %v8269_v30 }
 0x9d1   :  { %8167 = vmatmul.msk.bf16.gmra.mxu2 %vm459_vm3, %v4245_v62  ;;  %v8254_v62 = vld [vmem:[%s13525_s5 + $0x628] sm:$0xf0] }
 0x9d3   :  { %4591 = vmatmul.bf16.gmra.mxu0 %v8281_v11 }
 0x9e0   :  { %4634 = vmatmul.bf16.gmra.mxu1 %v8285_v15 }
 0x9e1   :  { %8290 = vmatmul.msk.bf16.vlgmr.msra.gmra.mxu2 %vm1381_vm8, %v8209_v22  ;;  %v8270_v22 = vld [vmem:[%s13525_s5 + $0x648] sm:$0xf0] }
 0x9f0   :  { %4639 = vmatmul.bf16.gmra.mxu1 %v4471_v2 }
 0x9f1   :  { %8291 = vmatmul.msk.bf16.gmra.mxu2 %vm1381_vm8, %v8225_v17  ;;  %v9261_v17 = vld [vmem:[%s13525_s5 + $0x65c] sm:$0xf] }
 0x9f2   :  { %v8289_v27 = vor.u32 %v9261_v17, %v8286_v16 }
 0x9f4   :  { %v4293_v1 = vpop.f32.mrf.mxu2 }
 0x9f5   :  { %v12594_v25 = vadd.f32 %v4293_v1, %v12406_v19  ;;  %v9249_v19 = vld [vmem:[%s13525_s5 + $0x5fc] sm:$0xf] }
 0x9f6   :  { %v8241_v4 = vor.u32 %v9249_v19, %v8238_v42  ;;  %v4526_v19 = vpop.f32.mrf.mxu3 }
 0x9fa   :  { %v4610_v60 = vpop.f32.mrf.mxu1 }
 0x9fc   :  { %v4295_v10 = vpop.f32.mrf.mxu2 }
 0x9fd   :  { %v12615_v57 = vadd.f32 %v4295_v10, %v12416_v31  ;;  %v8276_v31 = vld [vmem:[%s13525_s5 + $0x650] sm:$0xf] }
 0x9fe   :  { %v8277_v37 = vor.u32 %v9262_v59, %v8276_v31 }
 0xa00   :  { %4548 = vmatmul.bf16.gmra.mxu3 %v8277_v37  ;;  %v4567_v12 = vpop.f32.mrf.mxu0 }
 0xa01   :  { %8292 = vmatmul.msk.bf16.gmra.mxu2 %vm1381_vm8, %v8241_v4  ;;  %v4568_v51 = vadd.f32 %v4567_v12, %v4524_v45 }
 0xa02   :  { %v4612_v10 = vpop.f32.mrf.mxu1 }
 0xa04   :  { %v4298_v36 = vpop.f32.mrf.mxu2 }
 0xa05   :  { %v12625_v58 = vadd.f32 %v4298_v36, %v12431_v24  ;;  %v9253_v24 = vld [vmem:[%s13525_s5 + $0x61c] sm:$0xf] }
 0xa06   :  { %v8257_v38 = vor.u32 %v9253_v24, %v8254_v62 }
 0xa08   :  { %v4569_v42 = vpop.f32.mrf.mxu0 }
 0xa0c   :  { %v4300_v14 = vpop.f32.mrf.mxu2 }
 0xa0d   :  { %v12646_v6 = vadd.f32 %v4300_v14, %v12441_v8  ;;  %v9257_v8 = vld [vmem:[%s13525_s5 + $0x63c] sm:$0xf] }
 0xa0e   :  { %v8273_v20 = vor.u32 %v9257_v8, %v8270_v22  ;;  %v4611_v22 = vadd.f32 %v4610_v60, %v4568_v51 }
 0xa10   :  { %4553 = vmatmul.bf16.gmra.mxu3 %v4469_v35  ;;  %v4572_v53 = vpop.f32.mrf.mxu0 }
 0xa11   :  { %8293 = vmatmul.msk.bf16.gmra.mxu2 %vm1381_vm8, %v8257_v38 }
 0xa14   :  { %v4303_v56 = vpop.f32.mrf.mxu2 }
 0xa15   :  { %v12656_v63 = vadd.f32 %v4303_v56, %v12456_v39  ;;  %v4442_v39 = vunpack.c.h.b16 %v8192_v18  ;;  %v4570_v56 = vadd.f32 %v4569_v42, %v4526_v19 }
 0xa17   :  { %v4470_v5 = vpack.c.b16 %v4442_v39, %v4442_v39 }
 0xa18   :  { %v4574_v31 = vpop.f32.mrf.mxu0 }
 0xa19   :  { %4596 = vmatmul.bf16.gmra.mxu0 %v4470_v5 }
 0xa1b   :  { %v4529_v30 = vpop.f32.mrf.mxu3 }
 0xa1c   :  { %v12664_v46 = vpop.f32.mrf.mxu2  ;;  %v4573_v0 = vadd.f32 %v4572_v53, %v4529_v30 }
 0xa20   :  { %v4577_v11 = vpop.f32.mrf.mxu0 }
 0xa21   :  { %8294 = vmatmul.msk.bf16.gmra.mxu2 %vm1381_vm8, %v8273_v20  ;;  %v4613_v20 = vadd.f32 %v4612_v10, %v4570_v56 }
 0xa23   :  { %v4531_v59 = vpop.f32.mrf.mxu3 }
 0xa24   :  { %v4308_v43 = vpop.f32.mrf.mxu2  ;;  %v4575_v16 = vadd.f32 %v4574_v31, %v4531_v59 }
 0xa25   :  { %v12674_v23 = vadd.f32 %v4308_v43, %v12469_v32 }
 0xa28   :  { %v4579_v38 = vpop.f32.mrf.mxu0 }
 0xa2b   :  { %v4534_v24 = vpop.f32.mrf.mxu3 }
 0xa2c   :  { %v12682_v50 = vpop.f32.mrf.mxu2 }
 0xa30   :  { %v4582_v8 = vpop.f32.mrf.mxu0 }
 0xa31   :  { %8295 = vmatmul.msk.bf16.gmra.mxu2 %vm1381_vm8, %v8289_v27 }
 0xa33   :  { %v4536_v28 = vpop.f32.mrf.mxu3 }
 0xa34   :  { %v4313_v1 = vpop.f32.mrf.mxu2 }
 0xa35   :  { %v12686_v32 = vadd.f32 %v4313_v1, %v12484_v9  ;;  %v4615_v9 = vpop.f32.mrf.mxu1 }
 0xa36   :  { %v4616_v27 = vadd.f32 %v4615_v9, %v4573_v0 }
 0xa38   :  { %v4584_v43 = vpop.f32.mrf.mxu0 }
 0xa3b   :  { %v4539_v18 = vpop.f32.mrf.mxu3 }
 0xa3c   :  { %v12688_v48 = vpop.f32.mrf.mxu2 }
 0xa3d   :  { %v4617_v3 = vpop.f32.mrf.mxu1 }
 0xa3e   :  { %v4618_v1 = vadd.f32 %v4617_v3, %v4575_v16 }
 0xa40   :  { %v4587_v12 = vpop.f32.mrf.mxu0 }
 0xa41   :  { %8296 = vmatmul.msk.bf16.gmra.mxu2 %vm1381_vm8, %v4472_v55 }
 0xa43   :  { %v4541_v2 = vpop.f32.mrf.mxu3 }
 0xa44   :  { %v4318_v4 = vpop.f32.mrf.mxu2 }
 0xa45   :  { %v12692_v29 = vadd.f32 %v4318_v4, %v12490_v49  ;;  %v4620_v14 = vpop.f32.mrf.mxu1  ;;  %v4578_v4 = vadd.f32 %v4577_v11, %v4534_v24 }
 0xa4b   :  { %v4544_v19 = vpop.f32.mrf.mxu3 }
 0xa4c   :  { %v12694_v36 = vpop.f32.mrf.mxu2 }
 0xa4d   :  { %v4622_v15 = vpop.f32.mrf.mxu1 }
 0xa53   :  { %v4546_v53 = vpop.f32.mrf.mxu3 }
 0xa54   :  { %v4323_v37 = vpop.f32.mrf.mxu2 }
 0xa55   :  { %v12697_v13 = vadd.f32 %v4323_v37, %v12496_v40  ;;  %v4625_v5 = vpop.f32.mrf.mxu1  ;;  %v4589_v37 = vpop.f32.mrf.mxu0 }
 0xa5c   :  { %v4325_v62 = vpop.f32.mrf.mxu2 }
 0xa5d   :  { %v4627_v17 = vpop.f32.mrf.mxu1  ;;  %v4580_v62 = vadd.f32 %v4579_v38, %v4536_v28  ;;  %v4592_v56 = vpop.f32.mrf.mxu0 }
 0xa5f   :  { %v4623_v51 = vadd.f32 %v4622_v15, %v4580_v62  ;;  %v8352_v62 = vld [vmem:[%s13525_s5 + $0x688] sm:$0xf] }
 0xa64   :  { %v4653_v49 = vpop.f32.mrf.mxu2 }
 0xa65   :  { %v4654_v35 = vadd.f32 %v4653_v49, %v4611_v22  ;;  %v4630_v42 = vpop.f32.mrf.mxu1  ;;  %v4621_v49 = vadd.f32 %v4620_v14, %v4578_v4  ;;  %v4594_v11 = vpop.f32.mrf.mxu0 }
 0xa6c   :  { %v4655_v33 = vpop.f32.mrf.mxu2 }
 0xa6d   :  { %v4656_v39 = vadd.f32 %v4655_v33, %v4613_v20  ;;  %v4632_v30 = vpop.f32.mrf.mxu1 }
 0xa6f   :  { %v4687_v40 = vpack.c.bf16 %v4656_v39, %v4654_v35  ;;  %v4583_v35 = vadd.f32 %v4582_v8, %v4539_v18  ;;  %v4585_v39 = vadd.f32 %v4584_v43, %v4541_v2 }
 0xa71   :  { %8309 = vmatmul.msk.bf16.vlgmr.msra.gmra.mxu3 %vm459_vm3, %v4687_v40  ;;  %v4626_v40 = vadd.f32 %v4625_v5, %v4583_v35  ;;  %v4628_v24 = vadd.f32 %v4627_v17, %v4585_v39 }
 0xa74   :  { %v4658_v61 = vpop.f32.mrf.mxu2 }
 0xa75   :  { %v4659_v60 = vadd.f32 %v4658_v61, %v4616_v27  ;;  %v4635_v33 = vpop.f32.mrf.mxu1 }
 0xa7c   :  { %v4660_v45 = vpop.f32.mrf.mxu2 }
 0xa7d   :  { %v4661_v7 = vadd.f32 %v4660_v45, %v4618_v1  ;;  %v4637_v15 = vpop.f32.mrf.mxu1  ;;  %v4588_v1 = vadd.f32 %v4587_v12, %v4544_v19  ;;  %v9269_v12 = vld [vmem:[%s13525_s5 + $0x694] sm:$0xf0]  ;;  %v8344_v19 = vld [vmem:[%s13525_s5 + $0x680] sm:$0xf] }
 0xa7f   :  { %v4688_v55 = vpack.c.bf16 %v4661_v7, %v4659_v60  ;;  %v4590_v7 = vadd.f32 %v4589_v37, %v4546_v53  ;;  %v9268_v37 = vld [vmem:[%s13525_s5 + $0x68c] sm:$0xf0]  ;;  %v8346_v53 = vld [vmem:[%s13525_s5 + $0x690] sm:$0xf0] }
 0xa81   :  { %8310 = vmatmul.msk.bf16.gmra.mxu3 %vm459_vm3, %v4688_v55  ;;  %v4631_v55 = vadd.f32 %v4630_v42, %v4588_v1  ;;  %v4633_v18 = vadd.f32 %v4632_v30, %v4590_v7  ;;  %v8353_v42 = vor.u32 %v9269_v12, %v8352_v62  ;;  %v8345_v30 = vor.u32 %v9268_v37, %v8344_v19  ;;  %v8354_v62 = vld [vmem:[%s13525_s5 + $0x698] sm:$0xf0]  ;;  %v8400_v19 = vld [vmem:[%s13525_s5 + $0x6e8] sm:$0xf]  ;;  %v8392_v37 = vld [vmem:[%s13525_s5 + $0x6e0] sm:$0xf] }
 0xa83   :  { %v4549_v22 = vpop.f32.mrf.mxu3  ;;  %5057 = vmatmul.bf16.vlgmr.msrb.gmra.mxu2 %v8353_v42  ;;  %4971 = vmatmul.bf16.vlgmr.msra.gmra.mxu0 %v8345_v30  ;;  %v9281_v42 = vld [vmem:[%s13525_s5 + $0x6f4] sm:$0xf0]  ;;  %v9278_v30 = vld [vmem:[%s13525_s5 + $0x6e4] sm:$0xf] }
 0xa84   :  { %v4663_v10 = vpop.f32.mrf.mxu2 }
 0xa85   :  { %v4664_v9 = vadd.f32 %v4663_v10, %v4621_v49  ;;  %v4640_v60 = vpop.f32.mrf.mxu1  ;;  %v9266_v49 = vld [vmem:[%s13525_s5 + $0x684] sm:$0xf] }
 0xa8b   :  { %v4551_v61 = vpop.f32.mrf.mxu3 }
 0xa8c   :  { %v4665_v31 = vpop.f32.mrf.mxu2 }
 0xa8d   :  { %v4666_v59 = vadd.f32 %v4665_v31, %v4623_v51  ;;  %v4642_v10 = vpop.f32.mrf.mxu1  ;;  %v8349_v51 = vor.u32 %v9266_v49, %v8346_v53  ;;  %v8401_v49 = vor.u32 %v9281_v42, %v8400_v19  ;;  %v9280_v53 = vld [vmem:[%s13525_s5 + $0x6ec] sm:$0xf0]  ;;  %v9283_v19 = vld [vmem:[%s13525_s5 + $0x70c] sm:$0xf]  ;;  %v8418_v42 = vld [vmem:[%s13525_s5 + $0x718] sm:$0xf0] }
 0xa8f   :  { %v4689_v3 = vpack.c.bf16 %v4666_v59, %v4664_v9  ;;  %v4593_v9 = vadd.f32 %v4592_v56, %v4549_v22  ;;  %5014 = vmatmul.bf16.vlgmr.msrb.gmra.mxu1 %v8349_v51  ;;  %v4595_v59 = vadd.f32 %v4594_v11, %v4551_v61  ;;  %v9273_v56 = vld [vmem:[%s13525_s5 + $0x6b4] sm:$0xf0]  ;;  %v8360_v22 = vld [vmem:[%s13525_s5 + $0x6a0] sm:$0xf]  ;;  %v9272_v11 = vld [vmem:[%s13525_s5 + $0x6ac] sm:$0xf0] }
 0xa90   :  { %v8362_v61 = vld [vmem:[%s13525_s5 + $0x6b0] sm:$0xf0] }
 0xa91   :  { %8311 = vmatmul.msk.bf16.gmra.mxu3 %vm459_vm3, %v4689_v3  ;;  %v4636_v3 = vadd.f32 %v4635_v33, %v4593_v9  ;;  %v8394_v51 = vld [vmem:[%s13525_s5 + $0x6f0] sm:$0xf0] }
 0xa92   :  { %v8397_v9 = vor.u32 %v9278_v30, %v8394_v51 }
 0xa93   :  { %v4554_v45 = vpop.f32.mrf.mxu3 }
 0xa94   :  { %v4668_v20 = vpop.f32.mrf.mxu2 }
 0xa95   :  { %v4669_v14 = vadd.f32 %v4668_v20, %v4626_v40  ;;  %v4638_v20 = vadd.f32 %v4637_v15, %v4595_v59  ;;  %v8361_v15 = vor.u32 %v9272_v11, %v8360_v22  ;;  %v9271_v59 = vld [vmem:[%s13525_s5 + $0x6ac] sm:$0xf]  ;;  %v8410_v22 = vld [vmem:[%s13525_s5 + $0x710] sm:$0xf0] }
 0xa96   :  { %v4597_v16 = vpop.f32.mrf.mxu0 }
 0xa97   :  { %4976 = vmatmul.bf16.gmra.mxu0 %v8361_v15 }
 0xa9b   :  { %v4556_v17 = vpop.f32.mrf.mxu3 }
 0xa9c   :  { %v4670_v38 = vpop.f32.mrf.mxu2 }
 0xa9d   :  { %v4671_v28 = vadd.f32 %v4670_v38, %v4628_v24  ;;  %v4598_v38 = vadd.f32 %v4597_v16, %v4554_v45 }
 0xa9e   :  { %v4599_v8 = vpop.f32.mrf.mxu0 }
 0xa9f   :  { %v4690_v0 = vpack.c.bf16 %v4671_v28, %v4669_v14  ;;  %v8368_v14 = vld [vmem:[%s13525_s5 + $0x6a8] sm:$0xf]  ;;  %v9270_v28 = vld [vmem:[%s13525_s5 + $0x6a4] sm:$0xf]  ;;  %v9277_v8 = vld [vmem:[%s13525_s5 + $0x6d4] sm:$0xf0] }
 0xaa0   :  { %v8369_v33 = vor.u32 %v9273_v56, %v8368_v14  ;;  %v9284_v56 = vld [vmem:[%s13525_s5 + $0x70c] sm:$0xf0] }
 0xaa1   :  { %8312 = vmatmul.msk.bf16.gmra.mxu3 %vm459_vm3, %v4690_v0  ;;  %v8365_v0 = vor.u32 %v9270_v28, %v8362_v61  ;;  %v9275_v28 = vld [vmem:[%s13525_s5 + $0x6cc] sm:$0xf]  ;;  %v8386_v61 = vld [vmem:[%s13525_s5 + $0x6d8] sm:$0xf0] }
 0xaa2   :  { %5062 = vmatmul.bf16.gmra.mxu2 %v8369_v33 }
 0xaa3   :  { %5019 = vmatmul.bf16.gmra.mxu1 %v8365_v0 }
 0xaa4   :  { %v4673_v27 = vpop.f32.mrf.mxu2 }
 0xaa5   :  { %v4674_v43 = vadd.f32 %v4673_v27, %v4631_v55  ;;  %v4641_v27 = vadd.f32 %v4640_v60, %v4598_v38  ;;  %v8384_v55 = vld [vmem:[%s13525_s5 + $0x6c8] sm:$0xf]  ;;  %v8408_v38 = vld [vmem:[%s13525_s5 + $0x700] sm:$0xf] }
 0xaa6   :  { %v8385_v60 = vor.u32 %v9277_v8, %v8384_v55  ;;  %v8409_v33 = vor.u32 %v9284_v56, %v8408_v38  ;;  %v9288_v8 = vld [vmem:[%s13525_s5 + $0x72c] sm:$0xf0] }
 0xaac   :  { %v4675_v5 = vpop.f32.mrf.mxu2 }
 0xaad   :  { %v4676_v2 = vadd.f32 %v4675_v5, %v4633_v18  ;;  %v8376_v18 = vld [vmem:[%s13525_s5 + $0x6c0] sm:$0xf]  ;;  %v9276_v5 = vld [vmem:[%s13525_s5 + $0x6cc] sm:$0xf0] }
 0xaae   :  { %v8377_v17 = vor.u32 %v9276_v5, %v8376_v18  ;;  %v8426_v18 = vld [vmem:[%s13525_s5 + $0x730] sm:$0xf0] }
 0xaaf   :  { %v4691_v4 = vpack.c.bf16 %v4676_v2, %v4674_v43  ;;  %v9274_v43 = vld [vmem:[%s13525_s5 + $0x6c4] sm:$0xf]  ;;  %v8378_v2 = vld [vmem:[%s13525_s5 + $0x6d0] sm:$0xf0] }
 0xab0   :  { %v8381_v10 = vor.u32 %v9274_v43, %v8378_v2  ;;  %4981 = vmatmul.bf16.gmra.mxu0 %v8377_v17  ;;  %v9279_v43 = vld [vmem:[%s13525_s5 + $0x6ec] sm:$0xf]  ;;  %v8402_v2 = vld [vmem:[%s13525_s5 + $0x6f8] sm:$0xf0] }
 0xab1   :  { %8313 = vmatmul.msk.bf16.gmra.mxu3 %vm459_vm3, %v4691_v4  ;;  %v9267_v4 = vld [vmem:[%s13525_s5 + $0x68c] sm:$0xf] }
 0xab2   :  { %5067 = vmatmul.bf16.gmra.mxu2 %v8385_v60  ;;  %v8357_v12 = vor.u32 %v9267_v4, %v8354_v62  ;;  %v8405_v4 = vor.u32 %v9279_v43, %v8402_v2 }
 0xab3   :  { %5024 = vmatmul.bf16.gmra.mxu1 %v8381_v10 }
 0xab4   :  { %v4678_v31 = vpop.f32.mrf.mxu2 }
 0xab5   :  { %v4679_v39 = vadd.f32 %v4678_v31, %v4636_v3  ;;  %v8393_v31 = vor.u32 %v9280_v53, %v8392_v37  ;;  %v8370_v3 = vld [vmem:[%s13525_s5 + $0x6b8] sm:$0xf0] }
 0xabc   :  { %v4680_v35 = vpop.f32.mrf.mxu2 }
 0xabd   :  { %v4681_v40 = vadd.f32 %v4680_v35, %v4638_v20  ;;  %v8373_v20 = vor.u32 %v9271_v59, %v8370_v3 }
 0xabf   :  { %v4692_v24 = vpack.c.bf16 %v4681_v40, %v4679_v39  ;;  %v8416_v40 = vld [vmem:[%s13525_s5 + $0x708] sm:$0xf] }
 0xac0   :  { %4986 = vmatmul.bf16.gmra.mxu0 %v8393_v31 }
 0xac1   :  { %8314 = vmatmul.msk.bf16.gmra.mxu3 %vm459_vm3, %v4692_v24  ;;  %v9285_v24 = vld [vmem:[%s13525_s5 + $0x714] sm:$0xf0] }
 0xac2   :  { %5072 = vmatmul.bf16.gmra.mxu2 %v8401_v49  ;;  %v8417_v14 = vor.u32 %v9285_v24, %v8416_v40  ;;  %v8421_v49 = vor.u32 %v9283_v19, %v8418_v42  ;;  %v8434_v40 = vld [vmem:[%s13525_s5 + $0x738] sm:$0xf0] }
 0xac3   :  { %5029 = vmatmul.bf16.gmra.mxu1 %v8397_v9 }
 0xac4   :  { %v4683_v16 = vpop.f32.mrf.mxu2 }
 0xac5   :  { %v4684_v1 = vadd.f32 %v4683_v16, %v4641_v27  ;;  %v8389_v16 = vor.u32 %v9275_v28, %v8386_v61 }
 0xac7   :  { %v4693_v7 = vpack.c.bf16 %v4684_v1, %v4684_v1 }
 0xacc   :  { %v4685_v45 = vpop.f32.mrf.mxu2 }
 0xacd   :  { %v8432_v45 = vld [vmem:[%s13525_s5 + $0x728] sm:$0xf] }
 0xad0   :  { %4991 = vmatmul.bf16.gmra.mxu0 %v8409_v33 }
 0xad1   :  { %8315 = vmatmul.msk.bf16.gmra.mxu3 %vm459_vm3, %v4693_v7  ;;  %v9289_v7 = vld [vmem:[%s13525_s5 + $0x734] sm:$0xf0] }
 0xad2   :  { %5077 = vmatmul.bf16.gmra.mxu2 %v8417_v14  ;;  %v8433_v55 = vor.u32 %v9289_v7, %v8432_v45 }
 0xae1   :  { %8438 = vmatmul.msk.bf16.vlgmr.msrb.gmra.mxu3 %vm1381_vm8, %v8357_v12 }
 0xae2   :  { %5082 = vmatmul.bf16.gmra.mxu2 %v8433_v55 }
 0xaf1   :  { %8439 = vmatmul.msk.bf16.gmra.mxu3 %vm1381_vm8, %v8373_v20 }
 0xaf4   :  { %v4741_v35 = vpop.f32.mrf.mxu3 }
 0xaf5   :  { %v12793_v39 = vadd.f32 %v4741_v35, %v12594_v25  ;;  %v9282_v25 = vld [vmem:[%s13525_s5 + $0x704] sm:$0xf]  ;;  %v9287_v35 = vld [vmem:[%s13525_s5 + $0x72c] sm:$0xf] }
 0xaf6   :  { %v8413_v11 = vor.u32 %v9282_v25, %v8410_v22  ;;  %v8437_v38 = vor.u32 %v9287_v35, %v8434_v40 }
 0xaf8   :  { %5034 = vmatmul.bf16.gmra.mxu1 %v8413_v11 }
 0xafc   :  { %v4743_v15 = vpop.f32.mrf.mxu3 }
 0xafd   :  { %v12820_v0 = vadd.f32 %v4743_v15, %v12615_v57  ;;  %v8424_v57 = vld [vmem:[%s13525_s5 + $0x720] sm:$0xf] }
 0xafe   :  { %v8425_v60 = vor.u32 %v9288_v8, %v8424_v57 }
 0xb00   :  { %4996 = vmatmul.bf16.gmra.mxu0 %v8425_v60  ;;  %v4972_v25 = vpop.f32.mrf.mxu0 }
 0xb01   :  { %8440 = vmatmul.msk.bf16.gmra.mxu3 %vm1381_vm8, %v8389_v16 }
 0xb04   :  { %v4746_v27 = vpop.f32.mrf.mxu3 }
 0xb05   :  { %v12824_v1 = vadd.f32 %v4746_v27, %v12625_v58  ;;  %v9286_v58 = vld [vmem:[%s13525_s5 + $0x724] sm:$0xf] }
 0xb06   :  { %v8429_v5 = vor.u32 %v9286_v58, %v8426_v18  ;;  %v5058_v33 = vpop.f32.mrf.mxu2  ;;  %v9290_v58 = vld [vmem:[%s13526_s6 + $0x80] sm:$0xff] }
 0xb08   :  { %5039 = vmatmul.bf16.gmra.mxu1 %v8429_v5  ;;  %v4974_v15 = vpop.f32.mrf.mxu0 }
 0xb0c   :  { %v4748_v17 = vpop.f32.mrf.mxu3  ;;  %v5015_v22 = vpop.f32.mrf.mxu1 }
 0xb0d   :  { %v12851_v10 = vadd.f32 %v4748_v17, %v12646_v6  ;;  %v8341_v6 = vld [vmem:[%s13525_s5 + $0x748] sm:$0x11] }
 0xb0e   :  { %v4891_v53 = vunpack.c.l.b16 %v8341_v6  ;;  %v4892_v11 = vunpack.c.h.b16 %v8341_v6  ;;  %v5060_v27 = vpop.f32.mrf.mxu2 }
 0xb10   :  { %v4919_v30 = vpack.c.b16 %v4891_v53, %v4891_v53  ;;  %v4920_v61 = vpack.c.b16 %v4892_v11, %v4892_v11  ;;  %v5016_v53 = vadd.f32 %v5015_v22, %v4972_v25 }
 0xb11   :  { %8441 = vmatmul.msk.bf16.gmra.mxu3 %vm1381_vm8, %v8405_v4 }
 0xb12   :  { %5087 = vmatmul.bf16.gmra.mxu2 %v4919_v30 }
 0xb14   :  { %v4751_v62 = vpop.f32.mrf.mxu3  ;;  %v5017_v16 = vpop.f32.mrf.mxu1 }
 0xb15   :  { %v12855_v12 = vadd.f32 %v4751_v62, %v12656_v63  ;;  %v8340_v63 = vld [vmem:[%s13525_s5 + $0x740] sm:$0x11]  ;;  %v4977_v7 = vpop.f32.mrf.mxu0  ;;  %v5018_v30 = vadd.f32 %v5017_v16, %v4974_v15 }
 0xb16   :  { %v4889_v51 = vunpack.c.l.b16 %v8340_v63  ;;  %v4890_v31 = vunpack.c.h.b16 %v8340_v63  ;;  %v5059_v63 = vadd.f32 %v5058_v33, %v5016_v53 }
 0xb18   :  { %v4917_v59 = vpack.c.b16 %v4889_v51, %v4889_v51  ;;  %v4918_v3 = vpack.c.b16 %v4890_v31, %v4890_v31 }
 0xb1a   :  { %5001 = vmatmul.bf16.gmra.mxu0 %v4917_v59  ;;  %5044 = vmatmul.bf16.gmra.mxu1 %v4918_v3 }
 0xb1c   :  { %v12863_v37 = vpop.f32.mrf.mxu3 }
 0xb1d   :  { %v4979_v18 = vpop.f32.mrf.mxu0 }
 0xb20   :  { %v5020_v57 = vpop.f32.mrf.mxu1 }
 0xb21   :  { %8442 = vmatmul.msk.bf16.gmra.mxu3 %vm1381_vm8, %v8421_v49  ;;  %v5021_v11 = vadd.f32 %v5020_v57, %v4977_v7 }
 0xb24   :  { %v4756_v9 = vpop.f32.mrf.mxu3 }
 0xb25   :  { %v12873_v20 = vadd.f32 %v4756_v9, %v12674_v23  ;;  %v9291_v23 = vld [vmem:[%s13526_s6 + $0x88] sm:$0xff]  ;;  %v5063_v55 = vpop.f32.mrf.mxu2  ;;  %v5061_v9 = vadd.f32 %v5060_v27, %v5018_v30 }
 0xb26   :  { %5186 = vmatpush.bf16.msrb.mxu0 %v9291_v23 }
 0xb28   :  { %v5022_v60 = vpop.f32.mrf.mxu1 }
 0xb2a   :  { %5187 = vmatpush.bf16.msrb.mxu0 %v9290_v58  ;;  %v5064_v58 = vadd.f32 %v5063_v55, %v5021_v11 }
 0xb2c   :  { %v12881_v24 = vpop.f32.mrf.mxu3 }
 0xb2d   :  { %v5065_v5 = vpop.f32.mrf.mxu2  ;;  %v4982_v17 = vpop.f32.mrf.mxu0 }
 0xb31   :  { %8443 = vmatmul.msk.bf16.gmra.mxu3 %vm1381_vm8, %v8437_v38 }
 0xb34   :  { %v4761_v14 = vpop.f32.mrf.mxu3 }
 0xb35   :  { %v12885_v56 = vadd.f32 %v4761_v14, %v12686_v32  ;;  %v5068_v4 = vpop.f32.mrf.mxu2  ;;  %v4984_v19 = vpop.f32.mrf.mxu0 }
 0xb3c   :  { %v12890_v28 = vpop.f32.mrf.mxu3 }
 0xb3d   :  { %v5070_v49 = vpop.f32.mrf.mxu2  ;;  %v4987_v51 = vpop.f32.mrf.mxu0 }
 0xb41   :  { %8444 = vmatmul.msk.bf16.gmra.mxu3 %vm1381_vm8, %v4920_v61 }
 0xb44   :  { %v4766_v45 = vpop.f32.mrf.mxu3 }
 0xb45   :  { %v12894_v32 = vadd.f32 %v4766_v45, %v12692_v29  ;;  %v5025_v29 = vpop.f32.mrf.mxu1  ;;  %v5073_v59 = vpop.f32.mrf.mxu2  ;;  %v5023_v45 = vadd.f32 %v5022_v60, %v4979_v18 }
 0xb46   :  { %v4989_v38 = vpop.f32.mrf.mxu0  ;;  %v5026_v53 = vadd.f32 %v5025_v29, %v4982_v17 }
 0xb47   :  { %v5066_v25 = vadd.f32 %v5065_v5, %v5023_v45 }
 0xb4c   :  { %v12896_v8 = vpop.f32.mrf.mxu3 }
 0xb4d   :  { %v5027_v42 = vpop.f32.mrf.mxu1  ;;  %v5075_v61 = vpop.f32.mrf.mxu2 }
 0xb4e   :  { %v4992_v16 = vpop.f32.mrf.mxu0  ;;  %v5028_v30 = vadd.f32 %v5027_v42, %v4984_v19 }
 0xb50   :  { %v5071_v57 = vadd.f32 %v5070_v49, %v5028_v30 }
 0xb54   :  { %v4771_v43 = vpop.f32.mrf.mxu3 }
 0xb55   :  { %v12902_v2 = vadd.f32 %v4771_v43, %v12697_v13  ;;  %v5030_v31 = vpop.f32.mrf.mxu1 }
 0xb56   :  { %v5031_v11 = vadd.f32 %v5030_v31, %v4987_v51 }
 0xb5c   :  { %v4773_v62 = vpop.f32.mrf.mxu3 }
 0xb5d   :  { %v5032_v14 = vpop.f32.mrf.mxu1  ;;  %v5078_v62 = vpop.f32.mrf.mxu2 }
 0xb5e   :  { %v5033_v45 = vadd.f32 %v5032_v14, %v4989_v38 }
 0xb60   :  { %v5076_v17 = vadd.f32 %v5075_v61, %v5033_v45 }
 0xb64   :  { %v5101_v6 = vpop.f32.mrf.mxu3 }
 0xb65   :  { %v5102_v35 = vadd.f32 %v5101_v6, %v5059_v63  ;;  %v4994_v63 = vpop.f32.mrf.mxu0  ;;  %v5080_v7 = vpop.f32.mrf.mxu2 }
 0xb6c   :  { %v5103_v3 = vpop.f32.mrf.mxu3 }
 0xb6d   :  { %v5104_v40 = vadd.f32 %v5103_v3, %v5061_v9  ;;  %v5069_v3 = vadd.f32 %v5068_v4, %v5026_v53 }
 0xb6f   :  { %v5135_v13 = vpack.c.bf16 %v5104_v40, %v5102_v35 }
 0xb71   :  { %8457 = vmatmul.msk.bf16.vlgmr.msrb.gmra.mxu0 %vm459_vm3, %v5135_v13  ;;  %v5083_v13 = vpop.f32.mrf.mxu2 }
 0xb74   :  { %v5106_v23 = vpop.f32.mrf.mxu3 }
 0xb75   :  { %v5107_v33 = vadd.f32 %v5106_v23, %v5064_v58  ;;  %v5035_v27 = vpop.f32.mrf.mxu1  ;;  %v5074_v58 = vadd.f32 %v5073_v59, %v5031_v11 }
 0xb79   :  { %v5085_v49 = vpop.f32.mrf.mxu2 }
 0xb7c   :  { %v5108_v22 = vpop.f32.mrf.mxu3 }
 0xb7d   :  { %v5109_v15 = vadd.f32 %v5108_v22, %v5066_v25  ;;  %v5037_v9 = vpop.f32.mrf.mxu1  ;;  %v4997_v35 = vpop.f32.mrf.mxu0 }
 0xb7e   :  { %v5038_v30 = vadd.f32 %v5037_v9, %v4994_v63 }
 0xb7f   :  { %v5136_v43 = vpack.c.bf16 %v5109_v15, %v5107_v33 }
 0xb80   :  { %v5081_v51 = vadd.f32 %v5080_v7, %v5038_v30 }
 0xb81   :  { %8458 = vmatmul.msk.bf16.gmra.mxu0 %vm459_vm3, %v5136_v43 }
 0xb84   :  { %v5111_v6 = vpop.f32.mrf.mxu3 }
 0xb85   :  { %v5112_v55 = vadd.f32 %v5111_v6, %v5069_v3  ;;  %v5040_v40 = vpop.f32.mrf.mxu1  ;;  %v4999_v29 = vpop.f32.mrf.mxu0  ;;  %v5036_v6 = vadd.f32 %v5035_v27, %v4992_v16 }
 0xb87   :  { %v5079_v3 = vadd.f32 %v5078_v62, %v5036_v6  ;;  %v12918_v6 = vld [vmem:[%s13527_s7] ss:$0 sm:$0xff] }
 0xb8c   :  { %v5113_v18 = vpop.f32.mrf.mxu3 }
 0xb8d   :  { %v5114_v60 = vadd.f32 %v5113_v18, %v5071_v57  ;;  %v5042_v19 = vpop.f32.mrf.mxu1 }
 0xb8f   :  { %v5137_v5 = vpack.c.bf16 %v5114_v60, %v5112_v55  ;;  %v5041_v60 = vadd.f32 %v5040_v40, %v4997_v35 }
 0xb91   :  { %8459 = vmatmul.msk.bf16.gmra.mxu0 %vm459_vm3, %v5137_v5  ;;  %v5043_v5 = vadd.f32 %v5042_v19, %v4999_v29 }
 0xb93   :  { %v5086_v11 = vadd.f32 %v5085_v49, %v5043_v5 }
 0xb94   :  { %v5116_v23 = vpop.f32.mrf.mxu3 }
 0xb95   :  { %v5117_v4 = vadd.f32 %v5116_v23, %v5074_v58  ;;  %v5088_v53 = vpop.f32.mrf.mxu2  ;;  %v5084_v23 = vadd.f32 %v5083_v13, %v5041_v60 }
 0xb97   :  { %v5002_v33 = vpop.f32.mrf.mxu0  ;;  %v5045_v15 = vpop.f32.mrf.mxu1 }
 0xb98   :  { %v5046_v62 = vadd.f32 %v5045_v15, %v5002_v33 }
 0xb9a   :  { %v5089_v7 = vadd.f32 %v5088_v53, %v5046_v62  ;;  %v13617_v53 = vld [vmem:[#allocation16_spill] sm:$0xff] }
 0xb9b   :  { %v3438_v30 = vadd.f32 %v12286_v41, %v13617_v53 }
 0xb9c   :  { %v5118_v42 = vpop.f32.mrf.mxu3 }
 0xb9d   :  { %v5119_v25 = vadd.f32 %v5118_v42, %v5076_v17  ;;  %v5090_v57 = vpop.f32.mrf.mxu2 }
 0xb9f   :  { %v5138_v22 = vpack.c.bf16 %v5119_v25, %v5117_v4  ;;  %v5004_v31 = vpop.f32.mrf.mxu0  ;;  %v5047_v59 = vpop.f32.mrf.mxu1 }
 0xba1   :  { %8460 = vmatmul.msk.bf16.gmra.mxu0 %vm459_vm3, %v5138_v22 }
 0xba4   :  { %v5121_v43 = vpop.f32.mrf.mxu3 }
 0xba5   :  { %v5122_v14 = vadd.f32 %v5121_v43, %v5079_v3  ;;  %v3884_v43 = vadd.f32 %v12459_v47, %v12268_v26  ;;  %v3886_v26 = vadd.f32 %v12475_v44, %v3438_v30 }
 0xbac   :  { %v5123_v38 = vpop.f32.mrf.mxu3 }
 0xbad   :  { %v5124_v61 = vadd.f32 %v5123_v38, %v5081_v51  ;;  %v4332_v51 = vadd.f32 %v12664_v46, %v3884_v43  ;;  %v13618_v38 = vld [vmem:[#allocation17_spill] sm:$0xff] }
 0xbae   :  { %v3440_v46 = vadd.f32 %v12307_v34, %v13618_v38 }
 0xbaf   :  { %v5139_v18 = vpack.c.bf16 %v5124_v61, %v5122_v14  ;;  %v4780_v47 = vadd.f32 %v12863_v37, %v4332_v51  ;;  %v4334_v14 = vadd.f32 %v12682_v50, %v3886_v26 }
 0xbb0   :  { %v3888_v61 = vadd.f32 %v12487_v21, %v3440_v46 }
 0xbb1   :  { %8461 = vmatmul.msk.bf16.gmra.mxu0 %vm459_vm3, %v5139_v18  ;;  %v4782_v57 = vadd.f32 %v12881_v24, %v4334_v14 }
 0xbb2   :  { %v4336_v21 = vadd.f32 %v12688_v48, %v3888_v61 }
 0xbb4   :  { %v5126_v55 = vpop.f32.mrf.mxu3 }
 0xbb5   :  { %v5127_v16 = vadd.f32 %v5126_v55, %v5084_v23  ;;  %v13619_v55 = vld [vmem:[#allocation8_spill] sm:$0xff] }
 0xbb6   :  { %v3442_v60 = vadd.f32 %v12314_v54, %v13619_v55 }
 0xbbc   :  { %v5128_v45 = vpop.f32.mrf.mxu3 }
 0xbbd   :  { %v5129_v27 = vadd.f32 %v5128_v45, %v5086_v11 }
 0xbbf   :  { %v5140_v63 = vpack.c.bf16 %v5129_v27, %v5127_v16  ;;  %v3890_v16 = vadd.f32 %v12493_v52, %v3442_v60 }
 0xbc1   :  { %8462 = vmatmul.msk.bf16.gmra.mxu0 %vm459_vm3, %v5140_v63  ;;  %v4784_v63 = vadd.f32 %v12890_v28, %v4336_v21 }
 0xbc4   :  { %v5131_v9 = vpop.f32.mrf.mxu3 }
 0xbc5   :  { %v5132_v58 = vadd.f32 %v5131_v9, %v5089_v7  ;;  %v4338_v9 = vadd.f32 %v12694_v36, %v3890_v16 }
 0xbc7   :  { %v5141_v42 = vpack.c.bf16 %v5132_v58, %v5132_v58  ;;  %v4786_v28 = vadd.f32 %v12896_v8, %v4338_v9 }
 0xbcc   :  { %v5133_v17 = vpop.f32.mrf.mxu3 }
 0xbd1   :  { %8463 = vmatmul.msk.bf16.gmra.mxu0 %vm459_vm3, %v5141_v42 }
 0xbee   :  { %v5189_v4 = vpop.f32.mrf.mxu0 }
 0xbef   :  { %v5223_v35 = vadd.f32 %v5189_v4, %v12793_v39 }
 0xbf1   :  { %v12931_v59 = vadd.f32 %v12918_v6, %v5223_v35 }
 0xbf6   :  { %v5191_v40 = vpop.f32.mrf.mxu0 }
 0xbf7   :  { %v5224_v15 = vadd.f32 %v5191_v40, %v12820_v0 }
 0xbf9   :  { %v12925_v31 = vadd.f32 %v12918_v6, %v5224_v15 }
 0xbfe   :  { %v5194_v13 = vpop.f32.mrf.mxu0 }
 0xbff   :  { %v5225_v39 = vadd.f32 %v5194_v13, %v12824_v1 }
 0xc01   :  { %v12934_v1 = vadd.f32 %v12918_v6, %v5225_v39 }
 0xc03   :  { %v5259_v34 = vsel %vm5255_vm9, %v12934_v1, 0.0 }
 0xc06   :  { %v5196_v29 = vpop.f32.mrf.mxu0 }
 0xc07   :  { %v5226_v0 = vadd.f32 %v5196_v29, %v12851_v10  ;;  %v5257_v10 = vsel %vm5255_vm9, %v12925_v31, 0.0 }
 0xc09   :  { %v12943_v44 = vadd.f32 %v12918_v6, %v5226_v0 }
 0xc0b   :  { %v5261_v24 = vsel %vm5255_vm9, %v12943_v44, 0.0 }
 0xc0e   :  { %v5199_v19 = vpop.f32.mrf.mxu0 }
 0xc0f   :  { %v5227_v41 = vadd.f32 %v5199_v19, %v12855_v12  ;;  %v5256_v12 = vsel %vm5255_vm9, %v12931_v59, 0.0 }
 0xc10   :  { %v5258_v5 = vadd.f32 %v5257_v10, %v5256_v12 }
 0xc11   :  { %v12952_v50 = vadd.f32 %v12918_v6, %v5227_v41 }
 0xc12   :  { %v5260_v27 = vadd.f32 %v5259_v34, %v5258_v5 }
 0xc14   :  { %v5262_v62 = vadd.f32 %v5261_v24, %v5260_v27 }
 0xc16   :  { %v5201_v25 = vpop.f32.mrf.mxu0 }
 0xc17   :  { %v5228_v37 = vadd.f32 %v5201_v25, %v4780_v47 }
 0xc19   :  { %v12961_v11 = vadd.f32 %v12918_v6, %v5228_v37 }
 0xc1b   :  { %v5265_v7 = vsel %vm5255_vm9, %v12961_v11, 0.0 }
 0xc1e   :  { %v5204_v49 = vpop.f32.mrf.mxu0 }
 0xc1f   :  { %v5229_v18 = vadd.f32 %v5204_v49, %v12873_v20  ;;  %v5263_v20 = vsel %vm5255_vm9, %v12952_v50, 0.0 }
 0xc20   :  { %v5264_v17 = vadd.f32 %v5263_v20, %v5262_v62 }
 0xc21   :  { %v12968_v54 = vadd.f32 %v12918_v6, %v5229_v18 }
 0xc22   :  { %v5266_v35 = vadd.f32 %v5265_v7, %v5264_v17 }
 0xc23   :  { %v5267_v42 = vsel %vm5255_vm9, %v12968_v54, 0.0 }
 0xc24   :  { %v5268_v19 = vadd.f32 %v5267_v42, %v5266_v35 }
 0xc26   :  { %v5206_v22 = vpop.f32.mrf.mxu0 }
 0xc27   :  { %v5230_v45 = vadd.f32 %v5206_v22, %v4782_v57 }
 0xc29   :  { %v12975_v58 = vadd.f32 %v12918_v6, %v5230_v45 }
 0xc2b   :  { %v5269_v40 = vsel %vm5255_vm9, %v12975_v58, 0.0 }
 0xc2c   :  { %v5270_v49 = vadd.f32 %v5269_v40, %v5268_v19 }
 0xc2e   :  { %v5209_v33 = vpop.f32.mrf.mxu0 }
 0xc2f   :  { %v5231_v48 = vadd.f32 %v5209_v33, %v12885_v56 }
 0xc31   :  { %v12981_v4 = vadd.f32 %v12918_v6, %v5231_v48 }
 0xc33   :  { %v5271_v8 = vsel %vm5255_vm9, %v12981_v4, 0.0 }
 0xc34   :  { %v5272_v33 = vadd.f32 %v5271_v8, %v5270_v49 }
 0xc36   :  { %v5211_v3 = vpop.f32.mrf.mxu0 }
 0xc37   :  { %v5232_v52 = vadd.f32 %v5211_v3, %v4784_v63 }
 0xc39   :  { %v12987_v13 = vadd.f32 %v12918_v6, %v5232_v52 }
 0xc3e   :  { %v5214_v23 = vpop.f32.mrf.mxu0 }
 0xc3f   :  { %v5233_v56 = vadd.f32 %v5214_v23, %v12894_v32  ;;  %v5273_v32 = vsel %vm5255_vm9, %v12987_v13, 0.0 }
 0xc40   :  { %v5274_v43 = vadd.f32 %v5273_v32, %v5272_v33 }
 0xc41   :  { %v12992_v25 = vadd.f32 %v12918_v6, %v5233_v56 }
 0xc43   :  { %v5275_v15 = vsel %vm5255_vm9, %v12992_v25, 0.0 }
 0xc44   :  { %v5276_v3 = vadd.f32 %v5275_v15, %v5274_v43 }
 0xc46   :  { %v5216_v36 = vpop.f32.mrf.mxu0 }
 0xc47   :  { %v5234_v29 = vadd.f32 %v5216_v36, %v4786_v28 }
 0xc49   :  { %v12997_v22 = vadd.f32 %v12918_v6, %v5234_v29 }
 0xc4b   :  { %v5277_v53 = vsel %vm5255_vm9, %v12997_v22, 0.0 }
 0xc4c   :  { %v5278_v0 = vadd.f32 %v5277_v53, %v5276_v3 }
 0xc4e   :  { %v5219_v39 = vpop.f32.mrf.mxu0 }
 0xc4f   :  { %v5235_v30 = vadd.f32 %v5219_v39, %v12902_v2 }
 0xc51   :  { %v13005_v51 = vadd.f32 %v12918_v6, %v5235_v30 }
 0xc53   :  { %v5280_v26 = vsel %vm5279_vm10, %v13005_v51, 0.0 }
 0xc54   :  { %v5281_v47 = vadd.f32 %v5280_v26, %v5278_v0 }
 0xc56   :  { %v5282_v41 = vrot.slane %v5281_v47, 4  ;;  %v5221_v38 = vpop.f32.mrf.mxu0 }
 0xc58   :  { %v5283_v46 = vadd.f32 %v5282_v41, %v5281_v47 }
 0xc5a   :  { %v5284_v14 = vrot.slane %v5283_v46, 2 }
 0xc5c   :  { %v5285_v10 = vadd.f32 %v5284_v14, %v5283_v46 }
 0xc5e   :  { %v5286_v37 = vrot.slane %v5285_v10, 1 }
 0xc60   :  { %v5287_v61 = vadd.f32 %v5286_v37, %v5285_v10 }
 0xc62   :  { %v13009_v57 = vmul.f32 0.010204081, %v5287_v61 }
 0xc64   :  { %v5289_v2 = vsub.f32 %v12931_v59, %v13009_v57  ;;  %v5290_v6 = vsub.f32 %v12925_v31, %v13009_v57  ;;  %v5291_v12 = vsub.f32 %v12934_v1, %v13009_v57  ;;  %v5292_v34 = vsub.f32 %v12943_v44, %v13009_v57 }
 0xc65   :  { %v5293_v60 = vsub.f32 %v12952_v50, %v13009_v57  ;;  %v5294_v23 = vsub.f32 %v12961_v11, %v13009_v57  ;;  %v5295_v27 = vsub.f32 %v12968_v54, %v13009_v57  ;;  %v5296_v62 = vsub.f32 %v12975_v58, %v13009_v57 }
 0xc66   :  { %v5302_v18 = vmul.f32 %v5289_v2, %v5289_v2  ;;  %v5303_v55 = vmul.f32 %v5290_v6, %v5290_v6  ;;  %v5304_v5 = vmul.f32 %v5291_v12, %v5291_v12  ;;  %v5305_v21 = vmul.f32 %v5292_v34, %v5292_v34 }
 0xc67   :  { %v5306_v63 = vmul.f32 %v5293_v60, %v5293_v60  ;;  %v5307_v9 = vmul.f32 %v5294_v23, %v5294_v23  ;;  %v5297_v17 = vsub.f32 %v12981_v4, %v13009_v57  ;;  %v5308_v28 = vmul.f32 %v5295_v27, %v5295_v27 }
 0xc68   :  { %v5315_v24 = vsel %vm5255_vm9, %v5302_v18, 0.0  ;;  %v5316_v45 = vsel %vm5255_vm9, %v5303_v55, 0.0  ;;  %v5318_v20 = vsel %vm5255_vm9, %v5304_v5, 0.0  ;;  %v5320_v7 = vsel %vm5255_vm9, %v5305_v21, 0.0 }
 0xc69   :  { %v5317_v16 = vadd.f32 %v5316_v45, %v5315_v24  ;;  %v5322_v42 = vsel %vm5255_vm9, %v5306_v63, 0.0  ;;  %v5298_v35 = vsub.f32 %v12987_v13, %v13009_v57  ;;  %v5309_v36 = vmul.f32 %v5296_v62, %v5296_v62  ;;  %v5253_v63 = vld [vmem:[%s13528_s8] sm:$0x1] }
 0xc6a   :  { %v5324_v40 = vsel %vm5255_vm9, %v5307_v9, 0.0  ;;  %v5299_v19 = vsub.f32 %v12992_v25, %v13009_v57  ;;  %v5310_v8 = vmul.f32 %v5297_v17, %v5297_v17  ;;  %v5326_v49 = vsel %vm5255_vm9, %v5308_v28, 0.0  ;;  %v5254_v9 = vld [vmem:[%s13529_s9] sm:$0x1] }
 0xc6b   :  { %v5319_v48 = vadd.f32 %v5318_v20, %v5317_v16  ;;  %v5300_v33 = vsub.f32 %v12997_v22, %v13009_v57  ;;  %v5311_v15 = vmul.f32 %v5298_v35, %v5298_v35  ;;  %v5328_v43 = vsel %vm5255_vm9, %v5309_v36, 0.0 }
 0xc6c   :  { %v5301_v53 = vsub.f32 %v13005_v51, %v13009_v57  ;;  %v5312_v30 = vmul.f32 %v5299_v19, %v5299_v19  ;;  %v5330_v3 = vsel %vm5255_vm9, %v5310_v8, 0.0 }
 0xc6d   :  { %v5321_v52 = vadd.f32 %v5320_v7, %v5319_v48  ;;  %v5313_v26 = vmul.f32 %v5300_v33, %v5300_v33  ;;  %v5332_v47 = vsel %vm5255_vm9, %v5311_v15, 0.0 }
 0xc6e   :  { %v5314_v38 = vmul.f32 %v5301_v53, %v5301_v53  ;;  %v5334_v46 = vsel %vm5255_vm9, %v5312_v30, 0.0 }
 0xc6f   :  { %v5323_v56 = vadd.f32 %v5322_v42, %v5321_v52  ;;  %v5336_v10 = vsel %vm5255_vm9, %v5313_v26, 0.0 }
 0xc70   :  { %v5338_v61 = vsel %vm5279_vm10, %v5314_v38, 0.0 }
 0xc71   :  { %v5325_v29 = vadd.f32 %v5324_v40, %v5323_v56 }
 0xc73   :  { %v5327_v32 = vadd.f32 %v5326_v49, %v5325_v29 }
 0xc75   :  { %v5329_v39 = vadd.f32 %v5328_v43, %v5327_v32 }
 0xc77   :  { %v5331_v0 = vadd.f32 %v5330_v3, %v5329_v39 }
 0xc79   :  { %v5333_v41 = vadd.f32 %v5332_v47, %v5331_v0 }
 0xc7b   :  { %v5335_v14 = vadd.f32 %v5334_v46, %v5333_v41 }
 0xc7d   :  { %v5337_v37 = vadd.f32 %v5336_v10, %v5335_v14 }
 0xc7f   :  { %v5339_v2 = vadd.f32 %v5338_v61, %v5337_v37 }
 0xc81   :  { %v5340_v6 = vrot.slane %v5339_v2, 4 }
 0xc83   :  { %v5341_v12 = vadd.f32 %v5340_v6, %v5339_v2 }
 0xc85   :  { %v5342_v34 = vrot.slane %v5341_v12, 2 }
 0xc87   :  { %v5343_v18 = vadd.f32 %v5342_v34, %v5341_v12 }
 0xc89   :  { %v5344_v55 = vrot.slane %v5343_v18, 1 }
 0xc8b   :  { %v5345_v60 = vadd.f32 %v5344_v55, %v5343_v18 }
 0xc8d   :  { %v5346_v5 = vmul.f32 0.010204081, %v5345_v60 }
 0xc8f   :  { %v5347_v23 = vadd.f32 1e-05, %v5346_v5 }
 0xc91   :  { %9387 = vrsqrt.f32 %v5347_v23  ;;  %vm5354_vm12 = vweird.f32 %v5347_v23 }
 0xc97   :  { %v9388_v21 = vpop.eup %9387 }
 0xc98   :  { %v5349_v24 = vmul.f32 %v9388_v21, %v5347_v23  ;;  %vm5355_vm11 = vweird.f32 %v9388_v21 }
 0xc99   :  { %vm5356_vm13 = vmor %vm5354_vm12, %vm5355_vm11 }
 0xc9a   :  { %v5350_v45 = vmul.f32 %v9388_v21, %v5349_v24 }
 0xc9c   :  { %v5351_v16 = vmul.f32 0.5, %v5350_v45 }
 0xc9e   :  { %v5352_v27 = vsub.f32 1.5, %v5351_v16 }
 0xca0   :  { %v5353_v20 = vmul.f32 %v9388_v21, %v5352_v27 }
 0xca2   :  { %v5357_v48 = vsel %vm5356_vm13, %v9388_v21, %v5353_v20 }
 0xca3   :  { %v5358_v62 = vmul.f32 %v5357_v48, %v5253_v63 }
 0xca5   :  { %v5359_v7 = vmul.f32 %v5358_v62, %v13009_v57  ;;  %v5362_v52 = vperm.slane %v5358_v62, 0 }
 0xca7   :  { %v5360_v17 = vsub.f32 %v5254_v9, %v5359_v7  ;;  %v5376_v28 = vmul.f32 %v5362_v52, %v13005_v51  ;;  %v5374_v42 = vmul.f32 %v5362_v52, %v12992_v25  ;;  %v5375_v56 = vmul.f32 %v5362_v52, %v12997_v22 }
 0xca8   :  { %v5372_v35 = vmul.f32 %v5362_v52, %v12981_v4  ;;  %v5373_v40 = vmul.f32 %v5362_v52, %v12987_v13  ;;  %v5370_v29 = vmul.f32 %v5362_v52, %v12968_v54  ;;  %v5371_v19 = vmul.f32 %v5362_v52, %v12975_v58 }
 0xca9   :  { %v5378_v36 = vperm.slane %v5360_v17, 0  ;;  %v5368_v57 = vmul.f32 %v5362_v52, %v12952_v50  ;;  %v5369_v8 = vmul.f32 %v5362_v52, %v12961_v11  ;;  %v5366_v49 = vmul.f32 %v5362_v52, %v12934_v1  ;;  %v9303_v17 = vld [vmem:[%s13530_s10 + $0xc] sm:$0xff] }
 0xcaa   :  { %v5367_v51 = vmul.f32 %v5362_v52, %v12943_v44  ;;  %v5364_v11 = vmul.f32 %v5362_v52, %v12931_v59  ;;  %v5365_v46 = vmul.f32 %v5362_v52, %v12925_v31 }
 0xcab   :  { %v5392_v25 = vadd.f32 %v5378_v36, %v5376_v28  ;;  %v5390_v32 = vadd.f32 %v5378_v36, %v5374_v42  ;;  %v5391_v22 = vadd.f32 %v5378_v36, %v5375_v56  ;;  %v5388_v33 = vadd.f32 %v5378_v36, %v5372_v35  ;;  %v9298_v28 = vld [vmem:[%s13530_s10] sm:$0xff]  ;;  %v8496_v56 = vld [vmem:[%s13530_s10 + $0x14] sm:$0x1]  ;;  %v5449_v35 = vld [vmem:[%s13530_s10 + $0x8] sm:$0x1] }
 0xcac   :  { %v5389_v4 = vadd.f32 %v5378_v36, %v5373_v40  ;;  %v5386_v15 = vadd.f32 %v5378_v36, %v5370_v29  ;;  %v5387_v43 = vadd.f32 %v5378_v36, %v5371_v19  ;;  %v5384_v13 = vadd.f32 %v5378_v36, %v5368_v57  ;;  %v9313_v42 = vld [vmem:[%s13530_s10 + $0x24] sm:$0xff]  ;;  %v9308_v57 = vld [vmem:[%s13530_s10 + $0x18] sm:$0xff] }
 0xcad   :  { %v5405_v39 = vmax.f32 %v5392_v25, 0.0  ;;  %v5403_v54 = vmax.f32 %v5390_v32, 0.0  ;;  %v5404_v53 = vmax.f32 %v5391_v22, 0.0  ;;  %v5401_v58 = vmax.f32 %v5388_v33, 0.0  ;;  %v8549_v25 = vld [vmem:[%s13530_s10 + $0x20] sm:$0x1] }
 0xcae   :  { %v5402_v30 = vmax.f32 %v5389_v4, 0.0  ;;  %v5399_v50 = vmax.f32 %v5386_v15, 0.0  ;;  %v5385_v3 = vadd.f32 %v5378_v36, %v5369_v8  ;;  %v5400_v26 = vmax.f32 %v5387_v43, 0.0  ;;  %v8584_v8 = vld [vmem:[%s13530_s10 + $0x2c] sm:$0x1]  ;;  %v9323_v33 = vld [vmem:[%s13530_s10 + $0x3c] sm:$0xff] }
 0xcaf   :  { %v5418_v1 = vpack.c.bf16 %v5405_v39, %v5405_v39  ;;  %v5416_v0 = vpack.c.bf16 %v5403_v54, %v5403_v54  ;;  %v5417_v44 = vpack.c.bf16 %v5404_v53, %v5404_v53  ;;  %v5414_v47 = vpack.c.bf16 %v5401_v58, %v5401_v58  ;;  %v9318_v4 = vld [vmem:[%s13530_s10 + $0x30] sm:$0xff]  ;;  %v8654_v15 = vld [vmem:[%s13530_s10 + $0x44] sm:$0x1]  ;;  %v8619_v39 = vld [vmem:[%s13530_s10 + $0x38] sm:$0x1] }
 0xcb0   :  { %v5415_v41 = vpack.c.bf16 %v5402_v30, %v5402_v30  ;;  %v5397_v38 = vmax.f32 %v5384_v13, 0.0  ;;  %v5398_v14 = vmax.f32 %v5385_v3, 0.0  ;;  %v5382_v10 = vadd.f32 %v5378_v36, %v5366_v49  ;;  %v9333_v58 = vld [vmem:[%s13530_s10 + $0x54] sm:$0xff] }
 0xcb1   :  { %5433 = vst.msk [vmem:[#allocation3 + $0x30] sm:$0x1] %vm5432_vm14, %v5418_v1  ;;  %v5383_v37 = vadd.f32 %v5378_v36, %v5367_v51  ;;  %v5380_v61 = vadd.f32 %v5378_v36, %v5364_v11  ;;  %v5412_v2 = vpack.c.bf16 %v5399_v50, %v5399_v50  ;;  %v5381_v6 = vadd.f32 %v5378_v36, %v5365_v46  ;;  %v9307_v30 = vld [vmem:[%s13531_s11 + $0x38] sm:$0xff]  ;;  %v9328_v50 = vld [vmem:[%s13530_s10 + $0x48] sm:$0xff]  ;;  %v9306_v3 = vld [vmem:[%s13531_s11 + $0x30] sm:$0xff] }
 0xcb2   :  { %5430 = vst.msk [vmem:[#allocation3 + $0x28] sm:$0xf] %vm5419_vm15, %v5416_v0  ;;  %v5413_v59 = vpack.c.bf16 %v5400_v26, %v5400_v26  ;;  %v5395_v12 = vmax.f32 %v5382_v10, 0.0  ;;  %v5410_v18 = vpack.c.bf16 %v5397_v38, %v5397_v38  ;;  %v5411_v31 = vpack.c.bf16 %v5398_v14, %v5398_v14  ;;  %5617 = vmatpush.bf16.msra.mxu3 %v9307_v30  ;;  %v8724_v11 = vld [vmem:[%s13530_s10 + $0x5c] sm:$0x1]  ;;  %v9305_v26 = vld [vmem:[%s13531_s11 + $0x28] sm:$0xff] }
 0xcb3   :  { %5431 = vst.msk [vmem:[#allocation3 + $0x2c] sm:$0xf] %vm5419_vm15, %v5417_v44  ;;  %v5396_v34 = vmax.f32 %v5383_v37, 0.0  ;;  %v5393_v55 = vmax.f32 %v5380_v61, 0.0  ;;  %v5394_v60 = vmax.f32 %v5381_v6, 0.0  ;;  %v5545_v36 = vunpack.c.l.b16 %v8496_v56  ;;  %v9302_v0 = vld [vmem:[%s13531_s11 + $0x18] sm:$0xff] }
 0xcb4   :  { %5428 = vst.msk [vmem:[#allocation3 + $0x20] sm:$0xf] %vm5419_vm15, %v5414_v47  ;;  %v5408_v5 = vpack.c.bf16 %v5395_v12, %v5395_v12  ;;  %v5455_v40 = vunpack.c.l.b16 %v5449_v35  ;;  %v5786_v49 = vunpack.c.l.b16 %v8584_v8  ;;  %v5688_v32 = vunpack.c.l.b16 %v8549_v25  ;;  %v8689_v44 = vld [vmem:[%s13530_s10 + $0x50] sm:$0x1]  ;;  %v9304_v46 = vld [vmem:[%s13531_s11 + $0x20] sm:$0xff]  ;;  %v9300_v10 = vld [vmem:[%s13531_s11 + $0x8] sm:$0xff] }
 0xcb5   :  { %5429 = vst.msk [vmem:[#allocation3 + $0x24] sm:$0xf] %vm5419_vm15, %v5415_v41  ;;  %v5409_v23 = vpack.c.bf16 %v5396_v34, %v5396_v34  ;;  %v5406_v24 = vpack.c.bf16 %v5393_v55, %v5393_v55  ;;  %v5407_v16 = vpack.c.bf16 %v5394_v60, %v5394_v60  ;;  %v5547_v29 = vpack.c.b16 %v5545_v36, %v5545_v36  ;;  %v9301_v14 = vld [vmem:[%s13531_s11 + $0x10] sm:$0xff]  ;;  %v9299_v37 = vld [vmem:[%s13531_s11] sm:$0xff]  ;;  %v9312_v6 = vld [vmem:[%s13531_s11 + $0x58] sm:$0xff] }
 0xcb6   :  { %5426 = vst.msk [vmem:[#allocation3 + $0x18] sm:$0xf] %vm5419_vm15, %v5412_v2  ;;  %v5457_v19 = vpack.c.b16 %v5455_v40, %v5455_v40  ;;  %v5788_v51 = vpack.c.b16 %v5786_v49, %v5786_v49  ;;  %v5690_v22 = vpack.c.b16 %v5688_v32, %v5688_v32  ;;  %v5982_v43 = vunpack.c.l.b16 %v8654_v15  ;;  %5618 = vmatpush.bf16.msra.mxu3 %v9306_v3  ;;  %v9338_v61 = vld [vmem:[%s13530_s10 + $0x60] sm:$0xff]  ;;  %v9311_v12 = vld [vmem:[%s13531_s11 + $0x50] sm:$0xff]  ;;  %v9317_v34 = vld [vmem:[%s13531_s11 + $0x78] sm:$0xff] }
 0xcb7   :  { %5427 = vst.msk [vmem:[#allocation3 + $0x1c] sm:$0xf] %vm5419_vm15, %v5413_v59  ;;  %v5884_v54 = vunpack.c.l.b16 %v8619_v39  ;;  %v6178_v1 = vunpack.c.l.b16 %v8724_v11  ;;  %v6080_v41 = vunpack.c.l.b16 %v8689_v44  ;;  %v8759_v55 = vld [vmem:[%s13530_s10 + $0x68] sm:$0x1]  ;;  %v9321_v36 = vld [vmem:[%s13531_s11 + $0x90] sm:$0xff]  ;;  %v9327_v40 = vld [vmem:[%s13531_s11 + $0xb8] sm:$0xff] }
 0xcb8   :  { %v5446_v21 = vld [vmem:[#allocation3 + $0x30] sm:$0x1]  ;;  %5424 = vst.msk [vmem:[#allocation3 + $0x10] sm:$0xf] %vm5419_vm15, %v5410_v18  ;;  %v5984_v13 = vpack.c.b16 %v5982_v43, %v5982_v43  ;;  %v9325_v32 = vld [vmem:[%s13531_s11 + $0xa8] sm:$0xff]  ;;  %v9324_v15 = vld [vmem:[%s13531_s11 + $0xa0] sm:$0xff] }
 0xcb9   :  { %v5483_v45 = vunpack.c.l.b16 %v5446_v21  ;;  %5425 = vst.msk [vmem:[#allocation3 + $0x14] sm:$0xf] %vm5419_vm15, %v5411_v31  ;;  %v5886_v53 = vpack.c.b16 %v5884_v54, %v5884_v54  ;;  %v6180_v47 = vpack.c.b16 %v6178_v1, %v6178_v1  ;;  %v6082_v38 = vpack.c.b16 %v6080_v41, %v6080_v41  ;;  %v9310_v31 = vld [vmem:[%s13531_s11 + $0x48] sm:$0xff]  ;;  %v9326_v25 = vld [vmem:[%s13531_s11 + $0xb0] sm:$0xff]  ;;  %v9332_v54 = vld [vmem:[%s13531_s11 + $0xd8] sm:$0xff] }
 0xcba   :  { %5422 = vst.msk [vmem:[#allocation3 + $0x8] sm:$0xf] %vm5419_vm15, %v5408_v5  ;;  %v13088_v20 = vld [vmem:[#allocation3 + $0x28] sm:$0xff]  ;;  %5619 = vmatpush.bf16.msra.mxu3 %v9305_v26  ;;  %v6276_v5 = vunpack.c.l.b16 %v8759_v55  ;;  %v9329_v26 = vld [vmem:[%s13531_s11 + $0xc0] sm:$0xff] }
 0xcbb   :  { %v5490_v27 = vpack.c.b16 %v5483_v45, %v5483_v45  ;;  %5423 = vst.msk [vmem:[#allocation3 + $0xc] sm:$0xf] %vm5419_vm15, %v5409_v23  ;;  %v9309_v45 = vld [vmem:[%s13531_s11 + $0x40] sm:$0xff]  ;;  %v9331_v30 = vld [vmem:[%s13531_s11 + $0xd0] sm:$0xff]  ;;  %v9330_v11 = vld [vmem:[%s13531_s11 + $0xc8] sm:$0xff] }
 0xcbc   :  { %5420 = vst.msk [vmem:[#allocation3] sm:$0xf] %vm5419_vm15, %v5406_v24  ;;  %v13093_v48 = vld [vmem:[#allocation3 + $0x20] sm:$0xff]  ;;  %v6278_v24 = vpack.c.b16 %v6276_v5, %v6276_v5 }
 0xcbd   :  { %v13082_v63 = vsel %vm5504_vm0, %v5490_v27, 0  ;;  %5421 = vst.msk [vmem:[#allocation3 + $0x4] sm:$0xf] %vm5419_vm15, %v5407_v16  ;;  %v9316_v27 = vld [vmem:[%s13531_s11 + $0x70] sm:$0xff]  ;;  %v9335_v41 = vld [vmem:[%s13531_s11 + $0xe8] sm:$0xff]  ;;  %v9339_v5 = vld [vmem:[%s13531_s11 + $0x100] sm:$0xff] }
 0xcbe   :  { %5509 = vmatpush.bf16.msra.mxu1 %v13082_v63  ;;  %5555 = vmatpush.bf16.msra.mxu2 %v13082_v63  ;;  %v13098_v62 = vld [vmem:[#allocation3 + $0x18] sm:$0xff]  ;;  %v9340_v55 = vld [vmem:[%s13531_s11 + $0x108] sm:$0xff] }
 0xcbf   :  { %5796 = vmatpush.bf16.msra.mxu0 %v13082_v63  ;;  %5620 = vmatpush.bf16.msra.mxu3 %v9304_v46 }
 0xcc0   :  { %v13103_v9 = vld [vmem:[#allocation3 + $0x10] sm:$0xff] }
 0xcc2   :  { %5510 = vmatpush.bf16.msra.mxu1 %v13088_v20  ;;  %5556 = vmatpush.bf16.msra.mxu2 %v13088_v20  ;;  %v13108_v7 = vld [vmem:[#allocation3 + $0x8] sm:$0xff] }
 0xcc3   :  { %5797 = vmatpush.bf16.msra.mxu0 %v13088_v20  ;;  %5760 = vmatpush.bf16.msrb.mxu3 %v9312_v6  ;;  %v9342_v6 = vld [vmem:[%s13531_s11 + $0x118] sm:$0xff] }
 0xcc4   :  { %v13113_v52 = vld [vmem:[#allocation3] sm:$0xff] }
 0xcc6   :  { %5511 = vmatpush.bf16.msra.mxu1 %v13093_v48  ;;  %5557 = vmatpush.bf16.msra.mxu2 %v13093_v48 }
 0xcc7   :  { %5798 = vmatpush.bf16.msra.mxu0 %v13093_v48  ;;  %5761 = vmatpush.bf16.msrb.mxu3 %v9311_v12  ;;  %v9341_v12 = vld [vmem:[%s13531_s11 + $0x110] sm:$0xff] }
 0xcca   :  { %5512 = vmatpush.bf16.msra.mxu1 %v13098_v62  ;;  %5558 = vmatpush.bf16.msra.mxu2 %v13098_v62 }
 0xccb   :  { %5799 = vmatpush.bf16.msra.mxu0 %v13098_v62  ;;  %5762 = vmatpush.bf16.msrb.mxu3 %v9310_v31 }
 0xcce   :  { %5513 = vmatpush.bf16.msra.mxu1 %v13103_v9  ;;  %5559 = vmatpush.bf16.msra.mxu2 %v13103_v9 }
 0xccf   :  { %5800 = vmatpush.bf16.msra.mxu0 %v13103_v9  ;;  %5763 = vmatpush.bf16.msrb.mxu3 %v9309_v45 }
 0xcd2   :  { %5514 = vmatpush.bf16.msra.mxu1 %v13108_v7  ;;  %5560 = vmatpush.bf16.msra.mxu2 %v13108_v7 }
 0xcd3   :  { %5801 = vmatpush.bf16.msra.mxu0 %v13108_v7 }
 0xcd6   :  { %5515 = vmatpush.bf16.msra.mxu1 %v13113_v52  ;;  %5561 = vmatpush.bf16.msra.mxu2 %v13113_v52 }
 0xcd7   :  { %5802 = vmatpush.bf16.msra.mxu0 %v13113_v52 }
 0xcd9   :  { %8501 = vmatmul.msk.bf16.vlgmr.msra.gmra.mxu2 %vm5497_vm1, %v9303_v17  ;;  %8492 = vmatmul.msk.bf16.vlgmr.msra.gmra.mxu1 %vm5497_vm1, %v9298_v28 }
 0xcda   :  { %5698 = vmatpush.bf16.msrb.mxu2 %v13082_v63  ;;  %8589 = vmatmul.msk.bf16.vlgmr.msra.gmra.mxu0 %vm5497_vm1, %v9313_v42  ;;  %v9322_v42 = vld [vmem:[%s13531_s11 + $0x98] sm:$0xff] }
 0xcdb   :  { %5992 = vmatpush.bf16.msrb.mxu0 %v13082_v63  ;;  %5665 = vmatpush.bf16.msrb.mxu1 %v9302_v0 }
 0xcde   :  { %5699 = vmatpush.bf16.msrb.mxu2 %v13088_v20 }
 0xcdf   :  { %5993 = vmatpush.bf16.msrb.mxu0 %v13088_v20  ;;  %5666 = vmatpush.bf16.msrb.mxu1 %v9301_v14 }
 0xce2   :  { %5700 = vmatpush.bf16.msrb.mxu2 %v13093_v48 }
 0xce3   :  { %5994 = vmatpush.bf16.msrb.mxu0 %v13093_v48  ;;  %5667 = vmatpush.bf16.msrb.mxu1 %v9300_v10  ;;  %v9334_v10 = vld [vmem:[%s13531_s11 + $0xe0] sm:$0xff] }
 0xce6   :  { %5701 = vmatpush.bf16.msrb.mxu2 %v13098_v62 }
 0xce7   :  { %5995 = vmatpush.bf16.msrb.mxu0 %v13098_v62  ;;  %5668 = vmatpush.bf16.msrb.mxu1 %v9299_v37 }
 0xce9   :  { %8502 = vmatmul.msk.bf16.gmra.mxu2 %vm5497_vm1, %v5547_v29  ;;  %8493 = vmatmul.msk.bf16.gmra.mxu1 %vm5497_vm1, %v5457_v19  ;;  %v9320_v19 = vld [vmem:[%s13531_s11 + $0x88] sm:$0xff] }
 0xcea   :  { %5702 = vmatpush.bf16.msrb.mxu2 %v13103_v9  ;;  %8590 = vmatmul.msk.bf16.gmra.mxu0 %vm5497_vm1, %v5788_v51  ;;  %v9319_v51 = vld [vmem:[%s13531_s11 + $0x80] sm:$0xff] }
 0xceb   :  { %5996 = vmatpush.bf16.msrb.mxu0 %v13103_v9  ;;  %5858 = vmatpush.bf16.msra.mxu1 %v9317_v34 }
 0xcee   :  { %5703 = vmatpush.bf16.msrb.mxu2 %v13108_v7 }
 0xcef   :  { %5997 = vmatpush.bf16.msrb.mxu0 %v13108_v7  ;;  %5859 = vmatpush.bf16.msra.mxu1 %v9316_v27 }
 0xcf2   :  { %5704 = vmatpush.bf16.msrb.mxu2 %v13113_v52 }
 0xcf3   :  { %5998 = vmatpush.bf16.msrb.mxu0 %v13113_v52 }
 0xcf6   :  { %5894 = vmatpush.bf16.msra.mxu2 %v13082_v63 }
 0xcf7   :  { %6188 = vmatpush.bf16.msra.mxu0 %v13082_v63 }
 0xcf9   :  { %8554 = vmatmul.msk.bf16.vlgmr.msrb.gmra.mxu2 %vm5497_vm1, %v9308_v57 }
 0xcfa   :  { %5895 = vmatpush.bf16.msra.mxu2 %v13088_v20  ;;  %8659 = vmatmul.msk.bf16.vlgmr.msrb.gmra.mxu0 %vm5497_vm1, %v9323_v33 }
 0xcfb   :  { %6189 = vmatpush.bf16.msra.mxu0 %v13088_v20 }
 0xcfe   :  { %5896 = vmatpush.bf16.msra.mxu2 %v13093_v48 }
 0xcff   :  { %6190 = vmatpush.bf16.msra.mxu0 %v13093_v48 }
 0xd02   :  { %5897 = vmatpush.bf16.msra.mxu2 %v13098_v62 }
 0xd03   :  { %6191 = vmatpush.bf16.msra.mxu0 %v13098_v62 }
 0xd06   :  { %5898 = vmatpush.bf16.msra.mxu2 %v13103_v9 }
 0xd07   :  { %6192 = vmatpush.bf16.msra.mxu0 %v13103_v9 }
 0xd09   :  { %8555 = vmatmul.msk.bf16.gmra.mxu2 %vm5497_vm1, %v5690_v22 }
 0xd0a   :  { %5899 = vmatpush.bf16.msra.mxu2 %v13108_v7  ;;  %8660 = vmatmul.msk.bf16.gmra.mxu0 %vm5497_vm1, %v5984_v13 }
 0xd0b   :  { %6193 = vmatpush.bf16.msra.mxu0 %v13108_v7 }
 0xd0e   :  { %5900 = vmatpush.bf16.msra.mxu2 %v13113_v52 }
 0xd0f   :  { %6194 = vmatpush.bf16.msra.mxu0 %v13113_v52 }
 0xd12   :  { %6090 = vmatpush.bf16.msrb.mxu2 %v13082_v63 }
 0xd16   :  { %6091 = vmatpush.bf16.msrb.mxu2 %v13088_v20 }
 0xd19   :  { %8624 = vmatmul.msk.bf16.vlgmr.msra.gmra.mxu2 %vm5497_vm1, %v9318_v4 }
 0xd1a   :  { %6092 = vmatpush.bf16.msrb.mxu2 %v13093_v48  ;;  %8729 = vmatmul.msk.bf16.vlgmr.msra.gmra.mxu0 %vm5497_vm1, %v9333_v58 }
 0xd1e   :  { %6093 = vmatpush.bf16.msrb.mxu2 %v13098_v62 }
 0xd22   :  { %6094 = vmatpush.bf16.msrb.mxu2 %v13103_v9 }
 0xd26   :  { %6095 = vmatpush.bf16.msrb.mxu2 %v13108_v7 }
 0xd29   :  { %8625 = vmatmul.msk.bf16.gmra.mxu2 %vm5497_vm1, %v5886_v53 }
 0xd2a   :  { %6096 = vmatpush.bf16.msrb.mxu2 %v13113_v52  ;;  %8730 = vmatmul.msk.bf16.gmra.mxu0 %vm5497_vm1, %v6180_v47  ;;  %v9336_v47 = vld [vmem:[%s13531_s11 + $0xf0] sm:$0xff] }
 0xd2e   :  { %6286 = vmatpush.bf16.msra.mxu2 %v13082_v63 }
 0xd32   :  { %6287 = vmatpush.bf16.msra.mxu2 %v13088_v20  ;;  %v9315_v20 = vld [vmem:[%s13531_s11 + $0x68] sm:$0xff] }
 0xd33   :  { %5860 = vmatpush.bf16.msra.mxu1 %v9315_v20 }
 0xd36   :  { %6288 = vmatpush.bf16.msra.mxu2 %v13093_v48 }
 0xd39   :  { %8694 = vmatmul.msk.bf16.vlgmr.msrb.gmra.mxu2 %vm5497_vm1, %v9328_v50  ;;  %v9337_v50 = vld [vmem:[%s13531_s11 + $0xf8] sm:$0xff] }
 0xd3a   :  { %6289 = vmatpush.bf16.msra.mxu2 %v13098_v62 }
 0xd3e   :  { %6290 = vmatpush.bf16.msra.mxu2 %v13103_v9  ;;  %v9314_v9 = vld [vmem:[%s13531_s11 + $0x60] sm:$0xff] }
 0xd3f   :  { %5861 = vmatpush.bf16.msra.mxu1 %v9314_v9 }
 0xd42   :  { %6291 = vmatpush.bf16.msra.mxu2 %v13108_v7 }
 0xd46   :  { %6292 = vmatpush.bf16.msra.mxu2 %v13113_v52 }
 0xd49   :  { %8695 = vmatmul.msk.bf16.gmra.mxu2 %vm5497_vm1, %v6082_v38 }
 0xd56   :  { %v5517_v2 = vpop.f32.mrf.mxu1 }
 0xd57   :  { %v5804_v16 = vpop.f32.mrf.mxu0 }
 0xd59   :  { %8764 = vmatmul.msk.bf16.vlgmr.msra.gmra.mxu2 %vm5497_vm1, %v9338_v61 }
 0xd5c   :  { %v5563_v59 = vpop.f32.mrf.mxu2 }
 0xd5e   :  { %v5519_v18 = vpop.f32.mrf.mxu1 }
 0xd5f   :  { %v5526_v60 = vpack.c.bf16 %v5519_v18, %v5517_v2  ;;  %v5806_v7 = vpop.f32.mrf.mxu0 }
 0xd60   :  { %v5813_v29 = vpack.c.bf16 %v5806_v7, %v5804_v16 }
 0xd61   :  { %8545 = vmatmul.msk.bf16.vlgmr.msrb.gmra.mxu1 %vm5255_vm9, %v5526_v60 }
 0xd62   :  { %6054 = vmatpush.bf16.msrb.mxu1 %v9327_v40 }
 0xd64   :  { %v5565_v23 = vpop.f32.mrf.mxu2 }
 0xd65   :  { %v5572_v21 = vpack.c.bf16 %v5565_v23, %v5563_v59 }
 0xd66   :  { %v5522_v63 = vpop.f32.mrf.mxu1  ;;  %6055 = vmatpush.bf16.msrb.mxu1 %v9326_v25 }
 0xd67   :  { %8527 = vmatmul.msk.bf16.vlgmr.msra.gmra.mxu3 %vm5255_vm9, %v5572_v21  ;;  %v5527_v62 = vpack.c.bf16 %v5522_v63, %v5522_v63  ;;  %v5809_v56 = vpop.f32.mrf.mxu0 }
 0xd68   :  { %5956 = vmatpush.bf16.msra.mxu3 %v9322_v42  ;;  %v5814_v4 = vpack.c.bf16 %v5809_v56, %v5809_v56 }
 0xd69   :  { %8765 = vmatmul.msk.bf16.gmra.mxu2 %vm5497_vm1, %v6278_v24 }
 0xd6a   :  { %6056 = vmatpush.bf16.msrb.mxu1 %v9325_v32 }
 0xd6c   :  { %v5568_v48 = vpop.f32.mrf.mxu2  ;;  %5957 = vmatpush.bf16.msra.mxu3 %v9321_v36 }
 0xd6d   :  { %v5573_v28 = vpack.c.bf16 %v5568_v48, %v5568_v48 }
 0xd6e   :  { %v5524_v52 = vpop.f32.mrf.mxu1  ;;  %6057 = vmatpush.bf16.msrb.mxu1 %v9324_v15 }
 0xd6f   :  { %v5811_v57 = vpop.f32.mrf.mxu0 }
 0xd70   :  { %5958 = vmatpush.bf16.msra.mxu3 %v9320_v19 }
 0xd71   :  { %8546 = vmatmul.msk.bf16.gmra.mxu1 %vm5255_vm9, %v5527_v62 }
 0xd74   :  { %v5570_v17 = vpop.f32.mrf.mxu2  ;;  %5959 = vmatpush.bf16.msra.mxu3 %v9319_v51 }
 0xd77   :  { %8528 = vmatmul.msk.bf16.gmra.mxu3 %vm5255_vm9, %v5573_v28  ;;  %v6000_v22 = vpop.f32.mrf.mxu0 }
 0xd7c   :  { %v5706_v35 = vpop.f32.mrf.mxu2 }
 0xd7f   :  { %v6002_v43 = vpop.f32.mrf.mxu0 }
 0xd80   :  { %v6009_v3 = vpack.c.bf16 %v6002_v43, %v6000_v22 }
 0xd81   :  { %8615 = vmatmul.msk.bf16.vlgmr.msra.gmra.mxu1 %vm5255_vm9, %v5813_v29 }
 0xd82   :  { %6250 = vmatpush.bf16.msra.mxu1 %v9337_v50 }
 0xd84   :  { %v5708_v8 = vpop.f32.mrf.mxu2 }
 0xd85   :  { %v5715_v49 = vpack.c.bf16 %v5708_v8, %v5706_v35 }
 0xd86   :  { %6251 = vmatpush.bf16.msra.mxu1 %v9336_v47 }
 0xd87   :  { %8580 = vmatmul.msk.bf16.vlgmr.msrb.gmra.mxu3 %vm5255_vm9, %v5715_v49  ;;  %v6005_v53 = vpop.f32.mrf.mxu0 }
 0xd88   :  { %6152 = vmatpush.bf16.msrb.mxu3 %v9332_v54  ;;  %v6010_v14 = vpack.c.bf16 %v6005_v53, %v6005_v53 }
 0xd8a   :  { %6252 = vmatpush.bf16.msra.mxu1 %v9335_v41 }
 0xd8c   :  { %v5711_v33 = vpop.f32.mrf.mxu2  ;;  %6153 = vmatpush.bf16.msrb.mxu3 %v9331_v30 }
 0xd8d   :  { %v5716_v39 = vpack.c.bf16 %v5711_v33, %v5711_v33 }
 0xd8e   :  { %6253 = vmatpush.bf16.msra.mxu1 %v9334_v10 }
 0xd8f   :  { %v6007_v1 = vpop.f32.mrf.mxu0 }
 0xd90   :  { %6154 = vmatpush.bf16.msrb.mxu3 %v9330_v11 }
 0xd91   :  { %8616 = vmatmul.msk.bf16.gmra.mxu1 %vm5255_vm9, %v5814_v4 }
 0xd94   :  { %v5713_v13 = vpop.f32.mrf.mxu2  ;;  %6155 = vmatpush.bf16.msrb.mxu3 %v9329_v26 }
 0xd97   :  { %8581 = vmatmul.msk.bf16.gmra.mxu3 %vm5255_vm9, %v5716_v39  ;;  %v6196_v46 = vpop.f32.mrf.mxu0 }
 0xd9c   :  { %v5902_v58 = vpop.f32.mrf.mxu2 }
 0xd9f   :  { %v6198_v2 = vpop.f32.mrf.mxu0 }
 0xda0   :  { %v6205_v34 = vpack.c.bf16 %v6198_v2, %v6196_v46 }
 0xda1   :  { %8685 = vmatmul.msk.bf16.vlgmr.msrb.gmra.mxu1 %vm5255_vm9, %v6009_v3 }
 0xda4   :  { %v5904_v0 = vpop.f32.mrf.mxu2 }
 0xda5   :  { %v5911_v44 = vpack.c.bf16 %v5904_v0, %v5902_v58 }
 0xda7   :  { %8650 = vmatmul.msk.bf16.vlgmr.msra.gmra.mxu3 %vm5255_vm9, %v5911_v44  ;;  %v6201_v18 = vpop.f32.mrf.mxu0 }
 0xda8   :  { %6348 = vmatpush.bf16.msra.mxu3 %v9342_v6  ;;  %v6206_v24 = vpack.c.bf16 %v6201_v18, %v6201_v18 }
 0xdac   :  { %v5907_v38 = vpop.f32.mrf.mxu2  ;;  %6349 = vmatpush.bf16.msra.mxu3 %v9341_v12 }
 0xdad   :  { %v5912_v61 = vpack.c.bf16 %v5907_v38, %v5907_v38 }
 0xdaf   :  { %v6203_v23 = vpop.f32.mrf.mxu0 }
 0xdb0   :  { %6350 = vmatpush.bf16.msra.mxu3 %v9340_v55 }
 0xdb1   :  { %8686 = vmatmul.msk.bf16.gmra.mxu1 %vm5255_vm9, %v6010_v14 }
 0xdb4   :  { %v5909_v37 = vpop.f32.mrf.mxu2  ;;  %6351 = vmatpush.bf16.msra.mxu3 %v9339_v5 }
 0xdb7   :  { %8651 = vmatmul.msk.bf16.gmra.mxu3 %vm5255_vm9, %v5912_v61 }
 0xdbc   :  { %v6098_v59 = vpop.f32.mrf.mxu2 }
 0xdc1   :  { %8755 = vmatmul.msk.bf16.vlgmr.msra.gmra.mxu1 %vm5255_vm9, %v6205_v34 }
 0xdc4   :  { %v6100_v31 = vpop.f32.mrf.mxu2 }
 0xdc5   :  { %v6107_v60 = vpack.c.bf16 %v6100_v31, %v6098_v59 }
 0xdc7   :  { %8720 = vmatmul.msk.bf16.vlgmr.msrb.gmra.mxu3 %vm5255_vm9, %v6107_v60 }
 0xdcc   :  { %v6103_v21 = vpop.f32.mrf.mxu2 }
 0xdcd   :  { %v6108_v16 = vpack.c.bf16 %v6103_v21, %v6103_v21 }
 0xdd1   :  { %8756 = vmatmul.msk.bf16.gmra.mxu1 %vm5255_vm9, %v6206_v24 }
 0xdd4   :  { %v6105_v45 = vpop.f32.mrf.mxu2 }
 0xdd5   :  { %v9383_v45 = vld [vmem:[%s13532_s12] ss:$0 sm:$0xff]  ;;  %s6932_s12 = sshll.u32 %s13537_s17, 4  ;;  %s6933_s12 = int_to_ptr.hbm [resolvable:$true] %s6932_s12 }
 0xdd7   :  { %8721 = vmatmul.msk.bf16.gmra.mxu3 %vm5255_vm9, %v6108_v16 }
 0xddc   :  { %v6294_v27 = vpop.f32.mrf.mxu2 }
 0xdde   :  { %v5670_v63 = vpop.f32.mrf.mxu1 }
 0xde4   :  { %v6296_v20 = vpop.f32.mrf.mxu2 }
 0xde5   :  { %v6303_v48 = vpack.c.bf16 %v6296_v20, %v6294_v27 }
 0xde6   :  { %v5672_v62 = vpop.f32.mrf.mxu1 }
 0xde7   :  { %8790 = vmatmul.msk.bf16.vlgmr.msra.gmra.mxu3 %vm5255_vm9, %v6303_v48 }
 0xdea   :  { %v5622_v9 = vpop.f32.mrf.mxu3 }
 0xdeb   :  { %v5671_v7 = vadd.f32 %v5670_v63, %v5622_v9 }
 0xdec   :  { %v6299_v52 = vpop.f32.mrf.mxu2 }
 0xded   :  { %v6304_v56 = vpack.c.bf16 %v6299_v52, %v6299_v52 }
 0xdee   :  { %v5675_v17 = vpop.f32.mrf.mxu1 }
 0xdf2   :  { %v5624_v28 = vpop.f32.mrf.mxu3 }
 0xdf3   :  { %v5673_v42 = vadd.f32 %v5672_v62, %v5624_v28 }
 0xdf4   :  { %v6301_v35 = vpop.f32.mrf.mxu2 }
 0xdf6   :  { %v5677_v36 = vpop.f32.mrf.mxu1 }
 0xdf7   :  { %8791 = vmatmul.msk.bf16.gmra.mxu3 %vm5255_vm9, %v6304_v56 }
 0xdfa   :  { %v5627_v40 = vpop.f32.mrf.mxu3 }
 0xdfb   :  { %v5676_v29 = vadd.f32 %v5675_v17, %v5627_v40 }
 0xdfe   :  { %v5863_v19 = vpop.f32.mrf.mxu1 }
 0xe02   :  { %v5629_v57 = vpop.f32.mrf.mxu3 }
 0xe06   :  { %v5865_v8 = vpop.f32.mrf.mxu1 }
 0xe0a   :  { %v5765_v49 = vpop.f32.mrf.mxu3 }
 0xe0b   :  { %v5774_v51 = vadd.f32 %v5765_v49, %v5671_v7 }
 0xe0d   :  { %v5872_v25 = vadd.f32 %v5863_v19, %v5774_v51 }
 0xe0e   :  { %v5868_v32 = vpop.f32.mrf.mxu1 }
 0xe12   :  { %v5767_v22 = vpop.f32.mrf.mxu3 }
 0xe13   :  { %v5775_v33 = vadd.f32 %v5767_v22, %v5673_v42 }
 0xe15   :  { %v5873_v4 = vadd.f32 %v5865_v8, %v5775_v33 }
 0xe16   :  { %v5870_v15 = vpop.f32.mrf.mxu1 }
 0xe1a   :  { %v5770_v43 = vpop.f32.mrf.mxu3 }
 0xe1b   :  { %v5776_v13 = vadd.f32 %v5770_v43, %v5676_v29 }
 0xe1d   :  { %v5874_v39 = vadd.f32 %v5868_v32, %v5776_v13 }
 0xe1e   :  { %v6059_v54 = vpop.f32.mrf.mxu1 }
 0xe22   :  { %v5772_v53 = vpop.f32.mrf.mxu3 }
 0xe26   :  { %v6061_v58 = vpop.f32.mrf.mxu1 }
 0xe2a   :  { %v5961_v30 = vpop.f32.mrf.mxu3 }
 0xe2b   :  { %v5970_v50 = vadd.f32 %v5961_v30, %v5872_v25 }
 0xe2d   :  { %v6068_v3 = vadd.f32 %v6059_v54, %v5970_v50 }
 0xe2e   :  { %v6064_v11 = vpop.f32.mrf.mxu1 }
 0xe32   :  { %v5963_v1 = vpop.f32.mrf.mxu3 }
 0xe33   :  { %v5971_v0 = vadd.f32 %v5963_v1, %v5873_v4  ;;  %v9362_v1 = vld [vmem:[%s13535_s15 + $0x98] sm:$0xff] }
 0xe34   :  { %6693 = vmatpush.bf16.msrb.mxu3 %v9362_v1 }
 0xe35   :  { %v6069_v44 = vadd.f32 %v6061_v58, %v5971_v0  ;;  %v9350_v0 = vld [vmem:[%s13535_s15 + $0x38] sm:$0xff] }
 0xe36   :  { %v6066_v26 = vpop.f32.mrf.mxu1  ;;  %6493 = vmatpush.bf16.msrb.mxu0 %v9350_v0 }
 0xe37   :  { %v9358_v26 = vld [vmem:[%s13535_s15 + $0x78] sm:$0xff] }
 0xe38   :  { %6642 = vmatpush.bf16.msrb.mxu2 %v9358_v26 }
 0xe3a   :  { %v5966_v47 = vpop.f32.mrf.mxu3 }
 0xe3b   :  { %v5972_v41 = vadd.f32 %v5966_v47, %v5874_v39  ;;  %v9361_v47 = vld [vmem:[%s13535_s15 + $0x90] sm:$0xff] }
 0xe3c   :  { %6694 = vmatpush.bf16.msrb.mxu3 %v9361_v47  ;;  %v9366_v47 = vld [vmem:[%s13535_s15 + $0xb8] sm:$0xff] }
 0xe3d   :  { %v6070_v38 = vadd.f32 %v6064_v11, %v5972_v41  ;;  %v9349_v41 = vld [vmem:[%s13535_s15 + $0x30] sm:$0xff] }
 0xe3e   :  { %v6255_v46 = vpop.f32.mrf.mxu1  ;;  %6494 = vmatpush.bf16.msrb.mxu0 %v9349_v41 }
 0xe42   :  { %v5968_v14 = vpop.f32.mrf.mxu3 }
 0xe46   :  { %v6257_v10 = vpop.f32.mrf.mxu1 }
 0xe4a   :  { %v6157_v37 = vpop.f32.mrf.mxu3 }
 0xe4b   :  { %v6166_v55 = vadd.f32 %v6157_v37, %v6068_v3  ;;  %v9360_v37 = vld [vmem:[%s13535_s15 + $0x88] sm:$0xff] }
 0xe4c   :  { %6695 = vmatpush.bf16.msrb.mxu3 %v9360_v37 }
 0xe4d   :  { %v6264_v5 = vadd.f32 %v6255_v46, %v6166_v55  ;;  %v9357_v46 = vld [vmem:[%s13535_s15 + $0x70] sm:$0xff] }
 0xe4e   :  { %v6260_v61 = vpop.f32.mrf.mxu1  ;;  %6643 = vmatpush.bf16.msrb.mxu2 %v9357_v46 }
 0xe52   :  { %v6159_v2 = vpop.f32.mrf.mxu3 }
 0xe53   :  { %v6167_v18 = vadd.f32 %v6159_v2, %v6069_v44  ;;  %v9354_v44 = vld [vmem:[%s13535_s15 + $0x58] sm:$0xff] }
 0xe54   :  { %6587 = vmatpush.bf16.msrb.mxu1 %v9354_v44 }
 0xe55   :  { %v6265_v31 = vadd.f32 %v6257_v10, %v6167_v18  ;;  %v9347_v18 = vld [vmem:[%s13535_s15 + $0x20] sm:$0xff] }
 0xe56   :  { %v6262_v6 = vpop.f32.mrf.mxu1 }
 0xe57   :  { %v9352_v6 = vld [vmem:[%s13535_s15 + $0x48] sm:$0xff] }
 0xe5a   :  { %v6162_v59 = vpop.f32.mrf.mxu3 }
 0xe5b   :  { %v6168_v21 = vadd.f32 %v6162_v59, %v6070_v38  ;;  %v9353_v38 = vld [vmem:[%s13535_s15 + $0x50] sm:$0xff]  ;;  %v9356_v59 = vld [vmem:[%s13535_s15 + $0x68] sm:$0xff] }
 0xe5c   :  { %6588 = vmatpush.bf16.msrb.mxu1 %v9353_v38  ;;  %6644 = vmatpush.bf16.msrb.mxu2 %v9356_v59  ;;  %v9363_v59 = vld [vmem:[%s13535_s15 + $0xa0] sm:$0xff] }
 0xe5d   :  { %v6266_v27 = vadd.f32 %v6260_v61, %v6168_v21  ;;  %v9348_v61 = vld [vmem:[%s13535_s15 + $0x28] sm:$0xff] }
 0xe5e   :  { %6495 = vmatpush.bf16.msrb.mxu0 %v9348_v61  ;;  %v9364_v61 = vld [vmem:[%s13535_s15 + $0xa8] sm:$0xff] }
 0xe60   :  { %6589 = vmatpush.bf16.msrb.mxu1 %v9352_v6 }
 0xe62   :  { %v6164_v12 = vpop.f32.mrf.mxu3  ;;  %6496 = vmatpush.bf16.msrb.mxu0 %v9347_v18 }
 0xe6a   :  { %v6353_v34 = vpop.f32.mrf.mxu3 }
 0xe6b   :  { %v6362_v24 = vadd.f32 %v6353_v34, %v6264_v5  ;;  %v9359_v34 = vld [vmem:[%s13535_s15 + $0x80] sm:$0xff] }
 0xe6c   :  { %v6372_v5 = vld [vmem:[%s13533_s13] sm:$0x1]  ;;  %6696 = vmatpush.bf16.msrb.mxu3 %v9359_v34 }
 0xe6d   :  { %v13363_v63 = vadd.f32 %v9383_v45, %v6362_v24  ;;  %v9346_v24 = vld [vmem:[%s13535_s15 + $0x18] sm:$0xff] }
 0xe6e   :  { %6533 = vmatpush.bf16.msra.mxu0 %v9346_v24 }
 0xe6f   :  { %v6374_v9 = vsel %vm5255_vm9, %v13363_v63, 0.0 }
 0xe72   :  { %v6355_v60 = vpop.f32.mrf.mxu3 }
 0xe73   :  { %v6363_v23 = vadd.f32 %v6355_v60, %v6265_v31  ;;  %v9378_v31 = vld [vmem:[%s13535_s15 + $0x118] sm:$0xff]  ;;  %v9351_v60 = vld [vmem:[%s13535_s15 + $0x40] sm:$0xff] }
 0xe74   :  { %6909 = vmatpush.bf16.msra.mxu3 %v9378_v31  ;;  %6590 = vmatpush.bf16.msrb.mxu1 %v9351_v60 }
 0xe75   :  { %v13361_v16 = vadd.f32 %v9383_v45, %v6363_v23  ;;  %v9355_v23 = vld [vmem:[%s13535_s15 + $0x60] sm:$0xff] }
 0xe76   :  { %6645 = vmatpush.bf16.msrb.mxu2 %v9355_v23 }
 0xe77   :  { %v6375_v48 = vsel %vm5255_vm9, %v13361_v16, 0.0 }
 0xe78   :  { %v6376_v52 = vadd.f32 %v6375_v48, %v6374_v9  ;;  %v9377_v48 = vld [vmem:[%s13535_s15 + $0x110] sm:$0xff] }
 0xe79   :  { %v9345_v9 = vld [vmem:[%s13535_s15 + $0x10] sm:$0xff]  ;;  %6910 = vmatpush.bf16.msra.mxu3 %v9377_v48 }
 0xe7a   :  { %v6358_v20 = vpop.f32.mrf.mxu3  ;;  %6534 = vmatpush.bf16.msra.mxu0 %v9345_v9 }
 0xe7b   :  { %v6364_v62 = vadd.f32 %v6358_v20, %v6266_v27  ;;  %v9374_v27 = vld [vmem:[%s13535_s15 + $0xf8] sm:$0xff] }
 0xe7c   :  { %6858 = vmatpush.bf16.msra.mxu2 %v9374_v27 }
 0xe7d   :  { %v13369_v7 = vadd.f32 %v9383_v45, %v6364_v62  ;;  %v9370_v45 = vld [vmem:[%s13535_s15 + $0xd8] sm:$0xff] }
 0xe7e   :  { %6803 = vmatpush.bf16.msra.mxu1 %v9370_v45 }
 0xe7f   :  { %v6377_v17 = vsel %vm5279_vm10, %v13369_v7, 0.0 }
 0xe80   :  { %v6378_v28 = vadd.f32 %v6377_v17, %v6376_v52  ;;  %v6373_v52 = vld [vmem:[%s13534_s14] sm:$0x1]  ;;  %v9369_v17 = vld [vmem:[%s13535_s15 + $0xd0] sm:$0xff] }
 0xe82   :  { %v6379_v42 = vrot.slane %v6378_v28, 4  ;;  %v6360_v56 = vpop.f32.mrf.mxu3  ;;  %6804 = vmatpush.bf16.msra.mxu1 %v9369_v17 }
 0xe84   :  { %v6380_v35 = vadd.f32 %v6379_v42, %v6378_v28  ;;  %v9373_v28 = vld [vmem:[%s13535_s15 + $0xf0] sm:$0xff] }
 0xe85   :  { %6859 = vmatpush.bf16.msra.mxu2 %v9373_v28 }
 0xe86   :  { %v6381_v36 = vrot.slane %v6380_v35, 2 }
 0xe88   :  { %v6382_v40 = vadd.f32 %v6381_v36, %v6380_v35  ;;  %v9376_v35 = vld [vmem:[%s13535_s15 + $0x108] sm:$0xff] }
 0xe89   :  { %6911 = vmatpush.bf16.msra.mxu3 %v9376_v35 }
 0xe8a   :  { %v6383_v29 = vrot.slane %v6382_v40, 1 }
 0xe8c   :  { %v6384_v19 = vadd.f32 %v6383_v29, %v6382_v40  ;;  %v9344_v29 = vld [vmem:[%s13535_s15 + $0x8] sm:$0xff] }
 0xe8d   :  { %6535 = vmatpush.bf16.msra.mxu0 %v9344_v29 }
 0xe8e   :  { %v13373_v57 = vmul.f32 0.055555556, %v6384_v19  ;;  %v9368_v19 = vld [vmem:[%s13535_s15 + $0xc8] sm:$0xff] }
 0xe8f   :  { %6805 = vmatpush.bf16.msra.mxu1 %v9368_v19 }
 0xe90   :  { %v6386_v8 = vsub.f32 %v13363_v63, %v13373_v57  ;;  %v6387_v49 = vsub.f32 %v13361_v16, %v13373_v57  ;;  %v6388_v51 = vsub.f32 %v13369_v7, %v13373_v57 }
 0xe92   :  { %v6389_v25 = vmul.f32 %v6386_v8, %v6386_v8  ;;  %v6390_v32 = vmul.f32 %v6387_v49, %v6387_v49  ;;  %v6391_v22 = vmul.f32 %v6388_v51, %v6388_v51  ;;  %v9375_v51 = vld [vmem:[%s13535_s15 + $0x100] sm:$0xff] }
 0xe93   :  { %6912 = vmatpush.bf16.msra.mxu3 %v9375_v51 }
 0xe94   :  { %v6392_v33 = vsel %vm5255_vm9, %v6389_v25, 0.0  ;;  %v6393_v4 = vsel %vm5255_vm9, %v6390_v32, 0.0  ;;  %v6395_v43 = vsel %vm5279_vm10, %v6391_v22, 0.0 }
 0xe95   :  { %v6394_v15 = vadd.f32 %v6393_v4, %v6392_v33  ;;  %v9343_v33 = vld [vmem:[%s13535_s15] sm:$0xff] }
 0xe96   :  { %6536 = vmatpush.bf16.msra.mxu0 %v9343_v33  ;;  %v9384_v33 = vld [vmem:[%s13536_s16] ss:$0 sm:$0xff] }
 0xe97   :  { %v6396_v13 = vadd.f32 %v6395_v43, %v6394_v15 }
 0xe99   :  { %v6397_v39 = vrot.slane %v6396_v13, 4 }
 0xe9b   :  { %v6398_v54 = vadd.f32 %v6397_v39, %v6396_v13 }
 0xe9d   :  { %v6399_v53 = vrot.slane %v6398_v54, 2 }
 0xe9f   :  { %v6400_v58 = vadd.f32 %v6399_v53, %v6398_v54 }
 0xea1   :  { %v6401_v30 = vrot.slane %v6400_v58, 1 }
 0xea3   :  { %v6402_v50 = vadd.f32 %v6401_v30, %v6400_v58 }
 0xea5   :  { %v6403_v3 = vmul.f32 0.055555556, %v6402_v50 }
 0xea7   :  { %v6404_v11 = vadd.f32 1e-05, %v6403_v3 }
 0xea9   :  { %9389 = vrsqrt.f32 %v6404_v11  ;;  %vm6411_vm3 = vweird.f32 %v6404_v11 }
 0xeaf   :  { %v9390_v14 = vpop.eup %9389 }
 0xeb0   :  { %v6406_v10 = vmul.f32 %v9390_v14, %v6404_v11  ;;  %vm6412_vm2 = vweird.f32 %v9390_v14 }
 0xeb1   :  { %vm6413_vm4 = vmor %vm6411_vm3, %vm6412_vm2 }
 0xeb2   :  { %v6407_v2 = vmul.f32 %v9390_v14, %v6406_v10 }
 0xeb4   :  { %v6408_v12 = vmul.f32 0.5, %v6407_v2 }
 0xeb6   :  { %v6409_v55 = vsub.f32 1.5, %v6408_v12 }
 0xeb8   :  { %v6410_v21 = vmul.f32 %v9390_v14, %v6409_v55 }
 0xeba   :  { %v6414_v20 = vsel %vm6413_vm4, %v9390_v14, %v6410_v21  ;;  %v9365_v14 = vld [vmem:[%s13535_s15 + $0xb0] sm:$0xff] }
 0xebb   :  { %v6415_v62 = vmul.f32 %v6414_v20, %v6372_v5 }
 0xebd   :  { %v6416_v42 = vmul.f32 %v6415_v62, %v13373_v57  ;;  %v6419_v56 = vperm.slane %v6415_v62, 0  ;;  %v9372_v57 = vld [vmem:[%s13535_s15 + $0xe8] sm:$0xff] }
 0xebe   :  { %6860 = vmatpush.bf16.msra.mxu2 %v9372_v57 }
 0xebf   :  { %v6417_v36 = vsub.f32 %v6373_v52, %v6416_v42  ;;  %v6423_v40 = vmul.f32 %v6419_v56, %v13369_v7  ;;  %v6421_v8 = vmul.f32 %v6419_v56, %v13363_v63  ;;  %v6422_v49 = vmul.f32 %v6419_v56, %v13361_v16  ;;  %v9367_v16 = vld [vmem:[%s13535_s15 + $0xc0] sm:$0xff] }
 0xec0   :  { %v9371_v63 = vld [vmem:[%s13535_s15 + $0xe0] sm:$0xff]  ;;  %6806 = vmatpush.bf16.msra.mxu1 %v9367_v16 }
 0xec1   :  { %v6425_v7 = vperm.slane %v6417_v36, 0 }
 0xec2   :  { %6861 = vmatpush.bf16.msra.mxu2 %v9371_v63 }
 0xec3   :  { %v6427_v25 = vadd.f32 %v6425_v7, %v6421_v8  ;;  %v6428_v32 = vadd.f32 %v6425_v7, %v6422_v49  ;;  %v6429_v22 = vadd.f32 %v6425_v7, %v6423_v40 }
 0xec5   :  { %v6430_v4 = vmax.f32 %v6427_v25, 0.0  ;;  %v6431_v15 = vmax.f32 %v6428_v32, 0.0  ;;  %v6432_v43 = vmax.f32 %v6429_v22, 0.0 }
 0xec7   :  { %v6433_v13 = vpack.c.bf16 %v6430_v4, %v6430_v4  ;;  %v6434_v39 = vpack.c.bf16 %v6431_v15, %v6431_v15  ;;  %v6435_v54 = vpack.c.bf16 %v6432_v43, %v6432_v43 }
 0xec9   :  { %6436 = vst.msk [vmem:[#allocation4] sm:$0xf] %vm5419_vm15, %v6433_v13 }
 0xeca   :  { %6437 = vst.msk [vmem:[#allocation4 + $0x4] sm:$0xf] %vm5419_vm15, %v6434_v39 }
 0xecb   :  { %6438 = vst.msk [vmem:[#allocation4 + $0x8] sm:$0x1] %vm5432_vm14, %v6435_v54 }
 0xed0   :  { %v6448_v53 = vld [vmem:[#allocation4] sm:$0x2]  ;;  %v6542_v58 = vld [vmem:[#allocation4] sm:$0x4]  ;;  %v6597_v30 = vld [vmem:[#allocation4] sm:$0x8] }
 0xed1   :  { %v6652_v50 = vld [vmem:[#allocation4 + $0x4] sm:$0x1]  ;;  %v6459_v3 = vunpack.c.l.b16 %v6448_v53  ;;  %v6553_v11 = vunpack.c.l.b16 %v6542_v58  ;;  %v6608_v1 = vunpack.c.l.b16 %v6597_v30  ;;  %v6758_v10 = vld [vmem:[#allocation4 + $0x4] sm:$0x4]  ;;  %v6813_v37 = vld [vmem:[#allocation4 + $0x4] sm:$0x8] }
 0xed2   :  { %8908 = vmatmul.msk.bf16.vlgmr.msrb.gmra.mxu3 %vm5255_vm9, %v6652_v50  ;;  %v6769_v2 = vunpack.c.l.b16 %v6758_v10  ;;  %v6824_v6 = vunpack.c.l.b16 %v6813_v37  ;;  %v6868_v12 = vld [vmem:[#allocation4 + $0x8] sm:$0x1]  ;;  %v6439_v31 = vld [vmem:[#allocation4] sm:$0x1]  ;;  %v6703_v5 = vld [vmem:[#allocation4 + $0x4] sm:$0x2] }
 0xed3   :  { %v6460_v0 = vpack.c.b16 %v6459_v3, %v6459_v3  ;;  %v6554_v44 = vpack.c.b16 %v6553_v11, %v6553_v11  ;;  %v6609_v26 = vpack.c.b16 %v6608_v1, %v6608_v1  ;;  %v6714_v23 = vunpack.c.l.b16 %v6703_v5 }
 0xed4   :  { %v6770_v34 = vpack.c.b16 %v6769_v2, %v6769_v2  ;;  %v6825_v18 = vpack.c.b16 %v6824_v6, %v6824_v6 }
 0xed5   :  { %v6461_v41 = vrot.slane %v6460_v0, 1  ;;  %v6555_v38 = vrot.slane %v6554_v44, 2  ;;  %v6610_v46 = vrot.slane %v6609_v26, 3  ;;  %v6715_v21 = vpack.c.b16 %v6714_v23, %v6714_v23 }
 0xed6   :  { %v6771_v55 = vrot.slane %v6770_v34, 2  ;;  %v6826_v60 = vrot.slane %v6825_v18, 3 }
 0xed7   :  { %8816 = vmatmul.msk.bf16.vlgmr.msrb.gmra.mxu0 %vm5255_vm9, %v6461_v41  ;;  %8858 = vmatmul.msk.bf16.vlgmr.msrb.gmra.mxu1 %vm5255_vm9, %v6555_v38  ;;  %v6716_v24 = vrot.slane %v6715_v21, 1 }
 0xed8   :  { %8883 = vmatmul.msk.bf16.vlgmr.msrb.gmra.mxu2 %vm5255_vm9, %v6610_v46  ;;  %6748 = vmatpush.bf16.msrb.mxu0 %v9366_v47 }
 0xedc   :  { %6749 = vmatpush.bf16.msrb.mxu0 %v9365_v14 }
 0xee0   :  { %6750 = vmatpush.bf16.msrb.mxu0 %v9364_v61 }
 0xee2   :  { %9008 = vmatmul.msk.bf16.vlgmr.msra.gmra.mxu3 %vm5255_vm9, %v6868_v12 }
 0xee4   :  { %6751 = vmatpush.bf16.msrb.mxu0 %v9363_v59 }
 0xee7   :  { %8833 = vmatmul.msk.bf16.vlgmr.msra.gmra.mxu0 %vm5255_vm9, %v6439_v31  ;;  %8958 = vmatmul.msk.bf16.vlgmr.msra.gmra.mxu1 %vm5255_vm9, %v6771_v55 }
 0xee8   :  { %8983 = vmatmul.msk.bf16.vlgmr.msra.gmra.mxu2 %vm5255_vm9, %v6826_v60 }
 0xef7   :  { %8933 = vmatmul.msk.bf16.vlgmr.msrb.gmra.mxu0 %vm5255_vm9, %v6716_v24 }
 0xf54   :  { %v6498_v45 = vpop.f32.mrf.mxu0  ;;  %v6592_v27 = vpop.f32.mrf.mxu1 }
 0xf55   :  { %v6698_v20 = vpop.f32.mrf.mxu3 }
 0xf5b   :  { %v6647_v48 = vpop.f32.mrf.mxu2 }
 0xf5c   :  { %v6500_v62 = vpop.f32.mrf.mxu0  ;;  %v6594_v9 = vpop.f32.mrf.mxu1 }
 0xf5d   :  { %v6700_v52 = vpop.f32.mrf.mxu3 }
 0xf63   :  { %v6649_v17 = vpop.f32.mrf.mxu2 }
 0xf64   :  { %v6538_v28 = vpop.f32.mrf.mxu0  ;;  %v6808_v42 = vpop.f32.mrf.mxu1 }
 0xf65   :  { %v6914_v56 = vpop.f32.mrf.mxu3  ;;  %v6539_v35 = vadd.f32 %v6538_v28, %v6498_v45 }
 0xf67   :  { %v6596_v36 = vadd.f32 %v6592_v27, %v6539_v35 }
 0xf69   :  { %v6651_v8 = vadd.f32 %v6647_v48, %v6596_v36 }
 0xf6b   :  { %v6863_v40 = vpop.f32.mrf.mxu2  ;;  %v6702_v7 = vadd.f32 %v6698_v20, %v6651_v8 }
 0xf6c   :  { %v6540_v29 = vpop.f32.mrf.mxu0  ;;  %v6810_v19 = vpop.f32.mrf.mxu1 }
 0xf6d   :  { %v6916_v57 = vpop.f32.mrf.mxu3 }
 0xf73   :  { %v6865_v49 = vpop.f32.mrf.mxu2 }
 0xf74   :  { %v6753_v51 = vpop.f32.mrf.mxu0 }
 0xf75   :  { %v6757_v25 = vadd.f32 %v6753_v51, %v6702_v7 }
 0xf77   :  { %v6812_v32 = vadd.f32 %v6808_v42, %v6757_v25 }
 0xf79   :  { %v6867_v22 = vadd.f32 %v6863_v40, %v6812_v32 }
 0xf7b   :  { %v6918_v16 = vadd.f32 %v6914_v56, %v6867_v22 }
 0xf7c   :  { %v6755_v63 = vpop.f32.mrf.mxu0 }
 0xf7d   :  { %v6923_v4 = vadd.f32 %v9384_v33, %v6918_v16 }
 0xf7f   :  { %6924 = vst [vmem:[#allocation5] sm:$0x3] %v6923_v4 }
 0xf80   :  { %6935 = dma.vmem_to_hbm [thread:$0]  %s6931_s3, 32, %s6933_s12, [#allocation6]  }
 0xf81   :  { %9474 = dma.done.wait [#allocation6], 32  }
 0xf82   :  { %9475 = vsyncadd [#allocation6], 4294967264 }
 0xf83   :  { %6940 = vsyncpa [#allocation6], 1 }

</bundles_post_ra>
